<compile_context>
chip_gen: v5e
topology: v5e:2x2
jax: 0.10.0
libtpu: 0.0.40
codegen_flags: <defaults>
</compile_context>

<pallas_src>
import functools

import jax
import jax.numpy as jnp
import numpy as np
from jax.experimental import pallas as pl
from jax.experimental.pallas import tpu as pltpu

LANE = 128


# ----------------------------- utilities -----------------------------------

def _round_up(n, m):
    return ((n + m - 1) // m) * m


def _pick_tile_m(M):
    """Split M only when each grid step has real work; otherwise one block."""
    if M >= 1024:
        return 512
    if M >= 512:
        return 256
    return M


# --------------------------- Pallas kernels ---------------------------------

def _matmul_bias_kernel(x_ref, w_ref, b_ref, o_ref, *, relu):
    # x_ref: (tm, Kp) bf16, w_ref: (Kp, Np) bf16, b_ref: (1, Np) f32,
    # o_ref: (tm, Np) bf16.  MXU accumulates in f32; bias/ReLU in f32.
    acc = jnp.dot(x_ref[...], w_ref[...], preferred_element_type=jnp.float32)
    acc = acc + b_ref[...]
    if relu:
        acc = jnp.maximum(acc, 0.0)
    o_ref[...] = acc.astype(o_ref.dtype)


def _tail_kernel(x_ref, w6_ref, b6_ref, w7_ref, b7_ref, w8_ref, b8_ref, o_ref):
    # Fused layers 6 (2x2 -> 1x1), 7, 8 (1x1 -> 1x1) + spatial mean + *0.01.
    h = jnp.dot(x_ref[...], w6_ref[...], preferred_element_type=jnp.float32)
    h = jnp.maximum(h + b6_ref[...], 0.0)
    h = jnp.dot(h.astype(jnp.bfloat16), w7_ref[...],
                preferred_element_type=jnp.float32)
    h = jnp.maximum(h + b7_ref[...], 0.0)
    h = jnp.dot(h.astype(jnp.bfloat16), w8_ref[...],
                preferred_element_type=jnp.float32)
    h = h + b8_ref[...]
    # Match the unfused path / reference, which store the final conv output
    # as bf16 before the mean.
    h = h.astype(jnp.bfloat16).astype(jnp.float32)
    o_ref[...] = h * 0.01


def _mean_scale_kernel(x_ref, o_ref, *, scale):
    # Fallback path only: (B, S, C) bf16 -> (B, 1, C) f32 = sum_S * scale.
    x = x_ref[...].astype(jnp.float32)
    o_ref[...] = jnp.sum(x, axis=1, keepdims=True) * scale


# ------------------------------ wrappers -------------------------------------

def matmul_bias_relu(x, w, b, relu):
    """x: (M, Kp) bf16, w: (Kp, Np) bf16, b: (1, Np) f32 -> (M, Np) bf16."""
    M, K = x.shape
    Kw, N = w.shape
    assert Kw == K and K % LANE == 0 and N % LANE == 0
    tm = _pick_tile_m(M)
    Mp = _round_up(M, tm)
    if Mp != M:  # pad rows so every grid step reads real (zero) data
        x = jnp.pad(x, ((0, Mp - M), (0, 0)))
    y = pl.pallas_call(
        functools.partial(_matmul_bias_kernel, relu=relu),
        out_shape=jax.ShapeDtypeStruct((Mp, N), jnp.bfloat16),
        grid_spec=pltpu.PrefetchScalarGridSpec(
            num_scalar_prefetch=0,
            grid=(Mp // tm,),
            in_specs=[
                pl.BlockSpec((tm, K), lambda i: (i, 0)),   # patches tile
                pl.BlockSpec((K, N), lambda i: (0, 0)),    # stationary weight
                pl.BlockSpec((1, N), lambda i: (0, 0)),    # stationary bias
            ],
            out_specs=pl.BlockSpec((tm, N), lambda i: (i, 0)),
        ),
        compiler_params=pltpu.CompilerParams(
            dimension_semantics=("parallel",),
            vmem_limit_bytes=32 * 1024 * 1024),
    )(x, w, b)
    return y[:M] if Mp != M else y


def mean_scale(x, scale):
    """Fallback only. x: (B, S, C) -> (B, C) f32 : (sum over S) * scale."""
    B, S, C = x.shape
    out = pl.pallas_call(
        functools.partial(_mean_scale_kernel, scale=scale),
        out_shape=jax.ShapeDtypeStruct((B, 1, C), jnp.float32),
        grid=(1,),
        in_specs=[pl.BlockSpec((B, S, C), lambda i: (0, 0, 0))],
        out_specs=pl.BlockSpec((B, 1, C), lambda i: (0, 0, 0)),
    )(x)
    return out[:, 0, :]


# ------------------------------ conv glue -----------------------------------

def im2col_nhwc(x, cin, k, stride, pad):
    """x: (B, H, W, Cpad) NHWC -> patches (B*Hout*Wout, Kp), K=(kh,kw,c) order,
    zero-padded along K to a multiple of 128.  Only the first `cin` channels
    (the real ones) are used; lane-padding channels from the previous layer
    are dropped here for free."""
    B, H, W, _ = x.shape
    x = x[..., :cin]
    Hout = (H + 2 * pad - k) // stride + 1
    Wout = (W + 2 * pad - k) // stride + 1
    xp = jnp.pad(x, ((0, 0), (pad, pad), (pad, pad), (0, 0)))
    taps = []
    for i in range(k):
        for j in range(k):
            taps.append(
                xp[:, i:i + stride * Hout:stride, j:j + stride * Wout:stride, :])
    patches = jnp.stack(taps, axis=3)                 # (B, Hout, Wout, k*k, C)
    patches = patches.reshape(B * Hout * Wout, k * k * cin)
    K = k * k * cin
    Kp = _round_up(K, LANE)
    if Kp != K:
        patches = jnp.pad(patches, ((0, 0), (0, Kp - K)))
    return patches, Hout, Wout


def conv2d_pallas(h, w, b, stride, pad, relu):
    """PyTorch-semantics Conv2d on NHWC bf16 activations; weights OIHW f32.
    Returns a lane-dense (B, Hout, Wout, Np) activation with Cout zero-padded
    to a multiple of 128."""
    B = h.shape[0]
    Cout, Cin, k, _ = w.shape
    patches, Hout, Wout = im2col_nhwc(h, Cin, k, stride, pad)   # (M, Kp) bf16
    K = k * k * Cin
    Kp = _round_up(K, LANE)
    Np = _round_up(Cout, LANE)
    wm = w.transpose(2, 3, 1, 0).reshape(K, Cout).astype(jnp.bfloat16)
    wm = jnp.pad(wm, ((0, Kp - K), (0, Np - Cout)))             # zero pad K, N
    bm = jnp.pad(b.reshape(1, Cout).astype(jnp.float32),
                 ((0, 0), (0, Np - Cout)))
    y = matmul_bias_relu(patches, wm, bm, relu)                 # (M, Np) bf16
    return y.reshape(B, Hout, Wout, Np)


# --------------------------- fused tail (layers 6-8 + mean) ------------------

def _tail_fusible(h, tail):
    if h.shape[1] != 2 or h.shape[2] != 2:
        return False
    want_relu = [True, True, False]
    for (w, _b, stride, pad, relu), wr in zip(tail, want_relu):
        if w.shape[2] != 3 or w.shape[3] != 3 or stride != 2 or pad != 1:
            return False
        if relu != wr:
            return False
    return True


def fused_tail(h5, p6, p7, p8):
    """h5: (B, 2, 2, 256) bf16.  With k=3, s=2, p=1 the three tail convs see
    2x2 -> 1x1 -> 1x1 spatial, so only the taps landing on real pixels
    contribute and each conv is exactly a matmul.  Everything (plus the mean
    and the 0.01 scale) runs in one VMEM-resident kernel."""
    w6, b6 = p6[0], p6[1]
    w7, b7 = p7[0], p7[1]
    w8, b8 = p8[0], p8[1]
    B = h5.shape[0]
    C6 = w6.shape[1]
    x6 = h5[..., :C6].reshape(B, 4 * C6)               # (h, w, c) flatten

    # layer 6: output (0,0) sees taps (kh,kw) in {1,2}x{1,2} at pixels
    # (0,0),(0,1),(1,0),(1,1) of the 2x2 input -> concat those tap matrices.
    taps = [(1, 1), (1, 2), (2, 1), (2, 2)]
    w6cat = jnp.concatenate(
        [w6[:, :, kh, kw].T for (kh, kw) in taps], axis=0).astype(jnp.bfloat16)
    b6m = b6.reshape(1, -1).astype(jnp.float32)

    # layers 7/8 on 1x1 input: only the centre tap (1,1) hits a real pixel.
    w7c = w7[:, :, 1, 1].T.astype(jnp.bfloat16)
    b7m = b7.reshape(1, -1).astype(jnp.float32)
    Cout8 = w8.shape[0]
    Np = _round_up(Cout8, LANE)                        # lane-dense final store
    w8c = jnp.pad(w8[:, :, 1, 1].T.astype(jnp.bfloat16),
                  ((0, 0), (0, Np - Cout8)))
    b8m = jnp.pad(b8.reshape(1, Cout8).astype(jnp.float32),
                  ((0, 0), (0, Np - Cout8)))

    args = (x6, w6cat, b6m, w7c, b7m, w8c, b8m)
    out = pl.pallas_call(
        _tail_kernel,
        out_shape=jax.ShapeDtypeStruct((B, Np), jnp.float32),
        grid=(1,),
        in_specs=[pl.BlockSpec(a.shape, lambda i: (0, 0)) for a in args],
        out_specs=pl.BlockSpec((B, Np), lambda i: (0, 0)),
        compiler_params=pltpu.CompilerParams(
            vmem_limit_bytes=32 * 1024 * 1024),
    )(*args)
    return out[:, :Cout8]


# ------------------------------ PoseNet -------------------------------------

def posenet_layer_cfg(bundle_size):
    # (in_c, out_c, kernel, stride, pad, relu)
    return [
        (bundle_size * 3, 16, 7, 2, 3, True),
        (16, 32, 5, 2, 2, True),
        (32, 64, 3, 2, 1, True),
        (64, 128, 3, 2, 1, True),
        (128, 256, 3, 2, 1, True),
        (256, 256, 3, 2, 1, True),
        (256, 256, 3, 2, 1, True),
        (256, 6 * (bundle_size - 1), 3, 2, 1, False),
    ]


def init_params(key, bundle_size):
    params = []
    for (cin, cout, k, stride, pad, relu) in posenet_layer_cfg(bundle_size):
        key, kw, kb = jax.random.split(key, 3)
        fan_in = cin * k * k
        scale = 1.0 / np.sqrt(fan_in)
        w = jax.random.normal(kw, (cout, cin, k, k), jnp.float32) * scale
        b = jax.random.normal(kb, (cout,), jnp.float32) * 0.01
        params.append((w, b, stride, pad, relu))
    return params


def posenet_forward(x, params, bundle_size):
    assert x.shape[1] == bundle_size * 3
    B = x.shape[0]
    # bf16 cast BEFORE the boundary transpose (halves transpose bytes).
    h = jnp.transpose(x.astype(jnp.bfloat16), (0, 2, 3, 1))       # NHWC bf16
    head, tail = params[:-3], params[-3:]
    for (w, b, stride, pad, relu) in head:
        h = conv2d_pallas(h, w, b, stride, pad, relu)

    if _tail_fusible(h, tail):
        p = fused_tail(h, tail[0], tail[1], tail[2])              # (B, 12) f32
    else:
        # Fallback for image sizes where layer-6 input spatial != 2x2.
        for (w, b, stride, pad, relu) in tail:
            h = conv2d_pallas(h, w, b, stride, pad, relu)
        _, Hf, Wf, Cp = h.shape
        p = mean_scale(h.reshape(B, Hf * Wf, Cp), 0.01 / (Hf * Wf))
        p = p[:, :6 * (bundle_size - 1)]
    return p.reshape(B, bundle_size - 1, 6)


# -------------------------- pure-JAX reference ------------------------------

def posenet_reference(x, params, bundle_size):
    # Matches the Pallas path's operand quantization (bf16 operands, f32
    # accumulation, f32 bias/ReLU, bf16 activation storage).
    q = lambda t: t.astype(jnp.bfloat16).astype(jnp.float32)
    h = x
    for (w, b, stride, pad, relu) in params:
        h = jax.lax.conv_general_dilated(
            q(h), q(w), (stride, stride), [(pad, pad), (pad, pad)],
            dimension_numbers=("NCHW", "OIHW", "NCHW"))
        h = h + b[None, :, None, None]
        if relu:
            h = jnp.maximum(h, 0.0)
    h = q(h)
    B, C = h.shape[0], h.shape[1]
    p = h.reshape(B, C, -1).mean(axis=2)
    return p.reshape(B, bundle_size - 1, 6) * 0.01


# --------------------------------- main --------------------------------------

if __name__ == "__main__":
    bundle_size = 3
    B, H, W = 2, 64, 64

    key = jax.random.PRNGKey(0)
    key, kx = jax.random.split(key)
    x = jax.random.normal(kx, (B, bundle_size * 3, H, W), jnp.float32)

    params = init_params(key, bundle_size)

    fwd = jax.jit(functools.partial(posenet_forward, params=params,
                                    bundle_size=bundle_size))
    out = fwd(x)
    jax.block_until_ready(out)

    ref = posenet_reference(x, params, bundle_size)
    np.testing.assert_allclose(np.asarray(out), np.asarray(ref),
                               rtol=5e-3, atol=5e-5)
    assert out.shape == (B, bundle_size - 1, 6)

    print("KERNEL_OK")
</pallas_src>

<mosaic_0001>
module attributes {stable_mosaic.version = 11 : i64} {
  func.func @_matmul_bias_kernel(%arg0: i32, %arg1: memref<512x512xbf16, #tpu.memory_space<vmem>>, %arg2: memref<512x128xbf16, #tpu.memory_space<vmem>>, %arg3: memref<1x128xf32, #tpu.memory_space<vmem>>, %arg4: memref<512x128xbf16, #tpu.memory_space<vmem>>) attributes {dimension_semantics = [#tpu.dimension_semantics<parallel>], iteration_bounds = array<i64: 4>, scalar_prefetch = 0 : i64, scratch_operands = 0 : i64, tpu.core_type = #tpu.core_type<tc>, window_params = [{transform_indices = @transform_0, window_bounds = array<i64: 512, 512>}, {pipeline_mode = #tpu.pipeline_mode<synchronous>, transform_indices = @transform_1, window_bounds = array<i64: 512, 128>}, {pipeline_mode = #tpu.pipeline_mode<synchronous>, transform_indices = @transform_2, window_bounds = array<i64: 1, 128>}, {transform_indices = @transform_3, window_bounds = array<i64: 512, 128>}]} {
    %c0 = arith.constant 0 : index
    %c0_0 = arith.constant 0 : index
    %0 = vector.load %arg1[%c0, %c0_0] : memref<512x512xbf16, #tpu.memory_space<vmem>>, vector<512x512xbf16>
    %c0_1 = arith.constant 0 : index
    %c0_2 = arith.constant 0 : index
    %1 = vector.load %arg2[%c0_1, %c0_2] : memref<512x128xbf16, #tpu.memory_space<vmem>>, vector<512x128xbf16>
    %cst = arith.constant dense<0.000000e+00> : vector<512x128xf32>
    %2 = tpu.matmul %0, %1, %cst {dimension_numbers = #tpu.dot_dimension_numbers<[1], [0], [0], [1], [0, 0, 1, 1], [], []>} : vector<512x512xbf16>, vector<512x128xbf16>, vector<512x128xf32> -> vector<512x128xf32>
    %c0_3 = arith.constant 0 : index
    %c0_4 = arith.constant 0 : index
    %3 = vector.load %arg3[%c0_3, %c0_4] : memref<1x128xf32, #tpu.memory_space<vmem>>, vector<1x128xf32>
    %4 = vector.broadcast %3 : vector<1x128xf32> to vector<512x128xf32>
    %5 = arith.addf %2, %4 : vector<512x128xf32>
    %cst_5 = arith.constant 0.000000e+00 : f32
    %6 = vector.broadcast %cst_5 : f32 to vector<512x128xf32>
    %7 = arith.maximumf %5, %6 : vector<512x128xf32>
    %8 = arith.truncf %7 : vector<512x128xf32> to vector<512x128xbf16>
    %c0_6 = arith.constant 0 : index
    %c0_7 = arith.constant 0 : index
    %9 = vector.load %arg4[%c0_6, %c0_7] : memref<512x128xbf16, #tpu.memory_space<vmem>>, vector<512x128xbf16>
    tpu.vector_store %arg4[%c0_6, %c0_7], %8 {strides = array<i32>} : memref<512x128xbf16, #tpu.memory_space<vmem>>, vector<512x128xbf16>,
    return
  }
  func.func @transform_0(%arg0: i32) -> (i32, i32) {
    %c0_i32 = arith.constant 0 : i32
    %c0_i32_0 = arith.constant 0 : i32
    return %arg0, %c0_i32 : i32, i32
  }
  func.func @transform_1(%arg0: i32) -> (i32, i32) {
    %c0_i32 = arith.constant 0 : i32
    %c0_i32_0 = arith.constant 0 : i32
    %c0_i32_1 = arith.constant 0 : i32
    return %c0_i32, %c0_i32_0 : i32, i32
  }
  func.func @transform_2(%arg0: i32) -> (i32, i32) {
    %c0_i32 = arith.constant 0 : i32
    %c0_i32_0 = arith.constant 0 : i32
    %c0_i32_1 = arith.constant 0 : i32
    return %c0_i32, %c0_i32_0 : i32, i32
  }
  func.func @transform_3(%arg0: i32) -> (i32, i32) {
    %c0_i32 = arith.constant 0 : i32
    %c0_i32_0 = arith.constant 0 : i32
    return %arg0, %c0_i32 : i32, i32
  }
}

module attributes {stable_mosaic.version = 11 : i64} {
  func.func @_matmul_bias_kernel(%arg0: i32, %arg1: memref<256x512xbf16, #tpu.memory_space<vmem>>, %arg2: memref<512x128xbf16, #tpu.memory_space<vmem>>, %arg3: memref<1x128xf32, #tpu.memory_space<vmem>>, %arg4: memref<256x128xbf16, #tpu.memory_space<vmem>>) attributes {dimension_semantics = [#tpu.dimension_semantics<parallel>], iteration_bounds = array<i64: 2>, scalar_prefetch = 0 : i64, scratch_operands = 0 : i64, tpu.core_type = #tpu.core_type<tc>, window_params = [{transform_indices = @transform_0, window_bounds = array<i64: 256, 512>}, {pipeline_mode = #tpu.pipeline_mode<synchronous>, transform_indices = @transform_1, window_bounds = array<i64: 512, 128>}, {pipeline_mode = #tpu.pipeline_mode<synchronous>, transform_indices = @transform_2, window_bounds = array<i64: 1, 128>}, {transform_indices = @transform_3, window_bounds = array<i64: 256, 128>}]} {
    %c0 = arith.constant 0 : index
    %c0_0 = arith.constant 0 : index
    %0 = vector.load %arg1[%c0, %c0_0] : memref<256x512xbf16, #tpu.memory_space<vmem>>, vector<256x512xbf16>
    %c0_1 = arith.constant 0 : index
    %c0_2 = arith.constant 0 : index
    %1 = vector.load %arg2[%c0_1, %c0_2] : memref<512x128xbf16, #tpu.memory_space<vmem>>, vector<512x128xbf16>
    %cst = arith.constant dense<0.000000e+00> : vector<256x128xf32>
    %2 = tpu.matmul %0, %1, %cst {dimension_numbers = #tpu.dot_dimension_numbers<[1], [0], [0], [1], [0, 0, 1, 1], [], []>} : vector<256x512xbf16>, vector<512x128xbf16>, vector<256x128xf32> -> vector<256x128xf32>
    %c0_3 = arith.constant 0 : index
    %c0_4 = arith.constant 0 : index
    %3 = vector.load %arg3[%c0_3, %c0_4] : memref<1x128xf32, #tpu.memory_space<vmem>>, vector<1x128xf32>
    %4 = vector.broadcast %3 : vector<1x128xf32> to vector<256x128xf32>
    %5 = arith.addf %2, %4 : vector<256x128xf32>
    %cst_5 = arith.constant 0.000000e+00 : f32
    %6 = vector.broadcast %cst_5 : f32 to vector<256x128xf32>
    %7 = arith.maximumf %5, %6 : vector<256x128xf32>
    %8 = arith.truncf %7 : vector<256x128xf32> to vector<256x128xbf16>
    %c0_6 = arith.constant 0 : index
    %c0_7 = arith.constant 0 : index
    %9 = vector.load %arg4[%c0_6, %c0_7] : memref<256x128xbf16, #tpu.memory_space<vmem>>, vector<256x128xbf16>
    tpu.vector_store %arg4[%c0_6, %c0_7], %8 {strides = array<i32>} : memref<256x128xbf16, #tpu.memory_space<vmem>>, vector<256x128xbf16>,
    return
  }
  func.func @transform_0(%arg0: i32) -> (i32, i32) {
    %c0_i32 = arith.constant 0 : i32
    %c0_i32_0 = arith.constant 0 : i32
    return %arg0, %c0_i32 : i32, i32
  }
  func.func @transform_1(%arg0: i32) -> (i32, i32) {
    %c0_i32 = arith.constant 0 : i32
    %c0_i32_0 = arith.constant 0 : i32
    %c0_i32_1 = arith.constant 0 : i32
    return %c0_i32, %c0_i32_0 : i32, i32
  }
  func.func @transform_2(%arg0: i32) -> (i32, i32) {
    %c0_i32 = arith.constant 0 : i32
    %c0_i32_0 = arith.constant 0 : i32
    %c0_i32_1 = arith.constant 0 : i32
    return %c0_i32, %c0_i32_0 : i32, i32
  }
  func.func @transform_3(%arg0: i32) -> (i32, i32) {
    %c0_i32 = arith.constant 0 : i32
    %c0_i32_0 = arith.constant 0 : i32
    return %arg0, %c0_i32 : i32, i32
  }
}

module attributes {stable_mosaic.version = 11 : i64} {
  func.func @_matmul_bias_kernel(%arg0: i32, %arg1: memref<128x384xbf16, #tpu.memory_space<vmem>>, %arg2: memref<384x128xbf16, #tpu.memory_space<vmem>>, %arg3: memref<1x128xf32, #tpu.memory_space<vmem>>, %arg4: memref<128x128xbf16, #tpu.memory_space<vmem>>) attributes {dimension_semantics = [#tpu.dimension_semantics<parallel>], iteration_bounds = array<i64: 1>, scalar_prefetch = 0 : i64, scratch_operands = 0 : i64, tpu.core_type = #tpu.core_type<tc>, window_params = [{transform_indices = @transform_0, window_bounds = array<i64: 128, 384>}, {pipeline_mode = #tpu.pipeline_mode<synchronous>, transform_indices = @transform_1, window_bounds = array<i64: 384, 128>}, {pipeline_mode = #tpu.pipeline_mode<synchronous>, transform_indices = @transform_2, window_bounds = array<i64: 1, 128>}, {transform_indices = @transform_3, window_bounds = array<i64: 128, 128>}]} {
    %c0 = arith.constant 0 : index
    %c0_0 = arith.constant 0 : index
    %0 = vector.load %arg1[%c0, %c0_0] : memref<128x384xbf16, #tpu.memory_space<vmem>>, vector<128x384xbf16>
    %c0_1 = arith.constant 0 : index
    %c0_2 = arith.constant 0 : index
    %1 = vector.load %arg2[%c0_1, %c0_2] : memref<384x128xbf16, #tpu.memory_space<vmem>>, vector<384x128xbf16>
    %cst = arith.constant dense<0.000000e+00> : vector<128x128xf32>
    %2 = tpu.matmul %0, %1, %cst {dimension_numbers = #tpu.dot_dimension_numbers<[1], [0], [0], [1], [0, 0, 1, 1], [], []>} : vector<128x384xbf16>, vector<384x128xbf16>, vector<128x128xf32> -> vector<128x128xf32>
    %c0_3 = arith.constant 0 : index
    %c0_4 = arith.constant 0 : index
    %3 = vector.load %arg3[%c0_3, %c0_4] : memref<1x128xf32, #tpu.memory_space<vmem>>, vector<1x128xf32>
    %4 = vector.broadcast %3 : vector<1x128xf32> to vector<128x128xf32>
    %5 = arith.addf %2, %4 : vector<128x128xf32>
    %cst_5 = arith.constant 0.000000e+00 : f32
    %6 = vector.broadcast %cst_5 : f32 to vector<128x128xf32>
    %7 = arith.maximumf %5, %6 : vector<128x128xf32>
    %8 = arith.truncf %7 : vector<128x128xf32> to vector<128x128xbf16>
    %c0_6 = arith.constant 0 : index
    %c0_7 = arith.constant 0 : index
    %9 = vector.load %arg4[%c0_6, %c0_7] : memref<128x128xbf16, #tpu.memory_space<vmem>>, vector<128x128xbf16>
    tpu.vector_store %arg4[%c0_6, %c0_7], %8 {strides = array<i32>} : memref<128x128xbf16, #tpu.memory_space<vmem>>, vector<128x128xbf16>,
    return
  }
  func.func @transform_0(%arg0: i32) -> (i32, i32) {
    %c0_i32 = arith.constant 0 : i32
    %c0_i32_0 = arith.constant 0 : i32
    return %arg0, %c0_i32 : i32, i32
  }
  func.func @transform_1(%arg0: i32) -> (i32, i32) {
    %c0_i32 = arith.constant 0 : i32
    %c0_i32_0 = arith.constant 0 : i32
    %c0_i32_1 = arith.constant 0 : i32
    return %c0_i32, %c0_i32_0 : i32, i32
  }
  func.func @transform_2(%arg0: i32) -> (i32, i32) {
    %c0_i32 = arith.constant 0 : i32
    %c0_i32_0 = arith.constant 0 : i32
    %c0_i32_1 = arith.constant 0 : i32
    return %c0_i32, %c0_i32_0 : i32, i32
  }
  func.func @transform_3(%arg0: i32) -> (i32, i32) {
    %c0_i32 = arith.constant 0 : i32
    %c0_i32_0 = arith.constant 0 : i32
    return %arg0, %c0_i32 : i32, i32
  }
}

module attributes {stable_mosaic.version = 11 : i64} {
  func.func @_matmul_bias_kernel(%arg0: i32, %arg1: memref<32x640xbf16, #tpu.memory_space<vmem>>, %arg2: memref<640x128xbf16, #tpu.memory_space<vmem>>, %arg3: memref<1x128xf32, #tpu.memory_space<vmem>>, %arg4: memref<32x128xbf16, #tpu.memory_space<vmem>>) attributes {dimension_semantics = [#tpu.dimension_semantics<parallel>], iteration_bounds = array<i64: 1>, scalar_prefetch = 0 : i64, scratch_operands = 0 : i64, tpu.core_type = #tpu.core_type<tc>, window_params = [{transform_indices = @transform_0, window_bounds = array<i64: 32, 640>}, {pipeline_mode = #tpu.pipeline_mode<synchronous>, transform_indices = @transform_1, window_bounds = array<i64: 640, 128>}, {pipeline_mode = #tpu.pipeline_mode<synchronous>, transform_indices = @transform_2, window_bounds = array<i64: 1, 128>}, {transform_indices = @transform_3, window_bounds = array<i64: 32, 128>}]} {
    %c0 = arith.constant 0 : index
    %c0_0 = arith.constant 0 : index
    %0 = vector.load %arg1[%c0, %c0_0] : memref<32x640xbf16, #tpu.memory_space<vmem>>, vector<32x640xbf16>
    %c0_1 = arith.constant 0 : index
    %c0_2 = arith.constant 0 : index
    %1 = vector.load %arg2[%c0_1, %c0_2] : memref<640x128xbf16, #tpu.memory_space<vmem>>, vector<640x128xbf16>
    %cst = arith.constant dense<0.000000e+00> : vector<32x128xf32>
    %2 = tpu.matmul %0, %1, %cst {dimension_numbers = #tpu.dot_dimension_numbers<[1], [0], [0], [1], [0, 0, 1, 1], [], []>} : vector<32x640xbf16>, vector<640x128xbf16>, vector<32x128xf32> -> vector<32x128xf32>
    %c0_3 = arith.constant 0 : index
    %c0_4 = arith.constant 0 : index
    %3 = vector.load %arg3[%c0_3, %c0_4] : memref<1x128xf32, #tpu.memory_space<vmem>>, vector<1x128xf32>
    %4 = vector.broadcast %3 : vector<1x128xf32> to vector<32x128xf32>
    %5 = arith.addf %2, %4 : vector<32x128xf32>
    %cst_5 = arith.constant 0.000000e+00 : f32
    %6 = vector.broadcast %cst_5 : f32 to vector<32x128xf32>
    %7 = arith.maximumf %5, %6 : vector<32x128xf32>
    %8 = arith.truncf %7 : vector<32x128xf32> to vector<32x128xbf16>
    %c0_6 = arith.constant 0 : index
    %c0_7 = arith.constant 0 : index
    %9 = vector.load %arg4[%c0_6, %c0_7] : memref<32x128xbf16, #tpu.memory_space<vmem>>, vector<32x128xbf16>
    tpu.vector_store %arg4[%c0_6, %c0_7], %8 {strides = array<i32>} : memref<32x128xbf16, #tpu.memory_space<vmem>>, vector<32x128xbf16>,
    return
  }
  func.func @transform_0(%arg0: i32) -> (i32, i32) {
    %c0_i32 = arith.constant 0 : i32
    %c0_i32_0 = arith.constant 0 : i32
    return %arg0, %c0_i32 : i32, i32
  }
  func.func @transform_1(%arg0: i32) -> (i32, i32) {
    %c0_i32 = arith.constant 0 : i32
    %c0_i32_0 = arith.constant 0 : i32
    %c0_i32_1 = arith.constant 0 : i32
    return %c0_i32, %c0_i32_0 : i32, i32
  }
  func.func @transform_2(%arg0: i32) -> (i32, i32) {
    %c0_i32 = arith.constant 0 : i32
    %c0_i32_0 = arith.constant 0 : i32
    %c0_i32_1 = arith.constant 0 : i32
    return %c0_i32, %c0_i32_0 : i32, i32
  }
  func.func @transform_3(%arg0: i32) -> (i32, i32) {
    %c0_i32 = arith.constant 0 : i32
    %c0_i32_0 = arith.constant 0 : i32
    return %arg0, %c0_i32 : i32, i32
  }
}

module attributes {stable_mosaic.version = 11 : i64} {
  func.func @_matmul_bias_kernel(%arg0: i32, %arg1: memref<8x1152xbf16, #tpu.memory_space<vmem>>, %arg2: memref<1152x256xbf16, #tpu.memory_space<vmem>>, %arg3: memref<1x256xf32, #tpu.memory_space<vmem>>, %arg4: memref<8x256xbf16, #tpu.memory_space<vmem>>) attributes {dimension_semantics = [#tpu.dimension_semantics<parallel>], iteration_bounds = array<i64: 1>, scalar_prefetch = 0 : i64, scratch_operands = 0 : i64, tpu.core_type = #tpu.core_type<tc>, window_params = [{transform_indices = @transform_0, window_bounds = array<i64: 8, 1152>}, {pipeline_mode = #tpu.pipeline_mode<synchronous>, transform_indices = @transform_1, window_bounds = array<i64: 1152, 256>}, {pipeline_mode = #tpu.pipeline_mode<synchronous>, transform_indices = @transform_2, window_bounds = array<i64: 1, 256>}, {transform_indices = @transform_3, window_bounds = array<i64: 8, 256>}]} {
    %c0 = arith.constant 0 : index
    %c0_0 = arith.constant 0 : index
    %0 = vector.load %arg1[%c0, %c0_0] : memref<8x1152xbf16, #tpu.memory_space<vmem>>, vector<8x1152xbf16>
    %c0_1 = arith.constant 0 : index
    %c0_2 = arith.constant 0 : index
    %1 = vector.load %arg2[%c0_1, %c0_2] : memref<1152x256xbf16, #tpu.memory_space<vmem>>, vector<1152x256xbf16>
    %cst = arith.constant dense<0.000000e+00> : vector<8x256xf32>
    %2 = tpu.matmul %0, %1, %cst {dimension_numbers = #tpu.dot_dimension_numbers<[1], [0], [0], [1], [0, 0, 1, 1], [], []>} : vector<8x1152xbf16>, vector<1152x256xbf16>, vector<8x256xf32> -> vector<8x256xf32>
    %c0_3 = arith.constant 0 : index
    %c0_4 = arith.constant 0 : index
    %3 = vector.load %arg3[%c0_3, %c0_4] : memref<1x256xf32, #tpu.memory_space<vmem>>, vector<1x256xf32>
    %4 = vector.broadcast %3 : vector<1x256xf32> to vector<8x256xf32>
    %5 = arith.addf %2, %4 : vector<8x256xf32>
    %cst_5 = arith.constant 0.000000e+00 : f32
    %6 = vector.broadcast %cst_5 : f32 to vector<8x256xf32>
    %7 = arith.maximumf %5, %6 : vector<8x256xf32>
    %8 = arith.truncf %7 : vector<8x256xf32> to vector<8x256xbf16>
    %c0_6 = arith.constant 0 : index
    %c0_7 = arith.constant 0 : index
    %9 = vector.load %arg4[%c0_6, %c0_7] : memref<8x256xbf16, #tpu.memory_space<vmem>>, vector<8x256xbf16>
    tpu.vector_store %arg4[%c0_6, %c0_7], %8 {strides = array<i32>} : memref<8x256xbf16, #tpu.memory_space<vmem>>, vector<8x256xbf16>,
    return
  }
  func.func @transform_0(%arg0: i32) -> (i32, i32) {
    %c0_i32 = arith.constant 0 : i32
    %c0_i32_0 = arith.constant 0 : i32
    return %arg0, %c0_i32 : i32, i32
  }
  func.func @transform_1(%arg0: i32) -> (i32, i32) {
    %c0_i32 = arith.constant 0 : i32
    %c0_i32_0 = arith.constant 0 : i32
    %c0_i32_1 = arith.constant 0 : i32
    return %c0_i32, %c0_i32_0 : i32, i32
  }
  func.func @transform_2(%arg0: i32) -> (i32, i32) {
    %c0_i32 = arith.constant 0 : i32
    %c0_i32_0 = arith.constant 0 : i32
    %c0_i32_1 = arith.constant 0 : i32
    return %c0_i32, %c0_i32_0 : i32, i32
  }
  func.func @transform_3(%arg0: i32) -> (i32, i32) {
    %c0_i32 = arith.constant 0 : i32
    %c0_i32_0 = arith.constant 0 : i32
    return %arg0, %c0_i32 : i32, i32
  }
}

module attributes {stable_mosaic.version = 11 : i64} {
  func.func @_tail_kernel(%arg0: i32, %arg1: memref<2x1024xbf16, #tpu.memory_space<vmem>>, %arg2: memref<1024x256xbf16, #tpu.memory_space<vmem>>, %arg3: memref<1x256xf32, #tpu.memory_space<vmem>>, %arg4: memref<256x256xbf16, #tpu.memory_space<vmem>>, %arg5: memref<1x256xf32, #tpu.memory_space<vmem>>, %arg6: memref<256x128xbf16, #tpu.memory_space<vmem>>, %arg7: memref<1x128xf32, #tpu.memory_space<vmem>>, %arg8: memref<2x128xf32, #tpu.memory_space<vmem>>) attributes {dimension_semantics = [#tpu.dimension_semantics<arbitrary>], iteration_bounds = array<i64: 1>, scalar_prefetch = 0 : i64, scratch_operands = 0 : i64, tpu.core_type = #tpu.core_type<tc>, window_params = [{pipeline_mode = #tpu.pipeline_mode<synchronous>, transform_indices = @transform_0, window_bounds = array<i64: 2, 1024>}, {pipeline_mode = #tpu.pipeline_mode<synchronous>, transform_indices = @transform_1, window_bounds = array<i64: 1024, 256>}, {pipeline_mode = #tpu.pipeline_mode<synchronous>, transform_indices = @transform_2, window_bounds = array<i64: 1, 256>}, {pipeline_mode = #tpu.pipeline_mode<synchronous>, transform_indices = @transform_3, window_bounds = array<i64: 256, 256>}, {pipeline_mode = #tpu.pipeline_mode<synchronous>, transform_indices = @transform_4, window_bounds = array<i64: 1, 256>}, {pipeline_mode = #tpu.pipeline_mode<synchronous>, transform_indices = @transform_5, window_bounds = array<i64: 256, 128>}, {pipeline_mode = #tpu.pipeline_mode<synchronous>, transform_indices = @transform_6, window_bounds = array<i64: 1, 128>}, {pipeline_mode = #tpu.pipeline_mode<synchronous>, transform_indices = @transform_7, window_bounds = array<i64: 2, 128>}]} {
    %c0 = arith.constant 0 : index
    %c0_0 = arith.constant 0 : index
    %0 = vector.load %arg1[%c0, %c0_0] : memref<2x1024xbf16, #tpu.memory_space<vmem>>, vector<2x1024xbf16>
    %c0_1 = arith.constant 0 : index
    %c0_2 = arith.constant 0 : index
    %1 = vector.load %arg2[%c0_1, %c0_2] : memref<1024x256xbf16, #tpu.memory_space<vmem>>, vector<1024x256xbf16>
    %cst = arith.constant dense<0.000000e+00> : vector<2x256xf32>
    %2 = tpu.matmul %0, %1, %cst {dimension_numbers = #tpu.dot_dimension_numbers<[1], [0], [0], [1], [0, 0, 1, 1], [], []>} : vector<2x1024xbf16>, vector<1024x256xbf16>, vector<2x256xf32> -> vector<2x256xf32>
    %c0_3 = arith.constant 0 : index
    %c0_4 = arith.constant 0 : index
    %3 = vector.load %arg3[%c0_3, %c0_4] : memref<1x256xf32, #tpu.memory_space<vmem>>, vector<1x256xf32>
    %4 = vector.broadcast %3 : vector<1x256xf32> to vector<2x256xf32>
    %5 = arith.addf %2, %4 : vector<2x256xf32>
    %cst_5 = arith.constant 0.000000e+00 : f32
    %6 = vector.broadcast %cst_5 : f32 to vector<2x256xf32>
    %7 = arith.maximumf %5, %6 : vector<2x256xf32>
    %8 = arith.truncf %7 : vector<2x256xf32> to vector<2x256xbf16>
    %c0_6 = arith.constant 0 : index
    %c0_7 = arith.constant 0 : index
    %9 = vector.load %arg4[%c0_6, %c0_7] : memref<256x256xbf16, #tpu.memory_space<vmem>>, vector<256x256xbf16>
    %cst_8 = arith.constant dense<0.000000e+00> : vector<2x256xf32>
    %10 = tpu.matmul %8, %9, %cst_8 {dimension_numbers = #tpu.dot_dimension_numbers<[1], [0], [0], [1], [0, 0, 1, 1], [], []>} : vector<2x256xbf16>, vector<256x256xbf16>, vector<2x256xf32> -> vector<2x256xf32>
    %c0_9 = arith.constant 0 : index
    %c0_10 = arith.constant 0 : index
    %11 = vector.load %arg5[%c0_9, %c0_10] : memref<1x256xf32, #tpu.memory_space<vmem>>, vector<1x256xf32>
    %12 = vector.broadcast %11 : vector<1x256xf32> to vector<2x256xf32>
    %13 = arith.addf %10, %12 : vector<2x256xf32>
    %cst_11 = arith.constant 0.000000e+00 : f32
    %14 = vector.broadcast %cst_11 : f32 to vector<2x256xf32>
    %15 = arith.maximumf %13, %14 : vector<2x256xf32>
    %16 = arith.truncf %15 : vector<2x256xf32> to vector<2x256xbf16>
    %c0_12 = arith.constant 0 : index
    %c0_13 = arith.constant 0 : index
    %17 = vector.load %arg6[%c0_12, %c0_13] : memref<256x128xbf16, #tpu.memory_space<vmem>>, vector<256x128xbf16>
    %cst_14 = arith.constant dense<0.000000e+00> : vector<2x128xf32>
    %18 = tpu.matmul %16, %17, %cst_14 {dimension_numbers = #tpu.dot_dimension_numbers<[1], [0], [0], [1], [0, 0, 1, 1], [], []>} : vector<2x256xbf16>, vector<256x128xbf16>, vector<2x128xf32> -> vector<2x128xf32>
    %c0_15 = arith.constant 0 : index
    %c0_16 = arith.constant 0 : index
    %19 = vector.load %arg7[%c0_15, %c0_16] : memref<1x128xf32, #tpu.memory_space<vmem>>, vector<1x128xf32>
    %20 = vector.broadcast %19 : vector<1x128xf32> to vector<2x128xf32>
    %21 = arith.addf %18, %20 : vector<2x128xf32>
    %22 = arith.truncf %21 : vector<2x128xf32> to vector<2x128xbf16>
    %23 = arith.extf %22 : vector<2x128xbf16> to vector<2x128xf32>
    %cst_17 = arith.constant 0.00999999977 : f32
    %24 = vector.broadcast %cst_17 : f32 to vector<2x128xf32>
    %25 = arith.mulf %23, %24 : vector<2x128xf32>
    %c0_18 = arith.constant 0 : index
    %c0_19 = arith.constant 0 : index
    %26 = vector.load %arg8[%c0_18, %c0_19] : memref<2x128xf32, #tpu.memory_space<vmem>>, vector<2x128xf32>
    tpu.vector_store %arg8[%c0_18, %c0_19], %25 {strides = array<i32>} : memref<2x128xf32, #tpu.memory_space<vmem>>, vector<2x128xf32>,
    return
  }
  func.func @transform_0(%arg0: i32) -> (i32, i32) {
    %c0_i32 = arith.constant 0 : i32
    %c0_i32_0 = arith.constant 0 : i32
    %c0_i32_1 = arith.constant 0 : i32
    return %c0_i32, %c0_i32_0 : i32, i32
  }
  func.func @transform_1(%arg0: i32) -> (i32, i32) {
    %c0_i32 = arith.constant 0 : i32
    %c0_i32_0 = arith.constant 0 : i32
    %c0_i32_1 = arith.constant 0 : i32
    return %c0_i32, %c0_i32_0 : i32, i32
  }
  func.func @transform_2(%arg0: i32) -> (i32, i32) {
    %c0_i32 = arith.constant 0 : i32
    %c0_i32_0 = arith.constant 0 : i32
    %c0_i32_1 = arith.constant 0 : i32
    return %c0_i32, %c0_i32_0 : i32, i32
  }
  func.func @transform_3(%arg0: i32) -> (i32, i32) {
    %c0_i32 = arith.constant 0 : i32
    %c0_i32_0 = arith.constant 0 : i32
    %c0_i32_1 = arith.constant 0 : i32
    return %c0_i32, %c0_i32_0 : i32, i32
  }
  func.func @transform_4(%arg0: i32) -> (i32, i32) {
    %c0_i32 = arith.constant 0 : i32
    %c0_i32_0 = arith.constant 0 : i32
    %c0_i32_1 = arith.constant 0 : i32
    return %c0_i32, %c0_i32_0 : i32, i32
  }
  func.func @transform_5(%arg0: i32) -> (i32, i32) {
    %c0_i32 = arith.constant 0 : i32
    %c0_i32_0 = arith.constant 0 : i32
    %c0_i32_1 = arith.constant 0 : i32
    return %c0_i32, %c0_i32_0 : i32, i32
  }
  func.func @transform_6(%arg0: i32) -> (i32, i32) {
    %c0_i32 = arith.constant 0 : i32
    %c0_i32_0 = arith.constant 0 : i32
    %c0_i32_1 = arith.constant 0 : i32
    return %c0_i32, %c0_i32_0 : i32, i32
  }
  func.func @transform_7(%arg0: i32) -> (i32, i32) {
    %c0_i32 = arith.constant 0 : i32
    %c0_i32_0 = arith.constant 0 : i32
    %c0_i32_1 = arith.constant 0 : i32
    return %c0_i32, %c0_i32_0 : i32, i32
  }
}

</mosaic_0001>

<bundles_post_ra>
// kernel: posenet_forward.6
= control target key start
LH: loop header
LB: loop body
LE: loop exit
PB: predicated region body
PF: predicated region fallthrough
CT: control target
= control target key end

     0   :  { %s3171_s12 = smov 0   ;;  %s3654_s0 = inlined_call_operand.vmem [shape: bf16[2048,512], index: 0, kind: input, shape index: {}]   ;;  %s3655_s1 = inlined_call_operand.vmem [shape: bf16[512,128], index: 1, kind: input, shape index: {}]   ;;  %s3656_s2 = inlined_call_operand.vmem [shape: f32[1,128], index: 2, kind: input, shape index: {}]   ;;  %s3657_s3 = inlined_call_operand.vmem [shape: bf16[2048,128], index: 3, kind: output, shape index: {}]  }
   0x1 LB: > { %s2129_s13 = sadd.s32 4294967295, %s3149_s12   ;;  %p2133_p0 = scmp.ge.s32.totalorder %s3149_s12, 1  ;;  %s3149_s12 = sphi %s3171_s12, %s13_s12  }
   0x2   : > { %p139_p1 = scmp.lt.s32.totalorder %s3149_s12, 5 }
   0x4   : > { %p140_p2 = pnand %p2133_p0, %p139_p1 }
   0x5   : > { %s2134_s11 = sshll.u32 (!%p140_p2), %s2129_s13, 6 }
   0x6   : > { %143 = sbr.rel (%p140_p2) target bundleno = 690 (0x2b2), region = 32  ;;  %p165_p3 = scmp.lt.s32.totalorder (!%p140_p2), %s2134_s11, 255 }
   0xb   : > { %v2917_v0 = vld [vmem:[%s3655_s1 + $0x38] sm:$0xff]  ;;  %v2916_v4 = vld [vmem:[%s3655_s1 + $0x30] sm:$0xff]  ;;  %v2915_v8 = vld [vmem:[%s3655_s1 + $0x28] sm:$0xff]  ;;  %s3659_s11 = smov (!%p165_p3, %s2134_s11), 255 }
   0xc   : > { %v2925_v1 = vld [vmem:[%s3655_s1 + $0x78] sm:$0xff]  ;;  %1205 = vmatpush.bf16.msra.mxu0 %v2917_v0  ;;  %v2924_v5 = vld [vmem:[%s3655_s1 + $0x70] sm:$0xff]  ;;  %v2923_v9 = vld [vmem:[%s3655_s1 + $0x68] sm:$0xff]  ;;  %s2781_s10 = sshll.u32 %s3659_s11, 4  ;;  %s2138_s7 = sshll.u32 %s3659_s11, 2 }
   0xd   : > { %v2933_v2 = vld [vmem:[%s3655_s1 + $0xb8] sm:$0xff]  ;;  %1374 = vmatpush.bf16.msra.mxu1 %v2925_v1  ;;  %v2932_v6 = vld [vmem:[%s3655_s1 + $0xb0] sm:$0xff]  ;;  %v2931_v10 = vld [vmem:[%s3655_s1 + $0xa8] sm:$0xff]  ;;  %s3263_s20 = scalar_lea.vmem %s3654_s0, %s2781_s10  ;;  %s3375_s10 = scalar_lea.vmem %s3657_s3, %s2138_s7 }
   0xe   : > { %v2941_v3 = vld [vmem:[%s3655_s1 + $0xf8] sm:$0xff]  ;;  %1543 = vmatpush.bf16.msra.mxu2 %v2933_v2  ;;  %v2940_v7 = vld [vmem:[%s3655_s1 + $0xf0] sm:$0xff]  ;;  %v2939_v11 = vld [vmem:[%s3655_s1 + $0xe8] sm:$0xff] }
   0xf   : > { %1712 = vmatpush.bf16.msra.mxu3 %v2941_v3  ;;  %v2914_v12 = vld [vmem:[%s3655_s1 + $0x20] sm:$0xff]  ;;  %v2913_v16 = vld [vmem:[%s3655_s1 + $0x18] sm:$0xff]  ;;  %v2912_v20 = vld [vmem:[%s3655_s1 + $0x10] sm:$0xff] }
  0x10   : > { %1206 = vmatpush.bf16.msra.mxu0 %v2916_v4  ;;  %v2922_v13 = vld [vmem:[%s3655_s1 + $0x60] sm:$0xff]  ;;  %v2921_v17 = vld [vmem:[%s3655_s1 + $0x58] sm:$0xff]  ;;  %v2920_v21 = vld [vmem:[%s3655_s1 + $0x50] sm:$0xff] }
  0x11   : > { %1375 = vmatpush.bf16.msra.mxu1 %v2924_v5  ;;  %v2930_v14 = vld [vmem:[%s3655_s1 + $0xa0] sm:$0xff]  ;;  %v2929_v18 = vld [vmem:[%s3655_s1 + $0x98] sm:$0xff]  ;;  %v2928_v22 = vld [vmem:[%s3655_s1 + $0x90] sm:$0xff] }
  0x12   : > { %1544 = vmatpush.bf16.msra.mxu2 %v2932_v6  ;;  %v2938_v15 = vld [vmem:[%s3655_s1 + $0xe0] sm:$0xff]  ;;  %v2937_v19 = vld [vmem:[%s3655_s1 + $0xd8] sm:$0xff]  ;;  %v2936_v23 = vld [vmem:[%s3655_s1 + $0xd0] sm:$0xff] }
  0x13   : > { %1713 = vmatpush.bf16.msra.mxu3 %v2940_v7  ;;  %v2911_v24 = vld [vmem:[%s3655_s1 + $0x8] sm:$0xff]  ;;  %v2910_v28 = vld [vmem:[%s3655_s1] sm:$0xff]  ;;  %v2784_v33 = vld [vmem:[%s3263_s20 + $0xc] sm:$0xf0] }
  0x14   : > { %1207 = vmatpush.bf16.msra.mxu0 %v2915_v8  ;;  %v2919_v25 = vld [vmem:[%s3655_s1 + $0x48] sm:$0xff]  ;;  %v2918_v29 = vld [vmem:[%s3655_s1 + $0x40] sm:$0xff]  ;;  %v2143_v35 = vld [vmem:[%s3263_s20 + $0x10] sm:$0xf0] }
  0x15   : > { %1376 = vmatpush.bf16.msra.mxu1 %v2923_v9  ;;  %v2927_v26 = vld [vmem:[%s3655_s1 + $0x88] sm:$0xff]  ;;  %v2926_v30 = vld [vmem:[%s3655_s1 + $0x80] sm:$0xff]  ;;  %v2785_v37 = vld [vmem:[%s3263_s20 + $0x14] sm:$0xf0] }
  0x16   : > { %1545 = vmatpush.bf16.msra.mxu2 %v2931_v10  ;;  %v2935_v27 = vld [vmem:[%s3655_s1 + $0xc8] sm:$0xff]  ;;  %v2934_v31 = vld [vmem:[%s3655_s1 + $0xc0] sm:$0xff]  ;;  %v2151_v39 = vld [vmem:[%s3263_s20 + $0x18] sm:$0xf0] }
  0x17   : > { %1714 = vmatpush.bf16.msra.mxu3 %v2939_v11  ;;  %v2141_v32 = vld [vmem:[%s3263_s20] sm:$0xf]  ;;  %v2782_v34 = vld [vmem:[%s3263_s20 + $0x4] sm:$0xf]  ;;  %v2149_v36 = vld [vmem:[%s3263_s20 + $0x8] sm:$0xf] }
  0x18   : > { %1208 = vmatpush.bf16.msra.mxu0 %v2914_v12  ;;  %v2783_v38 = vld [vmem:[%s3263_s20 + $0xc] sm:$0xf]  ;;  %v2142_v40 = vor.u32 %v2784_v33, %v2141_v32  ;;  %v2146_v41 = vor.u32 %v2782_v34, %v2143_v35  ;;  %v2150_v42 = vor.u32 %v2785_v37, %v2149_v36  ;;  %v2157_v44 = vld [vmem:[%s3263_s20 + $0x20] sm:$0xf]  ;;  %v2788_v45 = vld [vmem:[%s3263_s20 + $0x2c] sm:$0xf0] }
  0x19   : > { %1377 = vmatpush.bf16.msra.mxu1 %v2922_v13  ;;  %v2154_v43 = vor.u32 %v2783_v38, %v2151_v39  ;;  %v2786_v46 = vld [vmem:[%s3263_s20 + $0x24] sm:$0xf]  ;;  %v2159_v47 = vld [vmem:[%s3263_s20 + $0x30] sm:$0xf0]  ;;  %v2165_v48 = vld [vmem:[%s3263_s20 + $0x28] sm:$0xf]  ;;  %v2158_v52 = vor.u32 %v2788_v45, %v2157_v44 }
  0x1a   : > { %1546 = vmatpush.bf16.msra.mxu2 %v2930_v14  ;;  %v2789_v49 = vld [vmem:[%s3263_s20 + $0x34] sm:$0xf0]  ;;  %v2787_v50 = vld [vmem:[%s3263_s20 + $0x2c] sm:$0xf]  ;;  %v2167_v51 = vld [vmem:[%s3263_s20 + $0x38] sm:$0xf0]  ;;  %v2162_v53 = vor.u32 %v2786_v46, %v2159_v47 }
  0x1b   : > { %1715 = vmatpush.bf16.msra.mxu3 %v2938_v15  ;;  %v2166_v54 = vor.u32 %v2789_v49, %v2165_v48  ;;  %v2170_v55 = vor.u32 %v2787_v50, %v2167_v51  ;;  %v2173_v56 = vld [vmem:[%s3263_s20 + $0x40] sm:$0xf]  ;;  %v2792_v57 = vld [vmem:[%s3263_s20 + $0x4c] sm:$0xf0]  ;;  %v2790_v58 = vld [vmem:[%s3263_s20 + $0x44] sm:$0xf] }
  0x1c   : > { %1209 = vmatpush.bf16.msra.mxu0 %v2913_v16  ;;  %v2175_v59 = vld [vmem:[%s3263_s20 + $0x50] sm:$0xf0]  ;;  %v2181_v60 = vld [vmem:[%s3263_s20 + $0x48] sm:$0xf]  ;;  %v2793_v61 = vld [vmem:[%s3263_s20 + $0x54] sm:$0xf0]  ;;  %v2174_v0 = vor.u32 %v2792_v57, %v2173_v56 }
  0x1d   : > { %1378 = vmatpush.bf16.msra.mxu1 %v2921_v17  ;;  %v2791_v62 = vld [vmem:[%s3263_s20 + $0x4c] sm:$0xf]  ;;  %v2183_v63 = vld [vmem:[%s3263_s20 + $0x58] sm:$0xf0]  ;;  %v2178_v1 = vor.u32 %v2790_v58, %v2175_v59  ;;  %v2182_v2 = vor.u32 %v2793_v61, %v2181_v60  ;;  %v2189_v4 = vld [vmem:[%s3263_s20 + $0x60] sm:$0xf] }
  0x1e   : > { %1547 = vmatpush.bf16.msra.mxu2 %v2929_v18  ;;  %v2186_v3 = vor.u32 %v2791_v62, %v2183_v63  ;;  %v2796_v5 = vld [vmem:[%s3263_s20 + $0x6c] sm:$0xf0]  ;;  %v2794_v6 = vld [vmem:[%s3263_s20 + $0x64] sm:$0xf]  ;;  %v2191_v7 = vld [vmem:[%s3263_s20 + $0x70] sm:$0xf0] }
  0x1f   : > { %1716 = vmatpush.bf16.msra.mxu3 %v2937_v19  ;;  %v2197_v8 = vld [vmem:[%s3263_s20 + $0x68] sm:$0xf]  ;;  %v2797_v9 = vld [vmem:[%s3263_s20 + $0x74] sm:$0xf0]  ;;  %v2795_v10 = vld [vmem:[%s3263_s20 + $0x6c] sm:$0xf]  ;;  %v2190_v12 = vor.u32 %v2796_v5, %v2189_v4  ;;  %v2194_v13 = vor.u32 %v2794_v6, %v2191_v7 }
  0x20   : > { %1210 = vmatpush.bf16.msra.mxu0 %v2912_v20  ;;  %v2199_v11 = vld [vmem:[%s3263_s20 + $0x78] sm:$0xf0]  ;;  %v2198_v14 = vor.u32 %v2797_v9, %v2197_v8  ;;  %v2205_v16 = vld [vmem:[%s3263_s20 + $0x80] sm:$0xf]  ;;  %v2800_v17 = vld [vmem:[%s3263_s20 + $0x8c] sm:$0xf0] }
  0x21   : > { %1379 = vmatpush.bf16.msra.mxu1 %v2920_v21  ;;  %v2202_v15 = vor.u32 %v2795_v10, %v2199_v11  ;;  %v2798_v18 = vld [vmem:[%s3263_s20 + $0x84] sm:$0xf]  ;;  %v2207_v19 = vld [vmem:[%s3263_s20 + $0x90] sm:$0xf0]  ;;  %v2213_v20 = vld [vmem:[%s3263_s20 + $0x88] sm:$0xf] }
  0x22   : > { %1548 = vmatpush.bf16.msra.mxu2 %v2928_v22  ;;  %v2801_v21 = vld [vmem:[%s3263_s20 + $0x94] sm:$0xf0]  ;;  %v2799_v22 = vld [vmem:[%s3263_s20 + $0x8c] sm:$0xf]  ;;  %v2229_v32 = vld [vmem:[%s3263_s20 + $0xa8] sm:$0xf] }
  0x23   : > { %1717 = vmatpush.bf16.msra.mxu3 %v2936_v23  ;;  %v2215_v23 = vld [vmem:[%s3263_s20 + $0x98] sm:$0xf0]  ;;  %v2805_v33 = vld [vmem:[%s3263_s20 + $0xb4] sm:$0xf0]  ;;  %v2803_v34 = vld [vmem:[%s3263_s20 + $0xac] sm:$0xf] }
  0x24   : > { %1211 = vmatpush.bf16.msra.mxu0 %v2911_v24  ;;  %v2206_v24 = vor.u32 %v2800_v17, %v2205_v16  ;;  %v2231_v35 = vld [vmem:[%s3263_s20 + $0xb8] sm:$0xf0]  ;;  %v2230_v38 = vor.u32 %v2805_v33, %v2229_v32  ;;  %v2245_v44 = vld [vmem:[%s3263_s20 + $0xc8] sm:$0xf]  ;;  %v2809_v45 = vld [vmem:[%s3263_s20 + $0xd4] sm:$0xf0] }
  0x25   : > { %1380 = vmatpush.bf16.msra.mxu1 %v2919_v25  ;;  %v2210_v25 = vor.u32 %v2798_v18, %v2207_v19  ;;  %v2234_v39 = vor.u32 %v2803_v34, %v2231_v35  ;;  %v2807_v46 = vld [vmem:[%s3263_s20 + $0xcc] sm:$0xf]  ;;  %v2247_v47 = vld [vmem:[%s3263_s20 + $0xd8] sm:$0xf0]  ;;  %v2246_v50 = vor.u32 %v2809_v45, %v2245_v44  ;;  %v2261_v56 = vld [vmem:[%s3263_s20 + $0xe8] sm:$0xf] }
  0x26   : > { %1549 = vmatpush.bf16.msra.mxu2 %v2927_v26  ;;  %v2214_v26 = vor.u32 %v2801_v21, %v2213_v20  ;;  %v2250_v51 = vor.u32 %v2807_v46, %v2247_v47  ;;  %v2813_v57 = vld [vmem:[%s3263_s20 + $0xf4] sm:$0xf0]  ;;  %v2811_v58 = vld [vmem:[%s3263_s20 + $0xec] sm:$0xf]  ;;  %v2263_v59 = vld [vmem:[%s3263_s20 + $0xf8] sm:$0xf0] }
  0x27   : > { %1718 = vmatpush.bf16.msra.mxu3 %v2935_v27  ;;  %v2218_v27 = vor.u32 %v2799_v22, %v2215_v23  ;;  %v2262_v62 = vor.u32 %v2813_v57, %v2261_v56  ;;  %v2266_v63 = vor.u32 %v2811_v58, %v2263_v59  ;;  %v2277_v4 = vld [vmem:[%s3263_s20 + $0x108] sm:$0xf]  ;;  %v2817_v5 = vld [vmem:[%s3263_s20 + $0x114] sm:$0xf0]  ;;  %v2815_v6 = vld [vmem:[%s3263_s20 + $0x10c] sm:$0xf] }
  0x28   : > { %1212 = vmatpush.bf16.msra.mxu0 %v2910_v28  ;;  %v2221_v28 = vld [vmem:[%s3263_s20 + $0xa0] sm:$0xf]  ;;  %v2279_v7 = vld [vmem:[%s3263_s20 + $0x118] sm:$0xf0]  ;;  %v2820_v23 = vld [vmem:[%s3263_s20 + $0x12c] sm:$0xf0] }
  0x29   : > { %1381 = vmatpush.bf16.msra.mxu1 %v2918_v29  ;;  %v2804_v29 = vld [vmem:[%s3263_s20 + $0xac] sm:$0xf0]  ;;  %v3358_v10 = vld [vmem:[%s3656_s2] ss:$0 sm:$0xff]  ;;  %v2822_v56 = vld [vmem:[%s3263_s20 + $0x144] sm:$0xf] }
  0x2a   : > { %1550 = vmatpush.bf16.msra.mxu2 %v2926_v30  ;;  %v2802_v30 = vld [vmem:[%s3263_s20 + $0xa4] sm:$0xf]  ;;  %v2222_v36 = vor.u32 %v2804_v29, %v2221_v28  ;;  %v2285_v22 = vld [vmem:[%s3263_s20 + $0x120] sm:$0xf]  ;;  %v2821_v28 = vld [vmem:[%s3263_s20 + $0x134] sm:$0xf0] }
  0x2b   : > { %1719 = vmatpush.bf16.msra.mxu3 %v2934_v31  ;;  %1213 = vmatmul.bf16.vlgmr.msra.gmra.mxu0 %v2142_v40  ;;  %v2223_v31 = vld [vmem:[%s3263_s20 + $0xb0] sm:$0xf0]  ;;  %v2237_v40 = vld [vmem:[%s3263_s20 + $0xc0] sm:$0xf]  ;;  %v2819_v29 = vld [vmem:[%s3263_s20 + $0x12c] sm:$0xf]  ;;  %v2286_v34 = vor.u32 %v2820_v23, %v2285_v22 }
  0x2c   : > { %1382 = vmatmul.bf16.vlgmr.msra.gmra.mxu1 %v2146_v41  ;;  %v2226_v37 = vor.u32 %v2802_v30, %v2223_v31  ;;  %v2808_v41 = vld [vmem:[%s3263_s20 + $0xcc] sm:$0xf0]  ;;  %v2295_v30 = vld [vmem:[%s3263_s20 + $0x138] sm:$0xf0]  ;;  %v2303_v57 = vld [vmem:[%s3263_s20 + $0x150] sm:$0xf0] }
  0x2d   : > { %1551 = vmatmul.bf16.vlgmr.msra.gmra.mxu2 %v2150_v42  ;;  %v2806_v42 = vld [vmem:[%s3263_s20 + $0xc4] sm:$0xf]  ;;  %v2238_v48 = vor.u32 %v2808_v41, %v2237_v40  ;;  %v2298_v41 = vor.u32 %v2819_v29, %v2295_v30  ;;  %v2309_v58 = vld [vmem:[%s3263_s20 + $0x148] sm:$0xf]  ;;  %v2825_v59 = vld [vmem:[%s3263_s20 + $0x154] sm:$0xf0] }
  0x2e   : > { %1720 = vmatmul.bf16.vlgmr.msra.gmra.mxu3 %v2154_v43  ;;  %v2239_v43 = vld [vmem:[%s3263_s20 + $0xd0] sm:$0xf0]  ;;  %v2828_v22 = vld [vmem:[%s3263_s20 + $0x16c] sm:$0xf0]  ;;  %v2327_v29 = vld [vmem:[%s3263_s20 + $0x178] sm:$0xf0] }
  0x2f   : > { %v2242_v49 = vor.u32 %v2806_v42, %v2239_v43 }
  0x3b   : > { %1218 = vmatmul.bf16.gmra.mxu0 %v2158_v52  ;;  %v2253_v52 = vld [vmem:[%s3263_s20 + $0xe0] sm:$0xf] }
  0x3c   : > { %1387 = vmatmul.bf16.gmra.mxu1 %v2162_v53  ;;  %v2812_v53 = vld [vmem:[%s3263_s20 + $0xec] sm:$0xf0] }
  0x3d   : > { %1556 = vmatmul.bf16.gmra.mxu2 %v2166_v54  ;;  %v2810_v54 = vld [vmem:[%s3263_s20 + $0xe4] sm:$0xf]  ;;  %v2254_v60 = vor.u32 %v2812_v53, %v2253_v52  ;;  %v2301_v53 = vld [vmem:[%s3263_s20 + $0x140] sm:$0xf] }
  0x3e   : > { %1725 = vmatmul.bf16.gmra.mxu3 %v2170_v55  ;;  %v2255_v55 = vld [vmem:[%s3263_s20 + $0xf0] sm:$0xf0] }
  0x3f   : > { %v2258_v61 = vor.u32 %v2810_v54, %v2255_v55  ;;  %v2824_v54 = vld [vmem:[%s3263_s20 + $0x14c] sm:$0xf0] }
  0x4b   : > { %1223 = vmatmul.bf16.gmra.mxu0 %v2174_v0  ;;  %v2269_v0 = vld [vmem:[%s3263_s20 + $0x100] sm:$0xf] }
  0x4c   : > { %1392 = vmatmul.bf16.gmra.mxu1 %v2178_v1  ;;  %v2816_v1 = vld [vmem:[%s3263_s20 + $0x10c] sm:$0xf0] }
  0x4d   : > { %1561 = vmatmul.bf16.gmra.mxu2 %v2182_v2  ;;  %v2814_v2 = vld [vmem:[%s3263_s20 + $0x104] sm:$0xf]  ;;  %v2270_v8 = vor.u32 %v2816_v1, %v2269_v0  ;;  %v2302_v1 = vor.u32 %v2824_v54, %v2301_v53  ;;  %v2832_v53 = vld [vmem:[%s3263_s20 + $0x18c] sm:$0xf0] }
  0x4e   : > { %1730 = vmatmul.bf16.gmra.mxu3 %v2186_v3  ;;  %v2271_v3 = vld [vmem:[%s3263_s20 + $0x110] sm:$0xf0] }
  0x4f   : > { %v2274_v9 = vor.u32 %v2814_v2, %v2271_v3  ;;  %v2306_v2 = vor.u32 %v2822_v56, %v2303_v57  ;;  %v2335_v56 = vld [vmem:[%s3263_s20 + $0x190] sm:$0xf0]  ;;  %v2341_v57 = vld [vmem:[%s3263_s20 + $0x188] sm:$0xf] }
  0x5b   : > { %1228 = vmatmul.bf16.gmra.mxu0 %v2190_v12 }
  0x5c   : > { %1397 = vmatmul.bf16.gmra.mxu1 %v2194_v13  ;;  %v2278_v13 = vor.u32 %v2817_v5, %v2277_v4 }
  0x5d   : > { %1566 = vmatmul.bf16.gmra.mxu2 %v2198_v14  ;;  %v2282_v14 = vor.u32 %v2815_v6, %v2279_v7  ;;  %v2310_v7 = vor.u32 %v2825_v59, %v2309_v58  ;;  %v2833_v58 = vld [vmem:[%s3263_s20 + $0x194] sm:$0xf0]  ;;  %v2831_v59 = vld [vmem:[%s3263_s20 + $0x18c] sm:$0xf] }
  0x5e   : > { %1735 = vmatmul.bf16.gmra.mxu3 %v2202_v15 }
  0x6b   : > { %1233 = vmatmul.bf16.gmra.mxu0 %v2206_v24 }
  0x6c   : > { %1402 = vmatmul.bf16.gmra.mxu1 %v2210_v25  ;;  %v2818_v25 = vld [vmem:[%s3263_s20 + $0x124] sm:$0xf] }
  0x6d   : > { %1571 = vmatmul.bf16.gmra.mxu2 %v2214_v26  ;;  %v2287_v26 = vld [vmem:[%s3263_s20 + $0x130] sm:$0xf0] }
  0x6e   : > { %1740 = vmatmul.bf16.gmra.mxu3 %v2218_v27  ;;  %v2293_v27 = vld [vmem:[%s3263_s20 + $0x128] sm:$0xf]  ;;  %v2290_v35 = vor.u32 %v2818_v25, %v2287_v26  ;;  %v2319_v25 = vld [vmem:[%s3263_s20 + $0x170] sm:$0xf0] }
  0x6f   : > { %v2294_v40 = vor.u32 %v2821_v28, %v2293_v27  ;;  %v2325_v26 = vld [vmem:[%s3263_s20 + $0x168] sm:$0xf]  ;;  %v2829_v27 = vld [vmem:[%s3263_s20 + $0x174] sm:$0xf0]  ;;  %v2827_v28 = vld [vmem:[%s3263_s20 + $0x16c] sm:$0xf] }
  0x7b   : > { %1238 = vmatmul.bf16.gmra.mxu0 %v2222_v36 }
  0x7c   : > { %1407 = vmatmul.bf16.gmra.mxu1 %v2226_v37 }
  0x7d   : > { %1576 = vmatmul.bf16.gmra.mxu2 %v2230_v38 }
  0x7e   : > { %1745 = vmatmul.bf16.gmra.mxu3 %v2234_v39 }
  0x8b   : > { %1243 = vmatmul.bf16.gmra.mxu0 %v2238_v48 }
  0x8c   : > { %1412 = vmatmul.bf16.gmra.mxu1 %v2242_v49 }
  0x8d   : > { %1581 = vmatmul.bf16.gmra.mxu2 %v2246_v50 }
  0x8e   : > { %1750 = vmatmul.bf16.gmra.mxu3 %v2250_v51 }
  0x9b   : > { %1248 = vmatmul.bf16.gmra.mxu0 %v2254_v60  ;;  %v2823_v60 = vld [vmem:[%s3263_s20 + $0x14c] sm:$0xf] }
  0x9c   : > { %1417 = vmatmul.bf16.gmra.mxu1 %v2258_v61  ;;  %v2311_v61 = vld [vmem:[%s3263_s20 + $0x158] sm:$0xf0] }
  0x9d   : > { %1586 = vmatmul.bf16.gmra.mxu2 %v2262_v62 }
  0x9e   : > { %1755 = vmatmul.bf16.gmra.mxu3 %v2266_v63 }
  0xa8   : > { %v1214_v11 = vpop.f32.mrf.mxu0 }
  0xa9   : > { %v1383_v12 = vpop.f32.mrf.mxu1  ;;  %v1215_v15 = vadd.f32 %v3358_v10, %v1214_v11 }
  0xab   : > { %1253 = vmatmul.bf16.gmra.mxu0 %v2270_v8  ;;  %v1384_v18 = vadd.f32 %v1383_v12, %v1215_v15  ;;  %v2314_v8 = vor.u32 %v2823_v60, %v2311_v61  ;;  %v2343_v60 = vld [vmem:[%s3263_s20 + $0x198] sm:$0xf0] }
  0xac   : > { %1422 = vmatmul.bf16.gmra.mxu1 %v2274_v9 }
  0xad   : > { %1591 = vmatmul.bf16.gmra.mxu2 %v2278_v13 }
  0xae   : > { %1760 = vmatmul.bf16.gmra.mxu3 %v2282_v14 }
  0xb0   : > { %v1552_v16 = vpop.f32.mrf.mxu2  ;;  %v1216_v19 = vpop.f32.mrf.mxu0 }
  0xb1   : > { %v1721_v17 = vpop.f32.mrf.mxu3  ;;  %v1385_v20 = vpop.f32.mrf.mxu1  ;;  %v1217_v21 = vadd.f32 %v3358_v10, %v1216_v19  ;;  %v1553_v24 = vadd.f32 %v1552_v16, %v1384_v18 }
  0xb3   : > { %v1386_v31 = vadd.f32 %v1385_v20, %v1217_v21  ;;  %v1722_v36 = vadd.f32 %v1721_v17, %v1553_v24  ;;  %v2317_v21 = vld [vmem:[%s3263_s20 + $0x160] sm:$0xf]  ;;  %v2826_v24 = vld [vmem:[%s3263_s20 + $0x164] sm:$0xf] }
  0xb5   : > { %v1881_v43 = vmax.f32 %v1722_v36, 0.0 }
  0xb8   : > { %v1554_v32 = vpop.f32.mrf.mxu2  ;;  %v1219_v38 = vpop.f32.mrf.mxu0 }
  0xb9   : > { %v1723_v33 = vpop.f32.mrf.mxu3  ;;  %v1555_v37 = vadd.f32 %v1554_v32, %v1386_v31  ;;  %v1388_v39 = vpop.f32.mrf.mxu1  ;;  %v1220_v45 = vadd.f32 %v3358_v10, %v1219_v38 }
  0xbb   : > { %v1724_v42 = vadd.f32 %v1723_v33, %v1555_v37  ;;  %1258 = vmatmul.bf16.gmra.mxu0 %v2286_v34  ;;  %v1389_v49 = vadd.f32 %v1388_v39, %v1220_v45  ;;  %v2318_v33 = vor.u32 %v2828_v22, %v2317_v21  ;;  %v2322_v34 = vor.u32 %v2826_v24, %v2319_v25  ;;  %v2836_v21 = vld [vmem:[%s3263_s20 + $0x1ac] sm:$0xf0]  ;;  %v2351_v24 = vld [vmem:[%s3263_s20 + $0x1b0] sm:$0xf0]  ;;  %v2357_v25 = vld [vmem:[%s3263_s20 + $0x1a8] sm:$0xf] }
  0xbc   : > { %1427 = vmatmul.bf16.gmra.mxu1 %v2290_v35  ;;  %v2326_v39 = vor.u32 %v2829_v27, %v2325_v26  ;;  %v2837_v26 = vld [vmem:[%s3263_s20 + $0x1b4] sm:$0xf0]  ;;  %v2835_v27 = vld [vmem:[%s3263_s20 + $0x1ac] sm:$0xf] }
  0xbd   : > { %v1882_v44 = vmax.f32 %v1724_v42, 0.0  ;;  %1596 = vmatmul.bf16.gmra.mxu2 %v2294_v40  ;;  %v2330_v40 = vor.u32 %v2827_v28, %v2327_v29  ;;  %v2359_v28 = vld [vmem:[%s3263_s20 + $0x1b8] sm:$0xf0] }
  0xbe   : > { %1765 = vmatmul.bf16.gmra.mxu3 %v2298_v41 }
  0xbf   : > { %v2945_v46 = vpack.c.bf16 %v1882_v44, %v1881_v43 }
  0xc0   : > { %v1557_v47 = vpop.f32.mrf.mxu2  ;;  %v1221_v50 = vpop.f32.mrf.mxu0 }
  0xc1   : > { %v1726_v48 = vpop.f32.mrf.mxu3  ;;  %2946 = vst [vmem:[%s3375_s10] sm:$0xff] %v2945_v46   ;;  %v1390_v51 = vpop.f32.mrf.mxu1  ;;  %v1222_v52 = vadd.f32 %v3358_v10, %v1221_v50  ;;  %v1558_v55 = vadd.f32 %v1557_v47, %v1389_v49 }
  0xc3   : > { %v1391_v62 = vadd.f32 %v1390_v51, %v1222_v52  ;;  %v1727_v3 = vadd.f32 %v1726_v48, %v1558_v55  ;;  %v2333_v52 = vld [vmem:[%s3263_s20 + $0x180] sm:$0xf]  ;;  %v2830_v55 = vld [vmem:[%s3263_s20 + $0x184] sm:$0xf] }
  0xc5   : > { %v1883_v11 = vmax.f32 %v1727_v3, 0.0 }
  0xc8   : > { %v1559_v63 = vpop.f32.mrf.mxu2  ;;  %v1224_v5 = vpop.f32.mrf.mxu0 }
  0xc9   : > { %v1728_v0 = vpop.f32.mrf.mxu3  ;;  %v1560_v4 = vadd.f32 %v1559_v63, %v1391_v62  ;;  %v1393_v6 = vpop.f32.mrf.mxu1  ;;  %v1225_v13 = vadd.f32 %v3358_v10, %v1224_v5 }
  0xcb   : > { %v1729_v9 = vadd.f32 %v1728_v0, %v1560_v4  ;;  %1263 = vmatmul.bf16.gmra.mxu0 %v2302_v1  ;;  %v1394_v17 = vadd.f32 %v1393_v6, %v1225_v13  ;;  %v2334_v0 = vor.u32 %v2832_v53, %v2333_v52  ;;  %v2338_v1 = vor.u32 %v2830_v55, %v2335_v56  ;;  %v2840_v52 = vld [vmem:[%s3263_s20 + $0x1cc] sm:$0xf0]  ;;  %v2367_v55 = vld [vmem:[%s3263_s20 + $0x1d0] sm:$0xf0]  ;;  %v2373_v56 = vld [vmem:[%s3263_s20 + $0x1c8] sm:$0xf] }
  0xcc   : > { %1432 = vmatmul.bf16.gmra.mxu1 %v2306_v2  ;;  %v2342_v6 = vor.u32 %v2833_v58, %v2341_v57  ;;  %v2841_v57 = vld [vmem:[%s3263_s20 + $0x1d4] sm:$0xf0]  ;;  %v2839_v58 = vld [vmem:[%s3263_s20 + $0x1cc] sm:$0xf] }
  0xcd   : > { %v1884_v12 = vmax.f32 %v1729_v9, 0.0  ;;  %1601 = vmatmul.bf16.gmra.mxu2 %v2310_v7  ;;  %v2346_v7 = vor.u32 %v2831_v59, %v2343_v60  ;;  %v2375_v59 = vld [vmem:[%s3263_s20 + $0x1d8] sm:$0xf0] }
  0xce   : > { %1770 = vmatmul.bf16.gmra.mxu3 %v2314_v8 }
  0xcf   : > { %v2950_v14 = vpack.c.bf16 %v1884_v12, %v1883_v11 }
  0xd0   : > { %v1562_v15 = vpop.f32.mrf.mxu2  ;;  %v1226_v18 = vpop.f32.mrf.mxu0 }
  0xd1   : > { %v1731_v16 = vpop.f32.mrf.mxu3  ;;  %3102 = vst [vmem:[%s3375_s10 + $0x8] sm:$0xff] %v2950_v14   ;;  %v1395_v19 = vpop.f32.mrf.mxu1  ;;  %v1227_v20 = vadd.f32 %v3358_v10, %v1226_v18  ;;  %v1563_v23 = vadd.f32 %v1562_v15, %v1394_v17 }
  0xd3   : > { %v1396_v30 = vadd.f32 %v1395_v19, %v1227_v20  ;;  %v1732_v35 = vadd.f32 %v1731_v16, %v1563_v23  ;;  %v2349_v20 = vld [vmem:[%s3263_s20 + $0x1a0] sm:$0xf]  ;;  %v2834_v23 = vld [vmem:[%s3263_s20 + $0x1a4] sm:$0xf] }
  0xd5   : > { %v1885_v42 = vmax.f32 %v1732_v35, 0.0 }
  0xd8   : > { %v1564_v31 = vpop.f32.mrf.mxu2  ;;  %v1229_v37 = vpop.f32.mrf.mxu0 }
  0xd9   : > { %v1733_v32 = vpop.f32.mrf.mxu3  ;;  %v1565_v36 = vadd.f32 %v1564_v31, %v1396_v30  ;;  %v1398_v38 = vpop.f32.mrf.mxu1  ;;  %v1230_v44 = vadd.f32 %v3358_v10, %v1229_v37 }
  0xdb   : > { %v1734_v41 = vadd.f32 %v1733_v32, %v1565_v36  ;;  %1268 = vmatmul.bf16.gmra.mxu0 %v2318_v33  ;;  %v1399_v48 = vadd.f32 %v1398_v38, %v1230_v44  ;;  %v2350_v32 = vor.u32 %v2836_v21, %v2349_v20  ;;  %v2354_v33 = vor.u32 %v2834_v23, %v2351_v24  ;;  %v2844_v20 = vld [vmem:[%s3263_s20 + $0x1ec] sm:$0xf0]  ;;  %v2383_v23 = vld [vmem:[%s3263_s20 + $0x1f0] sm:$0xf0]  ;;  %v2389_v24 = vld [vmem:[%s3263_s20 + $0x1e8] sm:$0xf] }
  0xdc   : > { %1437 = vmatmul.bf16.gmra.mxu1 %v2322_v34  ;;  %v2358_v38 = vor.u32 %v2837_v26, %v2357_v25  ;;  %v2845_v25 = vld [vmem:[%s3263_s20 + $0x1f4] sm:$0xf0]  ;;  %v2843_v26 = vld [vmem:[%s3263_s20 + $0x1ec] sm:$0xf] }
  0xdd   : > { %v1886_v43 = vmax.f32 %v1734_v41, 0.0  ;;  %1606 = vmatmul.bf16.gmra.mxu2 %v2326_v39  ;;  %v2362_v39 = vor.u32 %v2835_v27, %v2359_v28  ;;  %v2391_v27 = vld [vmem:[%s3263_s20 + $0x1f8] sm:$0xf0] }
  0xde   : > { %1775 = vmatmul.bf16.gmra.mxu3 %v2330_v40 }
  0xdf   : > { %v2955_v45 = vpack.c.bf16 %v1886_v43, %v1885_v42 }
  0xe0   : > { %v1567_v46 = vpop.f32.mrf.mxu2  ;;  %v1231_v49 = vpop.f32.mrf.mxu0 }
  0xe1   : > { %v1736_v47 = vpop.f32.mrf.mxu3  ;;  %3103 = vst [vmem:[%s3375_s10 + $0x10] sm:$0xff] %v2955_v45   ;;  %v1400_v50 = vpop.f32.mrf.mxu1  ;;  %v1232_v51 = vadd.f32 %v3358_v10, %v1231_v49  ;;  %v1568_v54 = vadd.f32 %v1567_v46, %v1399_v48 }
  0xe3   : > { %v1401_v61 = vadd.f32 %v1400_v50, %v1232_v51  ;;  %v1737_v2 = vadd.f32 %v1736_v47, %v1568_v54  ;;  %v2365_v51 = vld [vmem:[%s3263_s20 + $0x1c0] sm:$0xf]  ;;  %v2838_v54 = vld [vmem:[%s3263_s20 + $0x1c4] sm:$0xf] }
  0xe5   : > { %v1887_v9 = vmax.f32 %v1737_v2, 0.0 }
  0xe8   : > { %v1569_v62 = vpop.f32.mrf.mxu2  ;;  %v1234_v4 = vpop.f32.mrf.mxu0 }
  0xe9   : > { %v1738_v63 = vpop.f32.mrf.mxu3  ;;  %v1570_v3 = vadd.f32 %v1569_v62, %v1401_v61  ;;  %v1403_v5 = vpop.f32.mrf.mxu1  ;;  %v1235_v12 = vadd.f32 %v3358_v10, %v1234_v4 }
  0xeb   : > { %v1739_v8 = vadd.f32 %v1738_v63, %v1570_v3  ;;  %1273 = vmatmul.bf16.gmra.mxu0 %v2334_v0  ;;  %v1404_v16 = vadd.f32 %v1403_v5, %v1235_v12  ;;  %v2366_v63 = vor.u32 %v2840_v52, %v2365_v51  ;;  %v2370_v0 = vor.u32 %v2838_v54, %v2367_v55  ;;  %v2848_v51 = vld [vmem:[%s3263_s20 + $0x20c] sm:$0xf0]  ;;  %v2399_v54 = vld [vmem:[%s3263_s20 + $0x210] sm:$0xf0]  ;;  %v2405_v55 = vld [vmem:[%s3263_s20 + $0x208] sm:$0xf] }
  0xec   : > { %1442 = vmatmul.bf16.gmra.mxu1 %v2338_v1  ;;  %v2374_v5 = vor.u32 %v2841_v57, %v2373_v56  ;;  %v2849_v56 = vld [vmem:[%s3263_s20 + $0x214] sm:$0xf0]  ;;  %v2847_v57 = vld [vmem:[%s3263_s20 + $0x20c] sm:$0xf] }
  0xed   : > { %v1888_v11 = vmax.f32 %v1739_v8, 0.0  ;;  %1611 = vmatmul.bf16.gmra.mxu2 %v2342_v6  ;;  %v2378_v6 = vor.u32 %v2839_v58, %v2375_v59  ;;  %v2407_v58 = vld [vmem:[%s3263_s20 + $0x218] sm:$0xf0] }
  0xee   : > { %1780 = vmatmul.bf16.gmra.mxu3 %v2346_v7 }
  0xef   : > { %v2960_v13 = vpack.c.bf16 %v1888_v11, %v1887_v9 }
  0xf0   : > { %v1572_v14 = vpop.f32.mrf.mxu2  ;;  %v1236_v17 = vpop.f32.mrf.mxu0 }
  0xf1   : > { %v1741_v15 = vpop.f32.mrf.mxu3  ;;  %3104 = vst [vmem:[%s3375_s10 + $0x18] sm:$0xff] %v2960_v13   ;;  %v1405_v18 = vpop.f32.mrf.mxu1  ;;  %v1237_v19 = vadd.f32 %v3358_v10, %v1236_v17  ;;  %v1573_v22 = vadd.f32 %v1572_v14, %v1404_v16 }
  0xf3   : > { %v1406_v29 = vadd.f32 %v1405_v18, %v1237_v19  ;;  %v1742_v34 = vadd.f32 %v1741_v15, %v1573_v22  ;;  %v2381_v19 = vld [vmem:[%s3263_s20 + $0x1e0] sm:$0xf]  ;;  %v2842_v22 = vld [vmem:[%s3263_s20 + $0x1e4] sm:$0xf] }
  0xf5   : > { %v1889_v41 = vmax.f32 %v1742_v34, 0.0 }
  0xf8   : > { %v1574_v30 = vpop.f32.mrf.mxu2  ;;  %v1239_v36 = vpop.f32.mrf.mxu0 }
  0xf9   : > { %v1743_v31 = vpop.f32.mrf.mxu3  ;;  %v1575_v35 = vadd.f32 %v1574_v30, %v1406_v29  ;;  %v1408_v37 = vpop.f32.mrf.mxu1  ;;  %v1240_v43 = vadd.f32 %v3358_v10, %v1239_v36 }
  0xfb   : > { %v1744_v40 = vadd.f32 %v1743_v31, %v1575_v35  ;;  %1278 = vmatmul.bf16.gmra.mxu0 %v2350_v32  ;;  %v1409_v47 = vadd.f32 %v1408_v37, %v1240_v43  ;;  %v2382_v31 = vor.u32 %v2844_v20, %v2381_v19  ;;  %v2386_v32 = vor.u32 %v2842_v22, %v2383_v23  ;;  %v2852_v19 = vld [vmem:[%s3263_s20 + $0x22c] sm:$0xf0]  ;;  %v2415_v22 = vld [vmem:[%s3263_s20 + $0x230] sm:$0xf0]  ;;  %v2421_v23 = vld [vmem:[%s3263_s20 + $0x228] sm:$0xf] }
  0xfc   : > { %1447 = vmatmul.bf16.gmra.mxu1 %v2354_v33  ;;  %v2390_v37 = vor.u32 %v2845_v25, %v2389_v24  ;;  %v2853_v24 = vld [vmem:[%s3263_s20 + $0x234] sm:$0xf0]  ;;  %v2851_v25 = vld [vmem:[%s3263_s20 + $0x22c] sm:$0xf] }
  0xfd   : > { %v1890_v42 = vmax.f32 %v1744_v40, 0.0  ;;  %1616 = vmatmul.bf16.gmra.mxu2 %v2358_v38  ;;  %v2394_v38 = vor.u32 %v2843_v26, %v2391_v27  ;;  %v2423_v26 = vld [vmem:[%s3263_s20 + $0x238] sm:$0xf0] }
  0xfe   : > { %1785 = vmatmul.bf16.gmra.mxu3 %v2362_v39 }
  0xff   : > { %v2965_v44 = vpack.c.bf16 %v1890_v42, %v1889_v41 }
 0x100   : > { %v1577_v45 = vpop.f32.mrf.mxu2  ;;  %v1241_v48 = vpop.f32.mrf.mxu0 }
 0x101   : > { %v1746_v46 = vpop.f32.mrf.mxu3  ;;  %3105 = vst [vmem:[%s3375_s10 + $0x20] sm:$0xff] %v2965_v44   ;;  %v1410_v49 = vpop.f32.mrf.mxu1  ;;  %v1242_v50 = vadd.f32 %v3358_v10, %v1241_v48  ;;  %v1578_v53 = vadd.f32 %v1577_v45, %v1409_v47 }
 0x103   : > { %v1411_v60 = vadd.f32 %v1410_v49, %v1242_v50  ;;  %v1747_v1 = vadd.f32 %v1746_v46, %v1578_v53  ;;  %v2397_v50 = vld [vmem:[%s3263_s20 + $0x200] sm:$0xf]  ;;  %v2846_v53 = vld [vmem:[%s3263_s20 + $0x204] sm:$0xf] }
 0x105   : > { %v1891_v8 = vmax.f32 %v1747_v1, 0.0 }
 0x108   : > { %v1579_v61 = vpop.f32.mrf.mxu2  ;;  %v1244_v3 = vpop.f32.mrf.mxu0 }
 0x109   : > { %v1748_v62 = vpop.f32.mrf.mxu3  ;;  %v1580_v2 = vadd.f32 %v1579_v61, %v1411_v60  ;;  %v1413_v4 = vpop.f32.mrf.mxu1  ;;  %v1245_v11 = vadd.f32 %v3358_v10, %v1244_v3 }
 0x10b   : > { %v1749_v7 = vadd.f32 %v1748_v62, %v1580_v2  ;;  %1283 = vmatmul.bf16.gmra.mxu0 %v2366_v63  ;;  %v1414_v15 = vadd.f32 %v1413_v4, %v1245_v11  ;;  %v2398_v62 = vor.u32 %v2848_v51, %v2397_v50  ;;  %v2402_v63 = vor.u32 %v2846_v53, %v2399_v54  ;;  %v2856_v50 = vld [vmem:[%s3263_s20 + $0x24c] sm:$0xf0]  ;;  %v2431_v53 = vld [vmem:[%s3263_s20 + $0x250] sm:$0xf0]  ;;  %v2437_v54 = vld [vmem:[%s3263_s20 + $0x248] sm:$0xf] }
 0x10c   : > { %1452 = vmatmul.bf16.gmra.mxu1 %v2370_v0  ;;  %v2406_v4 = vor.u32 %v2849_v56, %v2405_v55  ;;  %v2857_v55 = vld [vmem:[%s3263_s20 + $0x254] sm:$0xf0]  ;;  %v2855_v56 = vld [vmem:[%s3263_s20 + $0x24c] sm:$0xf] }
 0x10d   : > { %v1892_v9 = vmax.f32 %v1749_v7, 0.0  ;;  %1621 = vmatmul.bf16.gmra.mxu2 %v2374_v5  ;;  %v2410_v5 = vor.u32 %v2847_v57, %v2407_v58  ;;  %v2439_v57 = vld [vmem:[%s3263_s20 + $0x258] sm:$0xf0] }
 0x10e   : > { %1790 = vmatmul.bf16.gmra.mxu3 %v2378_v6 }
 0x10f   : > { %v2970_v12 = vpack.c.bf16 %v1892_v9, %v1891_v8 }
 0x110   : > { %v1582_v13 = vpop.f32.mrf.mxu2  ;;  %v1246_v16 = vpop.f32.mrf.mxu0 }
 0x111   : > { %v1751_v14 = vpop.f32.mrf.mxu3  ;;  %3106 = vst [vmem:[%s3375_s10 + $0x28] sm:$0xff] %v2970_v12   ;;  %v1415_v17 = vpop.f32.mrf.mxu1  ;;  %v1247_v18 = vadd.f32 %v3358_v10, %v1246_v16  ;;  %v1583_v21 = vadd.f32 %v1582_v13, %v1414_v15 }
 0x113   : > { %v1416_v28 = vadd.f32 %v1415_v17, %v1247_v18  ;;  %v1752_v33 = vadd.f32 %v1751_v14, %v1583_v21  ;;  %v2413_v18 = vld [vmem:[%s3263_s20 + $0x220] sm:$0xf]  ;;  %v2850_v21 = vld [vmem:[%s3263_s20 + $0x224] sm:$0xf] }
 0x115   : > { %v1893_v40 = vmax.f32 %v1752_v33, 0.0 }
 0x118   : > { %v1584_v29 = vpop.f32.mrf.mxu2  ;;  %v1249_v35 = vpop.f32.mrf.mxu0 }
 0x119   : > { %v1753_v30 = vpop.f32.mrf.mxu3  ;;  %v1585_v34 = vadd.f32 %v1584_v29, %v1416_v28  ;;  %v1418_v36 = vpop.f32.mrf.mxu1  ;;  %v1250_v42 = vadd.f32 %v3358_v10, %v1249_v35 }
 0x11b   : > { %v1754_v39 = vadd.f32 %v1753_v30, %v1585_v34  ;;  %1288 = vmatmul.bf16.gmra.mxu0 %v2382_v31  ;;  %v1419_v46 = vadd.f32 %v1418_v36, %v1250_v42  ;;  %v2414_v30 = vor.u32 %v2852_v19, %v2413_v18  ;;  %v2418_v31 = vor.u32 %v2850_v21, %v2415_v22  ;;  %v2860_v18 = vld [vmem:[%s3263_s20 + $0x26c] sm:$0xf0]  ;;  %v2447_v21 = vld [vmem:[%s3263_s20 + $0x270] sm:$0xf0]  ;;  %v2453_v22 = vld [vmem:[%s3263_s20 + $0x268] sm:$0xf] }
 0x11c   : > { %1457 = vmatmul.bf16.gmra.mxu1 %v2386_v32  ;;  %v2422_v36 = vor.u32 %v2853_v24, %v2421_v23  ;;  %v2861_v23 = vld [vmem:[%s3263_s20 + $0x274] sm:$0xf0]  ;;  %v2859_v24 = vld [vmem:[%s3263_s20 + $0x26c] sm:$0xf] }
 0x11d   : > { %v1894_v41 = vmax.f32 %v1754_v39, 0.0  ;;  %1626 = vmatmul.bf16.gmra.mxu2 %v2390_v37  ;;  %v2426_v37 = vor.u32 %v2851_v25, %v2423_v26  ;;  %v2455_v25 = vld [vmem:[%s3263_s20 + $0x278] sm:$0xf0] }
 0x11e   : > { %1795 = vmatmul.bf16.gmra.mxu3 %v2394_v38 }
 0x11f   : > { %v2975_v43 = vpack.c.bf16 %v1894_v41, %v1893_v40 }
 0x120   : > { %v1587_v44 = vpop.f32.mrf.mxu2  ;;  %v1251_v47 = vpop.f32.mrf.mxu0 }
 0x121   : > { %v1756_v45 = vpop.f32.mrf.mxu3  ;;  %3107 = vst [vmem:[%s3375_s10 + $0x30] sm:$0xff] %v2975_v43   ;;  %v1420_v48 = vpop.f32.mrf.mxu1  ;;  %v1252_v49 = vadd.f32 %v3358_v10, %v1251_v47  ;;  %v1588_v52 = vadd.f32 %v1587_v44, %v1419_v46 }
 0x123   : > { %v1421_v59 = vadd.f32 %v1420_v48, %v1252_v49  ;;  %v1757_v0 = vadd.f32 %v1756_v45, %v1588_v52  ;;  %v2429_v49 = vld [vmem:[%s3263_s20 + $0x240] sm:$0xf]  ;;  %v2854_v52 = vld [vmem:[%s3263_s20 + $0x244] sm:$0xf] }
 0x125   : > { %v1895_v7 = vmax.f32 %v1757_v0, 0.0 }
 0x128   : > { %v1589_v60 = vpop.f32.mrf.mxu2  ;;  %v1254_v2 = vpop.f32.mrf.mxu0 }
 0x129   : > { %v1758_v61 = vpop.f32.mrf.mxu3  ;;  %v1590_v1 = vadd.f32 %v1589_v60, %v1421_v59  ;;  %v1423_v3 = vpop.f32.mrf.mxu1  ;;  %v1255_v9 = vadd.f32 %v3358_v10, %v1254_v2 }
 0x12b   : > { %v1759_v6 = vadd.f32 %v1758_v61, %v1590_v1  ;;  %1293 = vmatmul.bf16.gmra.mxu0 %v2398_v62  ;;  %v1424_v14 = vadd.f32 %v1423_v3, %v1255_v9  ;;  %v2430_v61 = vor.u32 %v2856_v50, %v2429_v49  ;;  %v2434_v62 = vor.u32 %v2854_v52, %v2431_v53  ;;  %v2864_v49 = vld [vmem:[%s3263_s20 + $0x28c] sm:$0xf0]  ;;  %v2463_v52 = vld [vmem:[%s3263_s20 + $0x290] sm:$0xf0]  ;;  %v2469_v53 = vld [vmem:[%s3263_s20 + $0x288] sm:$0xf] }
 0x12c   : > { %1462 = vmatmul.bf16.gmra.mxu1 %v2402_v63  ;;  %v2438_v3 = vor.u32 %v2857_v55, %v2437_v54  ;;  %v2865_v54 = vld [vmem:[%s3263_s20 + $0x294] sm:$0xf0]  ;;  %v2863_v55 = vld [vmem:[%s3263_s20 + $0x28c] sm:$0xf] }
 0x12d   : > { %v1896_v8 = vmax.f32 %v1759_v6, 0.0  ;;  %1631 = vmatmul.bf16.gmra.mxu2 %v2406_v4  ;;  %v2442_v4 = vor.u32 %v2855_v56, %v2439_v57  ;;  %v2471_v56 = vld [vmem:[%s3263_s20 + $0x298] sm:$0xf0] }
 0x12e   : > { %1800 = vmatmul.bf16.gmra.mxu3 %v2410_v5 }
 0x12f   : > { %v2980_v11 = vpack.c.bf16 %v1896_v8, %v1895_v7 }
 0x130   : > { %v1592_v12 = vpop.f32.mrf.mxu2  ;;  %v1256_v15 = vpop.f32.mrf.mxu0 }
 0x131   : > { %v1761_v13 = vpop.f32.mrf.mxu3  ;;  %3108 = vst [vmem:[%s3375_s10 + $0x38] sm:$0xff] %v2980_v11   ;;  %v1425_v16 = vpop.f32.mrf.mxu1  ;;  %v1257_v17 = vadd.f32 %v3358_v10, %v1256_v15  ;;  %v1593_v20 = vadd.f32 %v1592_v12, %v1424_v14 }
 0x133   : > { %v1426_v27 = vadd.f32 %v1425_v16, %v1257_v17  ;;  %v1762_v32 = vadd.f32 %v1761_v13, %v1593_v20  ;;  %v2445_v17 = vld [vmem:[%s3263_s20 + $0x260] sm:$0xf]  ;;  %v2858_v20 = vld [vmem:[%s3263_s20 + $0x264] sm:$0xf] }
 0x135   : > { %v1897_v39 = vmax.f32 %v1762_v32, 0.0 }
 0x138   : > { %v1594_v28 = vpop.f32.mrf.mxu2  ;;  %v1259_v34 = vpop.f32.mrf.mxu0 }
 0x139   : > { %v1763_v29 = vpop.f32.mrf.mxu3  ;;  %v1595_v33 = vadd.f32 %v1594_v28, %v1426_v27  ;;  %v1428_v35 = vpop.f32.mrf.mxu1  ;;  %v1260_v41 = vadd.f32 %v3358_v10, %v1259_v34 }
 0x13b   : > { %v1764_v38 = vadd.f32 %v1763_v29, %v1595_v33  ;;  %1298 = vmatmul.bf16.gmra.mxu0 %v2414_v30  ;;  %v1429_v45 = vadd.f32 %v1428_v35, %v1260_v41  ;;  %v2446_v29 = vor.u32 %v2860_v18, %v2445_v17  ;;  %v2450_v30 = vor.u32 %v2858_v20, %v2447_v21  ;;  %v2868_v17 = vld [vmem:[%s3263_s20 + $0x2ac] sm:$0xf0]  ;;  %v2479_v20 = vld [vmem:[%s3263_s20 + $0x2b0] sm:$0xf0]  ;;  %v2485_v21 = vld [vmem:[%s3263_s20 + $0x2a8] sm:$0xf] }
 0x13c   : > { %1467 = vmatmul.bf16.gmra.mxu1 %v2418_v31  ;;  %v2454_v35 = vor.u32 %v2861_v23, %v2453_v22  ;;  %v2869_v22 = vld [vmem:[%s3263_s20 + $0x2b4] sm:$0xf0]  ;;  %v2867_v23 = vld [vmem:[%s3263_s20 + $0x2ac] sm:$0xf] }
 0x13d   : > { %v1898_v40 = vmax.f32 %v1764_v38, 0.0  ;;  %1636 = vmatmul.bf16.gmra.mxu2 %v2422_v36  ;;  %v2458_v36 = vor.u32 %v2859_v24, %v2455_v25  ;;  %v2487_v24 = vld [vmem:[%s3263_s20 + $0x2b8] sm:$0xf0] }
 0x13e   : > { %1805 = vmatmul.bf16.gmra.mxu3 %v2426_v37 }
 0x13f   : > { %v2985_v42 = vpack.c.bf16 %v1898_v40, %v1897_v39 }
 0x140   : > { %v1597_v43 = vpop.f32.mrf.mxu2  ;;  %v1261_v46 = vpop.f32.mrf.mxu0 }
 0x141   : > { %v1766_v44 = vpop.f32.mrf.mxu3  ;;  %3109 = vst [vmem:[%s3375_s10 + $0x40] sm:$0xff] %v2985_v42   ;;  %v1430_v47 = vpop.f32.mrf.mxu1  ;;  %v1262_v48 = vadd.f32 %v3358_v10, %v1261_v46  ;;  %v1598_v51 = vadd.f32 %v1597_v43, %v1429_v45 }
 0x143   : > { %v1431_v58 = vadd.f32 %v1430_v47, %v1262_v48  ;;  %v1767_v63 = vadd.f32 %v1766_v44, %v1598_v51  ;;  %v2461_v48 = vld [vmem:[%s3263_s20 + $0x280] sm:$0xf]  ;;  %v2862_v51 = vld [vmem:[%s3263_s20 + $0x284] sm:$0xf] }
 0x145   : > { %v1899_v6 = vmax.f32 %v1767_v63, 0.0 }
 0x148   : > { %v1599_v59 = vpop.f32.mrf.mxu2  ;;  %v1264_v1 = vpop.f32.mrf.mxu0 }
 0x149   : > { %v1768_v60 = vpop.f32.mrf.mxu3  ;;  %v1600_v0 = vadd.f32 %v1599_v59, %v1431_v58  ;;  %v1433_v2 = vpop.f32.mrf.mxu1  ;;  %v1265_v8 = vadd.f32 %v3358_v10, %v1264_v1 }
 0x14b   : > { %v1769_v5 = vadd.f32 %v1768_v60, %v1600_v0  ;;  %1303 = vmatmul.bf16.gmra.mxu0 %v2430_v61  ;;  %v1434_v13 = vadd.f32 %v1433_v2, %v1265_v8  ;;  %v2462_v60 = vor.u32 %v2864_v49, %v2461_v48  ;;  %v2466_v61 = vor.u32 %v2862_v51, %v2463_v52  ;;  %v2872_v48 = vld [vmem:[%s3263_s20 + $0x2cc] sm:$0xf0]  ;;  %v2495_v51 = vld [vmem:[%s3263_s20 + $0x2d0] sm:$0xf0]  ;;  %v2501_v52 = vld [vmem:[%s3263_s20 + $0x2c8] sm:$0xf] }
 0x14c   : > { %1472 = vmatmul.bf16.gmra.mxu1 %v2434_v62  ;;  %v2470_v2 = vor.u32 %v2865_v54, %v2469_v53  ;;  %v2873_v53 = vld [vmem:[%s3263_s20 + $0x2d4] sm:$0xf0]  ;;  %v2871_v54 = vld [vmem:[%s3263_s20 + $0x2cc] sm:$0xf] }
 0x14d   : > { %v1900_v7 = vmax.f32 %v1769_v5, 0.0  ;;  %1641 = vmatmul.bf16.gmra.mxu2 %v2438_v3  ;;  %v2474_v3 = vor.u32 %v2863_v55, %v2471_v56  ;;  %v2503_v55 = vld [vmem:[%s3263_s20 + $0x2d8] sm:$0xf0] }
 0x14e   : > { %1810 = vmatmul.bf16.gmra.mxu3 %v2442_v4 }
 0x14f   : > { %v2990_v9 = vpack.c.bf16 %v1900_v7, %v1899_v6 }
 0x150   : > { %v1602_v11 = vpop.f32.mrf.mxu2  ;;  %v1266_v14 = vpop.f32.mrf.mxu0 }
 0x151   : > { %v1771_v12 = vpop.f32.mrf.mxu3  ;;  %3110 = vst [vmem:[%s3375_s10 + $0x48] sm:$0xff] %v2990_v9   ;;  %v1435_v15 = vpop.f32.mrf.mxu1  ;;  %v1267_v16 = vadd.f32 %v3358_v10, %v1266_v14  ;;  %v1603_v19 = vadd.f32 %v1602_v11, %v1434_v13 }
 0x153   : > { %v1436_v26 = vadd.f32 %v1435_v15, %v1267_v16  ;;  %v1772_v31 = vadd.f32 %v1771_v12, %v1603_v19  ;;  %v2477_v16 = vld [vmem:[%s3263_s20 + $0x2a0] sm:$0xf]  ;;  %v2866_v19 = vld [vmem:[%s3263_s20 + $0x2a4] sm:$0xf] }
 0x155   : > { %v1901_v38 = vmax.f32 %v1772_v31, 0.0 }
 0x158   : > { %v1604_v27 = vpop.f32.mrf.mxu2  ;;  %v1269_v33 = vpop.f32.mrf.mxu0 }
 0x159   : > { %v1773_v28 = vpop.f32.mrf.mxu3  ;;  %v1605_v32 = vadd.f32 %v1604_v27, %v1436_v26  ;;  %v1438_v34 = vpop.f32.mrf.mxu1  ;;  %v1270_v40 = vadd.f32 %v3358_v10, %v1269_v33 }
 0x15b   : > { %v1774_v37 = vadd.f32 %v1773_v28, %v1605_v32  ;;  %1308 = vmatmul.bf16.gmra.mxu0 %v2446_v29  ;;  %v1439_v44 = vadd.f32 %v1438_v34, %v1270_v40  ;;  %v2478_v28 = vor.u32 %v2868_v17, %v2477_v16  ;;  %v2482_v29 = vor.u32 %v2866_v19, %v2479_v20  ;;  %v2876_v16 = vld [vmem:[%s3263_s20 + $0x2ec] sm:$0xf0]  ;;  %v2511_v19 = vld [vmem:[%s3263_s20 + $0x2f0] sm:$0xf0]  ;;  %v2517_v20 = vld [vmem:[%s3263_s20 + $0x2e8] sm:$0xf] }
 0x15c   : > { %1477 = vmatmul.bf16.gmra.mxu1 %v2450_v30  ;;  %v2486_v34 = vor.u32 %v2869_v22, %v2485_v21  ;;  %v2877_v21 = vld [vmem:[%s3263_s20 + $0x2f4] sm:$0xf0]  ;;  %v2875_v22 = vld [vmem:[%s3263_s20 + $0x2ec] sm:$0xf] }
 0x15d   : > { %v1902_v39 = vmax.f32 %v1774_v37, 0.0  ;;  %1646 = vmatmul.bf16.gmra.mxu2 %v2454_v35  ;;  %v2490_v35 = vor.u32 %v2867_v23, %v2487_v24  ;;  %v2519_v23 = vld [vmem:[%s3263_s20 + $0x2f8] sm:$0xf0] }
 0x15e   : > { %1815 = vmatmul.bf16.gmra.mxu3 %v2458_v36 }
 0x15f   : > { %v2995_v41 = vpack.c.bf16 %v1902_v39, %v1901_v38 }
 0x160   : > { %v1607_v42 = vpop.f32.mrf.mxu2  ;;  %v1271_v45 = vpop.f32.mrf.mxu0 }
 0x161   : > { %v1776_v43 = vpop.f32.mrf.mxu3  ;;  %3111 = vst [vmem:[%s3375_s10 + $0x50] sm:$0xff] %v2995_v41   ;;  %v1440_v46 = vpop.f32.mrf.mxu1  ;;  %v1272_v47 = vadd.f32 %v3358_v10, %v1271_v45  ;;  %v1608_v50 = vadd.f32 %v1607_v42, %v1439_v44 }
 0x163   : > { %v1441_v57 = vadd.f32 %v1440_v46, %v1272_v47  ;;  %v1777_v62 = vadd.f32 %v1776_v43, %v1608_v50  ;;  %v2493_v47 = vld [vmem:[%s3263_s20 + $0x2c0] sm:$0xf]  ;;  %v2870_v50 = vld [vmem:[%s3263_s20 + $0x2c4] sm:$0xf] }
 0x165   : > { %v1903_v5 = vmax.f32 %v1777_v62, 0.0 }
 0x168   : > { %v1609_v58 = vpop.f32.mrf.mxu2  ;;  %v1274_v0 = vpop.f32.mrf.mxu0 }
 0x169   : > { %v1778_v59 = vpop.f32.mrf.mxu3  ;;  %v1610_v63 = vadd.f32 %v1609_v58, %v1441_v57  ;;  %v1443_v1 = vpop.f32.mrf.mxu1  ;;  %v1275_v7 = vadd.f32 %v3358_v10, %v1274_v0 }
 0x16b   : > { %v1779_v4 = vadd.f32 %v1778_v59, %v1610_v63  ;;  %1313 = vmatmul.bf16.gmra.mxu0 %v2462_v60  ;;  %v1444_v12 = vadd.f32 %v1443_v1, %v1275_v7  ;;  %v2494_v59 = vor.u32 %v2872_v48, %v2493_v47  ;;  %v2498_v60 = vor.u32 %v2870_v50, %v2495_v51  ;;  %v2880_v47 = vld [vmem:[%s3263_s20 + $0x30c] sm:$0xf0]  ;;  %v2527_v50 = vld [vmem:[%s3263_s20 + $0x310] sm:$0xf0]  ;;  %v2533_v51 = vld [vmem:[%s3263_s20 + $0x308] sm:$0xf] }
 0x16c   : > { %1482 = vmatmul.bf16.gmra.mxu1 %v2466_v61  ;;  %v2502_v1 = vor.u32 %v2873_v53, %v2501_v52  ;;  %v2881_v52 = vld [vmem:[%s3263_s20 + $0x314] sm:$0xf0]  ;;  %v2879_v53 = vld [vmem:[%s3263_s20 + $0x30c] sm:$0xf] }
 0x16d   : > { %v1904_v6 = vmax.f32 %v1779_v4, 0.0  ;;  %1651 = vmatmul.bf16.gmra.mxu2 %v2470_v2  ;;  %v2506_v2 = vor.u32 %v2871_v54, %v2503_v55  ;;  %v2535_v54 = vld [vmem:[%s3263_s20 + $0x318] sm:$0xf0] }
 0x16e   : > { %1820 = vmatmul.bf16.gmra.mxu3 %v2474_v3 }
 0x16f   : > { %v3000_v8 = vpack.c.bf16 %v1904_v6, %v1903_v5 }
 0x170   : > { %v1612_v9 = vpop.f32.mrf.mxu2  ;;  %v1276_v13 = vpop.f32.mrf.mxu0 }
 0x171   : > { %v1781_v11 = vpop.f32.mrf.mxu3  ;;  %3112 = vst [vmem:[%s3375_s10 + $0x58] sm:$0xff] %v3000_v8   ;;  %v1445_v14 = vpop.f32.mrf.mxu1  ;;  %v1277_v15 = vadd.f32 %v3358_v10, %v1276_v13  ;;  %v1613_v18 = vadd.f32 %v1612_v9, %v1444_v12 }
 0x173   : > { %v1446_v25 = vadd.f32 %v1445_v14, %v1277_v15  ;;  %v1782_v30 = vadd.f32 %v1781_v11, %v1613_v18  ;;  %v3524_v14 = vld [vmem:[%s3656_s2] ss:$0 sm:$0xff]  ;;  %v2874_v18 = vld [vmem:[%s3263_s20 + $0x2e4] sm:$0xf] }
 0x174   : > { %v2509_v15 = vld [vmem:[%s3263_s20 + $0x2e0] sm:$0xf] }
 0x175   : > { %v1905_v37 = vmax.f32 %v1782_v30, 0.0 }
 0x178   : > { %v1614_v26 = vpop.f32.mrf.mxu2  ;;  %v1279_v32 = vpop.f32.mrf.mxu0 }
 0x179   : > { %v1783_v27 = vpop.f32.mrf.mxu3  ;;  %v1615_v31 = vadd.f32 %v1614_v26, %v1446_v25  ;;  %v1448_v33 = vpop.f32.mrf.mxu1  ;;  %v1280_v39 = vadd.f32 %v3358_v10, %v1279_v32 }
 0x17b   : > { %v1784_v36 = vadd.f32 %v1783_v27, %v1615_v31  ;;  %1318 = vmatmul.bf16.gmra.mxu0 %v2478_v28  ;;  %v1449_v43 = vadd.f32 %v1448_v33, %v1280_v39  ;;  %v2510_v27 = vor.u32 %v2876_v16, %v2509_v15  ;;  %v2514_v28 = vor.u32 %v2874_v18, %v2511_v19  ;;  %v2884_v15 = vld [vmem:[%s3263_s20 + $0x32c] sm:$0xf0]  ;;  %v2543_v18 = vld [vmem:[%s3263_s20 + $0x330] sm:$0xf0]  ;;  %v2549_v19 = vld [vmem:[%s3263_s20 + $0x328] sm:$0xf] }
 0x17c   : > { %1487 = vmatmul.bf16.gmra.mxu1 %v2482_v29  ;;  %v2518_v33 = vor.u32 %v2877_v21, %v2517_v20  ;;  %v2885_v20 = vld [vmem:[%s3263_s20 + $0x334] sm:$0xf0]  ;;  %v2883_v21 = vld [vmem:[%s3263_s20 + $0x32c] sm:$0xf] }
 0x17d   : > { %v1906_v38 = vmax.f32 %v1784_v36, 0.0  ;;  %1656 = vmatmul.bf16.gmra.mxu2 %v2486_v34  ;;  %v2522_v34 = vor.u32 %v2875_v22, %v2519_v23  ;;  %v2551_v22 = vld [vmem:[%s3263_s20 + $0x338] sm:$0xf0] }
 0x17e   : > { %1825 = vmatmul.bf16.gmra.mxu3 %v2490_v35 }
 0x17f   : > { %v3005_v40 = vpack.c.bf16 %v1906_v38, %v1905_v37 }
 0x180   : > { %v1617_v41 = vpop.f32.mrf.mxu2  ;;  %v1281_v44 = vpop.f32.mrf.mxu0 }
 0x181   : > { %v1786_v42 = vpop.f32.mrf.mxu3  ;;  %3113 = vst [vmem:[%s3375_s10 + $0x60] sm:$0xff] %v3005_v40   ;;  %v1450_v45 = vpop.f32.mrf.mxu1  ;;  %v1282_v46 = vadd.f32 %v3358_v10, %v1281_v44  ;;  %v1618_v49 = vadd.f32 %v1617_v41, %v1449_v43 }
 0x183   : > { %v1451_v56 = vadd.f32 %v1450_v45, %v1282_v46  ;;  %v1787_v61 = vadd.f32 %v1786_v42, %v1618_v49  ;;  %v2525_v46 = vld [vmem:[%s3263_s20 + $0x300] sm:$0xf]  ;;  %v2878_v49 = vld [vmem:[%s3263_s20 + $0x304] sm:$0xf] }
 0x185   : > { %v1907_v4 = vmax.f32 %v1787_v61, 0.0 }
 0x188   : > { %v1619_v57 = vpop.f32.mrf.mxu2  ;;  %v1284_v63 = vpop.f32.mrf.mxu0 }
 0x189   : > { %v1788_v58 = vpop.f32.mrf.mxu3  ;;  %v1620_v62 = vadd.f32 %v1619_v57, %v1451_v56  ;;  %v1453_v0 = vpop.f32.mrf.mxu1  ;;  %v1285_v6 = vadd.f32 %v3358_v10, %v1284_v63 }
 0x18b   : > { %v1789_v3 = vadd.f32 %v1788_v58, %v1620_v62  ;;  %1323 = vmatmul.bf16.gmra.mxu0 %v2494_v59  ;;  %v1454_v11 = vadd.f32 %v1453_v0, %v1285_v6  ;;  %v2526_v58 = vor.u32 %v2880_v47, %v2525_v46  ;;  %v2530_v59 = vor.u32 %v2878_v49, %v2527_v50  ;;  %v2888_v46 = vld [vmem:[%s3263_s20 + $0x34c] sm:$0xf0]  ;;  %v2559_v49 = vld [vmem:[%s3263_s20 + $0x350] sm:$0xf0]  ;;  %v2565_v50 = vld [vmem:[%s3263_s20 + $0x348] sm:$0xf] }
 0x18c   : > { %1492 = vmatmul.bf16.gmra.mxu1 %v2498_v60  ;;  %v2534_v0 = vor.u32 %v2881_v52, %v2533_v51  ;;  %v2889_v51 = vld [vmem:[%s3263_s20 + $0x354] sm:$0xf0]  ;;  %v2887_v52 = vld [vmem:[%s3263_s20 + $0x34c] sm:$0xf] }
 0x18d   : > { %v1908_v5 = vmax.f32 %v1789_v3, 0.0  ;;  %1661 = vmatmul.bf16.gmra.mxu2 %v2502_v1  ;;  %v2538_v1 = vor.u32 %v2879_v53, %v2535_v54  ;;  %v2567_v53 = vld [vmem:[%s3263_s20 + $0x358] sm:$0xf0] }
 0x18e   : > { %1830 = vmatmul.bf16.gmra.mxu3 %v2506_v2 }
 0x18f   : > { %v3010_v7 = vpack.c.bf16 %v1908_v5, %v1907_v4 }
 0x190   : > { %v1622_v8 = vpop.f32.mrf.mxu2  ;;  %v1286_v12 = vpop.f32.mrf.mxu0 }
 0x191   : > { %v1791_v9 = vpop.f32.mrf.mxu3  ;;  %3114 = vst [vmem:[%s3375_s10 + $0x68] sm:$0xff] %v3010_v7   ;;  %v1455_v13 = vpop.f32.mrf.mxu1  ;;  %v1287_v10 = vadd.f32 %v3524_v14, %v1286_v12  ;;  %v1623_v17 = vadd.f32 %v1622_v8, %v1454_v11 }
 0x193   : > { %v1456_v24 = vadd.f32 %v1455_v13, %v1287_v10  ;;  %v1792_v29 = vadd.f32 %v1791_v9, %v1623_v17  ;;  %v2541_v10 = vld [vmem:[%s3263_s20 + $0x320] sm:$0xf]  ;;  %v2882_v17 = vld [vmem:[%s3263_s20 + $0x324] sm:$0xf] }
 0x195   : > { %v1909_v36 = vmax.f32 %v1792_v29, 0.0 }
 0x198   : > { %v1624_v25 = vpop.f32.mrf.mxu2  ;;  %v1289_v31 = vpop.f32.mrf.mxu0 }
 0x199   : > { %v1793_v26 = vpop.f32.mrf.mxu3  ;;  %v1625_v30 = vadd.f32 %v1624_v25, %v1456_v24  ;;  %v1458_v32 = vpop.f32.mrf.mxu1  ;;  %v1290_v38 = vadd.f32 %v3524_v14, %v1289_v31 }
 0x19b   : > { %v1794_v35 = vadd.f32 %v1793_v26, %v1625_v30  ;;  %1328 = vmatmul.bf16.gmra.mxu0 %v2510_v27  ;;  %v1459_v42 = vadd.f32 %v1458_v32, %v1290_v38  ;;  %v2542_v26 = vor.u32 %v2884_v15, %v2541_v10  ;;  %v2546_v27 = vor.u32 %v2882_v17, %v2543_v18  ;;  %v2892_v10 = vld [vmem:[%s3263_s20 + $0x36c] sm:$0xf0]  ;;  %v2575_v17 = vld [vmem:[%s3263_s20 + $0x370] sm:$0xf0]  ;;  %v2581_v18 = vld [vmem:[%s3263_s20 + $0x368] sm:$0xf] }
 0x19c   : > { %1497 = vmatmul.bf16.gmra.mxu1 %v2514_v28  ;;  %v2550_v32 = vor.u32 %v2885_v20, %v2549_v19  ;;  %v2893_v19 = vld [vmem:[%s3263_s20 + $0x374] sm:$0xf0]  ;;  %v2891_v20 = vld [vmem:[%s3263_s20 + $0x36c] sm:$0xf] }
 0x19d   : > { %v1910_v37 = vmax.f32 %v1794_v35, 0.0  ;;  %1666 = vmatmul.bf16.gmra.mxu2 %v2518_v33  ;;  %v2554_v33 = vor.u32 %v2883_v21, %v2551_v22  ;;  %v2583_v21 = vld [vmem:[%s3263_s20 + $0x378] sm:$0xf0] }
 0x19e   : > { %1835 = vmatmul.bf16.gmra.mxu3 %v2522_v34 }
 0x19f   : > { %v3015_v39 = vpack.c.bf16 %v1910_v37, %v1909_v36 }
 0x1a0   : > { %v1627_v40 = vpop.f32.mrf.mxu2  ;;  %v1291_v43 = vpop.f32.mrf.mxu0 }
 0x1a1   : > { %v1796_v41 = vpop.f32.mrf.mxu3  ;;  %3115 = vst [vmem:[%s3375_s10 + $0x70] sm:$0xff] %v3015_v39   ;;  %v1460_v44 = vpop.f32.mrf.mxu1  ;;  %v1292_v45 = vadd.f32 %v3524_v14, %v1291_v43  ;;  %v1628_v48 = vadd.f32 %v1627_v40, %v1459_v42 }
 0x1a3   : > { %v1461_v55 = vadd.f32 %v1460_v44, %v1292_v45  ;;  %v1797_v60 = vadd.f32 %v1796_v41, %v1628_v48  ;;  %v2557_v45 = vld [vmem:[%s3263_s20 + $0x340] sm:$0xf]  ;;  %v2886_v48 = vld [vmem:[%s3263_s20 + $0x344] sm:$0xf] }
 0x1a5   : > { %v1911_v3 = vmax.f32 %v1797_v60, 0.0 }
 0x1a8   : > { %v1629_v56 = vpop.f32.mrf.mxu2  ;;  %v1294_v62 = vpop.f32.mrf.mxu0 }
 0x1a9   : > { %v1798_v57 = vpop.f32.mrf.mxu3  ;;  %v1630_v61 = vadd.f32 %v1629_v56, %v1461_v55  ;;  %v1463_v63 = vpop.f32.mrf.mxu1  ;;  %v1295_v5 = vadd.f32 %v3524_v14, %v1294_v62 }
 0x1ab   : > { %v1799_v2 = vadd.f32 %v1798_v57, %v1630_v61  ;;  %1333 = vmatmul.bf16.gmra.mxu0 %v2526_v58  ;;  %v1464_v9 = vadd.f32 %v1463_v63, %v1295_v5  ;;  %v2558_v57 = vor.u32 %v2888_v46, %v2557_v45  ;;  %v2562_v58 = vor.u32 %v2886_v48, %v2559_v49  ;;  %v2896_v45 = vld [vmem:[%s3263_s20 + $0x38c] sm:$0xf0]  ;;  %v2591_v48 = vld [vmem:[%s3263_s20 + $0x390] sm:$0xf0]  ;;  %v2597_v49 = vld [vmem:[%s3263_s20 + $0x388] sm:$0xf] }
 0x1ac   : > { %1502 = vmatmul.bf16.gmra.mxu1 %v2530_v59  ;;  %v2566_v63 = vor.u32 %v2889_v51, %v2565_v50  ;;  %v2897_v50 = vld [vmem:[%s3263_s20 + $0x394] sm:$0xf0]  ;;  %v2895_v51 = vld [vmem:[%s3263_s20 + $0x38c] sm:$0xf] }
 0x1ad   : > { %v1912_v4 = vmax.f32 %v1799_v2, 0.0  ;;  %1671 = vmatmul.bf16.gmra.mxu2 %v2534_v0  ;;  %v2570_v0 = vor.u32 %v2887_v52, %v2567_v53  ;;  %v2599_v52 = vld [vmem:[%s3263_s20 + $0x398] sm:$0xf0] }
 0x1ae   : > { %1840 = vmatmul.bf16.gmra.mxu3 %v2538_v1 }
 0x1af   : > { %v3020_v6 = vpack.c.bf16 %v1912_v4, %v1911_v3 }
 0x1b0   : > { %v1632_v7 = vpop.f32.mrf.mxu2  ;;  %v1296_v11 = vpop.f32.mrf.mxu0 }
 0x1b1   : > { %v1801_v8 = vpop.f32.mrf.mxu3  ;;  %3116 = vst [vmem:[%s3375_s10 + $0x78] sm:$0xff] %v3020_v6   ;;  %v1465_v12 = vpop.f32.mrf.mxu1  ;;  %v1297_v13 = vadd.f32 %v3524_v14, %v1296_v11  ;;  %v1633_v16 = vadd.f32 %v1632_v7, %v1464_v9 }
 0x1b3   : > { %v1466_v23 = vadd.f32 %v1465_v12, %v1297_v13  ;;  %v1802_v28 = vadd.f32 %v1801_v8, %v1633_v16  ;;  %v2573_v13 = vld [vmem:[%s3263_s20 + $0x360] sm:$0xf]  ;;  %v2890_v16 = vld [vmem:[%s3263_s20 + $0x364] sm:$0xf] }
 0x1b5   : > { %v1913_v35 = vmax.f32 %v1802_v28, 0.0 }
 0x1b8   : > { %v1634_v24 = vpop.f32.mrf.mxu2  ;;  %v1299_v30 = vpop.f32.mrf.mxu0 }
 0x1b9   : > { %v1803_v25 = vpop.f32.mrf.mxu3  ;;  %v1635_v29 = vadd.f32 %v1634_v24, %v1466_v23  ;;  %v1468_v31 = vpop.f32.mrf.mxu1  ;;  %v1300_v37 = vadd.f32 %v3524_v14, %v1299_v30 }
 0x1bb   : > { %v1804_v34 = vadd.f32 %v1803_v25, %v1635_v29  ;;  %1338 = vmatmul.bf16.gmra.mxu0 %v2542_v26  ;;  %v1469_v41 = vadd.f32 %v1468_v31, %v1300_v37  ;;  %v2574_v25 = vor.u32 %v2892_v10, %v2573_v13  ;;  %v2578_v26 = vor.u32 %v2890_v16, %v2575_v17  ;;  %v2900_v13 = vld [vmem:[%s3263_s20 + $0x3ac] sm:$0xf0]  ;;  %v2607_v16 = vld [vmem:[%s3263_s20 + $0x3b0] sm:$0xf0]  ;;  %v2613_v17 = vld [vmem:[%s3263_s20 + $0x3a8] sm:$0xf] }
 0x1bc   : > { %1507 = vmatmul.bf16.gmra.mxu1 %v2546_v27  ;;  %v2582_v31 = vor.u32 %v2893_v19, %v2581_v18  ;;  %v2901_v18 = vld [vmem:[%s3263_s20 + $0x3b4] sm:$0xf0]  ;;  %v2899_v19 = vld [vmem:[%s3263_s20 + $0x3ac] sm:$0xf] }
 0x1bd   : > { %v1914_v36 = vmax.f32 %v1804_v34, 0.0  ;;  %1676 = vmatmul.bf16.gmra.mxu2 %v2550_v32  ;;  %v2586_v32 = vor.u32 %v2891_v20, %v2583_v21  ;;  %v2615_v20 = vld [vmem:[%s3263_s20 + $0x3b8] sm:$0xf0] }
 0x1be   : > { %1845 = vmatmul.bf16.gmra.mxu3 %v2554_v33 }
 0x1bf   : > { %v3025_v38 = vpack.c.bf16 %v1914_v36, %v1913_v35 }
 0x1c0   : > { %v1637_v39 = vpop.f32.mrf.mxu2  ;;  %v1301_v42 = vpop.f32.mrf.mxu0 }
 0x1c1   : > { %v1806_v40 = vpop.f32.mrf.mxu3  ;;  %3117 = vst [vmem:[%s3375_s10 + $0x80] sm:$0xff] %v3025_v38   ;;  %v1470_v43 = vpop.f32.mrf.mxu1  ;;  %v1302_v44 = vadd.f32 %v3524_v14, %v1301_v42  ;;  %v1638_v47 = vadd.f32 %v1637_v39, %v1469_v41 }
 0x1c3   : > { %v1471_v54 = vadd.f32 %v1470_v43, %v1302_v44  ;;  %v1807_v59 = vadd.f32 %v1806_v40, %v1638_v47  ;;  %v2589_v44 = vld [vmem:[%s3263_s20 + $0x380] sm:$0xf]  ;;  %v2894_v47 = vld [vmem:[%s3263_s20 + $0x384] sm:$0xf] }
 0x1c5   : > { %v1915_v2 = vmax.f32 %v1807_v59, 0.0 }
 0x1c8   : > { %v1639_v55 = vpop.f32.mrf.mxu2  ;;  %v1304_v61 = vpop.f32.mrf.mxu0 }
 0x1c9   : > { %v1808_v56 = vpop.f32.mrf.mxu3  ;;  %v1640_v60 = vadd.f32 %v1639_v55, %v1471_v54  ;;  %v1473_v62 = vpop.f32.mrf.mxu1  ;;  %v1305_v4 = vadd.f32 %v3524_v14, %v1304_v61 }
 0x1cb   : > { %v1809_v1 = vadd.f32 %v1808_v56, %v1640_v60  ;;  %1343 = vmatmul.bf16.gmra.mxu0 %v2558_v57  ;;  %v1474_v8 = vadd.f32 %v1473_v62, %v1305_v4  ;;  %v2590_v56 = vor.u32 %v2896_v45, %v2589_v44  ;;  %v2594_v57 = vor.u32 %v2894_v47, %v2591_v48  ;;  %v2904_v44 = vld [vmem:[%s3263_s20 + $0x3cc] sm:$0xf0]  ;;  %v2623_v47 = vld [vmem:[%s3263_s20 + $0x3d0] sm:$0xf0]  ;;  %v2629_v48 = vld [vmem:[%s3263_s20 + $0x3c8] sm:$0xf] }
 0x1cc   : > { %1512 = vmatmul.bf16.gmra.mxu1 %v2562_v58  ;;  %v2598_v62 = vor.u32 %v2897_v50, %v2597_v49  ;;  %v2905_v49 = vld [vmem:[%s3263_s20 + $0x3d4] sm:$0xf0]  ;;  %v2903_v50 = vld [vmem:[%s3263_s20 + $0x3cc] sm:$0xf] }
 0x1cd   : > { %v1916_v3 = vmax.f32 %v1809_v1, 0.0  ;;  %1681 = vmatmul.bf16.gmra.mxu2 %v2566_v63  ;;  %v2602_v63 = vor.u32 %v2895_v51, %v2599_v52  ;;  %v2631_v51 = vld [vmem:[%s3263_s20 + $0x3d8] sm:$0xf0] }
 0x1ce   : > { %1850 = vmatmul.bf16.gmra.mxu3 %v2570_v0 }
 0x1cf   : > { %v3030_v5 = vpack.c.bf16 %v1916_v3, %v1915_v2 }
 0x1d0   : > { %v1642_v6 = vpop.f32.mrf.mxu2  ;;  %v1306_v9 = vpop.f32.mrf.mxu0 }
 0x1d1   : > { %v1811_v7 = vpop.f32.mrf.mxu3  ;;  %3118 = vst [vmem:[%s3375_s10 + $0x88] sm:$0xff] %v3030_v5   ;;  %v1475_v11 = vpop.f32.mrf.mxu1  ;;  %v1307_v12 = vadd.f32 %v3524_v14, %v1306_v9  ;;  %v1643_v15 = vadd.f32 %v1642_v6, %v1474_v8 }
 0x1d3   : > { %v1476_v22 = vadd.f32 %v1475_v11, %v1307_v12  ;;  %v1812_v27 = vadd.f32 %v1811_v7, %v1643_v15  ;;  %v2605_v12 = vld [vmem:[%s3263_s20 + $0x3a0] sm:$0xf]  ;;  %v2898_v15 = vld [vmem:[%s3263_s20 + $0x3a4] sm:$0xf] }
 0x1d5   : > { %v1917_v34 = vmax.f32 %v1812_v27, 0.0 }
 0x1d8   : > { %v1644_v23 = vpop.f32.mrf.mxu2  ;;  %v1309_v29 = vpop.f32.mrf.mxu0 }
 0x1d9   : > { %v1813_v24 = vpop.f32.mrf.mxu3  ;;  %v1645_v28 = vadd.f32 %v1644_v23, %v1476_v22  ;;  %v1478_v30 = vpop.f32.mrf.mxu1  ;;  %v1310_v36 = vadd.f32 %v3524_v14, %v1309_v29 }
 0x1db   : > { %v1814_v33 = vadd.f32 %v1813_v24, %v1645_v28  ;;  %1348 = vmatmul.bf16.gmra.mxu0 %v2574_v25  ;;  %v1479_v40 = vadd.f32 %v1478_v30, %v1310_v36  ;;  %v2606_v24 = vor.u32 %v2900_v13, %v2605_v12  ;;  %v2610_v25 = vor.u32 %v2898_v15, %v2607_v16  ;;  %v2908_v12 = vld [vmem:[%s3263_s20 + $0x3ec] sm:$0xf0]  ;;  %v2639_v15 = vld [vmem:[%s3263_s20 + $0x3f0] sm:$0xf0]  ;;  %v2645_v16 = vld [vmem:[%s3263_s20 + $0x3e8] sm:$0xf] }
 0x1dc   : > { %1517 = vmatmul.bf16.gmra.mxu1 %v2578_v26  ;;  %v2614_v30 = vor.u32 %v2901_v18, %v2613_v17  ;;  %v2909_v17 = vld [vmem:[%s3263_s20 + $0x3f4] sm:$0xf0]  ;;  %v2907_v18 = vld [vmem:[%s3263_s20 + $0x3ec] sm:$0xf] }
 0x1dd   : > { %v1918_v35 = vmax.f32 %v1814_v33, 0.0  ;;  %1686 = vmatmul.bf16.gmra.mxu2 %v2582_v31  ;;  %v2618_v31 = vor.u32 %v2899_v19, %v2615_v20  ;;  %v2647_v19 = vld [vmem:[%s3263_s20 + $0x3f8] sm:$0xf0] }
 0x1de   : > { %1855 = vmatmul.bf16.gmra.mxu3 %v2586_v32 }
 0x1df   : > { %v3035_v37 = vpack.c.bf16 %v1918_v35, %v1917_v34 }
 0x1e0   : > { %v1647_v38 = vpop.f32.mrf.mxu2  ;;  %v1311_v41 = vpop.f32.mrf.mxu0 }
 0x1e1   : > { %v1816_v39 = vpop.f32.mrf.mxu3  ;;  %3119 = vst [vmem:[%s3375_s10 + $0x90] sm:$0xff] %v3035_v37   ;;  %v1480_v42 = vpop.f32.mrf.mxu1  ;;  %v1312_v43 = vadd.f32 %v3524_v14, %v1311_v41  ;;  %v1648_v46 = vadd.f32 %v1647_v38, %v1479_v40 }
 0x1e3   : > { %v1481_v53 = vadd.f32 %v1480_v42, %v1312_v43  ;;  %v1817_v58 = vadd.f32 %v1816_v39, %v1648_v46  ;;  %v2621_v43 = vld [vmem:[%s3263_s20 + $0x3c0] sm:$0xf]  ;;  %v2902_v46 = vld [vmem:[%s3263_s20 + $0x3c4] sm:$0xf] }
 0x1e5   : > { %v1919_v1 = vmax.f32 %v1817_v58, 0.0 }
 0x1e8   : > { %v1649_v54 = vpop.f32.mrf.mxu2  ;;  %v1314_v60 = vpop.f32.mrf.mxu0 }
 0x1e9   : > { %v1818_v55 = vpop.f32.mrf.mxu3  ;;  %v1650_v59 = vadd.f32 %v1649_v54, %v1481_v53  ;;  %v1483_v61 = vpop.f32.mrf.mxu1  ;;  %v1315_v3 = vadd.f32 %v3524_v14, %v1314_v60 }
 0x1eb   : > { %v1819_v0 = vadd.f32 %v1818_v55, %v1650_v59  ;;  %1353 = vmatmul.bf16.gmra.mxu0 %v2590_v56  ;;  %v1484_v7 = vadd.f32 %v1483_v61, %v1315_v3  ;;  %v2622_v55 = vor.u32 %v2904_v44, %v2621_v43  ;;  %v2626_v56 = vor.u32 %v2902_v46, %v2623_v47 }
 0x1ec   : > { %1522 = vmatmul.bf16.gmra.mxu1 %v2594_v57  ;;  %v2630_v61 = vor.u32 %v2905_v49, %v2629_v48 }
 0x1ed   : > { %v1920_v2 = vmax.f32 %v1819_v0, 0.0  ;;  %1691 = vmatmul.bf16.gmra.mxu2 %v2598_v62  ;;  %v2634_v62 = vor.u32 %v2903_v50, %v2631_v51 }
 0x1ee   : > { %1860 = vmatmul.bf16.gmra.mxu3 %v2602_v63 }
 0x1ef   : > { %v3040_v4 = vpack.c.bf16 %v1920_v2, %v1919_v1 }
 0x1f0   : > { %v1652_v5 = vpop.f32.mrf.mxu2  ;;  %v1316_v8 = vpop.f32.mrf.mxu0 }
 0x1f1   : > { %v1821_v6 = vpop.f32.mrf.mxu3  ;;  %3120 = vst [vmem:[%s3375_s10 + $0x98] sm:$0xff] %v3040_v4   ;;  %v1485_v9 = vpop.f32.mrf.mxu1  ;;  %v1317_v11 = vadd.f32 %v3524_v14, %v1316_v8  ;;  %v1653_v10 = vadd.f32 %v1652_v5, %v1484_v7 }
 0x1f3   : > { %v1486_v21 = vadd.f32 %v1485_v9, %v1317_v11  ;;  %v1822_v26 = vadd.f32 %v1821_v6, %v1653_v10  ;;  %v2637_v11 = vld [vmem:[%s3263_s20 + $0x3e0] sm:$0xf]  ;;  %v2906_v10 = vld [vmem:[%s3263_s20 + $0x3e4] sm:$0xf] }
 0x1f5   : > { %v1921_v33 = vmax.f32 %v1822_v26, 0.0 }
 0x1f8   : > { %v1654_v22 = vpop.f32.mrf.mxu2  ;;  %v1319_v28 = vpop.f32.mrf.mxu0 }
 0x1f9   : > { %v1823_v23 = vpop.f32.mrf.mxu3  ;;  %v1655_v27 = vadd.f32 %v1654_v22, %v1486_v21  ;;  %v1488_v29 = vpop.f32.mrf.mxu1  ;;  %v1320_v35 = vadd.f32 %v3524_v14, %v1319_v28 }
 0x1fb   : > { %v1824_v32 = vadd.f32 %v1823_v23, %v1655_v27  ;;  %1358 = vmatmul.bf16.gmra.mxu0 %v2606_v24  ;;  %v1489_v39 = vadd.f32 %v1488_v29, %v1320_v35  ;;  %v2638_v23 = vor.u32 %v2908_v12, %v2637_v11  ;;  %v2642_v24 = vor.u32 %v2906_v10, %v2639_v15 }
 0x1fc   : > { %1527 = vmatmul.bf16.gmra.mxu1 %v2610_v25  ;;  %v2646_v29 = vor.u32 %v2909_v17, %v2645_v16 }
 0x1fd   : > { %v1922_v34 = vmax.f32 %v1824_v32, 0.0  ;;  %1696 = vmatmul.bf16.gmra.mxu2 %v2614_v30  ;;  %v2650_v30 = vor.u32 %v2907_v18, %v2647_v19 }
 0x1fe   : > { %1865 = vmatmul.bf16.gmra.mxu3 %v2618_v31 }
 0x1ff   : > { %v3045_v36 = vpack.c.bf16 %v1922_v34, %v1921_v33 }
 0x200   : > { %v1657_v37 = vpop.f32.mrf.mxu2  ;;  %v1321_v40 = vpop.f32.mrf.mxu0 }
 0x201   : > { %v1826_v38 = vpop.f32.mrf.mxu3  ;;  %3121 = vst [vmem:[%s3375_s10 + $0xa0] sm:$0xff] %v3045_v36   ;;  %v1490_v41 = vpop.f32.mrf.mxu1  ;;  %v1322_v42 = vadd.f32 %v3524_v14, %v1321_v40  ;;  %v1658_v45 = vadd.f32 %v1657_v37, %v1489_v39 }
 0x203   : > { %v1491_v52 = vadd.f32 %v1490_v41, %v1322_v42  ;;  %v1827_v57 = vadd.f32 %v1826_v38, %v1658_v45 }
 0x205   : > { %v1923_v0 = vmax.f32 %v1827_v57, 0.0 }
 0x208   : > { %v1659_v53 = vpop.f32.mrf.mxu2  ;;  %v1324_v59 = vpop.f32.mrf.mxu0 }
 0x209   : > { %v1828_v54 = vpop.f32.mrf.mxu3  ;;  %v1660_v58 = vadd.f32 %v1659_v53, %v1491_v52  ;;  %v1493_v60 = vpop.f32.mrf.mxu1  ;;  %v1325_v2 = vadd.f32 %v3524_v14, %v1324_v59 }
 0x20b   : > { %v1829_v63 = vadd.f32 %v1828_v54, %v1660_v58  ;;  %1363 = vmatmul.bf16.gmra.mxu0 %v2622_v55  ;;  %v1494_v6 = vadd.f32 %v1493_v60, %v1325_v2 }
 0x20c   : > { %1532 = vmatmul.bf16.gmra.mxu1 %v2626_v56 }
 0x20d   : > { %v1924_v1 = vmax.f32 %v1829_v63, 0.0  ;;  %1701 = vmatmul.bf16.gmra.mxu2 %v2630_v61 }
 0x20e   : > { %1870 = vmatmul.bf16.gmra.mxu3 %v2634_v62 }
 0x20f   : > { %v3050_v3 = vpack.c.bf16 %v1924_v1, %v1923_v0 }
 0x210   : > { %v1662_v4 = vpop.f32.mrf.mxu2  ;;  %v1326_v7 = vpop.f32.mrf.mxu0 }
 0x211   : > { %v1831_v5 = vpop.f32.mrf.mxu3  ;;  %3122 = vst [vmem:[%s3375_s10 + $0xa8] sm:$0xff] %v3050_v3   ;;  %v1495_v8 = vpop.f32.mrf.mxu1  ;;  %v1327_v9 = vadd.f32 %v3524_v14, %v1326_v7  ;;  %v1663_v13 = vadd.f32 %v1662_v4, %v1494_v6 }
 0x213   : > { %v1496_v20 = vadd.f32 %v1495_v8, %v1327_v9  ;;  %v1832_v25 = vadd.f32 %v1831_v5, %v1663_v13 }
 0x215   : > { %v1925_v32 = vmax.f32 %v1832_v25, 0.0 }
 0x218   : > { %v1664_v21 = vpop.f32.mrf.mxu2  ;;  %v1329_v27 = vpop.f32.mrf.mxu0 }
 0x219   : > { %v1833_v22 = vpop.f32.mrf.mxu3  ;;  %v1665_v26 = vadd.f32 %v1664_v21, %v1496_v20  ;;  %v1498_v28 = vpop.f32.mrf.mxu1  ;;  %v1330_v34 = vadd.f32 %v3524_v14, %v1329_v27 }
 0x21b   : > { %v1834_v31 = vadd.f32 %v1833_v22, %v1665_v26  ;;  %1368 = vmatmul.bf16.gmra.mxu0 %v2638_v23  ;;  %v1499_v38 = vadd.f32 %v1498_v28, %v1330_v34 }
 0x21c   : > { %1537 = vmatmul.bf16.gmra.mxu1 %v2642_v24 }
 0x21d   : > { %v1926_v33 = vmax.f32 %v1834_v31, 0.0  ;;  %1706 = vmatmul.bf16.gmra.mxu2 %v2646_v29 }
 0x21e   : > { %1875 = vmatmul.bf16.gmra.mxu3 %v2650_v30 }
 0x21f   : > { %v3055_v35 = vpack.c.bf16 %v1926_v33, %v1925_v32 }
 0x220   : > { %v1667_v36 = vpop.f32.mrf.mxu2  ;;  %v1331_v39 = vpop.f32.mrf.mxu0 }
 0x221   : > { %v1836_v37 = vpop.f32.mrf.mxu3  ;;  %3123 = vst [vmem:[%s3375_s10 + $0xb0] sm:$0xff] %v3055_v35   ;;  %v1500_v40 = vpop.f32.mrf.mxu1  ;;  %v1332_v41 = vadd.f32 %v3524_v14, %v1331_v39  ;;  %v1668_v42 = vadd.f32 %v1667_v36, %v1499_v38 }
 0x223   : > { %v1501_v43 = vadd.f32 %v1500_v40, %v1332_v41  ;;  %v1837_v46 = vadd.f32 %v1836_v37, %v1668_v42 }
 0x225   : > { %v1927_v51 = vmax.f32 %v1837_v46, 0.0 }
 0x228   : > { %v1669_v44 = vpop.f32.mrf.mxu2  ;;  %v1334_v48 = vpop.f32.mrf.mxu0 }
 0x229   : > { %v1838_v45 = vpop.f32.mrf.mxu3  ;;  %v1670_v47 = vadd.f32 %v1669_v44, %v1501_v43  ;;  %v1503_v49 = vpop.f32.mrf.mxu1  ;;  %v1335_v53 = vadd.f32 %v3524_v14, %v1334_v48 }
 0x22b   : > { %v1839_v50 = vadd.f32 %v1838_v45, %v1670_v47  ;;  %v1504_v57 = vadd.f32 %v1503_v49, %v1335_v53 }
 0x22d   : > { %v1928_v52 = vmax.f32 %v1839_v50, 0.0 }
 0x22f   : > { %v3060_v54 = vpack.c.bf16 %v1928_v52, %v1927_v51 }
 0x230   : > { %v1672_v55 = vpop.f32.mrf.mxu2  ;;  %v1336_v58 = vpop.f32.mrf.mxu0 }
 0x231   : > { %v1841_v56 = vpop.f32.mrf.mxu3  ;;  %3124 = vst [vmem:[%s3375_s10 + $0xb8] sm:$0xff] %v3060_v54   ;;  %v1505_v59 = vpop.f32.mrf.mxu1  ;;  %v1337_v60 = vadd.f32 %v3524_v14, %v1336_v58  ;;  %v1673_v61 = vadd.f32 %v1672_v55, %v1504_v57 }
 0x233   : > { %v1506_v62 = vadd.f32 %v1505_v59, %v1337_v60  ;;  %v1842_v1 = vadd.f32 %v1841_v56, %v1673_v61 }
 0x235   : > { %v1929_v6 = vmax.f32 %v1842_v1, 0.0 }
 0x238   : > { %v1674_v63 = vpop.f32.mrf.mxu2  ;;  %v1339_v3 = vpop.f32.mrf.mxu0 }
 0x239   : > { %v1843_v0 = vpop.f32.mrf.mxu3  ;;  %v1675_v2 = vadd.f32 %v1674_v63, %v1506_v62  ;;  %v1508_v4 = vpop.f32.mrf.mxu1  ;;  %v1340_v8 = vadd.f32 %v3524_v14, %v1339_v3 }
 0x23b   : > { %v1844_v5 = vadd.f32 %v1843_v0, %v1675_v2  ;;  %v1509_v13 = vadd.f32 %v1508_v4, %v1340_v8 }
 0x23d   : > { %v1930_v7 = vmax.f32 %v1844_v5, 0.0 }
 0x23f   : > { %v3065_v9 = vpack.c.bf16 %v1930_v7, %v1929_v6 }
 0x240   : > { %v1677_v11 = vpop.f32.mrf.mxu2  ;;  %v1341_v10 = vpop.f32.mrf.mxu0 }
 0x241   : > { %v1846_v12 = vpop.f32.mrf.mxu3  ;;  %3125 = vst [vmem:[%s3375_s10 + $0xc0] sm:$0xff] %v3065_v9   ;;  %v1510_v15 = vpop.f32.mrf.mxu1  ;;  %v1342_v16 = vadd.f32 %v3524_v14, %v1341_v10  ;;  %v1678_v17 = vadd.f32 %v1677_v11, %v1509_v13 }
 0x243   : > { %v1511_v18 = vadd.f32 %v1510_v15, %v1342_v16  ;;  %v1847_v21 = vadd.f32 %v1846_v12, %v1678_v17 }
 0x245   : > { %v1931_v26 = vmax.f32 %v1847_v21, 0.0 }
 0x248   : > { %v1679_v19 = vpop.f32.mrf.mxu2  ;;  %v1344_v23 = vpop.f32.mrf.mxu0 }
 0x249   : > { %v1848_v20 = vpop.f32.mrf.mxu3  ;;  %v1680_v22 = vadd.f32 %v1679_v19, %v1511_v18  ;;  %v1513_v24 = vpop.f32.mrf.mxu1  ;;  %v1345_v28 = vadd.f32 %v3524_v14, %v1344_v23 }
 0x24b   : > { %v1849_v25 = vadd.f32 %v1848_v20, %v1680_v22  ;;  %v1514_v32 = vadd.f32 %v1513_v24, %v1345_v28 }
 0x24d   : > { %v1932_v27 = vmax.f32 %v1849_v25, 0.0 }
 0x24f   : > { %v3070_v29 = vpack.c.bf16 %v1932_v27, %v1931_v26 }
 0x250   : > { %v1682_v30 = vpop.f32.mrf.mxu2  ;;  %v1346_v33 = vpop.f32.mrf.mxu0 }
 0x251   : > { %v1851_v31 = vpop.f32.mrf.mxu3  ;;  %3126 = vst [vmem:[%s3375_s10 + $0xc8] sm:$0xff] %v3070_v29   ;;  %v1515_v34 = vpop.f32.mrf.mxu1  ;;  %v1347_v35 = vadd.f32 %v3524_v14, %v1346_v33  ;;  %v1683_v36 = vadd.f32 %v1682_v30, %v1514_v32 }
 0x253   : > { %v1516_v37 = vadd.f32 %v1515_v34, %v1347_v35  ;;  %v1852_v40 = vadd.f32 %v1851_v31, %v1683_v36 }
 0x255   : > { %v1933_v45 = vmax.f32 %v1852_v40, 0.0 }
 0x258   : > { %v1684_v38 = vpop.f32.mrf.mxu2  ;;  %v1349_v42 = vpop.f32.mrf.mxu0 }
 0x259   : > { %v1853_v39 = vpop.f32.mrf.mxu3  ;;  %v1685_v41 = vadd.f32 %v1684_v38, %v1516_v37  ;;  %v1518_v43 = vpop.f32.mrf.mxu1  ;;  %v1350_v47 = vadd.f32 %v3524_v14, %v1349_v42 }
 0x25b   : > { %v1854_v44 = vadd.f32 %v1853_v39, %v1685_v41  ;;  %v1519_v51 = vadd.f32 %v1518_v43, %v1350_v47 }
 0x25d   : > { %v1934_v46 = vmax.f32 %v1854_v44, 0.0 }
 0x25f   : > { %v3075_v48 = vpack.c.bf16 %v1934_v46, %v1933_v45 }
 0x260   : > { %v1687_v49 = vpop.f32.mrf.mxu2  ;;  %v1351_v52 = vpop.f32.mrf.mxu0 }
 0x261   : > { %v1856_v50 = vpop.f32.mrf.mxu3  ;;  %3127 = vst [vmem:[%s3375_s10 + $0xd0] sm:$0xff] %v3075_v48   ;;  %v1520_v53 = vpop.f32.mrf.mxu1  ;;  %v1352_v54 = vadd.f32 %v3524_v14, %v1351_v52  ;;  %v1688_v55 = vadd.f32 %v1687_v49, %v1519_v51 }
 0x263   : > { %v1521_v56 = vadd.f32 %v1520_v53, %v1352_v54  ;;  %v1857_v59 = vadd.f32 %v1856_v50, %v1688_v55 }
 0x265   : > { %v1935_v0 = vmax.f32 %v1857_v59, 0.0 }
 0x268   : > { %v1689_v57 = vpop.f32.mrf.mxu2  ;;  %v1354_v61 = vpop.f32.mrf.mxu0 }
 0x269   : > { %v1858_v58 = vpop.f32.mrf.mxu3  ;;  %v1690_v60 = vadd.f32 %v1689_v57, %v1521_v56  ;;  %v1523_v62 = vpop.f32.mrf.mxu1  ;;  %v1355_v2 = vadd.f32 %v3524_v14, %v1354_v61 }
 0x26b   : > { %v1859_v63 = vadd.f32 %v1858_v58, %v1690_v60  ;;  %v1524_v6 = vadd.f32 %v1523_v62, %v1355_v2 }
 0x26d   : > { %v1936_v1 = vmax.f32 %v1859_v63, 0.0 }
 0x26f   : > { %v3080_v3 = vpack.c.bf16 %v1936_v1, %v1935_v0 }
 0x270   : > { %v1692_v4 = vpop.f32.mrf.mxu2  ;;  %v1356_v7 = vpop.f32.mrf.mxu0 }
 0x271   : > { %v1861_v5 = vpop.f32.mrf.mxu3  ;;  %3128 = vst [vmem:[%s3375_s10 + $0xd8] sm:$0xff] %v3080_v3   ;;  %v1525_v8 = vpop.f32.mrf.mxu1  ;;  %v1357_v9 = vadd.f32 %v3524_v14, %v1356_v7  ;;  %v1693_v11 = vadd.f32 %v1692_v4, %v1524_v6 }
 0x273   : > { %v1526_v12 = vadd.f32 %v1525_v8, %v1357_v9  ;;  %v1862_v15 = vadd.f32 %v1861_v5, %v1693_v11 }
 0x275   : > { %v1937_v20 = vmax.f32 %v1862_v15, 0.0 }
 0x278   : > { %v1694_v13 = vpop.f32.mrf.mxu2  ;;  %v1359_v17 = vpop.f32.mrf.mxu0 }
 0x279   : > { %v1863_v10 = vpop.f32.mrf.mxu3  ;;  %v1695_v16 = vadd.f32 %v1694_v13, %v1526_v12  ;;  %v1528_v18 = vpop.f32.mrf.mxu1  ;;  %v1360_v22 = vadd.f32 %v3524_v14, %v1359_v17 }
 0x27b   : > { %v1864_v19 = vadd.f32 %v1863_v10, %v1695_v16  ;;  %v1529_v26 = vadd.f32 %v1528_v18, %v1360_v22 }
 0x27d   : > { %v1938_v21 = vmax.f32 %v1864_v19, 0.0 }
 0x27f   : > { %v3085_v23 = vpack.c.bf16 %v1938_v21, %v1937_v20 }
 0x280   : > { %v1697_v24 = vpop.f32.mrf.mxu2  ;;  %v1361_v27 = vpop.f32.mrf.mxu0 }
 0x281   : > { %v1866_v25 = vpop.f32.mrf.mxu3  ;;  %3129 = vst [vmem:[%s3375_s10 + $0xe0] sm:$0xff] %v3085_v23   ;;  %v1530_v28 = vpop.f32.mrf.mxu1  ;;  %v1362_v29 = vadd.f32 %v3524_v14, %v1361_v27  ;;  %v1698_v30 = vadd.f32 %v1697_v24, %v1529_v26 }
 0x283   : > { %v1531_v31 = vadd.f32 %v1530_v28, %v1362_v29  ;;  %v1867_v34 = vadd.f32 %v1866_v25, %v1698_v30 }
 0x285   : > { %v1939_v39 = vmax.f32 %v1867_v34, 0.0 }
 0x288   : > { %v1699_v32 = vpop.f32.mrf.mxu2  ;;  %v1364_v36 = vpop.f32.mrf.mxu0 }
 0x289   : > { %v1868_v33 = vpop.f32.mrf.mxu3  ;;  %v1700_v35 = vadd.f32 %v1699_v32, %v1531_v31  ;;  %v1533_v37 = vpop.f32.mrf.mxu1  ;;  %v1365_v41 = vadd.f32 %v3524_v14, %v1364_v36 }
 0x28b   : > { %v1869_v38 = vadd.f32 %v1868_v33, %v1700_v35  ;;  %v1534_v45 = vadd.f32 %v1533_v37, %v1365_v41 }
 0x28d   : > { %v1940_v40 = vmax.f32 %v1869_v38, 0.0 }
 0x28f   : > { %v3090_v42 = vpack.c.bf16 %v1940_v40, %v1939_v39 }
 0x290   : > { %v1702_v43 = vpop.f32.mrf.mxu2  ;;  %v1366_v46 = vpop.f32.mrf.mxu0 }
 0x291   : > { %v1871_v44 = vpop.f32.mrf.mxu3  ;;  %3130 = vst [vmem:[%s3375_s10 + $0xe8] sm:$0xff] %v3090_v42   ;;  %v1535_v47 = vpop.f32.mrf.mxu1  ;;  %v1367_v48 = vadd.f32 %v3524_v14, %v1366_v46  ;;  %v1703_v49 = vadd.f32 %v1702_v43, %v1534_v45 }
 0x293   : > { %v1536_v50 = vadd.f32 %v1535_v47, %v1367_v48  ;;  %v1872_v53 = vadd.f32 %v1871_v44, %v1703_v49 }
 0x295   : > { %v1941_v58 = vmax.f32 %v1872_v53, 0.0 }
 0x298   : > { %v1704_v51 = vpop.f32.mrf.mxu2  ;;  %v1369_v55 = vpop.f32.mrf.mxu0 }
 0x299   : > { %v1873_v52 = vpop.f32.mrf.mxu3  ;;  %v1705_v54 = vadd.f32 %v1704_v51, %v1536_v50  ;;  %v1538_v57 = vpop.f32.mrf.mxu1  ;;  %v1370_v60 = vadd.f32 %v3524_v14, %v1369_v55 }
 0x29b   : > { %v1874_v56 = vadd.f32 %v1873_v52, %v1705_v54  ;;  %v1539_v0 = vadd.f32 %v1538_v57, %v1370_v60 }
 0x29d   : > { %v1942_v59 = vmax.f32 %v1874_v56, 0.0 }
 0x29f   : > { %v3095_v61 = vpack.c.bf16 %v1942_v59, %v1941_v58 }
 0x2a0   : > { %v1707_v62 = vpop.f32.mrf.mxu2  ;;  %v1371_v1 = vpop.f32.mrf.mxu0 }
 0x2a1   : > { %v1876_v63 = vpop.f32.mrf.mxu3  ;;  %3131 = vst [vmem:[%s3375_s10 + $0xf0] sm:$0xff] %v3095_v61   ;;  %v1372_v2 = vadd.f32 %v3524_v14, %v1371_v1  ;;  %v1708_v3 = vadd.f32 %v1707_v62, %v1539_v0  ;;  %v1540_v4 = vpop.f32.mrf.mxu1 }
 0x2a3   : > { %v1541_v5 = vadd.f32 %v1540_v4, %v1372_v2  ;;  %v1877_v7 = vadd.f32 %v1876_v63, %v1708_v3 }
 0x2a5   : > { %v1943_v12 = vmax.f32 %v1877_v7, 0.0 }
 0x2a8   : > { %v1709_v6 = vpop.f32.mrf.mxu2 }
 0x2a9   : > { %v1710_v8 = vadd.f32 %v1709_v6, %v1541_v5  ;;  %v1878_v9 = vpop.f32.mrf.mxu3 }
 0x2ab   : > { %v1879_v11 = vadd.f32 %v1878_v9, %v1710_v8 }
 0x2ad   : > { %v1944_v13 = vmax.f32 %v1879_v11, 0.0 }
 0x2af   : > { %v3100_v10 = vpack.c.bf16 %v1944_v13, %v1943_v12 }
 0x2b1   : > { %3132 = vst [vmem:[%s3375_s10 + $0xf8] sm:$0xff] %v3100_v10  }
 0x2b2 PF: > { %s13_s12 = sadd.s32 1, %s3149_s12  }
 0x2b3   : > { %p10_p4 = scmp.ge.s32.totalorder %s13_s12, 6  }
 0x2b5   :  { %12 = sbr.rel (!%p10_p4) target bundleno = 1 (0x1), region = 62 }

// kernel: posenet_forward.7
= control target key start
LH: loop header
LB: loop body
LE: loop exit
PB: predicated region body
PF: predicated region fallthrough
CT: control target
= control target key end

     0   :  { %s1954_s12 = smov 0   ;;  %s2256_s0 = inlined_call_operand.vmem [shape: bf16[512,512], index: 0, kind: input, shape index: {}]   ;;  %s2257_s1 = inlined_call_operand.vmem [shape: bf16[512,128], index: 1, kind: input, shape index: {}]   ;;  %s2258_s2 = inlined_call_operand.vmem [shape: f32[1,128], index: 2, kind: input, shape index: {}]   ;;  %s2259_s3 = inlined_call_operand.vmem [shape: bf16[512,128], index: 3, kind: output, shape index: {}]  }
   0x1 LB: > { %s1329_s13 = sadd.s32 4294967295, %s1932_s12   ;;  %p1333_p0 = scmp.ge.s32.totalorder %s1932_s12, 1  ;;  %s1932_s12 = sphi %s1954_s12, %s13_s12  }
   0x2   : > { %p139_p1 = scmp.lt.s32.totalorder %s1932_s12, 3 }
   0x4   : > { %p140_p2 = pnand %p1333_p0, %p139_p1 }
   0x5   : > { %s1334_s11 = sshll.u32 (!%p140_p2), %s1329_s13, 5 }
   0x6   : > { %143 = sbr.rel (%p140_p2) target bundleno = 434 (0x1b2), region = 32  ;;  %p165_p3 = scmp.lt.s32.totalorder (!%p140_p2), %s1334_s11, 63 }
   0xb   : > { %v1797_v0 = vld [vmem:[%s2257_s1 + $0x38] sm:$0xff]  ;;  %v1796_v4 = vld [vmem:[%s2257_s1 + $0x30] sm:$0xff]  ;;  %v1795_v8 = vld [vmem:[%s2257_s1 + $0x28] sm:$0xff]  ;;  %s2261_s11 = smov (!%p165_p3, %s1334_s11), 63 }
   0xc   : > { %v1805_v1 = vld [vmem:[%s2257_s1 + $0x78] sm:$0xff]  ;;  %821 = vmatpush.bf16.msra.mxu0 %v1797_v0  ;;  %v1804_v5 = vld [vmem:[%s2257_s1 + $0x70] sm:$0xff]  ;;  %v1803_v9 = vld [vmem:[%s2257_s1 + $0x68] sm:$0xff]  ;;  %s1725_s10 = sshll.u32 %s2261_s11, 4  ;;  %s1338_s7 = sshll.u32 %s2261_s11, 2 }
   0xd   : > { %v1813_v2 = vld [vmem:[%s2257_s1 + $0xb8] sm:$0xff]  ;;  %910 = vmatpush.bf16.msra.mxu1 %v1805_v1  ;;  %v1812_v6 = vld [vmem:[%s2257_s1 + $0xb0] sm:$0xff]  ;;  %v1811_v10 = vld [vmem:[%s2257_s1 + $0xa8] sm:$0xff]  ;;  %s2046_s20 = scalar_lea.vmem %s2256_s0, %s1725_s10  ;;  %s2158_s10 = scalar_lea.vmem %s2259_s3, %s1338_s7 }
   0xe   : > { %v1821_v3 = vld [vmem:[%s2257_s1 + $0xf8] sm:$0xff]  ;;  %999 = vmatpush.bf16.msra.mxu2 %v1813_v2  ;;  %v1820_v7 = vld [vmem:[%s2257_s1 + $0xf0] sm:$0xff]  ;;  %v1819_v11 = vld [vmem:[%s2257_s1 + $0xe8] sm:$0xff] }
   0xf   : > { %1088 = vmatpush.bf16.msra.mxu3 %v1821_v3  ;;  %v1794_v12 = vld [vmem:[%s2257_s1 + $0x20] sm:$0xff]  ;;  %v1793_v16 = vld [vmem:[%s2257_s1 + $0x18] sm:$0xff]  ;;  %v1792_v20 = vld [vmem:[%s2257_s1 + $0x10] sm:$0xff] }
  0x10   : > { %822 = vmatpush.bf16.msra.mxu0 %v1796_v4  ;;  %v1802_v13 = vld [vmem:[%s2257_s1 + $0x60] sm:$0xff]  ;;  %v1801_v17 = vld [vmem:[%s2257_s1 + $0x58] sm:$0xff]  ;;  %v1800_v21 = vld [vmem:[%s2257_s1 + $0x50] sm:$0xff] }
  0x11   : > { %911 = vmatpush.bf16.msra.mxu1 %v1804_v5  ;;  %v1810_v14 = vld [vmem:[%s2257_s1 + $0xa0] sm:$0xff]  ;;  %v1809_v18 = vld [vmem:[%s2257_s1 + $0x98] sm:$0xff]  ;;  %v1808_v22 = vld [vmem:[%s2257_s1 + $0x90] sm:$0xff] }
  0x12   : > { %1000 = vmatpush.bf16.msra.mxu2 %v1812_v6  ;;  %v1818_v15 = vld [vmem:[%s2257_s1 + $0xe0] sm:$0xff]  ;;  %v1817_v19 = vld [vmem:[%s2257_s1 + $0xd8] sm:$0xff]  ;;  %v1816_v23 = vld [vmem:[%s2257_s1 + $0xd0] sm:$0xff] }
  0x13   : > { %1089 = vmatpush.bf16.msra.mxu3 %v1820_v7  ;;  %v1791_v24 = vld [vmem:[%s2257_s1 + $0x8] sm:$0xff]  ;;  %v1790_v28 = vld [vmem:[%s2257_s1] sm:$0xff]  ;;  %v1728_v33 = vld [vmem:[%s2046_s20 + $0xc] sm:$0xf0] }
  0x14   : > { %823 = vmatpush.bf16.msra.mxu0 %v1795_v8  ;;  %v1799_v25 = vld [vmem:[%s2257_s1 + $0x48] sm:$0xff]  ;;  %v1798_v29 = vld [vmem:[%s2257_s1 + $0x40] sm:$0xff]  ;;  %v1343_v35 = vld [vmem:[%s2046_s20 + $0x10] sm:$0xf0] }
  0x15   : > { %912 = vmatpush.bf16.msra.mxu1 %v1803_v9  ;;  %v1807_v26 = vld [vmem:[%s2257_s1 + $0x88] sm:$0xff]  ;;  %v1806_v30 = vld [vmem:[%s2257_s1 + $0x80] sm:$0xff]  ;;  %v1729_v37 = vld [vmem:[%s2046_s20 + $0x14] sm:$0xf0] }
  0x16   : > { %1001 = vmatpush.bf16.msra.mxu2 %v1811_v10  ;;  %v1815_v27 = vld [vmem:[%s2257_s1 + $0xc8] sm:$0xff]  ;;  %v1814_v31 = vld [vmem:[%s2257_s1 + $0xc0] sm:$0xff]  ;;  %v1351_v39 = vld [vmem:[%s2046_s20 + $0x18] sm:$0xf0] }
  0x17   : > { %1090 = vmatpush.bf16.msra.mxu3 %v1819_v11  ;;  %v1341_v32 = vld [vmem:[%s2046_s20] sm:$0xf]  ;;  %v1726_v34 = vld [vmem:[%s2046_s20 + $0x4] sm:$0xf]  ;;  %v1349_v36 = vld [vmem:[%s2046_s20 + $0x8] sm:$0xf] }
  0x18   : > { %824 = vmatpush.bf16.msra.mxu0 %v1794_v12  ;;  %v1727_v38 = vld [vmem:[%s2046_s20 + $0xc] sm:$0xf]  ;;  %v1342_v40 = vor.u32 %v1728_v33, %v1341_v32  ;;  %v1346_v41 = vor.u32 %v1726_v34, %v1343_v35  ;;  %v1350_v42 = vor.u32 %v1729_v37, %v1349_v36  ;;  %v1357_v44 = vld [vmem:[%s2046_s20 + $0x20] sm:$0xf]  ;;  %v1732_v45 = vld [vmem:[%s2046_s20 + $0x2c] sm:$0xf0] }
  0x19   : > { %913 = vmatpush.bf16.msra.mxu1 %v1802_v13  ;;  %v1354_v43 = vor.u32 %v1727_v38, %v1351_v39  ;;  %v1730_v46 = vld [vmem:[%s2046_s20 + $0x24] sm:$0xf]  ;;  %v1359_v47 = vld [vmem:[%s2046_s20 + $0x30] sm:$0xf0]  ;;  %v1365_v48 = vld [vmem:[%s2046_s20 + $0x28] sm:$0xf]  ;;  %v1358_v52 = vor.u32 %v1732_v45, %v1357_v44 }
  0x1a   : > { %1002 = vmatpush.bf16.msra.mxu2 %v1810_v14  ;;  %v1733_v49 = vld [vmem:[%s2046_s20 + $0x34] sm:$0xf0]  ;;  %v1731_v50 = vld [vmem:[%s2046_s20 + $0x2c] sm:$0xf]  ;;  %v1367_v51 = vld [vmem:[%s2046_s20 + $0x38] sm:$0xf0]  ;;  %v1362_v53 = vor.u32 %v1730_v46, %v1359_v47 }
  0x1b   : > { %1091 = vmatpush.bf16.msra.mxu3 %v1818_v15  ;;  %v1366_v54 = vor.u32 %v1733_v49, %v1365_v48  ;;  %v1370_v55 = vor.u32 %v1731_v50, %v1367_v51  ;;  %v1373_v56 = vld [vmem:[%s2046_s20 + $0x40] sm:$0xf]  ;;  %v1736_v57 = vld [vmem:[%s2046_s20 + $0x4c] sm:$0xf0]  ;;  %v1734_v58 = vld [vmem:[%s2046_s20 + $0x44] sm:$0xf] }
  0x1c   : > { %825 = vmatpush.bf16.msra.mxu0 %v1793_v16  ;;  %v1375_v59 = vld [vmem:[%s2046_s20 + $0x50] sm:$0xf0]  ;;  %v1381_v60 = vld [vmem:[%s2046_s20 + $0x48] sm:$0xf]  ;;  %v1737_v61 = vld [vmem:[%s2046_s20 + $0x54] sm:$0xf0]  ;;  %v1374_v0 = vor.u32 %v1736_v57, %v1373_v56 }
  0x1d   : > { %914 = vmatpush.bf16.msra.mxu1 %v1801_v17  ;;  %v1735_v62 = vld [vmem:[%s2046_s20 + $0x4c] sm:$0xf]  ;;  %v1383_v63 = vld [vmem:[%s2046_s20 + $0x58] sm:$0xf0]  ;;  %v1378_v1 = vor.u32 %v1734_v58, %v1375_v59  ;;  %v1382_v2 = vor.u32 %v1737_v61, %v1381_v60  ;;  %v1389_v4 = vld [vmem:[%s2046_s20 + $0x60] sm:$0xf] }
  0x1e   : > { %1003 = vmatpush.bf16.msra.mxu2 %v1809_v18  ;;  %v1386_v3 = vor.u32 %v1735_v62, %v1383_v63  ;;  %v1740_v5 = vld [vmem:[%s2046_s20 + $0x6c] sm:$0xf0]  ;;  %v1738_v6 = vld [vmem:[%s2046_s20 + $0x64] sm:$0xf]  ;;  %v1391_v7 = vld [vmem:[%s2046_s20 + $0x70] sm:$0xf0] }
  0x1f   : > { %1092 = vmatpush.bf16.msra.mxu3 %v1817_v19  ;;  %v1397_v8 = vld [vmem:[%s2046_s20 + $0x68] sm:$0xf]  ;;  %v1741_v9 = vld [vmem:[%s2046_s20 + $0x74] sm:$0xf0]  ;;  %v1739_v10 = vld [vmem:[%s2046_s20 + $0x6c] sm:$0xf]  ;;  %v1390_v12 = vor.u32 %v1740_v5, %v1389_v4  ;;  %v1394_v13 = vor.u32 %v1738_v6, %v1391_v7 }
  0x20   : > { %826 = vmatpush.bf16.msra.mxu0 %v1792_v20  ;;  %v1399_v11 = vld [vmem:[%s2046_s20 + $0x78] sm:$0xf0]  ;;  %v1398_v14 = vor.u32 %v1741_v9, %v1397_v8  ;;  %v1405_v16 = vld [vmem:[%s2046_s20 + $0x80] sm:$0xf]  ;;  %v1744_v17 = vld [vmem:[%s2046_s20 + $0x8c] sm:$0xf0] }
  0x21   : > { %915 = vmatpush.bf16.msra.mxu1 %v1800_v21  ;;  %v1402_v15 = vor.u32 %v1739_v10, %v1399_v11  ;;  %v1742_v18 = vld [vmem:[%s2046_s20 + $0x84] sm:$0xf]  ;;  %v1407_v19 = vld [vmem:[%s2046_s20 + $0x90] sm:$0xf0]  ;;  %v1413_v20 = vld [vmem:[%s2046_s20 + $0x88] sm:$0xf] }
  0x22   : > { %1004 = vmatpush.bf16.msra.mxu2 %v1808_v22  ;;  %v1745_v21 = vld [vmem:[%s2046_s20 + $0x94] sm:$0xf0]  ;;  %v1743_v22 = vld [vmem:[%s2046_s20 + $0x8c] sm:$0xf]  ;;  %v1429_v32 = vld [vmem:[%s2046_s20 + $0xa8] sm:$0xf] }
  0x23   : > { %1093 = vmatpush.bf16.msra.mxu3 %v1816_v23  ;;  %v1415_v23 = vld [vmem:[%s2046_s20 + $0x98] sm:$0xf0]  ;;  %v1749_v33 = vld [vmem:[%s2046_s20 + $0xb4] sm:$0xf0]  ;;  %v1747_v34 = vld [vmem:[%s2046_s20 + $0xac] sm:$0xf] }
  0x24   : > { %827 = vmatpush.bf16.msra.mxu0 %v1791_v24  ;;  %v1406_v24 = vor.u32 %v1744_v17, %v1405_v16  ;;  %v1431_v35 = vld [vmem:[%s2046_s20 + $0xb8] sm:$0xf0]  ;;  %v1430_v38 = vor.u32 %v1749_v33, %v1429_v32  ;;  %v1445_v44 = vld [vmem:[%s2046_s20 + $0xc8] sm:$0xf]  ;;  %v1753_v45 = vld [vmem:[%s2046_s20 + $0xd4] sm:$0xf0] }
  0x25   : > { %916 = vmatpush.bf16.msra.mxu1 %v1799_v25  ;;  %v1410_v25 = vor.u32 %v1742_v18, %v1407_v19  ;;  %v1434_v39 = vor.u32 %v1747_v34, %v1431_v35  ;;  %v1751_v46 = vld [vmem:[%s2046_s20 + $0xcc] sm:$0xf]  ;;  %v1447_v47 = vld [vmem:[%s2046_s20 + $0xd8] sm:$0xf0]  ;;  %v1446_v50 = vor.u32 %v1753_v45, %v1445_v44  ;;  %v1461_v56 = vld [vmem:[%s2046_s20 + $0xe8] sm:$0xf] }
  0x26   : > { %1005 = vmatpush.bf16.msra.mxu2 %v1807_v26  ;;  %v1414_v26 = vor.u32 %v1745_v21, %v1413_v20  ;;  %v1450_v51 = vor.u32 %v1751_v46, %v1447_v47  ;;  %v1757_v57 = vld [vmem:[%s2046_s20 + $0xf4] sm:$0xf0]  ;;  %v1755_v58 = vld [vmem:[%s2046_s20 + $0xec] sm:$0xf]  ;;  %v1463_v59 = vld [vmem:[%s2046_s20 + $0xf8] sm:$0xf0] }
  0x27   : > { %1094 = vmatpush.bf16.msra.mxu3 %v1815_v27  ;;  %v1418_v27 = vor.u32 %v1743_v22, %v1415_v23  ;;  %v1462_v62 = vor.u32 %v1757_v57, %v1461_v56  ;;  %v1466_v63 = vor.u32 %v1755_v58, %v1463_v59  ;;  %v1477_v4 = vld [vmem:[%s2046_s20 + $0x108] sm:$0xf]  ;;  %v1761_v5 = vld [vmem:[%s2046_s20 + $0x114] sm:$0xf0]  ;;  %v1759_v6 = vld [vmem:[%s2046_s20 + $0x10c] sm:$0xf] }
  0x28   : > { %828 = vmatpush.bf16.msra.mxu0 %v1790_v28  ;;  %v1421_v28 = vld [vmem:[%s2046_s20 + $0xa0] sm:$0xf]  ;;  %v1479_v7 = vld [vmem:[%s2046_s20 + $0x118] sm:$0xf0]  ;;  %v1764_v23 = vld [vmem:[%s2046_s20 + $0x12c] sm:$0xf0] }
  0x29   : > { %917 = vmatpush.bf16.msra.mxu1 %v1798_v29  ;;  %v1748_v29 = vld [vmem:[%s2046_s20 + $0xac] sm:$0xf0]  ;;  %v2141_v10 = vld [vmem:[%s2258_s2] ss:$0 sm:$0xff]  ;;  %v1766_v56 = vld [vmem:[%s2046_s20 + $0x144] sm:$0xf] }
  0x2a   : > { %1006 = vmatpush.bf16.msra.mxu2 %v1806_v30  ;;  %v1746_v30 = vld [vmem:[%s2046_s20 + $0xa4] sm:$0xf]  ;;  %v1422_v36 = vor.u32 %v1748_v29, %v1421_v28  ;;  %v1485_v22 = vld [vmem:[%s2046_s20 + $0x120] sm:$0xf]  ;;  %v1765_v28 = vld [vmem:[%s2046_s20 + $0x134] sm:$0xf0] }
  0x2b   : > { %1095 = vmatpush.bf16.msra.mxu3 %v1814_v31  ;;  %829 = vmatmul.bf16.vlgmr.msra.gmra.mxu0 %v1342_v40  ;;  %v1423_v31 = vld [vmem:[%s2046_s20 + $0xb0] sm:$0xf0]  ;;  %v1437_v40 = vld [vmem:[%s2046_s20 + $0xc0] sm:$0xf]  ;;  %v1763_v29 = vld [vmem:[%s2046_s20 + $0x12c] sm:$0xf]  ;;  %v1486_v34 = vor.u32 %v1764_v23, %v1485_v22 }
  0x2c   : > { %918 = vmatmul.bf16.vlgmr.msra.gmra.mxu1 %v1346_v41  ;;  %v1426_v37 = vor.u32 %v1746_v30, %v1423_v31  ;;  %v1752_v41 = vld [vmem:[%s2046_s20 + $0xcc] sm:$0xf0]  ;;  %v1495_v30 = vld [vmem:[%s2046_s20 + $0x138] sm:$0xf0]  ;;  %v1503_v57 = vld [vmem:[%s2046_s20 + $0x150] sm:$0xf0] }
  0x2d   : > { %1007 = vmatmul.bf16.vlgmr.msra.gmra.mxu2 %v1350_v42  ;;  %v1750_v42 = vld [vmem:[%s2046_s20 + $0xc4] sm:$0xf]  ;;  %v1438_v48 = vor.u32 %v1752_v41, %v1437_v40  ;;  %v1498_v41 = vor.u32 %v1763_v29, %v1495_v30  ;;  %v1509_v58 = vld [vmem:[%s2046_s20 + $0x148] sm:$0xf]  ;;  %v1769_v59 = vld [vmem:[%s2046_s20 + $0x154] sm:$0xf0] }
  0x2e   : > { %1096 = vmatmul.bf16.vlgmr.msra.gmra.mxu3 %v1354_v43  ;;  %v1439_v43 = vld [vmem:[%s2046_s20 + $0xd0] sm:$0xf0]  ;;  %v1772_v22 = vld [vmem:[%s2046_s20 + $0x16c] sm:$0xf0]  ;;  %v1527_v29 = vld [vmem:[%s2046_s20 + $0x178] sm:$0xf0] }
  0x2f   : > { %v1442_v49 = vor.u32 %v1750_v42, %v1439_v43 }
  0x3b   : > { %834 = vmatmul.bf16.gmra.mxu0 %v1358_v52  ;;  %v1453_v52 = vld [vmem:[%s2046_s20 + $0xe0] sm:$0xf] }
  0x3c   : > { %923 = vmatmul.bf16.gmra.mxu1 %v1362_v53  ;;  %v1756_v53 = vld [vmem:[%s2046_s20 + $0xec] sm:$0xf0] }
  0x3d   : > { %1012 = vmatmul.bf16.gmra.mxu2 %v1366_v54  ;;  %v1754_v54 = vld [vmem:[%s2046_s20 + $0xe4] sm:$0xf]  ;;  %v1454_v60 = vor.u32 %v1756_v53, %v1453_v52  ;;  %v1501_v53 = vld [vmem:[%s2046_s20 + $0x140] sm:$0xf] }
  0x3e   : > { %1101 = vmatmul.bf16.gmra.mxu3 %v1370_v55  ;;  %v1455_v55 = vld [vmem:[%s2046_s20 + $0xf0] sm:$0xf0] }
  0x3f   : > { %v1458_v61 = vor.u32 %v1754_v54, %v1455_v55  ;;  %v1768_v54 = vld [vmem:[%s2046_s20 + $0x14c] sm:$0xf0] }
  0x4b   : > { %839 = vmatmul.bf16.gmra.mxu0 %v1374_v0  ;;  %v1469_v0 = vld [vmem:[%s2046_s20 + $0x100] sm:$0xf] }
  0x4c   : > { %928 = vmatmul.bf16.gmra.mxu1 %v1378_v1  ;;  %v1760_v1 = vld [vmem:[%s2046_s20 + $0x10c] sm:$0xf0] }
  0x4d   : > { %1017 = vmatmul.bf16.gmra.mxu2 %v1382_v2  ;;  %v1758_v2 = vld [vmem:[%s2046_s20 + $0x104] sm:$0xf]  ;;  %v1470_v8 = vor.u32 %v1760_v1, %v1469_v0  ;;  %v1502_v1 = vor.u32 %v1768_v54, %v1501_v53  ;;  %v1776_v53 = vld [vmem:[%s2046_s20 + $0x18c] sm:$0xf0] }
  0x4e   : > { %1106 = vmatmul.bf16.gmra.mxu3 %v1386_v3  ;;  %v1471_v3 = vld [vmem:[%s2046_s20 + $0x110] sm:$0xf0] }
  0x4f   : > { %v1474_v9 = vor.u32 %v1758_v2, %v1471_v3  ;;  %v1506_v2 = vor.u32 %v1766_v56, %v1503_v57  ;;  %v1535_v56 = vld [vmem:[%s2046_s20 + $0x190] sm:$0xf0]  ;;  %v1541_v57 = vld [vmem:[%s2046_s20 + $0x188] sm:$0xf] }
  0x5b   : > { %844 = vmatmul.bf16.gmra.mxu0 %v1390_v12 }
  0x5c   : > { %933 = vmatmul.bf16.gmra.mxu1 %v1394_v13  ;;  %v1478_v13 = vor.u32 %v1761_v5, %v1477_v4 }
  0x5d   : > { %1022 = vmatmul.bf16.gmra.mxu2 %v1398_v14  ;;  %v1482_v14 = vor.u32 %v1759_v6, %v1479_v7  ;;  %v1510_v7 = vor.u32 %v1769_v59, %v1509_v58  ;;  %v1777_v58 = vld [vmem:[%s2046_s20 + $0x194] sm:$0xf0]  ;;  %v1775_v59 = vld [vmem:[%s2046_s20 + $0x18c] sm:$0xf] }
  0x5e   : > { %1111 = vmatmul.bf16.gmra.mxu3 %v1402_v15 }
  0x6b   : > { %849 = vmatmul.bf16.gmra.mxu0 %v1406_v24 }
  0x6c   : > { %938 = vmatmul.bf16.gmra.mxu1 %v1410_v25  ;;  %v1762_v25 = vld [vmem:[%s2046_s20 + $0x124] sm:$0xf] }
  0x6d   : > { %1027 = vmatmul.bf16.gmra.mxu2 %v1414_v26  ;;  %v1487_v26 = vld [vmem:[%s2046_s20 + $0x130] sm:$0xf0] }
  0x6e   : > { %1116 = vmatmul.bf16.gmra.mxu3 %v1418_v27  ;;  %v1493_v27 = vld [vmem:[%s2046_s20 + $0x128] sm:$0xf]  ;;  %v1490_v35 = vor.u32 %v1762_v25, %v1487_v26  ;;  %v1519_v25 = vld [vmem:[%s2046_s20 + $0x170] sm:$0xf0] }
  0x6f   : > { %v1494_v40 = vor.u32 %v1765_v28, %v1493_v27  ;;  %v1525_v26 = vld [vmem:[%s2046_s20 + $0x168] sm:$0xf]  ;;  %v1773_v27 = vld [vmem:[%s2046_s20 + $0x174] sm:$0xf0]  ;;  %v1771_v28 = vld [vmem:[%s2046_s20 + $0x16c] sm:$0xf] }
  0x7b   : > { %854 = vmatmul.bf16.gmra.mxu0 %v1422_v36 }
  0x7c   : > { %943 = vmatmul.bf16.gmra.mxu1 %v1426_v37 }
  0x7d   : > { %1032 = vmatmul.bf16.gmra.mxu2 %v1430_v38 }
  0x7e   : > { %1121 = vmatmul.bf16.gmra.mxu3 %v1434_v39 }
  0x8b   : > { %859 = vmatmul.bf16.gmra.mxu0 %v1438_v48 }
  0x8c   : > { %948 = vmatmul.bf16.gmra.mxu1 %v1442_v49 }
  0x8d   : > { %1037 = vmatmul.bf16.gmra.mxu2 %v1446_v50 }
  0x8e   : > { %1126 = vmatmul.bf16.gmra.mxu3 %v1450_v51 }
  0x9b   : > { %864 = vmatmul.bf16.gmra.mxu0 %v1454_v60  ;;  %v1767_v60 = vld [vmem:[%s2046_s20 + $0x14c] sm:$0xf] }
  0x9c   : > { %953 = vmatmul.bf16.gmra.mxu1 %v1458_v61  ;;  %v1511_v61 = vld [vmem:[%s2046_s20 + $0x158] sm:$0xf0] }
  0x9d   : > { %1042 = vmatmul.bf16.gmra.mxu2 %v1462_v62 }
  0x9e   : > { %1131 = vmatmul.bf16.gmra.mxu3 %v1466_v63 }
  0xa8   : > { %v830_v11 = vpop.f32.mrf.mxu0 }
  0xa9   : > { %v919_v12 = vpop.f32.mrf.mxu1  ;;  %v831_v15 = vadd.f32 %v2141_v10, %v830_v11 }
  0xab   : > { %869 = vmatmul.bf16.gmra.mxu0 %v1470_v8  ;;  %v920_v18 = vadd.f32 %v919_v12, %v831_v15  ;;  %v1514_v8 = vor.u32 %v1767_v60, %v1511_v61  ;;  %v1543_v60 = vld [vmem:[%s2046_s20 + $0x198] sm:$0xf0] }
  0xac   : > { %958 = vmatmul.bf16.gmra.mxu1 %v1474_v9 }
  0xad   : > { %1047 = vmatmul.bf16.gmra.mxu2 %v1478_v13 }
  0xae   : > { %1136 = vmatmul.bf16.gmra.mxu3 %v1482_v14 }
  0xb0   : > { %v1008_v16 = vpop.f32.mrf.mxu2  ;;  %v832_v19 = vpop.f32.mrf.mxu0 }
  0xb1   : > { %v1097_v17 = vpop.f32.mrf.mxu3  ;;  %v921_v20 = vpop.f32.mrf.mxu1  ;;  %v833_v21 = vadd.f32 %v2141_v10, %v832_v19  ;;  %v1009_v24 = vadd.f32 %v1008_v16, %v920_v18 }
  0xb3   : > { %v922_v31 = vadd.f32 %v921_v20, %v833_v21  ;;  %v1098_v36 = vadd.f32 %v1097_v17, %v1009_v24  ;;  %v1517_v21 = vld [vmem:[%s2046_s20 + $0x160] sm:$0xf]  ;;  %v1770_v24 = vld [vmem:[%s2046_s20 + $0x164] sm:$0xf] }
  0xb5   : > { %v1177_v43 = vmax.f32 %v1098_v36, 0.0 }
  0xb8   : > { %v1010_v32 = vpop.f32.mrf.mxu2  ;;  %v835_v38 = vpop.f32.mrf.mxu0 }
  0xb9   : > { %v1099_v33 = vpop.f32.mrf.mxu3  ;;  %v1011_v37 = vadd.f32 %v1010_v32, %v922_v31  ;;  %v924_v39 = vpop.f32.mrf.mxu1  ;;  %v836_v45 = vadd.f32 %v2141_v10, %v835_v38 }
  0xbb   : > { %v1100_v42 = vadd.f32 %v1099_v33, %v1011_v37  ;;  %874 = vmatmul.bf16.gmra.mxu0 %v1486_v34  ;;  %v925_v49 = vadd.f32 %v924_v39, %v836_v45  ;;  %v1518_v33 = vor.u32 %v1772_v22, %v1517_v21  ;;  %v1522_v34 = vor.u32 %v1770_v24, %v1519_v25  ;;  %v1780_v21 = vld [vmem:[%s2046_s20 + $0x1ac] sm:$0xf0]  ;;  %v1551_v24 = vld [vmem:[%s2046_s20 + $0x1b0] sm:$0xf0]  ;;  %v1557_v25 = vld [vmem:[%s2046_s20 + $0x1a8] sm:$0xf] }
  0xbc   : > { %963 = vmatmul.bf16.gmra.mxu1 %v1490_v35  ;;  %v1526_v39 = vor.u32 %v1773_v27, %v1525_v26  ;;  %v1781_v26 = vld [vmem:[%s2046_s20 + $0x1b4] sm:$0xf0]  ;;  %v1779_v27 = vld [vmem:[%s2046_s20 + $0x1ac] sm:$0xf] }
  0xbd   : > { %v1178_v44 = vmax.f32 %v1100_v42, 0.0  ;;  %1052 = vmatmul.bf16.gmra.mxu2 %v1494_v40  ;;  %v1530_v40 = vor.u32 %v1771_v28, %v1527_v29  ;;  %v1559_v28 = vld [vmem:[%s2046_s20 + $0x1b8] sm:$0xf0] }
  0xbe   : > { %1141 = vmatmul.bf16.gmra.mxu3 %v1498_v41 }
  0xbf   : > { %v1825_v46 = vpack.c.bf16 %v1178_v44, %v1177_v43 }
  0xc0   : > { %v1013_v47 = vpop.f32.mrf.mxu2  ;;  %v837_v50 = vpop.f32.mrf.mxu0 }
  0xc1   : > { %v1102_v48 = vpop.f32.mrf.mxu3  ;;  %1826 = vst [vmem:[%s2158_s10] sm:$0xff] %v1825_v46   ;;  %v926_v51 = vpop.f32.mrf.mxu1  ;;  %v838_v52 = vadd.f32 %v2141_v10, %v837_v50  ;;  %v1014_v55 = vadd.f32 %v1013_v47, %v925_v49 }
  0xc3   : > { %v927_v62 = vadd.f32 %v926_v51, %v838_v52  ;;  %v1103_v3 = vadd.f32 %v1102_v48, %v1014_v55  ;;  %v1533_v52 = vld [vmem:[%s2046_s20 + $0x180] sm:$0xf]  ;;  %v1774_v55 = vld [vmem:[%s2046_s20 + $0x184] sm:$0xf] }
  0xc5   : > { %v1179_v11 = vmax.f32 %v1103_v3, 0.0 }
  0xc8   : > { %v1015_v63 = vpop.f32.mrf.mxu2  ;;  %v840_v5 = vpop.f32.mrf.mxu0 }
  0xc9   : > { %v1104_v0 = vpop.f32.mrf.mxu3  ;;  %v1016_v4 = vadd.f32 %v1015_v63, %v927_v62  ;;  %v929_v6 = vpop.f32.mrf.mxu1  ;;  %v841_v13 = vadd.f32 %v2141_v10, %v840_v5 }
  0xcb   : > { %v1105_v9 = vadd.f32 %v1104_v0, %v1016_v4  ;;  %879 = vmatmul.bf16.gmra.mxu0 %v1502_v1  ;;  %v930_v17 = vadd.f32 %v929_v6, %v841_v13  ;;  %v1534_v0 = vor.u32 %v1776_v53, %v1533_v52  ;;  %v1538_v1 = vor.u32 %v1774_v55, %v1535_v56  ;;  %v1784_v52 = vld [vmem:[%s2046_s20 + $0x1cc] sm:$0xf0]  ;;  %v1567_v55 = vld [vmem:[%s2046_s20 + $0x1d0] sm:$0xf0]  ;;  %v1573_v56 = vld [vmem:[%s2046_s20 + $0x1c8] sm:$0xf] }
  0xcc   : > { %968 = vmatmul.bf16.gmra.mxu1 %v1506_v2  ;;  %v1542_v6 = vor.u32 %v1777_v58, %v1541_v57  ;;  %v1785_v57 = vld [vmem:[%s2046_s20 + $0x1d4] sm:$0xf0]  ;;  %v1783_v58 = vld [vmem:[%s2046_s20 + $0x1cc] sm:$0xf] }
  0xcd   : > { %v1180_v12 = vmax.f32 %v1105_v9, 0.0  ;;  %1057 = vmatmul.bf16.gmra.mxu2 %v1510_v7  ;;  %v1546_v7 = vor.u32 %v1775_v59, %v1543_v60  ;;  %v1575_v59 = vld [vmem:[%s2046_s20 + $0x1d8] sm:$0xf0] }
  0xce   : > { %1146 = vmatmul.bf16.gmra.mxu3 %v1514_v8 }
  0xcf   : > { %v1830_v14 = vpack.c.bf16 %v1180_v12, %v1179_v11 }
  0xd0   : > { %v1018_v15 = vpop.f32.mrf.mxu2  ;;  %v842_v18 = vpop.f32.mrf.mxu0 }
  0xd1   : > { %v1107_v16 = vpop.f32.mrf.mxu3  ;;  %1902 = vst [vmem:[%s2158_s10 + $0x8] sm:$0xff] %v1830_v14   ;;  %v931_v19 = vpop.f32.mrf.mxu1  ;;  %v843_v20 = vadd.f32 %v2141_v10, %v842_v18  ;;  %v1019_v23 = vadd.f32 %v1018_v15, %v930_v17 }
  0xd3   : > { %v932_v30 = vadd.f32 %v931_v19, %v843_v20  ;;  %v1108_v35 = vadd.f32 %v1107_v16, %v1019_v23  ;;  %v1549_v20 = vld [vmem:[%s2046_s20 + $0x1a0] sm:$0xf]  ;;  %v1778_v23 = vld [vmem:[%s2046_s20 + $0x1a4] sm:$0xf] }
  0xd5   : > { %v1181_v42 = vmax.f32 %v1108_v35, 0.0 }
  0xd8   : > { %v1020_v31 = vpop.f32.mrf.mxu2  ;;  %v845_v37 = vpop.f32.mrf.mxu0 }
  0xd9   : > { %v1109_v32 = vpop.f32.mrf.mxu3  ;;  %v1021_v36 = vadd.f32 %v1020_v31, %v932_v30  ;;  %v934_v38 = vpop.f32.mrf.mxu1  ;;  %v846_v44 = vadd.f32 %v2141_v10, %v845_v37 }
  0xdb   : > { %v1110_v41 = vadd.f32 %v1109_v32, %v1021_v36  ;;  %884 = vmatmul.bf16.gmra.mxu0 %v1518_v33  ;;  %v935_v48 = vadd.f32 %v934_v38, %v846_v44  ;;  %v1550_v32 = vor.u32 %v1780_v21, %v1549_v20  ;;  %v1554_v33 = vor.u32 %v1778_v23, %v1551_v24  ;;  %v1788_v20 = vld [vmem:[%s2046_s20 + $0x1ec] sm:$0xf0]  ;;  %v1583_v23 = vld [vmem:[%s2046_s20 + $0x1f0] sm:$0xf0]  ;;  %v1589_v24 = vld [vmem:[%s2046_s20 + $0x1e8] sm:$0xf] }
  0xdc   : > { %973 = vmatmul.bf16.gmra.mxu1 %v1522_v34  ;;  %v1558_v38 = vor.u32 %v1781_v26, %v1557_v25  ;;  %v1789_v25 = vld [vmem:[%s2046_s20 + $0x1f4] sm:$0xf0]  ;;  %v1787_v26 = vld [vmem:[%s2046_s20 + $0x1ec] sm:$0xf] }
  0xdd   : > { %v1182_v43 = vmax.f32 %v1110_v41, 0.0  ;;  %1062 = vmatmul.bf16.gmra.mxu2 %v1526_v39  ;;  %v1562_v39 = vor.u32 %v1779_v27, %v1559_v28  ;;  %v1591_v27 = vld [vmem:[%s2046_s20 + $0x1f8] sm:$0xf0] }
  0xde   : > { %1151 = vmatmul.bf16.gmra.mxu3 %v1530_v40 }
  0xdf   : > { %v1835_v45 = vpack.c.bf16 %v1182_v43, %v1181_v42 }
  0xe0   : > { %v1023_v46 = vpop.f32.mrf.mxu2  ;;  %v847_v49 = vpop.f32.mrf.mxu0 }
  0xe1   : > { %v1112_v47 = vpop.f32.mrf.mxu3  ;;  %1903 = vst [vmem:[%s2158_s10 + $0x10] sm:$0xff] %v1835_v45   ;;  %v936_v50 = vpop.f32.mrf.mxu1  ;;  %v848_v51 = vadd.f32 %v2141_v10, %v847_v49  ;;  %v1024_v54 = vadd.f32 %v1023_v46, %v935_v48 }
  0xe3   : > { %v937_v61 = vadd.f32 %v936_v50, %v848_v51  ;;  %v1113_v2 = vadd.f32 %v1112_v47, %v1024_v54  ;;  %v1565_v51 = vld [vmem:[%s2046_s20 + $0x1c0] sm:$0xf]  ;;  %v1782_v54 = vld [vmem:[%s2046_s20 + $0x1c4] sm:$0xf] }
  0xe5   : > { %v1183_v9 = vmax.f32 %v1113_v2, 0.0 }
  0xe8   : > { %v1025_v62 = vpop.f32.mrf.mxu2  ;;  %v850_v4 = vpop.f32.mrf.mxu0 }
  0xe9   : > { %v1114_v63 = vpop.f32.mrf.mxu3  ;;  %v1026_v3 = vadd.f32 %v1025_v62, %v937_v61  ;;  %v939_v5 = vpop.f32.mrf.mxu1  ;;  %v851_v12 = vadd.f32 %v2141_v10, %v850_v4 }
  0xeb   : > { %v1115_v8 = vadd.f32 %v1114_v63, %v1026_v3  ;;  %889 = vmatmul.bf16.gmra.mxu0 %v1534_v0  ;;  %v940_v16 = vadd.f32 %v939_v5, %v851_v12  ;;  %v1566_v63 = vor.u32 %v1784_v52, %v1565_v51  ;;  %v1570_v0 = vor.u32 %v1782_v54, %v1567_v55 }
  0xec   : > { %978 = vmatmul.bf16.gmra.mxu1 %v1538_v1  ;;  %v1574_v5 = vor.u32 %v1785_v57, %v1573_v56 }
  0xed   : > { %v1184_v11 = vmax.f32 %v1115_v8, 0.0  ;;  %1067 = vmatmul.bf16.gmra.mxu2 %v1542_v6  ;;  %v1578_v6 = vor.u32 %v1783_v58, %v1575_v59 }
  0xee   : > { %1156 = vmatmul.bf16.gmra.mxu3 %v1546_v7 }
  0xef   : > { %v1840_v13 = vpack.c.bf16 %v1184_v11, %v1183_v9 }
  0xf0   : > { %v1028_v14 = vpop.f32.mrf.mxu2  ;;  %v852_v17 = vpop.f32.mrf.mxu0 }
  0xf1   : > { %v1117_v15 = vpop.f32.mrf.mxu3  ;;  %1904 = vst [vmem:[%s2158_s10 + $0x18] sm:$0xff] %v1840_v13   ;;  %v941_v18 = vpop.f32.mrf.mxu1  ;;  %v853_v19 = vadd.f32 %v2141_v10, %v852_v17  ;;  %v1029_v22 = vadd.f32 %v1028_v14, %v940_v16 }
  0xf3   : > { %v942_v29 = vadd.f32 %v941_v18, %v853_v19  ;;  %v1118_v34 = vadd.f32 %v1117_v15, %v1029_v22  ;;  %v1581_v19 = vld [vmem:[%s2046_s20 + $0x1e0] sm:$0xf]  ;;  %v1786_v22 = vld [vmem:[%s2046_s20 + $0x1e4] sm:$0xf] }
  0xf5   : > { %v1185_v41 = vmax.f32 %v1118_v34, 0.0 }
  0xf8   : > { %v1030_v30 = vpop.f32.mrf.mxu2  ;;  %v855_v36 = vpop.f32.mrf.mxu0 }
  0xf9   : > { %v1119_v31 = vpop.f32.mrf.mxu3  ;;  %v1031_v35 = vadd.f32 %v1030_v30, %v942_v29  ;;  %v944_v37 = vpop.f32.mrf.mxu1  ;;  %v856_v43 = vadd.f32 %v2141_v10, %v855_v36 }
  0xfb   : > { %v1120_v40 = vadd.f32 %v1119_v31, %v1031_v35  ;;  %894 = vmatmul.bf16.gmra.mxu0 %v1550_v32  ;;  %v945_v47 = vadd.f32 %v944_v37, %v856_v43  ;;  %v1582_v31 = vor.u32 %v1788_v20, %v1581_v19  ;;  %v1586_v32 = vor.u32 %v1786_v22, %v1583_v23 }
  0xfc   : > { %983 = vmatmul.bf16.gmra.mxu1 %v1554_v33  ;;  %v1590_v37 = vor.u32 %v1789_v25, %v1589_v24 }
  0xfd   : > { %v1186_v42 = vmax.f32 %v1120_v40, 0.0  ;;  %1072 = vmatmul.bf16.gmra.mxu2 %v1558_v38  ;;  %v1594_v38 = vor.u32 %v1787_v26, %v1591_v27 }
  0xfe   : > { %1161 = vmatmul.bf16.gmra.mxu3 %v1562_v39 }
  0xff   : > { %v1845_v44 = vpack.c.bf16 %v1186_v42, %v1185_v41 }
 0x100   : > { %v1033_v45 = vpop.f32.mrf.mxu2  ;;  %v857_v48 = vpop.f32.mrf.mxu0 }
 0x101   : > { %v1122_v46 = vpop.f32.mrf.mxu3  ;;  %1905 = vst [vmem:[%s2158_s10 + $0x20] sm:$0xff] %v1845_v44   ;;  %v946_v49 = vpop.f32.mrf.mxu1  ;;  %v858_v50 = vadd.f32 %v2141_v10, %v857_v48  ;;  %v1034_v53 = vadd.f32 %v1033_v45, %v945_v47 }
 0x103   : > { %v947_v60 = vadd.f32 %v946_v49, %v858_v50  ;;  %v1123_v1 = vadd.f32 %v1122_v46, %v1034_v53 }
 0x105   : > { %v1187_v8 = vmax.f32 %v1123_v1, 0.0 }
 0x108   : > { %v1035_v61 = vpop.f32.mrf.mxu2  ;;  %v860_v3 = vpop.f32.mrf.mxu0 }
 0x109   : > { %v1124_v62 = vpop.f32.mrf.mxu3  ;;  %v1036_v2 = vadd.f32 %v1035_v61, %v947_v60  ;;  %v949_v4 = vpop.f32.mrf.mxu1  ;;  %v861_v11 = vadd.f32 %v2141_v10, %v860_v3 }
 0x10b   : > { %v1125_v7 = vadd.f32 %v1124_v62, %v1036_v2  ;;  %899 = vmatmul.bf16.gmra.mxu0 %v1566_v63  ;;  %v950_v15 = vadd.f32 %v949_v4, %v861_v11 }
 0x10c   : > { %988 = vmatmul.bf16.gmra.mxu1 %v1570_v0 }
 0x10d   : > { %v1188_v9 = vmax.f32 %v1125_v7, 0.0  ;;  %1077 = vmatmul.bf16.gmra.mxu2 %v1574_v5 }
 0x10e   : > { %1166 = vmatmul.bf16.gmra.mxu3 %v1578_v6 }
 0x10f   : > { %v1850_v12 = vpack.c.bf16 %v1188_v9, %v1187_v8 }
 0x110   : > { %v1038_v13 = vpop.f32.mrf.mxu2  ;;  %v862_v16 = vpop.f32.mrf.mxu0 }
 0x111   : > { %v1127_v14 = vpop.f32.mrf.mxu3  ;;  %1906 = vst [vmem:[%s2158_s10 + $0x28] sm:$0xff] %v1850_v12   ;;  %v951_v17 = vpop.f32.mrf.mxu1  ;;  %v863_v18 = vadd.f32 %v2141_v10, %v862_v16  ;;  %v1039_v21 = vadd.f32 %v1038_v13, %v950_v15 }
 0x113   : > { %v952_v28 = vadd.f32 %v951_v17, %v863_v18  ;;  %v1128_v33 = vadd.f32 %v1127_v14, %v1039_v21 }
 0x115   : > { %v1189_v40 = vmax.f32 %v1128_v33, 0.0 }
 0x118   : > { %v1040_v29 = vpop.f32.mrf.mxu2  ;;  %v865_v35 = vpop.f32.mrf.mxu0 }
 0x119   : > { %v1129_v30 = vpop.f32.mrf.mxu3  ;;  %v1041_v34 = vadd.f32 %v1040_v29, %v952_v28  ;;  %v954_v36 = vpop.f32.mrf.mxu1  ;;  %v866_v42 = vadd.f32 %v2141_v10, %v865_v35 }
 0x11b   : > { %v1130_v39 = vadd.f32 %v1129_v30, %v1041_v34  ;;  %904 = vmatmul.bf16.gmra.mxu0 %v1582_v31  ;;  %v955_v46 = vadd.f32 %v954_v36, %v866_v42 }
 0x11c   : > { %993 = vmatmul.bf16.gmra.mxu1 %v1586_v32 }
 0x11d   : > { %v1190_v41 = vmax.f32 %v1130_v39, 0.0  ;;  %1082 = vmatmul.bf16.gmra.mxu2 %v1590_v37 }
 0x11e   : > { %1171 = vmatmul.bf16.gmra.mxu3 %v1594_v38 }
 0x11f   : > { %v1855_v43 = vpack.c.bf16 %v1190_v41, %v1189_v40 }
 0x120   : > { %v1043_v44 = vpop.f32.mrf.mxu2  ;;  %v867_v47 = vpop.f32.mrf.mxu0 }
 0x121   : > { %v1132_v45 = vpop.f32.mrf.mxu3  ;;  %1907 = vst [vmem:[%s2158_s10 + $0x30] sm:$0xff] %v1855_v43   ;;  %v956_v48 = vpop.f32.mrf.mxu1  ;;  %v868_v49 = vadd.f32 %v2141_v10, %v867_v47  ;;  %v1044_v50 = vadd.f32 %v1043_v44, %v955_v46 }
 0x123   : > { %v957_v51 = vadd.f32 %v956_v48, %v868_v49  ;;  %v1133_v54 = vadd.f32 %v1132_v45, %v1044_v50 }
 0x125   : > { %v1191_v59 = vmax.f32 %v1133_v54, 0.0 }
 0x128   : > { %v1045_v52 = vpop.f32.mrf.mxu2  ;;  %v870_v56 = vpop.f32.mrf.mxu0 }
 0x129   : > { %v1134_v53 = vpop.f32.mrf.mxu3  ;;  %v1046_v55 = vadd.f32 %v1045_v52, %v957_v51  ;;  %v959_v57 = vpop.f32.mrf.mxu1  ;;  %v871_v61 = vadd.f32 %v2141_v10, %v870_v56 }
 0x12b   : > { %v1135_v58 = vadd.f32 %v1134_v53, %v1046_v55  ;;  %v960_v1 = vadd.f32 %v959_v57, %v871_v61 }
 0x12d   : > { %v1192_v60 = vmax.f32 %v1135_v58, 0.0 }
 0x12f   : > { %v1860_v62 = vpack.c.bf16 %v1192_v60, %v1191_v59 }
 0x130   : > { %v1048_v63 = vpop.f32.mrf.mxu2  ;;  %v872_v2 = vpop.f32.mrf.mxu0 }
 0x131   : > { %v1137_v0 = vpop.f32.mrf.mxu3  ;;  %1908 = vst [vmem:[%s2158_s10 + $0x38] sm:$0xff] %v1860_v62   ;;  %v961_v3 = vpop.f32.mrf.mxu1  ;;  %v873_v4 = vadd.f32 %v2141_v10, %v872_v2  ;;  %v1049_v5 = vadd.f32 %v1048_v63, %v960_v1 }
 0x133   : > { %v962_v6 = vadd.f32 %v961_v3, %v873_v4  ;;  %v1138_v9 = vadd.f32 %v1137_v0, %v1049_v5 }
 0x135   : > { %v1193_v15 = vmax.f32 %v1138_v9, 0.0 }
 0x138   : > { %v1050_v7 = vpop.f32.mrf.mxu2  ;;  %v875_v12 = vpop.f32.mrf.mxu0 }
 0x139   : > { %v1139_v8 = vpop.f32.mrf.mxu3  ;;  %v1051_v11 = vadd.f32 %v1050_v7, %v962_v6  ;;  %v964_v13 = vpop.f32.mrf.mxu1  ;;  %v876_v17 = vadd.f32 %v2141_v10, %v875_v12 }
 0x13b   : > { %v1140_v14 = vadd.f32 %v1139_v8, %v1051_v11  ;;  %v965_v21 = vadd.f32 %v964_v13, %v876_v17 }
 0x13d   : > { %v1194_v16 = vmax.f32 %v1140_v14, 0.0 }
 0x13f   : > { %v1865_v18 = vpack.c.bf16 %v1194_v16, %v1193_v15 }
 0x140   : > { %v1053_v19 = vpop.f32.mrf.mxu2  ;;  %v877_v22 = vpop.f32.mrf.mxu0 }
 0x141   : > { %v1142_v20 = vpop.f32.mrf.mxu3  ;;  %1909 = vst [vmem:[%s2158_s10 + $0x40] sm:$0xff] %v1865_v18   ;;  %v966_v23 = vpop.f32.mrf.mxu1  ;;  %v878_v24 = vadd.f32 %v2141_v10, %v877_v22  ;;  %v1054_v25 = vadd.f32 %v1053_v19, %v965_v21 }
 0x143   : > { %v967_v26 = vadd.f32 %v966_v23, %v878_v24  ;;  %v1143_v29 = vadd.f32 %v1142_v20, %v1054_v25 }
 0x145   : > { %v1195_v34 = vmax.f32 %v1143_v29, 0.0 }
 0x148   : > { %v1055_v27 = vpop.f32.mrf.mxu2  ;;  %v880_v31 = vpop.f32.mrf.mxu0 }
 0x149   : > { %v1144_v28 = vpop.f32.mrf.mxu3  ;;  %v1056_v30 = vadd.f32 %v1055_v27, %v967_v26  ;;  %v969_v32 = vpop.f32.mrf.mxu1  ;;  %v881_v36 = vadd.f32 %v2141_v10, %v880_v31 }
 0x14b   : > { %v1145_v33 = vadd.f32 %v1144_v28, %v1056_v30  ;;  %v970_v40 = vadd.f32 %v969_v32, %v881_v36 }
 0x14d   : > { %v1196_v35 = vmax.f32 %v1145_v33, 0.0 }
 0x14f   : > { %v1870_v37 = vpack.c.bf16 %v1196_v35, %v1195_v34 }
 0x150   : > { %v1058_v38 = vpop.f32.mrf.mxu2  ;;  %v882_v41 = vpop.f32.mrf.mxu0 }
 0x151   : > { %v1147_v39 = vpop.f32.mrf.mxu3  ;;  %1910 = vst [vmem:[%s2158_s10 + $0x48] sm:$0xff] %v1870_v37   ;;  %v971_v42 = vpop.f32.mrf.mxu1  ;;  %v883_v43 = vadd.f32 %v2141_v10, %v882_v41  ;;  %v1059_v44 = vadd.f32 %v1058_v38, %v970_v40 }
 0x153   : > { %v972_v45 = vadd.f32 %v971_v42, %v883_v43  ;;  %v1148_v48 = vadd.f32 %v1147_v39, %v1059_v44 }
 0x155   : > { %v1197_v53 = vmax.f32 %v1148_v48, 0.0 }
 0x158   : > { %v1060_v46 = vpop.f32.mrf.mxu2  ;;  %v885_v50 = vpop.f32.mrf.mxu0 }
 0x159   : > { %v1149_v47 = vpop.f32.mrf.mxu3  ;;  %v1061_v49 = vadd.f32 %v1060_v46, %v972_v45  ;;  %v974_v51 = vpop.f32.mrf.mxu1  ;;  %v886_v55 = vadd.f32 %v2141_v10, %v885_v50 }
 0x15b   : > { %v1150_v52 = vadd.f32 %v1149_v47, %v1061_v49  ;;  %v975_v59 = vadd.f32 %v974_v51, %v886_v55 }
 0x15d   : > { %v1198_v54 = vmax.f32 %v1150_v52, 0.0 }
 0x15f   : > { %v1875_v56 = vpack.c.bf16 %v1198_v54, %v1197_v53 }
 0x160   : > { %v1063_v57 = vpop.f32.mrf.mxu2  ;;  %v887_v60 = vpop.f32.mrf.mxu0 }
 0x161   : > { %v1152_v58 = vpop.f32.mrf.mxu3  ;;  %1911 = vst [vmem:[%s2158_s10 + $0x50] sm:$0xff] %v1875_v56   ;;  %v976_v61 = vpop.f32.mrf.mxu1  ;;  %v888_v62 = vadd.f32 %v2141_v10, %v887_v60  ;;  %v1064_v63 = vadd.f32 %v1063_v57, %v975_v59 }
 0x163   : > { %v977_v0 = vadd.f32 %v976_v61, %v888_v62  ;;  %v1153_v3 = vadd.f32 %v1152_v58, %v1064_v63 }
 0x165   : > { %v1199_v8 = vmax.f32 %v1153_v3, 0.0 }
 0x168   : > { %v1065_v1 = vpop.f32.mrf.mxu2  ;;  %v890_v5 = vpop.f32.mrf.mxu0 }
 0x169   : > { %v1154_v2 = vpop.f32.mrf.mxu3  ;;  %v1066_v4 = vadd.f32 %v1065_v1, %v977_v0  ;;  %v979_v6 = vpop.f32.mrf.mxu1  ;;  %v891_v11 = vadd.f32 %v2141_v10, %v890_v5 }
 0x16b   : > { %v1155_v7 = vadd.f32 %v1154_v2, %v1066_v4  ;;  %v980_v15 = vadd.f32 %v979_v6, %v891_v11 }
 0x16d   : > { %v1200_v9 = vmax.f32 %v1155_v7, 0.0 }
 0x16f   : > { %v1880_v12 = vpack.c.bf16 %v1200_v9, %v1199_v8 }
 0x170   : > { %v1068_v13 = vpop.f32.mrf.mxu2  ;;  %v892_v16 = vpop.f32.mrf.mxu0 }
 0x171   : > { %v1157_v14 = vpop.f32.mrf.mxu3  ;;  %1912 = vst [vmem:[%s2158_s10 + $0x58] sm:$0xff] %v1880_v12   ;;  %v981_v17 = vpop.f32.mrf.mxu1  ;;  %v893_v18 = vadd.f32 %v2141_v10, %v892_v16  ;;  %v1069_v19 = vadd.f32 %v1068_v13, %v980_v15 }
 0x173   : > { %v982_v20 = vadd.f32 %v981_v17, %v893_v18  ;;  %v1158_v23 = vadd.f32 %v1157_v14, %v1069_v19 }
 0x175   : > { %v1201_v28 = vmax.f32 %v1158_v23, 0.0 }
 0x178   : > { %v1070_v21 = vpop.f32.mrf.mxu2  ;;  %v895_v25 = vpop.f32.mrf.mxu0 }
 0x179   : > { %v1159_v22 = vpop.f32.mrf.mxu3  ;;  %v1071_v24 = vadd.f32 %v1070_v21, %v982_v20  ;;  %v984_v26 = vpop.f32.mrf.mxu1  ;;  %v896_v30 = vadd.f32 %v2141_v10, %v895_v25 }
 0x17b   : > { %v1160_v27 = vadd.f32 %v1159_v22, %v1071_v24  ;;  %v985_v34 = vadd.f32 %v984_v26, %v896_v30 }
 0x17d   : > { %v1202_v29 = vmax.f32 %v1160_v27, 0.0 }
 0x17f   : > { %v1885_v31 = vpack.c.bf16 %v1202_v29, %v1201_v28 }
 0x180   : > { %v1073_v32 = vpop.f32.mrf.mxu2  ;;  %v897_v35 = vpop.f32.mrf.mxu0 }
 0x181   : > { %v1162_v33 = vpop.f32.mrf.mxu3  ;;  %1913 = vst [vmem:[%s2158_s10 + $0x60] sm:$0xff] %v1885_v31   ;;  %v986_v36 = vpop.f32.mrf.mxu1  ;;  %v898_v37 = vadd.f32 %v2141_v10, %v897_v35  ;;  %v1074_v38 = vadd.f32 %v1073_v32, %v985_v34 }
 0x183   : > { %v987_v39 = vadd.f32 %v986_v36, %v898_v37  ;;  %v1163_v42 = vadd.f32 %v1162_v33, %v1074_v38 }
 0x185   : > { %v1203_v47 = vmax.f32 %v1163_v42, 0.0 }
 0x188   : > { %v1075_v40 = vpop.f32.mrf.mxu2  ;;  %v900_v44 = vpop.f32.mrf.mxu0 }
 0x189   : > { %v1164_v41 = vpop.f32.mrf.mxu3  ;;  %v1076_v43 = vadd.f32 %v1075_v40, %v987_v39  ;;  %v989_v45 = vpop.f32.mrf.mxu1  ;;  %v901_v49 = vadd.f32 %v2141_v10, %v900_v44 }
 0x18b   : > { %v1165_v46 = vadd.f32 %v1164_v41, %v1076_v43  ;;  %v990_v53 = vadd.f32 %v989_v45, %v901_v49 }
 0x18d   : > { %v1204_v48 = vmax.f32 %v1165_v46, 0.0 }
 0x18f   : > { %v1890_v50 = vpack.c.bf16 %v1204_v48, %v1203_v47 }
 0x190   : > { %v1078_v51 = vpop.f32.mrf.mxu2  ;;  %v902_v54 = vpop.f32.mrf.mxu0 }
 0x191   : > { %v1167_v52 = vpop.f32.mrf.mxu3  ;;  %1914 = vst [vmem:[%s2158_s10 + $0x68] sm:$0xff] %v1890_v50   ;;  %v991_v55 = vpop.f32.mrf.mxu1  ;;  %v903_v56 = vadd.f32 %v2141_v10, %v902_v54  ;;  %v1079_v57 = vadd.f32 %v1078_v51, %v990_v53 }
 0x193   : > { %v992_v58 = vadd.f32 %v991_v55, %v903_v56  ;;  %v1168_v61 = vadd.f32 %v1167_v52, %v1079_v57 }
 0x195   : > { %v1205_v2 = vmax.f32 %v1168_v61, 0.0 }
 0x198   : > { %v1080_v59 = vpop.f32.mrf.mxu2  ;;  %v905_v63 = vpop.f32.mrf.mxu0 }
 0x199   : > { %v1169_v60 = vpop.f32.mrf.mxu3  ;;  %v1081_v62 = vadd.f32 %v1080_v59, %v992_v58  ;;  %v994_v1 = vpop.f32.mrf.mxu1  ;;  %v906_v4 = vadd.f32 %v2141_v10, %v905_v63 }
 0x19b   : > { %v1170_v0 = vadd.f32 %v1169_v60, %v1081_v62  ;;  %v995_v8 = vadd.f32 %v994_v1, %v906_v4 }
 0x19d   : > { %v1206_v3 = vmax.f32 %v1170_v0, 0.0 }
 0x19f   : > { %v1895_v5 = vpack.c.bf16 %v1206_v3, %v1205_v2 }
 0x1a0   : > { %v1083_v6 = vpop.f32.mrf.mxu2  ;;  %v907_v9 = vpop.f32.mrf.mxu0 }
 0x1a1   : > { %v1172_v7 = vpop.f32.mrf.mxu3  ;;  %1915 = vst [vmem:[%s2158_s10 + $0x70] sm:$0xff] %v1895_v5   ;;  %v908_v11 = vadd.f32 %v2141_v10, %v907_v9  ;;  %v1084_v12 = vadd.f32 %v1083_v6, %v995_v8  ;;  %v996_v13 = vpop.f32.mrf.mxu1 }
 0x1a3   : > { %v997_v14 = vadd.f32 %v996_v13, %v908_v11  ;;  %v1173_v16 = vadd.f32 %v1172_v7, %v1084_v12 }
 0x1a5   : > { %v1207_v20 = vmax.f32 %v1173_v16, 0.0 }
 0x1a8   : > { %v1085_v15 = vpop.f32.mrf.mxu2 }
 0x1a9   : > { %v1086_v17 = vadd.f32 %v1085_v15, %v997_v14  ;;  %v1174_v18 = vpop.f32.mrf.mxu3 }
 0x1ab   : > { %v1175_v19 = vadd.f32 %v1174_v18, %v1086_v17 }
 0x1ad   : > { %v1208_v21 = vmax.f32 %v1175_v19, 0.0 }
 0x1af   : > { %v1900_v22 = vpack.c.bf16 %v1208_v21, %v1207_v20 }
 0x1b1   : > { %1916 = vst [vmem:[%s2158_s10 + $0x78] sm:$0xff] %v1900_v22  }
 0x1b2 PF: > { %s13_s12 = sadd.s32 1, %s1932_s12  }
 0x1b3   : > { %p10_p4 = scmp.ge.s32.totalorder %s13_s12, 4  }
 0x1b5   :  { %12 = sbr.rel (!%p10_p4) target bundleno = 1 (0x1), region = 62 }

// kernel: posenet_forward.8
= control target key start
LH: loop header
LB: loop body
LE: loop exit
PB: predicated region body
PF: predicated region fallthrough
CT: control target
= control target key end

     0   :  { %s1214_s1 = inlined_call_operand.vmem [shape: bf16[384,128], index: 1, kind: input, shape index: {}]   ;;  %s1215_s2 = inlined_call_operand.vmem [shape: f32[1,128], index: 2, kind: input, shape index: {}]   ;;  %s1216_s0 = inlined_call_operand.vmem [shape: bf16[128,384], index: 0, kind: input, shape index: {}]   ;;  %s1217_s3 = inlined_call_operand.vmem [shape: bf16[128,128], index: 3, kind: output, shape index: {}]  }
   0x1   :  { %v792_v0 = vld [vmem:[%s1214_s1 + $0x38] sm:$0xff]  ;;  %v791_v3 = vld [vmem:[%s1214_s1 + $0x30] sm:$0xff]  ;;  %v790_v6 = vld [vmem:[%s1214_s1 + $0x28] sm:$0xff] }
   0x2   :  { %v907_v1 = vld [vmem:[%s1214_s1 + $0x78] sm:$0xff]  ;;  %370 = vmatpush.bf16.msra.mxu0 %v792_v0  ;;  %856 = vmatpush.bf16.msra.mxu3 %v792_v0  ;;  %v922_v4 = vld [vmem:[%s1214_s1 + $0x70] sm:$0xff]  ;;  %v798_v7 = vld [vmem:[%s1214_s1 + $0x68] sm:$0xff] }
   0x3   :  { %v912_v2 = vld [vmem:[%s1214_s1 + $0xb8] sm:$0xff]  ;;  %419 = vmatpush.bf16.msra.mxu1 %v907_v1  ;;  %v927_v5 = vld [vmem:[%s1214_s1 + $0xb0] sm:$0xff]  ;;  %v940_v8 = vld [vmem:[%s1214_s1 + $0xa8] sm:$0xff] }
   0x4   :  { %468 = vmatpush.bf16.msra.mxu2 %v912_v2  ;;  %v789_v9 = vld [vmem:[%s1214_s1 + $0x20] sm:$0xff]  ;;  %v788_v12 = vld [vmem:[%s1214_s1 + $0x18] sm:$0xff]  ;;  %v787_v15 = vld [vmem:[%s1214_s1 + $0x10] sm:$0xff] }
   0x5   :  { %v797_v10 = vld [vmem:[%s1214_s1 + $0x60] sm:$0xff]  ;;  %v796_v13 = vld [vmem:[%s1214_s1 + $0x58] sm:$0xff]  ;;  %v795_v16 = vld [vmem:[%s1214_s1 + $0x50] sm:$0xff] }
   0x6   :  { %371 = vmatpush.bf16.msra.mxu0 %v791_v3  ;;  %857 = vmatpush.bf16.msra.mxu3 %v791_v3  ;;  %v952_v11 = vld [vmem:[%s1214_s1 + $0xa0] sm:$0xff]  ;;  %v964_v14 = vld [vmem:[%s1214_s1 + $0x98] sm:$0xff]  ;;  %v976_v17 = vld [vmem:[%s1214_s1 + $0x90] sm:$0xff] }
   0x7   :  { %420 = vmatpush.bf16.msra.mxu1 %v922_v4  ;;  %v786_v18 = vld [vmem:[%s1214_s1 + $0x8] sm:$0xff]  ;;  %v785_v21 = vld [vmem:[%s1214_s1] sm:$0xff]  ;;  %v643_v26 = vld [vmem:[%s1216_s0 + $0x90] sm:$0xf] }
   0x8   :  { %469 = vmatpush.bf16.msra.mxu2 %v927_v5  ;;  %v794_v19 = vld [vmem:[%s1214_s1 + $0x48] sm:$0xff]  ;;  %v793_v22 = vld [vmem:[%s1214_s1 + $0x40] sm:$0xff]  ;;  %v780_v27 = vld [vmem:[%s1216_s0 + $0x98] sm:$0xf0] }
   0x9   :  { %v988_v20 = vld [vmem:[%s1214_s1 + $0x88] sm:$0xff]  ;;  %v999_v23 = vld [vmem:[%s1214_s1 + $0x80] sm:$0xff]  ;;  %v573_v29 = vld [vmem:[%s1216_s0 + $0xc] sm:$0xf0]  ;;  %v644_v33 = vor.u32 %v780_v27, %v643_v26 }
   0xa   :  { %372 = vmatpush.bf16.msra.mxu0 %v790_v6  ;;  %858 = vmatpush.bf16.msra.mxu3 %v790_v6  ;;  %v571_v24 = vld [vmem:[%s1216_s0] sm:$0xf]  ;;  %v762_v25 = vld [vmem:[%s1216_s0 + $0x8] sm:$0xf0]  ;;  %v761_v28 = vld [vmem:[%s1216_s0 + $0x4] sm:$0xf] }
   0xb   :  { %421 = vmatpush.bf16.msra.mxu1 %v798_v7  ;;  %v579_v30 = vld [vmem:[%s1216_s0 + $0x8] sm:$0xf]  ;;  %v763_v31 = vld [vmem:[%s1216_s0 + $0x10] sm:$0xf0]  ;;  %v572_v32 = vor.u32 %v762_v25, %v571_v24  ;;  %v576_v34 = vor.u32 %v761_v28, %v573_v29  ;;  %v583_v36 = vld [vmem:[%s1216_s0 + $0x18] sm:$0xf] }
   0xc   :  { %470 = vmatpush.bf16.msra.mxu2 %v940_v8  ;;  %v580_v35 = vor.u32 %v763_v31, %v579_v30  ;;  %v765_v37 = vld [vmem:[%s1216_s0 + $0x20] sm:$0xf0]  ;;  %v655_v38 = vld [vmem:[%s1216_s0 + $0xa8] sm:$0xf]  ;;  %v783_v39 = vld [vmem:[%s1216_s0 + $0xb0] sm:$0xf0] }
   0xd   :  { %v764_v40 = vld [vmem:[%s1216_s0 + $0x1c] sm:$0xf]  ;;  %v585_v41 = vld [vmem:[%s1216_s0 + $0x24] sm:$0xf0]  ;;  %v591_v42 = vld [vmem:[%s1216_s0 + $0x20] sm:$0xf]  ;;  %v584_v44 = vor.u32 %v765_v37, %v583_v36  ;;  %v656_v45 = vor.u32 %v783_v39, %v655_v38 }
   0xe   :  { %373 = vmatpush.bf16.msra.mxu0 %v789_v9  ;;  %859 = vmatpush.bf16.msra.mxu3 %v789_v9  ;;  %v766_v43 = vld [vmem:[%s1216_s0 + $0x28] sm:$0xf0]  ;;  %v588_v46 = vor.u32 %v764_v40, %v585_v41  ;;  %v595_v48 = vld [vmem:[%s1216_s0 + $0x30] sm:$0xf]  ;;  %v768_v49 = vld [vmem:[%s1216_s0 + $0x38] sm:$0xf0] }
   0xf   :  { %422 = vmatpush.bf16.msra.mxu1 %v797_v10  ;;  %v592_v47 = vor.u32 %v766_v43, %v591_v42  ;;  %v767_v50 = vld [vmem:[%s1216_s0 + $0x34] sm:$0xf]  ;;  %v645_v52 = vld [vmem:[%s1216_s0 + $0x9c] sm:$0xf0]  ;;  %v603_v54 = vld [vmem:[%s1216_s0 + $0x38] sm:$0xf]  ;;  %v596_v56 = vor.u32 %v768_v49, %v595_v48 }
  0x10   :  { %471 = vmatpush.bf16.msra.mxu2 %v952_v11  ;;  %v779_v51 = vld [vmem:[%s1216_s0 + $0x94] sm:$0xf]  ;;  %v597_v53 = vld [vmem:[%s1216_s0 + $0x3c] sm:$0xf0]  ;;  %v769_v55 = vld [vmem:[%s1216_s0 + $0x40] sm:$0xf0] }
  0x11   :  { %v648_v57 = vor.u32 %v779_v51, %v645_v52  ;;  %v600_v58 = vor.u32 %v767_v50, %v597_v53  ;;  %v604_v59 = vor.u32 %v769_v55, %v603_v54  ;;  %v607_v60 = vld [vmem:[%s1216_s0 + $0x48] sm:$0xf]  ;;  %v771_v61 = vld [vmem:[%s1216_s0 + $0x50] sm:$0xf0]  ;;  %v770_v62 = vld [vmem:[%s1216_s0 + $0x4c] sm:$0xf] }
  0x12   :  { %374 = vmatpush.bf16.msra.mxu0 %v788_v12  ;;  %860 = vmatpush.bf16.msra.mxu3 %v788_v12  ;;  %v782_v63 = vld [vmem:[%s1216_s0 + $0xac] sm:$0xf]  ;;  %v657_v0 = vld [vmem:[%s1216_s0 + $0xb4] sm:$0xf0]  ;;  %v772_v3 = vld [vmem:[%s1216_s0 + $0x58] sm:$0xf0] }
  0x13   :  { %423 = vmatpush.bf16.msra.mxu1 %v796_v13  ;;  %v774_v9 = vld [vmem:[%s1216_s0 + $0x68] sm:$0xf0]  ;;  %v781_v12 = vld [vmem:[%s1216_s0 + $0xa0] sm:$0xf0]  ;;  %v784_v24 = vld [vmem:[%s1216_s0 + $0xb8] sm:$0xf0] }
  0x14   :  { %472 = vmatpush.bf16.msra.mxu2 %v964_v14  ;;  %v633_v25 = vld [vmem:[%s1216_s0 + $0x84] sm:$0xf0]  ;;  %v639_v26 = vld [vmem:[%s1216_s0 + $0x80] sm:$0xf]  ;;  %v778_v27 = vld [vmem:[%s1216_s0 + $0x88] sm:$0xf0] }
  0x15   :  { %v640_v31 = vor.u32 %v778_v27, %v639_v26 }
  0x16   :  { %375 = vmatpush.bf16.msra.mxu0 %v787_v15  ;;  %861 = vmatpush.bf16.msra.mxu3 %v787_v15  ;;  %v775_v15 = vld [vmem:[%s1216_s0 + $0x70] sm:$0xf0] }
  0x17   :  { %424 = vmatpush.bf16.msra.mxu1 %v795_v16 }
  0x18   :  { %473 = vmatpush.bf16.msra.mxu2 %v976_v17 }
  0x1a   :  { %376 = vmatpush.bf16.msra.mxu0 %v786_v18  ;;  %862 = vmatpush.bf16.msra.mxu3 %v786_v18 }
  0x1b   :  { %425 = vmatpush.bf16.msra.mxu1 %v794_v19 }
  0x1c   :  { %474 = vmatpush.bf16.msra.mxu2 %v988_v20 }
  0x1e   :  { %377 = vmatpush.bf16.msra.mxu0 %v785_v21  ;;  %863 = vmatpush.bf16.msra.mxu3 %v785_v21  ;;  %v777_v21 = vld [vmem:[%s1216_s0 + $0x80] sm:$0xf0] }
  0x1f   :  { %426 = vmatpush.bf16.msra.mxu1 %v793_v22 }
  0x20   :  { %475 = vmatpush.bf16.msra.mxu2 %v999_v23 }
  0x21   :  { %378 = vmatmul.bf16.vlgmr.msra.gmra.mxu0 %v572_v32  ;;  %408 = vmatmul.bf16.vlgmr.msra.gmra.mxu3 %v644_v33 }
  0x22   :  { %864 = vmatpush.bf16.msrb.mxu3 %v907_v1  ;;  %427 = vmatmul.bf16.vlgmr.msra.gmra.mxu1 %v576_v34  ;;  %v609_v1 = vld [vmem:[%s1216_s0 + $0x54] sm:$0xf0]  ;;  %v1160_v34 = vld [vmem:[%s1215_s2] ss:$0 sm:$0xff] }
  0x23   :  { %476 = vmatmul.bf16.vlgmr.msra.gmra.mxu2 %v580_v35  ;;  %v612_v6 = vor.u32 %v770_v62, %v609_v1 }
  0x26   :  { %865 = vmatpush.bf16.msrb.mxu3 %v922_v4  ;;  %v608_v4 = vor.u32 %v771_v61, %v607_v60 }
  0x2a   :  { %866 = vmatpush.bf16.msrb.mxu3 %v798_v7 }
  0x2e   :  { %867 = vmatpush.bf16.msrb.mxu3 %v797_v10  ;;  %v773_v10 = vld [vmem:[%s1216_s0 + $0x64] sm:$0xf] }
  0x31   :  { %383 = vmatmul.bf16.gmra.mxu0 %v584_v44  ;;  %413 = vmatmul.bf16.gmra.mxu3 %v656_v45 }
  0x32   :  { %868 = vmatpush.bf16.msrb.mxu3 %v796_v13  ;;  %432 = vmatmul.bf16.gmra.mxu1 %v588_v46  ;;  %v621_v13 = vld [vmem:[%s1216_s0 + $0x6c] sm:$0xf0] }
  0x33   :  { %481 = vmatmul.bf16.gmra.mxu2 %v592_v47  ;;  %v624_v18 = vor.u32 %v773_v10, %v621_v13 }
  0x36   :  { %869 = vmatpush.bf16.msrb.mxu3 %v795_v16 }
  0x3a   :  { %870 = vmatpush.bf16.msrb.mxu3 %v794_v19 }
  0x3e   :  { %871 = vmatpush.bf16.msrb.mxu3 %v793_v22  ;;  %v776_v22 = vld [vmem:[%s1216_s0 + $0x7c] sm:$0xf] }
  0x3f   :  { %v636_v30 = vor.u32 %v776_v22, %v633_v25 }
  0x41   :  { %388 = vmatmul.bf16.gmra.mxu0 %v596_v56  ;;  %457 = vmatmul.bf16.vlgmr.msrb.gmra.mxu3 %v648_v57 }
  0x42   :  { %872 = vmatpush.bf16.msra.mxu3 %v912_v2  ;;  %437 = vmatmul.bf16.gmra.mxu1 %v600_v58  ;;  %v615_v2 = vld [vmem:[%s1216_s0 + $0x50] sm:$0xf] }
  0x43   :  { %486 = vmatmul.bf16.gmra.mxu2 %v604_v59  ;;  %v616_v7 = vor.u32 %v772_v3, %v615_v2 }
  0x46   :  { %873 = vmatpush.bf16.msra.mxu3 %v927_v5  ;;  %v660_v5 = vor.u32 %v782_v63, %v657_v0 }
  0x4a   :  { %874 = vmatpush.bf16.msra.mxu3 %v940_v8  ;;  %v619_v8 = vld [vmem:[%s1216_s0 + $0x60] sm:$0xf] }
  0x4b   :  { %v620_v16 = vor.u32 %v774_v9, %v619_v8 }
  0x4e   :  { %875 = vmatpush.bf16.msra.mxu3 %v952_v11  ;;  %v651_v11 = vld [vmem:[%s1216_s0 + $0x98] sm:$0xf] }
  0x51   :  { %393 = vmatmul.bf16.gmra.mxu0 %v608_v4  ;;  %462 = vmatmul.bf16.gmra.mxu3 %v660_v5 }
  0x52   :  { %876 = vmatpush.bf16.msra.mxu3 %v964_v14  ;;  %442 = vmatmul.bf16.gmra.mxu1 %v612_v6  ;;  %v627_v14 = vld [vmem:[%s1216_s0 + $0x68] sm:$0xf] }
  0x53   :  { %491 = vmatmul.bf16.gmra.mxu2 %v616_v7  ;;  %v628_v19 = vor.u32 %v775_v15, %v627_v14 }
  0x56   :  { %877 = vmatpush.bf16.msra.mxu3 %v976_v17  ;;  %v652_v17 = vor.u32 %v781_v12, %v651_v11 }
  0x5a   :  { %878 = vmatpush.bf16.msra.mxu3 %v988_v20  ;;  %v631_v20 = vld [vmem:[%s1216_s0 + $0x78] sm:$0xf] }
  0x5b   :  { %v632_v28 = vor.u32 %v777_v21, %v631_v20 }
  0x5e   :  { %879 = vmatpush.bf16.msra.mxu3 %v999_v23  ;;  %v663_v23 = vld [vmem:[%s1216_s0 + $0xb0] sm:$0xf] }
  0x5f   :  { %v664_v29 = vor.u32 %v784_v24, %v663_v23 }
  0x61   :  { %398 = vmatmul.bf16.gmra.mxu0 %v620_v16  ;;  %506 = vmatmul.bf16.vlgmr.msra.gmra.mxu3 %v652_v17 }
  0x62   :  { %447 = vmatmul.bf16.gmra.mxu1 %v624_v18 }
  0x63   :  { %496 = vmatmul.bf16.gmra.mxu2 %v628_v19 }
  0x71   :  { %403 = vmatmul.bf16.gmra.mxu0 %v632_v28  ;;  %511 = vmatmul.bf16.gmra.mxu3 %v664_v29 }
  0x72   :  { %452 = vmatmul.bf16.gmra.mxu1 %v636_v30 }
  0x73   :  { %501 = vmatmul.bf16.gmra.mxu2 %v640_v31 }
  0x9e   :  { %v379_v32 = vpop.f32.mrf.mxu0 }
  0x9f   :  { %v428_v33 = vpop.f32.mrf.mxu1  ;;  %v380_v35 = vadd.f32 %v1160_v34, %v379_v32 }
  0xa1   :  { %v429_v40 = vadd.f32 %v428_v33, %v380_v35 }
  0xa4   :  { %v1163_v36 = vpop.f32.mrf.mxu3 }
  0xa6   :  { %v477_v37 = vpop.f32.mrf.mxu2  ;;  %v381_v38 = vpop.f32.mrf.mxu0 }
  0xa7   :  { %v430_v39 = vpop.f32.mrf.mxu1  ;;  %v382_v41 = vadd.f32 %v1160_v34, %v381_v38  ;;  %v478_v42 = vadd.f32 %v477_v37, %v429_v40 }
  0xa9   :  { %v431_v43 = vadd.f32 %v430_v39, %v382_v41  ;;  %v517_v49 = vmax.f32 %v478_v42, 0.0 }
  0xac   :  { %v1166_v44 = vpop.f32.mrf.mxu3 }
  0xae   :  { %v479_v45 = vpop.f32.mrf.mxu2  ;;  %v384_v47 = vpop.f32.mrf.mxu0 }
  0xaf   :  { %v480_v46 = vadd.f32 %v479_v45, %v431_v43  ;;  %v433_v48 = vpop.f32.mrf.mxu1  ;;  %v385_v52 = vadd.f32 %v1160_v34, %v384_v47 }
  0xb1   :  { %v518_v50 = vmax.f32 %v480_v46, 0.0  ;;  %v434_v57 = vadd.f32 %v433_v48, %v385_v52  ;;  %v410_v46 = vadd.f32 %v1160_v34, %v1163_v36 }
  0xb3   :  { %v812_v51 = vpack.c.bf16 %v518_v50, %v517_v49  ;;  %v412_v50 = vadd.f32 %v1160_v34, %v1166_v44 }
  0xb4   :  { %v1172_v53 = vpop.f32.mrf.mxu3 }
  0xb5   :  { %813 = vst [vmem:[%s1217_s3] sm:$0xff] %v812_v51  }
  0xb6   :  { %v482_v54 = vpop.f32.mrf.mxu2  ;;  %v386_v55 = vpop.f32.mrf.mxu0 }
  0xb7   :  { %v435_v56 = vpop.f32.mrf.mxu1  ;;  %v387_v58 = vadd.f32 %v1160_v34, %v386_v55  ;;  %v483_v59 = vadd.f32 %v482_v54, %v434_v57 }
  0xb9   :  { %v436_v60 = vadd.f32 %v435_v56, %v387_v58  ;;  %v519_v2 = vmax.f32 %v483_v59, 0.0 }
  0xbc   :  { %v1175_v61 = vpop.f32.mrf.mxu3 }
  0xbe   :  { %v484_v62 = vpop.f32.mrf.mxu2  ;;  %v389_v0 = vpop.f32.mrf.mxu0 }
  0xbf   :  { %v485_v63 = vadd.f32 %v484_v62, %v436_v60  ;;  %v438_v1 = vpop.f32.mrf.mxu1  ;;  %v390_v5 = vadd.f32 %v1160_v34, %v389_v0 }
  0xc1   :  { %v520_v3 = vmax.f32 %v485_v63, 0.0  ;;  %v439_v10 = vadd.f32 %v438_v1, %v390_v5 }
  0xc3   :  { %v817_v4 = vpack.c.bf16 %v520_v3, %v519_v2 }
  0xc4   :  { %v458_v6 = vpop.f32.mrf.mxu3 }
  0xc5   :  { %849 = vst [vmem:[%s1217_s3 + $0x8] sm:$0xff] %v817_v4   ;;  %v459_v51 = vadd.f32 %v458_v6, %v410_v46 }
  0xc6   :  { %v487_v7 = vpop.f32.mrf.mxu2  ;;  %v391_v8 = vpop.f32.mrf.mxu0 }
  0xc7   :  { %v440_v9 = vpop.f32.mrf.mxu1  ;;  %v392_v11 = vadd.f32 %v1160_v34, %v391_v8  ;;  %v488_v12 = vadd.f32 %v487_v7, %v439_v10  ;;  %v415_v8 = vadd.f32 %v1160_v34, %v1172_v53 }
  0xc9   :  { %v441_v13 = vadd.f32 %v440_v9, %v392_v11  ;;  %v521_v19 = vmax.f32 %v488_v12, 0.0  ;;  %v417_v11 = vadd.f32 %v1160_v34, %v1175_v61 }
  0xcc   :  { %v460_v14 = vpop.f32.mrf.mxu3 }
  0xcd   :  { %v461_v52 = vadd.f32 %v460_v14, %v412_v50 }
  0xce   :  { %v489_v15 = vpop.f32.mrf.mxu2  ;;  %v394_v17 = vpop.f32.mrf.mxu0 }
  0xcf   :  { %v490_v16 = vadd.f32 %v489_v15, %v441_v13  ;;  %v443_v18 = vpop.f32.mrf.mxu1  ;;  %v395_v22 = vadd.f32 %v1160_v34, %v394_v17 }
  0xd1   :  { %v522_v20 = vmax.f32 %v490_v16, 0.0  ;;  %v444_v27 = vadd.f32 %v443_v18, %v395_v22 }
  0xd3   :  { %v822_v21 = vpack.c.bf16 %v522_v20, %v521_v19 }
  0xd4   :  { %v463_v23 = vpop.f32.mrf.mxu3 }
  0xd5   :  { %850 = vst [vmem:[%s1217_s3 + $0x10] sm:$0xff] %v822_v21   ;;  %v464_v12 = vadd.f32 %v463_v23, %v415_v8 }
  0xd6   :  { %v492_v24 = vpop.f32.mrf.mxu2  ;;  %v396_v25 = vpop.f32.mrf.mxu0 }
  0xd7   :  { %v445_v26 = vpop.f32.mrf.mxu1  ;;  %v397_v28 = vadd.f32 %v1160_v34, %v396_v25  ;;  %v493_v29 = vadd.f32 %v492_v24, %v444_v27 }
  0xd9   :  { %v446_v30 = vadd.f32 %v445_v26, %v397_v28  ;;  %v523_v38 = vmax.f32 %v493_v29, 0.0 }
  0xdc   :  { %v465_v31 = vpop.f32.mrf.mxu3 }
  0xdd   :  { %v466_v13 = vadd.f32 %v465_v31, %v417_v11 }
  0xde   :  { %v494_v32 = vpop.f32.mrf.mxu2  ;;  %v399_v35 = vpop.f32.mrf.mxu0 }
  0xdf   :  { %v495_v33 = vadd.f32 %v494_v32, %v446_v30  ;;  %v448_v37 = vpop.f32.mrf.mxu1  ;;  %v400_v41 = vadd.f32 %v1160_v34, %v399_v35 }
  0xe1   :  { %v524_v39 = vmax.f32 %v495_v33, 0.0  ;;  %v449_v48 = vadd.f32 %v448_v37, %v400_v41 }
  0xe3   :  { %v827_v40 = vpack.c.bf16 %v524_v39, %v523_v38 }
  0xe4   :  { %v507_v42 = vpop.f32.mrf.mxu3 }
  0xe5   :  { %851 = vst [vmem:[%s1217_s3 + $0x18] sm:$0xff] %v827_v40   ;;  %v508_v54 = vadd.f32 %v507_v42, %v459_v51 }
  0xe6   :  { %v497_v43 = vpop.f32.mrf.mxu2  ;;  %v401_v45 = vpop.f32.mrf.mxu0 }
  0xe7   :  { %v450_v47 = vpop.f32.mrf.mxu1  ;;  %v402_v49 = vadd.f32 %v1160_v34, %v401_v45  ;;  %v498_v55 = vadd.f32 %v497_v43, %v449_v48  ;;  %v529_v63 = vmax.f32 %v508_v54, 0.0 }
  0xe9   :  { %v451_v56 = vadd.f32 %v450_v47, %v402_v49  ;;  %v525_v36 = vmax.f32 %v498_v55, 0.0 }
  0xec   :  { %v509_v57 = vpop.f32.mrf.mxu3 }
  0xed   :  { %v510_v59 = vadd.f32 %v509_v57, %v461_v52 }
  0xee   :  { %v499_v58 = vpop.f32.mrf.mxu2  ;;  %v404_v62 = vpop.f32.mrf.mxu0 }
  0xef   :  { %v500_v60 = vadd.f32 %v499_v58, %v451_v56  ;;  %v530_v0 = vmax.f32 %v510_v59, 0.0  ;;  %v453_v3 = vpop.f32.mrf.mxu1  ;;  %v405_v44 = vadd.f32 %v1160_v34, %v404_v62 }
  0xf1   :  { %v526_v1 = vmax.f32 %v500_v60, 0.0  ;;  %v842_v2 = vpack.c.bf16 %v530_v0, %v529_v63  ;;  %v454_v9 = vadd.f32 %v453_v3, %v405_v44 }
  0xf3   :  { %v832_v4 = vpack.c.bf16 %v526_v1, %v525_v36  ;;  %854 = vst [vmem:[%s1217_s3 + $0x30] sm:$0xff] %v842_v2  }
  0xf4   :  { %v512_v5 = vpop.f32.mrf.mxu3 }
  0xf5   :  { %852 = vst [vmem:[%s1217_s3 + $0x20] sm:$0xff] %v832_v4   ;;  %v513_v14 = vadd.f32 %v512_v5, %v464_v12 }
  0xf6   :  { %v502_v6 = vpop.f32.mrf.mxu2  ;;  %v406_v7 = vpop.f32.mrf.mxu0 }
  0xf7   :  { %v407_v10 = vadd.f32 %v1160_v34, %v406_v7  ;;  %v455_v15 = vpop.f32.mrf.mxu1  ;;  %v503_v16 = vadd.f32 %v502_v6, %v454_v9  ;;  %v531_v22 = vmax.f32 %v513_v14, 0.0 }
  0xf9   :  { %v456_v17 = vadd.f32 %v455_v15, %v407_v10  ;;  %v527_v25 = vmax.f32 %v503_v16, 0.0 }
  0xfc   :  { %v514_v18 = vpop.f32.mrf.mxu3 }
  0xfd   :  { %v515_v20 = vadd.f32 %v514_v18, %v466_v13 }
  0xfe   :  { %v504_v19 = vpop.f32.mrf.mxu2 }
  0xff   :  { %v505_v21 = vadd.f32 %v504_v19, %v456_v17  ;;  %v532_v24 = vmax.f32 %v515_v20, 0.0 }
 0x101   :  { %v528_v53 = vmax.f32 %v505_v21, 0.0  ;;  %v847_v26 = vpack.c.bf16 %v532_v24, %v531_v22 }
 0x103   :  { %v837_v27 = vpack.c.bf16 %v528_v53, %v527_v25  ;;  %855 = vst [vmem:[%s1217_s3 + $0x38] sm:$0xff] %v847_v26  }
 0x105   :  { %853 = vst [vmem:[%s1217_s3 + $0x28] sm:$0xff] %v837_v27  }

// kernel: posenet_forward.9
= control target key start
LH: loop header
LB: loop body
LE: loop exit
PB: predicated region body
PF: predicated region fallthrough
CT: control target
= control target key end

     0   :  { %s992_s1 = inlined_call_operand.vmem [shape: bf16[640,128], index: 1, kind: input, shape index: {}]   ;;  %s993_s2 = inlined_call_operand.vmem [shape: f32[1,128], index: 2, kind: input, shape index: {}]   ;;  %s994_s0 = inlined_call_operand.vmem [shape: bf16[32,640], index: 0, kind: input, shape index: {}]   ;;  %s995_s3 = inlined_call_operand.vmem [shape: bf16[32,128], index: 3, kind: output, shape index: {}]  }
   0x1   :  { %v730_v0 = vld [vmem:[%s992_s1 + $0x38] sm:$0xff]  ;;  %v729_v4 = vld [vmem:[%s992_s1 + $0x30] sm:$0xff]  ;;  %v728_v8 = vld [vmem:[%s992_s1 + $0x28] sm:$0xff] }
   0x2   :  { %v738_v1 = vld [vmem:[%s992_s1 + $0x78] sm:$0xff]  ;;  %402 = vmatpush.bf16.msra.mxu0 %v730_v0  ;;  %v737_v5 = vld [vmem:[%s992_s1 + $0x70] sm:$0xff]  ;;  %v736_v9 = vld [vmem:[%s992_s1 + $0x68] sm:$0xff] }
   0x3   :  { %v746_v2 = vld [vmem:[%s992_s1 + $0xb8] sm:$0xff]  ;;  %421 = vmatpush.bf16.msra.mxu1 %v738_v1  ;;  %v745_v6 = vld [vmem:[%s992_s1 + $0xb0] sm:$0xff]  ;;  %v744_v10 = vld [vmem:[%s992_s1 + $0xa8] sm:$0xff] }
   0x4   :  { %v754_v3 = vld [vmem:[%s992_s1 + $0xf8] sm:$0xff]  ;;  %440 = vmatpush.bf16.msra.mxu2 %v746_v2  ;;  %v753_v7 = vld [vmem:[%s992_s1 + $0xf0] sm:$0xff]  ;;  %v752_v11 = vld [vmem:[%s992_s1 + $0xe8] sm:$0xff] }
   0x5   :  { %459 = vmatpush.bf16.msra.mxu3 %v754_v3  ;;  %v727_v12 = vld [vmem:[%s992_s1 + $0x20] sm:$0xff]  ;;  %v726_v16 = vld [vmem:[%s992_s1 + $0x18] sm:$0xff]  ;;  %v725_v20 = vld [vmem:[%s992_s1 + $0x10] sm:$0xff] }
   0x6   :  { %403 = vmatpush.bf16.msra.mxu0 %v729_v4  ;;  %v735_v13 = vld [vmem:[%s992_s1 + $0x60] sm:$0xff]  ;;  %v734_v17 = vld [vmem:[%s992_s1 + $0x58] sm:$0xff]  ;;  %v733_v21 = vld [vmem:[%s992_s1 + $0x50] sm:$0xff] }
   0x7   :  { %422 = vmatpush.bf16.msra.mxu1 %v737_v5  ;;  %v743_v14 = vld [vmem:[%s992_s1 + $0xa0] sm:$0xff]  ;;  %v742_v18 = vld [vmem:[%s992_s1 + $0x98] sm:$0xff]  ;;  %v741_v22 = vld [vmem:[%s992_s1 + $0x90] sm:$0xff] }
   0x8   :  { %441 = vmatpush.bf16.msra.mxu2 %v745_v6  ;;  %v751_v15 = vld [vmem:[%s992_s1 + $0xe0] sm:$0xff]  ;;  %v750_v19 = vld [vmem:[%s992_s1 + $0xd8] sm:$0xff]  ;;  %v749_v23 = vld [vmem:[%s992_s1 + $0xd0] sm:$0xff] }
   0x9   :  { %460 = vmatpush.bf16.msra.mxu3 %v753_v7  ;;  %v724_v24 = vld [vmem:[%s992_s1 + $0x8] sm:$0xff]  ;;  %v723_v28 = vld [vmem:[%s992_s1] sm:$0xff]  ;;  %v715_v33 = vld [vmem:[%s994_s0 + $0x10] sm:$0xf0] }
   0xa   :  { %404 = vmatpush.bf16.msra.mxu0 %v728_v8  ;;  %v732_v25 = vld [vmem:[%s992_s1 + $0x48] sm:$0xff]  ;;  %v731_v29 = vld [vmem:[%s992_s1 + $0x40] sm:$0xff]  ;;  %v517_v35 = vld [vmem:[%s994_s0 + $0x14] sm:$0xf0] }
   0xb   :  { %423 = vmatpush.bf16.msra.mxu1 %v736_v9  ;;  %v740_v26 = vld [vmem:[%s992_s1 + $0x88] sm:$0xff]  ;;  %v739_v30 = vld [vmem:[%s992_s1 + $0x80] sm:$0xff]  ;;  %v716_v37 = vld [vmem:[%s994_s0 + $0x18] sm:$0xf0] }
   0xc   :  { %442 = vmatpush.bf16.msra.mxu2 %v744_v10  ;;  %v748_v27 = vld [vmem:[%s992_s1 + $0xc8] sm:$0xff]  ;;  %v747_v31 = vld [vmem:[%s992_s1 + $0xc0] sm:$0xff]  ;;  %v762_v40 = vld [vmem:[%s992_s1 + $0x138] sm:$0xff] }
   0xd   :  { %461 = vmatpush.bf16.msra.mxu3 %v752_v11  ;;  %v515_v32 = vld [vmem:[%s994_s0] sm:$0xf]  ;;  %v713_v34 = vld [vmem:[%s994_s0 + $0x4] sm:$0xf]  ;;  %v523_v36 = vld [vmem:[%s994_s0 + $0x8] sm:$0xf] }
   0xe   :  { %405 = vmatpush.bf16.msra.mxu0 %v727_v12  ;;  %v714_v38 = vld [vmem:[%s994_s0 + $0xc] sm:$0xf]  ;;  %v525_v39 = vld [vmem:[%s994_s0 + $0x1c] sm:$0xf0]  ;;  %v516_v41 = vor.u32 %v715_v33, %v515_v32  ;;  %v520_v42 = vor.u32 %v713_v34, %v517_v35  ;;  %v524_v43 = vor.u32 %v716_v37, %v523_v36  ;;  %v761_v45 = vld [vmem:[%s992_s1 + $0x130] sm:$0xff] }
   0xf   :  { %424 = vmatpush.bf16.msra.mxu1 %v735_v13  ;;  %v528_v44 = vor.u32 %v714_v38, %v525_v39  ;;  %v760_v46 = vld [vmem:[%s992_s1 + $0x128] sm:$0xff]  ;;  %v759_v47 = vld [vmem:[%s992_s1 + $0x120] sm:$0xff]  ;;  %v720_v49 = vld [vmem:[%s994_s0 + $0x38] sm:$0xf0] }
  0x10   :  { %443 = vmatpush.bf16.msra.mxu2 %v743_v14  ;;  %v535_v48 = vld [vmem:[%s994_s0 + $0x28] sm:$0xf]  ;;  %v718_v50 = vld [vmem:[%s994_s0 + $0x2c] sm:$0xf]  ;;  %v537_v51 = vld [vmem:[%s994_s0 + $0x3c] sm:$0xf0] }
  0x11   :  { %462 = vmatpush.bf16.msra.mxu3 %v751_v15  ;;  %v543_v52 = vld [vmem:[%s994_s0 + $0x30] sm:$0xf]  ;;  %v721_v53 = vld [vmem:[%s994_s0 + $0x40] sm:$0xf0]  ;;  %v719_v54 = vld [vmem:[%s994_s0 + $0x34] sm:$0xf]  ;;  %v536_v57 = vor.u32 %v720_v49, %v535_v48  ;;  %v540_v58 = vor.u32 %v718_v50, %v537_v51 }
  0x12   :  { %406 = vmatpush.bf16.msra.mxu0 %v726_v16  ;;  %v545_v55 = vld [vmem:[%s994_s0 + $0x44] sm:$0xf0]  ;;  %v758_v56 = vld [vmem:[%s992_s1 + $0x118] sm:$0xff]  ;;  %v544_v59 = vor.u32 %v721_v53, %v543_v52  ;;  %v757_v61 = vld [vmem:[%s992_s1 + $0x110] sm:$0xff] }
  0x13   :  { %425 = vmatpush.bf16.msra.mxu1 %v734_v17  ;;  %v548_v60 = vor.u32 %v719_v54, %v545_v55  ;;  %v756_v62 = vld [vmem:[%s992_s1 + $0x108] sm:$0xff]  ;;  %v755_v63 = vld [vmem:[%s992_s1 + $0x100] sm:$0xff]  ;;  %v531_v0 = vld [vmem:[%s994_s0 + $0x10] sm:$0xf] }
  0x14   :  { %444 = vmatpush.bf16.msra.mxu2 %v742_v18  ;;  %v717_v1 = vld [vmem:[%s994_s0 + $0x20] sm:$0xf0]  ;;  %v551_v2 = vld [vmem:[%s994_s0 + $0x38] sm:$0xf]  ;;  %v722_v3 = vld [vmem:[%s994_s0 + $0x48] sm:$0xf0] }
  0x15   :  { %463 = vmatpush.bf16.msra.mxu3 %v750_v19  ;;  %v532_v4 = vor.u32 %v717_v1, %v531_v0  ;;  %v552_v5 = vor.u32 %v722_v3, %v551_v2  ;;  %v782_v16 = vld [vmem:[%s993_s2] ss:$0 sm:$0xff] }
  0x16   :  { %407 = vmatpush.bf16.msra.mxu0 %v725_v20 }
  0x17   :  { %426 = vmatpush.bf16.msra.mxu1 %v733_v21 }
  0x18   :  { %445 = vmatpush.bf16.msra.mxu2 %v741_v22 }
  0x19   :  { %464 = vmatpush.bf16.msra.mxu3 %v749_v23 }
  0x1a   :  { %408 = vmatpush.bf16.msra.mxu0 %v724_v24 }
  0x1b   :  { %427 = vmatpush.bf16.msra.mxu1 %v732_v25 }
  0x1c   :  { %446 = vmatpush.bf16.msra.mxu2 %v740_v26 }
  0x1d   :  { %465 = vmatpush.bf16.msra.mxu3 %v748_v27 }
  0x1e   :  { %409 = vmatpush.bf16.msra.mxu0 %v723_v28 }
  0x1f   :  { %428 = vmatpush.bf16.msra.mxu1 %v731_v29 }
  0x20   :  { %447 = vmatpush.bf16.msra.mxu2 %v739_v30 }
  0x21   :  { %466 = vmatpush.bf16.msra.mxu3 %v747_v31  ;;  %410 = vmatmul.bf16.vlgmr.msra.gmra.mxu0 %v516_v41 }
  0x22   :  { %478 = vmatpush.bf16.msrb.mxu0 %v762_v40  ;;  %429 = vmatmul.bf16.vlgmr.msra.gmra.mxu1 %v520_v42 }
  0x23   :  { %774 = vmatpush.bf16.msrb.mxu1 %v762_v40  ;;  %448 = vmatmul.bf16.vlgmr.msra.gmra.mxu2 %v524_v43 }
  0x24   :  { %467 = vmatmul.bf16.vlgmr.msra.gmra.mxu3 %v528_v44 }
  0x26   :  { %479 = vmatpush.bf16.msrb.mxu0 %v761_v45 }
  0x27   :  { %775 = vmatpush.bf16.msrb.mxu1 %v761_v45 }
  0x2a   :  { %480 = vmatpush.bf16.msrb.mxu0 %v760_v46 }
  0x2b   :  { %776 = vmatpush.bf16.msrb.mxu1 %v760_v46 }
  0x2e   :  { %481 = vmatpush.bf16.msrb.mxu0 %v759_v47 }
  0x2f   :  { %777 = vmatpush.bf16.msrb.mxu1 %v759_v47 }
  0x31   :  { %415 = vmatmul.bf16.gmra.mxu0 %v536_v57 }
  0x32   :  { %482 = vmatpush.bf16.msrb.mxu0 %v758_v56  ;;  %434 = vmatmul.bf16.gmra.mxu1 %v540_v58 }
  0x33   :  { %778 = vmatpush.bf16.msrb.mxu1 %v758_v56  ;;  %453 = vmatmul.bf16.gmra.mxu2 %v544_v59 }
  0x34   :  { %472 = vmatmul.bf16.gmra.mxu3 %v548_v60 }
  0x36   :  { %483 = vmatpush.bf16.msrb.mxu0 %v757_v61 }
  0x37   :  { %779 = vmatpush.bf16.msrb.mxu1 %v757_v61 }
  0x3a   :  { %484 = vmatpush.bf16.msrb.mxu0 %v756_v62 }
  0x3b   :  { %780 = vmatpush.bf16.msrb.mxu1 %v756_v62 }
  0x3e   :  { %485 = vmatpush.bf16.msrb.mxu0 %v755_v63 }
  0x3f   :  { %781 = vmatpush.bf16.msrb.mxu1 %v755_v63 }
  0x41   :  { %486 = vmatmul.bf16.vlgmr.msrb.gmra.mxu0 %v532_v4 }
  0x42   :  { %491 = vmatmul.bf16.vlgmr.msrb.gmra.mxu1 %v552_v5 }
  0x9e   :  { %v411_v6 = vpop.f32.mrf.mxu0 }
  0x9f   :  { %v430_v7 = vpop.f32.mrf.mxu1  ;;  %v412_v20 = vadd.f32 %v782_v16, %v411_v6 }
  0xa1   :  { %v431_v25 = vadd.f32 %v430_v7, %v412_v20 }
  0xa6   :  { %v449_v8 = vpop.f32.mrf.mxu2  ;;  %v413_v10 = vpop.f32.mrf.mxu0 }
  0xa7   :  { %v468_v9 = vpop.f32.mrf.mxu3  ;;  %v432_v11 = vpop.f32.mrf.mxu1  ;;  %v414_v23 = vadd.f32 %v782_v16, %v413_v10  ;;  %v450_v30 = vadd.f32 %v449_v8, %v431_v25 }
  0xa9   :  { %v433_v31 = vadd.f32 %v432_v11, %v414_v23  ;;  %v469_v36 = vadd.f32 %v468_v9, %v450_v30 }
  0xae   :  { %v451_v12 = vpop.f32.mrf.mxu2  ;;  %v416_v13 = vpop.f32.mrf.mxu0 }
  0xaf   :  { %v435_v14 = vpop.f32.mrf.mxu1  ;;  %v470_v15 = vpop.f32.mrf.mxu3  ;;  %v417_v21 = vadd.f32 %v782_v16, %v416_v13  ;;  %v452_v34 = vadd.f32 %v451_v12, %v433_v31 }
  0xb1   :  { %v436_v26 = vadd.f32 %v435_v14, %v417_v21  ;;  %v471_v39 = vadd.f32 %v470_v15, %v452_v34 }
  0xb6   :  { %v454_v17 = vpop.f32.mrf.mxu2  ;;  %v418_v18 = vpop.f32.mrf.mxu0 }
  0xb7   :  { %v437_v19 = vpop.f32.mrf.mxu1  ;;  %v473_v22 = vpop.f32.mrf.mxu3  ;;  %v419_v24 = vadd.f32 %v782_v16, %v418_v18  ;;  %v455_v32 = vadd.f32 %v454_v17, %v436_v26 }
  0xb9   :  { %v438_v33 = vadd.f32 %v437_v19, %v419_v24  ;;  %v474_v37 = vadd.f32 %v473_v22, %v455_v32 }
  0xbe   :  { %v456_v27 = vpop.f32.mrf.mxu2  ;;  %v487_v28 = vpop.f32.mrf.mxu0 }
  0xbf   :  { %v492_v29 = vpop.f32.mrf.mxu1  ;;  %v457_v35 = vadd.f32 %v456_v27, %v438_v33  ;;  %v475_v38 = vpop.f32.mrf.mxu3  ;;  %v488_v41 = vadd.f32 %v487_v28, %v469_v36 }
  0xc0   :  { %v493_v42 = vadd.f32 %v492_v29, %v474_v37 }
  0xc1   :  { %v476_v40 = vadd.f32 %v475_v38, %v457_v35  ;;  %v497_v47 = vmax.f32 %v488_v41, 0.0 }
  0xc2   :  { %v499_v48 = vmax.f32 %v493_v42, 0.0 }
  0xc6   :  { %v489_v43 = vpop.f32.mrf.mxu0 }
  0xc7   :  { %v494_v44 = vpop.f32.mrf.mxu1  ;;  %v490_v45 = vadd.f32 %v489_v43, %v471_v39 }
  0xc8   :  { %v495_v46 = vadd.f32 %v494_v44, %v476_v40 }
  0xc9   :  { %v498_v49 = vmax.f32 %v490_v45, 0.0 }
  0xca   :  { %v500_v50 = vmax.f32 %v495_v46, 0.0 }
  0xcb   :  { %v766_v51 = vpack.c.bf16 %v498_v49, %v497_v47 }
  0xcc   :  { %v771_v52 = vpack.c.bf16 %v500_v50, %v499_v48 }
  0xcd   :  { %767 = vst [vmem:[%s995_s3] sm:$0xff] %v766_v51  }
  0xce   :  { %773 = vst [vmem:[%s995_s3 + $0x8] sm:$0xff] %v771_v52  }

// kernel: posenet_forward.10
= control target key start
LH: loop header
LB: loop body
LE: loop exit
PB: predicated region body
PF: predicated region fallthrough
CT: control target
= control target key end

     0   :  { %s2824_s1 = inlined_call_operand.vmem [shape: bf16[1152,256], index: 1, kind: input, shape index: {}]   ;;  %s2825_s0 = inlined_call_operand.vmem [shape: bf16[8,1152], index: 0, kind: input, shape index: {}]   ;;  %s2826_s2 = inlined_call_operand.vmem [shape: f32[1,256], index: 2, kind: input, shape index: {}]   ;;  %s2827_s3 = inlined_call_operand.vmem [shape: bf16[8,256], index: 3, kind: output, shape index: {}]  }
   0x1   :  { %v1221_v0 = vld [vmem:[%s2824_s1 + $0x70] sm:$0xf]  ;;  %v1754_v1 = vld [vmem:[%s2824_s1 + $0x74] sm:$0xf0]  ;;  %v1213_v9 = vld [vmem:[%s2824_s1 + $0x60] sm:$0xf] }
   0x2   :  { %v1285_v2 = vld [vmem:[%s2824_s1 + $0xf0] sm:$0xf]  ;;  %v1222_v3 = vor.u32 %v1754_v1, %v1221_v0  ;;  %v1770_v4 = vld [vmem:[%s2824_s1 + $0xf4] sm:$0xf0]  ;;  %v1752_v10 = vld [vmem:[%s2824_s1 + $0x64] sm:$0xf0] }
   0x3   :  { %v1349_v5 = vld [vmem:[%s2824_s1 + $0x170] sm:$0xf]  ;;  %v1786_v6 = vld [vmem:[%s2824_s1 + $0x174] sm:$0xf0]  ;;  %v1286_v7 = vor.u32 %v1770_v4, %v1285_v2  ;;  %v1277_v11 = vld [vmem:[%s2824_s1 + $0xe0] sm:$0xf]  ;;  %v1214_v12 = vor.u32 %v1752_v10, %v1213_v9 }
   0x4   :  { %v1350_v8 = vor.u32 %v1786_v6, %v1349_v5  ;;  %921 = vmatpush.bf16.msra.mxu0 %v1222_v3  ;;  %v1768_v13 = vld [vmem:[%s2824_s1 + $0xe4] sm:$0xf0]  ;;  %v1413_v14 = vld [vmem:[%s2824_s1 + $0x1f0] sm:$0xf]  ;;  %v1802_v15 = vld [vmem:[%s2824_s1 + $0x1f4] sm:$0xf0] }
   0x5   :  { %934 = vmatpush.bf16.msra.mxu1 %v1286_v7  ;;  %v1278_v16 = vor.u32 %v1768_v13, %v1277_v11  ;;  %v1414_v17 = vor.u32 %v1802_v15, %v1413_v14  ;;  %v1341_v18 = vld [vmem:[%s2824_s1 + $0x160] sm:$0xf]  ;;  %v1784_v19 = vld [vmem:[%s2824_s1 + $0x164] sm:$0xf0]  ;;  %v1205_v20 = vld [vmem:[%s2824_s1 + $0x50] sm:$0xf] }
   0x6   :  { %947 = vmatpush.bf16.msra.mxu2 %v1350_v8  ;;  %v1342_v21 = vor.u32 %v1784_v19, %v1341_v18  ;;  %v1750_v22 = vld [vmem:[%s2824_s1 + $0x54] sm:$0xf0]  ;;  %v1269_v23 = vld [vmem:[%s2824_s1 + $0xd0] sm:$0xf]  ;;  %v1405_v25 = vld [vmem:[%s2824_s1 + $0x1e0] sm:$0xf] }
   0x7   :  { %v1766_v24 = vld [vmem:[%s2824_s1 + $0xd4] sm:$0xf0]  ;;  %960 = vmatpush.bf16.msra.mxu3 %v1414_v17  ;;  %v1800_v26 = vld [vmem:[%s2824_s1 + $0x1e4] sm:$0xf0]  ;;  %v1333_v27 = vld [vmem:[%s2824_s1 + $0x150] sm:$0xf]  ;;  %v1206_v28 = vor.u32 %v1750_v22, %v1205_v20 }
   0x8   :  { %922 = vmatpush.bf16.msra.mxu0 %v1214_v12  ;;  %v1406_v29 = vor.u32 %v1800_v26, %v1405_v25  ;;  %v1782_v30 = vld [vmem:[%s2824_s1 + $0x154] sm:$0xf0]  ;;  %v1197_v31 = vld [vmem:[%s2824_s1 + $0x40] sm:$0xf]  ;;  %v1748_v32 = vld [vmem:[%s2824_s1 + $0x44] sm:$0xf0]  ;;  %v1270_v33 = vor.u32 %v1766_v24, %v1269_v23 }
   0x9   :  { %935 = vmatpush.bf16.msra.mxu1 %v1278_v16  ;;  %v1334_v34 = vor.u32 %v1782_v30, %v1333_v27  ;;  %v1261_v35 = vld [vmem:[%s2824_s1 + $0xc0] sm:$0xf]  ;;  %v1764_v36 = vld [vmem:[%s2824_s1 + $0xc4] sm:$0xf0]  ;;  %v1397_v37 = vld [vmem:[%s2824_s1 + $0x1d0] sm:$0xf]  ;;  %v1198_v42 = vor.u32 %v1748_v32, %v1197_v31 }
   0xa   :  { %948 = vmatpush.bf16.msra.mxu2 %v1342_v21  ;;  %v1798_v38 = vld [vmem:[%s2824_s1 + $0x1d4] sm:$0xf0]  ;;  %v1325_v39 = vld [vmem:[%s2824_s1 + $0x140] sm:$0xf]  ;;  %v1780_v40 = vld [vmem:[%s2824_s1 + $0x144] sm:$0xf0]  ;;  %v1262_v45 = vor.u32 %v1764_v36, %v1261_v35 }
   0xb   :  { %961 = vmatpush.bf16.msra.mxu3 %v1406_v29  ;;  %v1398_v41 = vor.u32 %v1798_v38, %v1397_v37  ;;  %v1389_v43 = vld [vmem:[%s2824_s1 + $0x1c0] sm:$0xf]  ;;  %v1796_v44 = vld [vmem:[%s2824_s1 + $0x1c4] sm:$0xf0]  ;;  %v1326_v46 = vor.u32 %v1780_v40, %v1325_v39  ;;  %v1189_v47 = vld [vmem:[%s2824_s1 + $0x30] sm:$0xf] }
   0xc   :  { %923 = vmatpush.bf16.msra.mxu0 %v1206_v28  ;;  %v1746_v48 = vld [vmem:[%s2824_s1 + $0x34] sm:$0xf0]  ;;  %v1253_v49 = vld [vmem:[%s2824_s1 + $0xb0] sm:$0xf]  ;;  %v1390_v53 = vor.u32 %v1796_v44, %v1389_v43  ;;  %v1181_v59 = vld [vmem:[%s2824_s1 + $0x20] sm:$0xf] }
   0xd   :  { %936 = vmatpush.bf16.msra.mxu1 %v1270_v33  ;;  %v1762_v50 = vld [vmem:[%s2824_s1 + $0xb4] sm:$0xf0]  ;;  %v1317_v51 = vld [vmem:[%s2824_s1 + $0x130] sm:$0xf]  ;;  %v1190_v54 = vor.u32 %v1746_v48, %v1189_v47  ;;  %v1744_v60 = vld [vmem:[%s2824_s1 + $0x24] sm:$0xf0] }
   0xe   :  { %949 = vmatpush.bf16.msra.mxu2 %v1334_v34  ;;  %v1778_v52 = vld [vmem:[%s2824_s1 + $0x134] sm:$0xf0]  ;;  %v1381_v55 = vld [vmem:[%s2824_s1 + $0x1b0] sm:$0xf]  ;;  %v1254_v57 = vor.u32 %v1762_v50, %v1253_v49  ;;  %v1245_v61 = vld [vmem:[%s2824_s1 + $0xa0] sm:$0xf]  ;;  %v1182_v2 = vor.u32 %v1744_v60, %v1181_v59 }
   0xf   :  { %962 = vmatpush.bf16.msra.mxu3 %v1398_v41  ;;  %v1794_v56 = vld [vmem:[%s2824_s1 + $0x1b4] sm:$0xf0]  ;;  %v1318_v58 = vor.u32 %v1778_v52, %v1317_v51  ;;  %v1760_v62 = vld [vmem:[%s2824_s1 + $0xa4] sm:$0xf0]  ;;  %v1309_v63 = vld [vmem:[%s2824_s1 + $0x120] sm:$0xf] }
  0x10   :  { %924 = vmatpush.bf16.msra.mxu0 %v1198_v42  ;;  %v1776_v0 = vld [vmem:[%s2824_s1 + $0x124] sm:$0xf0]  ;;  %v1382_v1 = vor.u32 %v1794_v56, %v1381_v55  ;;  %v1373_v3 = vld [vmem:[%s2824_s1 + $0x1a0] sm:$0xf]  ;;  %v1246_v5 = vor.u32 %v1760_v62, %v1245_v61  ;;  %v1173_v7 = vld [vmem:[%s2824_s1 + $0x10] sm:$0xf] }
  0x11   :  { %937 = vmatpush.bf16.msra.mxu1 %v1262_v45  ;;  %v1792_v4 = vld [vmem:[%s2824_s1 + $0x1a4] sm:$0xf0]  ;;  %v1310_v6 = vor.u32 %v1776_v0, %v1309_v63  ;;  %v1742_v8 = vld [vmem:[%s2824_s1 + $0x14] sm:$0xf0]  ;;  %v1237_v9 = vld [vmem:[%s2824_s1 + $0x90] sm:$0xf] }
  0x12   :  { %950 = vmatpush.bf16.msra.mxu2 %v1326_v46  ;;  %v1758_v10 = vld [vmem:[%s2824_s1 + $0x94] sm:$0xf0]  ;;  %v1301_v11 = vld [vmem:[%s2824_s1 + $0x110] sm:$0xf]  ;;  %v1374_v13 = vor.u32 %v1792_v4, %v1373_v3  ;;  %v1165_v14 = vld [vmem:[%s2824_s1] sm:$0xf]  ;;  %v1174_v15 = vor.u32 %v1742_v8, %v1173_v7 }
  0x13   :  { %963 = vmatpush.bf16.msra.mxu3 %v1390_v53  ;;  %v1774_v12 = vld [vmem:[%s2824_s1 + $0x114] sm:$0xf0]  ;;  %v1740_v16 = vld [vmem:[%s2824_s1 + $0x4] sm:$0xf0]  ;;  %v1365_v17 = vld [vmem:[%s2824_s1 + $0x190] sm:$0xf]  ;;  %v1238_v19 = vor.u32 %v1758_v10, %v1237_v9 }
  0x14   :  { %925 = vmatpush.bf16.msra.mxu0 %v1190_v54  ;;  %v1790_v18 = vld [vmem:[%s2824_s1 + $0x194] sm:$0xf0]  ;;  %v1302_v20 = vor.u32 %v1774_v12, %v1301_v11  ;;  %v1229_v21 = vld [vmem:[%s2824_s1 + $0x80] sm:$0xf]  ;;  %v1756_v22 = vld [vmem:[%s2824_s1 + $0x84] sm:$0xf0]  ;;  %v1166_v31 = vor.u32 %v1740_v16, %v1165_v14 }
  0x15   :  { %938 = vmatpush.bf16.msra.mxu1 %v1254_v57  ;;  %v1477_v23 = vld [vmem:[%s2824_s1 + $0x270] sm:$0xf]  ;;  %v1818_v24 = vld [vmem:[%s2824_s1 + $0x274] sm:$0xf0]  ;;  %v1366_v27 = vor.u32 %v1790_v18, %v1365_v17  ;;  %v1293_v28 = vld [vmem:[%s2824_s1 + $0x100] sm:$0xf]  ;;  %v1230_v35 = vor.u32 %v1756_v22, %v1229_v21 }
  0x16   :  { %951 = vmatpush.bf16.msra.mxu2 %v1318_v58  ;;  %v1541_v25 = vld [vmem:[%s2824_s1 + $0x2f0] sm:$0xf]  ;;  %v1834_v26 = vld [vmem:[%s2824_s1 + $0x2f4] sm:$0xf0]  ;;  %v1772_v29 = vld [vmem:[%s2824_s1 + $0x104] sm:$0xf0]  ;;  %v1478_v36 = vor.u32 %v1818_v24, %v1477_v23 }
  0x17   :  { %964 = vmatpush.bf16.msra.mxu3 %v1382_v1  ;;  %v1605_v30 = vld [vmem:[%s2824_s1 + $0x370] sm:$0xf]  ;;  %v1850_v32 = vld [vmem:[%s2824_s1 + $0x374] sm:$0xf0]  ;;  %v1357_v33 = vld [vmem:[%s2824_s1 + $0x180] sm:$0xf]  ;;  %v1542_v39 = vor.u32 %v1834_v26, %v1541_v25  ;;  %v1294_v40 = vor.u32 %v1772_v29, %v1293_v28 }
  0x18   :  { %926 = vmatpush.bf16.msra.mxu0 %v1182_v2  ;;  %v1788_v34 = vld [vmem:[%s2824_s1 + $0x184] sm:$0xf0]  ;;  %v1669_v37 = vld [vmem:[%s2824_s1 + $0x3f0] sm:$0xf]  ;;  %v1866_v38 = vld [vmem:[%s2824_s1 + $0x3f4] sm:$0xf0]  ;;  %v1606_v43 = vor.u32 %v1850_v32, %v1605_v30 }
  0x19   :  { %939 = vmatpush.bf16.msra.mxu1 %v1246_v5  ;;  %v1469_v41 = vld [vmem:[%s2824_s1 + $0x260] sm:$0xf]  ;;  %v1816_v42 = vld [vmem:[%s2824_s1 + $0x264] sm:$0xf0]  ;;  %v1358_v44 = vor.u32 %v1788_v34, %v1357_v33  ;;  %v1670_v47 = vor.u32 %v1866_v38, %v1669_v37  ;;  %v1461_v54 = vld [vmem:[%s2824_s1 + $0x250] sm:$0xf] }
  0x1a   :  { %952 = vmatpush.bf16.msra.mxu2 %v1310_v6  ;;  %v1533_v45 = vld [vmem:[%s2824_s1 + $0x2e0] sm:$0xf]  ;;  %v1832_v46 = vld [vmem:[%s2824_s1 + $0x2e4] sm:$0xf0]  ;;  %v1470_v50 = vor.u32 %v1816_v42, %v1469_v41  ;;  %v1814_v55 = vld [vmem:[%s2824_s1 + $0x254] sm:$0xf0] }
  0x1b   :  { %965 = vmatpush.bf16.msra.mxu3 %v1374_v13  ;;  %v1597_v48 = vld [vmem:[%s2824_s1 + $0x360] sm:$0xf]  ;;  %v1848_v49 = vld [vmem:[%s2824_s1 + $0x364] sm:$0xf0]  ;;  %v1534_v53 = vor.u32 %v1832_v46, %v1533_v45  ;;  %v1525_v58 = vld [vmem:[%s2824_s1 + $0x2d0] sm:$0xf]  ;;  %v1462_v4 = vor.u32 %v1814_v55, %v1461_v54 }
  0x1c   :  { %927 = vmatpush.bf16.msra.mxu0 %v1174_v15  ;;  %v1661_v51 = vld [vmem:[%s2824_s1 + $0x3e0] sm:$0xf]  ;;  %v1864_v52 = vld [vmem:[%s2824_s1 + $0x3e4] sm:$0xf0]  ;;  %v1598_v57 = vor.u32 %v1848_v49, %v1597_v48  ;;  %v1830_v59 = vld [vmem:[%s2824_s1 + $0x2d4] sm:$0xf0] }
  0x1d   :  { %940 = vmatpush.bf16.msra.mxu1 %v1238_v19  ;;  %v15_v56 = vld [vmem:[%s2825_s0 + $0x8] sm:$0xff]  ;;  %v14_v61 = vld [vmem:[%s2825_s0] sm:$0xff]  ;;  %v1662_v63 = vor.u32 %v1864_v52, %v1661_v51  ;;  %v1589_v0 = vld [vmem:[%s2824_s1 + $0x350] sm:$0xf]  ;;  %v1526_v9 = vor.u32 %v1830_v59, %v1525_v58 }
  0x1e   :  { %953 = vmatpush.bf16.msra.mxu2 %v1302_v20  ;;  %v176_v60 = vunpack.c.l.b16 %v15_v56  ;;  %v177_v62 = vunpack.c.h.b16 %v15_v56  ;;  %v1846_v1 = vld [vmem:[%s2824_s1 + $0x354] sm:$0xf0]  ;;  %v174_v2 = vunpack.c.l.b16 %v14_v61  ;;  %v175_v3 = vunpack.c.h.b16 %v14_v61  ;;  %v1653_v5 = vld [vmem:[%s2824_s1 + $0x3d0] sm:$0xf]  ;;  %v1453_v10 = vld [vmem:[%s2824_s1 + $0x240] sm:$0xf] }
  0x1f   :  { %966 = vmatpush.bf16.msra.mxu3 %v1366_v27  ;;  %v1862_v6 = vld [vmem:[%s2824_s1 + $0x3d4] sm:$0xf0]  ;;  %v1812_v11 = vld [vmem:[%s2824_s1 + $0x244] sm:$0xf0]  ;;  %v1590_v14 = vor.u32 %v1846_v1, %v1589_v0  ;;  %v1517_v15 = vld [vmem:[%s2824_s1 + $0x2c0] sm:$0xf] }
  0x20   :  { %928 = vmatpush.bf16.msra.mxu0 %v1166_v31  ;;  %v2173_v7 = vpack.c.b16 %v176_v60, %v176_v60  ;;  %v2175_v8 = vpack.c.b16 %v177_v62, %v177_v62  ;;  %v2183_v12 = vpack.c.b16 %v174_v2, %v174_v2  ;;  %v2185_v13 = vpack.c.b16 %v175_v3, %v175_v3  ;;  %v1828_v16 = vld [vmem:[%s2824_s1 + $0x2c4] sm:$0xf0]  ;;  %v1581_v18 = vld [vmem:[%s2824_s1 + $0x340] sm:$0xf]  ;;  %v1445_v24 = vld [vmem:[%s2824_s1 + $0x230] sm:$0xf] }
  0x21   :  { %941 = vmatpush.bf16.msra.mxu1 %v1230_v35  ;;  %v1654_v17 = vor.u32 %v1862_v6, %v1653_v5  ;;  %v1844_v19 = vld [vmem:[%s2824_s1 + $0x344] sm:$0xf0]  ;;  %v1454_v20 = vor.u32 %v1812_v11, %v1453_v10  ;;  %v1645_v21 = vld [vmem:[%s2824_s1 + $0x3c0] sm:$0xf]  ;;  %v1518_v23 = vor.u32 %v1828_v16, %v1517_v15  ;;  %v1810_v25 = vld [vmem:[%s2824_s1 + $0x234] sm:$0xf0] }
  0x22   :  { %954 = vmatpush.bf16.msra.mxu2 %v1294_v40  ;;  %v1860_v22 = vld [vmem:[%s2824_s1 + $0x3c4] sm:$0xf0]  ;;  %v1582_v26 = vor.u32 %v1844_v19, %v1581_v18  ;;  %v1509_v27 = vld [vmem:[%s2824_s1 + $0x2b0] sm:$0xf]  ;;  %v1826_v28 = vld [vmem:[%s2824_s1 + $0x2b4] sm:$0xf0]  ;;  %v1446_v32 = vor.u32 %v1810_v25, %v1445_v24 }
  0x23   :  { %967 = vmatpush.bf16.msra.mxu3 %v1358_v44  ;;  %929 = vmatmul.bf16.vlgmr.msra.gmra.mxu0 %v2183_v12  ;;  %v1646_v29 = vor.u32 %v1860_v22, %v1645_v21  ;;  %v1573_v30 = vld [vmem:[%s2824_s1 + $0x330] sm:$0xf]  ;;  %v1842_v31 = vld [vmem:[%s2824_s1 + $0x334] sm:$0xf0]  ;;  %v1510_v35 = vor.u32 %v1826_v28, %v1509_v27  ;;  %v1808_v37 = vld [vmem:[%s2824_s1 + $0x224] sm:$0xf0] }
  0x24   :  { %973 = vmatpush.bf16.msrb.mxu0 %v1478_v36  ;;  %942 = vmatmul.bf16.vlgmr.msra.gmra.mxu1 %v2185_v13  ;;  %v1637_v33 = vld [vmem:[%s2824_s1 + $0x3b0] sm:$0xf]  ;;  %v1858_v34 = vld [vmem:[%s2824_s1 + $0x3b4] sm:$0xf0]  ;;  %v1437_v36 = vld [vmem:[%s2824_s1 + $0x220] sm:$0xf]  ;;  %v1574_v38 = vor.u32 %v1842_v31, %v1573_v30 }
  0x25   :  { %986 = vmatpush.bf16.msrb.mxu1 %v1542_v39  ;;  %955 = vmatmul.bf16.vlgmr.msra.gmra.mxu2 %v2173_v7  ;;  %v1501_v39 = vld [vmem:[%s2824_s1 + $0x2a0] sm:$0xf]  ;;  %v1824_v40 = vld [vmem:[%s2824_s1 + $0x2a4] sm:$0xf0]  ;;  %v1638_v41 = vor.u32 %v1858_v34, %v1637_v33  ;;  %v1438_v44 = vor.u32 %v1808_v37, %v1437_v36  ;;  %v1429_v48 = vld [vmem:[%s2824_s1 + $0x210] sm:$0xf] }
  0x26   :  { %999 = vmatpush.bf16.msrb.mxu2 %v1606_v43  ;;  %968 = vmatmul.bf16.vlgmr.msra.gmra.mxu3 %v2175_v8  ;;  %v1565_v42 = vld [vmem:[%s2824_s1 + $0x320] sm:$0xf]  ;;  %v1840_v43 = vld [vmem:[%s2824_s1 + $0x324] sm:$0xf0]  ;;  %v1806_v49 = vld [vmem:[%s2824_s1 + $0x214] sm:$0xf0] }
  0x27   :  { %1012 = vmatpush.bf16.msrb.mxu3 %v1670_v47  ;;  %v1629_v45 = vld [vmem:[%s2824_s1 + $0x3a0] sm:$0xf]  ;;  %v1856_v46 = vld [vmem:[%s2824_s1 + $0x3a4] sm:$0xf0]  ;;  %v1502_v47 = vor.u32 %v1824_v40, %v1501_v39  ;;  %v1493_v51 = vld [vmem:[%s2824_s1 + $0x290] sm:$0xf]  ;;  %v1430_v58 = vor.u32 %v1806_v49, %v1429_v48 }
  0x28   :  { %974 = vmatpush.bf16.msrb.mxu0 %v1470_v50  ;;  %v1566_v50 = vor.u32 %v1840_v43, %v1565_v42  ;;  %v1822_v52 = vld [vmem:[%s2824_s1 + $0x294] sm:$0xf0]  ;;  %v1630_v54 = vor.u32 %v1856_v46, %v1629_v45  ;;  %v1421_v56 = vld [vmem:[%s2824_s1 + $0x200] sm:$0xf]  ;;  %v1820_v60 = vld [vmem:[%s2824_s1 + $0x284] sm:$0xf0] }
  0x29   :  { %987 = vmatpush.bf16.msrb.mxu1 %v1534_v53  ;;  %v1557_v53 = vld [vmem:[%s2824_s1 + $0x310] sm:$0xf]  ;;  %v1838_v55 = vld [vmem:[%s2824_s1 + $0x314] sm:$0xf0]  ;;  %v1485_v59 = vld [vmem:[%s2824_s1 + $0x280] sm:$0xf] }
  0x2a   :  { %1000 = vmatpush.bf16.msrb.mxu2 %v1598_v57  ;;  %v1804_v57 = vld [vmem:[%s2824_s1 + $0x204] sm:$0xf0]  ;;  %v1621_v61 = vld [vmem:[%s2824_s1 + $0x390] sm:$0xf]  ;;  %v1854_v62 = vld [vmem:[%s2824_s1 + $0x394] sm:$0xf0]  ;;  %v1558_v3 = vor.u32 %v1838_v55, %v1557_v53 }
  0x2b   :  { %1013 = vmatpush.bf16.msrb.mxu3 %v1662_v63  ;;  %v1494_v63 = vor.u32 %v1822_v52, %v1493_v51  ;;  %v1733_v0 = vld [vmem:[%s2824_s1 + $0x470] sm:$0xf]  ;;  %v1882_v1 = vld [vmem:[%s2824_s1 + $0x474] sm:$0xf0]  ;;  %v1223_v5 = vld [vmem:[%s2824_s1 + $0x78] sm:$0xf0]  ;;  %v1422_v15 = vor.u32 %v1804_v57, %v1421_v56 }
  0x2c   :  { %975 = vmatpush.bf16.msrb.mxu0 %v1462_v4  ;;  %v16_v2 = vld [vmem:[%s2825_s0 + $0x10] sm:$0xff]  ;;  %v17_v6 = vld [vmem:[%s2825_s0 + $0x18] sm:$0xff]  ;;  %v1549_v10 = vld [vmem:[%s2824_s1 + $0x300] sm:$0xf]  ;;  %v1734_v21 = vor.u32 %v1882_v1, %v1733_v0 }
  0x2d   :  { %988 = vmatpush.bf16.msrb.mxu1 %v1526_v9  ;;  %v1753_v4 = vld [vmem:[%s2824_s1 + $0x74] sm:$0xf]  ;;  %v1622_v9 = vor.u32 %v1854_v62, %v1621_v61  ;;  %v1836_v11 = vld [vmem:[%s2824_s1 + $0x304] sm:$0xf0]  ;;  %v1287_v16 = vld [vmem:[%s2824_s1 + $0xf8] sm:$0xf0]  ;;  %v178_v19 = vunpack.c.l.b16 %v16_v2  ;;  %v180_v24 = vunpack.c.l.b16 %v17_v6  ;;  %v179_v34 = vunpack.c.h.b16 %v16_v2 }
  0x2e   :  { %1001 = vmatpush.bf16.msrb.mxu2 %v1590_v14  ;;  %v1769_v14 = vld [vmem:[%s2824_s1 + $0xf4] sm:$0xf]  ;;  %v1852_v18 = vld [vmem:[%s2824_s1 + $0x384] sm:$0xf0]  ;;  %v1226_v25 = vor.u32 %v1753_v4, %v1223_v5  ;;  %v1725_v27 = vld [vmem:[%s2824_s1 + $0x460] sm:$0xf] }
  0x2f   :  { %1014 = vmatpush.bf16.msrb.mxu3 %v1654_v17  ;;  %v1613_v17 = vld [vmem:[%s2824_s1 + $0x380] sm:$0xf]  ;;  %v1785_v22 = vld [vmem:[%s2824_s1 + $0x174] sm:$0xf]  ;;  %v1880_v28 = vld [vmem:[%s2824_s1 + $0x464] sm:$0xf0]  ;;  %v1290_v30 = vor.u32 %v1769_v14, %v1287_v16  ;;  %v2355_v40 = vpack.c.b16 %v180_v24, %v180_v24 }
  0x30   :  { %976 = vmatpush.bf16.msrb.mxu0 %v1454_v20  ;;  %v1486_v20 = vor.u32 %v1820_v60, %v1485_v59  ;;  %v1614_v31 = vor.u32 %v1852_v18, %v1613_v17  ;;  %v1215_v33 = vld [vmem:[%s2824_s1 + $0x68] sm:$0xf0]  ;;  %v1767_v36 = vld [vmem:[%s2824_s1 + $0xe4] sm:$0xf]  ;;  %v1726_v39 = vor.u32 %v1880_v28, %v1725_v27  ;;  %v1717_v45 = vld [vmem:[%s2824_s1 + $0x450] sm:$0xf] }
  0x31   :  { %989 = vmatpush.bf16.msrb.mxu1 %v1518_v23  ;;  %v1351_v23 = vld [vmem:[%s2824_s1 + $0x178] sm:$0xf0]  ;;  %v1279_v37 = vld [vmem:[%s2824_s1 + $0xe8] sm:$0xf0]  ;;  %v1878_v46 = vld [vmem:[%s2824_s1 + $0x454] sm:$0xf0] }
  0x32   :  { %1002 = vmatpush.bf16.msrb.mxu2 %v1582_v26  ;;  %v1550_v26 = vor.u32 %v1836_v11, %v1549_v10  ;;  %v1343_v42 = vld [vmem:[%s2824_s1 + $0x168] sm:$0xf0]  ;;  %v1749_v48 = vld [vmem:[%s2824_s1 + $0x54] sm:$0xf]  ;;  %v1207_v49 = vld [vmem:[%s2824_s1 + $0x58] sm:$0xf0] }
  0x33   :  { %1015 = vmatpush.bf16.msrb.mxu3 %v1646_v29  ;;  %v181_v29 = vunpack.c.h.b16 %v17_v6  ;;  %v1765_v52 = vld [vmem:[%s2824_s1 + $0xd4] sm:$0xf]  ;;  %v1271_v53 = vld [vmem:[%s2824_s1 + $0xd8] sm:$0xf0]  ;;  %v1210_v57 = vor.u32 %v1749_v48, %v1207_v49  ;;  %v1876_v59 = vld [vmem:[%s2824_s1 + $0x444] sm:$0xf0] }
  0x34   :  { %977 = vmatpush.bf16.msrb.mxu0 %v1446_v32  ;;  %v1751_v32 = vld [vmem:[%s2824_s1 + $0x64] sm:$0xf]  ;;  %v1781_v55 = vld [vmem:[%s2824_s1 + $0x154] sm:$0xf]  ;;  %v1335_v56 = vld [vmem:[%s2824_s1 + $0x158] sm:$0xf0]  ;;  %v1274_v60 = vor.u32 %v1765_v52, %v1271_v53 }
  0x35   :  { %990 = vmatpush.bf16.msrb.mxu1 %v1510_v35  ;;  %v1354_v35 = vor.u32 %v1785_v22, %v1351_v23  ;;  %v1218_v43 = vor.u32 %v1751_v32, %v1215_v33  ;;  %v1747_v61 = vld [vmem:[%s2824_s1 + $0x44] sm:$0xf]  ;;  %v1199_v62 = vld [vmem:[%s2824_s1 + $0x48] sm:$0xf0]  ;;  %v1701_v6 = vld [vmem:[%s2824_s1 + $0x430] sm:$0xf] }
  0x36   :  { %1003 = vmatpush.bf16.msrb.mxu2 %v1574_v38  ;;  %v2353_v38 = vpack.c.b16 %v178_v19, %v178_v19  ;;  %v1763_v0 = vld [vmem:[%s2824_s1 + $0xc4] sm:$0xf]  ;;  %v1263_v1 = vld [vmem:[%s2824_s1 + $0xc8] sm:$0xf0]  ;;  %v1202_v5 = vor.u32 %v1747_v61, %v1199_v62  ;;  %v1745_v11 = vld [vmem:[%s2824_s1 + $0x34] sm:$0xf] }
  0x37   :  { %1016 = vmatpush.bf16.msrb.mxu3 %v1638_v41  ;;  %v1783_v41 = vld [vmem:[%s2824_s1 + $0x164] sm:$0xf]  ;;  %v1327_v4 = vld [vmem:[%s2824_s1 + $0x148] sm:$0xf0]  ;;  %v1266_v10 = vor.u32 %v1763_v0, %v1263_v1  ;;  %v1191_v14 = vld [vmem:[%s2824_s1 + $0x38] sm:$0xf0] }
  0x38   :  { %978 = vmatpush.bf16.msrb.mxu0 %v1438_v44  ;;  %v2363_v44 = vpack.c.b16 %v181_v29, %v181_v29  ;;  %v1346_v51 = vor.u32 %v1783_v41, %v1343_v42  ;;  %v1761_v16 = vld [vmem:[%s2824_s1 + $0xb4] sm:$0xf]  ;;  %v1255_v17 = vld [vmem:[%s2824_s1 + $0xb8] sm:$0xf0]  ;;  %v1693_v22 = vld [vmem:[%s2824_s1 + $0x420] sm:$0xf] }
  0x39   :  { %991 = vmatpush.bf16.msrb.mxu1 %v1502_v47  ;;  %v1282_v47 = vor.u32 %v1767_v36, %v1279_v37  ;;  %v1777_v19 = vld [vmem:[%s2824_s1 + $0x134] sm:$0xf]  ;;  %v1872_v23 = vld [vmem:[%s2824_s1 + $0x424] sm:$0xf0]  ;;  %v1258_v24 = vor.u32 %v1761_v16, %v1255_v17  ;;  %v1759_v28 = vld [vmem:[%s2824_s1 + $0xa4] sm:$0xf] }
  0x3a   :  { %1004 = vmatpush.bf16.msrb.mxu2 %v1566_v50  ;;  %v2377_v50 = vpack.c.b16 %v179_v34, %v179_v34  ;;  %v1247_v29 = vld [vmem:[%s2824_s1 + $0xa8] sm:$0xf0]  ;;  %v1685_v34 = vld [vmem:[%s2824_s1 + $0x410] sm:$0xf]  ;;  %v1741_v37 = vld [vmem:[%s2824_s1 + $0x14] sm:$0xf] }
  0x3b   :  { %1017 = vmatpush.bf16.msrb.mxu3 %v1630_v54  ;;  %v1718_v54 = vor.u32 %v1878_v46, %v1717_v45  ;;  %v1311_v32 = vld [vmem:[%s2824_s1 + $0x128] sm:$0xf0]  ;;  %v1250_v36 = vor.u32 %v1759_v28, %v1247_v29  ;;  %v1757_v42 = vld [vmem:[%s2824_s1 + $0x94] sm:$0xf]  ;;  %v1677_v45 = vld [vmem:[%s2824_s1 + $0x400] sm:$0xf] }
  0x3c   :  { %979 = vmatpush.bf16.msrb.mxu0 %v1430_v58  ;;  %v1709_v58 = vld [vmem:[%s2824_s1 + $0x440] sm:$0xf]  ;;  %v1303_v48 = vld [vmem:[%s2824_s1 + $0x118] sm:$0xf0]  ;;  %v1868_v52 = vld [vmem:[%s2824_s1 + $0x404] sm:$0xf0] }
  0x3d   :  { %992 = vmatpush.bf16.msrb.mxu1 %v1494_v63  ;;  %v1338_v63 = vor.u32 %v1781_v55, %v1335_v56  ;;  %v1710_v2 = vor.u32 %v1876_v59, %v1709_v58  ;;  %v18_v49 = vld [vmem:[%s2825_s0 + $0x20] sm:$0xf]  ;;  %v1739_v53 = vld [vmem:[%s2824_s1 + $0x4] sm:$0xf]  ;;  %v1801_v56 = vld [vmem:[%s2824_s1 + $0x1f4] sm:$0xf]  ;;  %v1678_v0 = vor.u32 %v1868_v52, %v1677_v45 }
  0x3e   :  { %1005 = vmatpush.bf16.msrb.mxu2 %v1558_v3  ;;  %v1779_v3 = vld [vmem:[%s2824_s1 + $0x144] sm:$0xf]  ;;  %v1817_v58 = vld [vmem:[%s2824_s1 + $0x274] sm:$0xf]  ;;  %v1231_v62 = vld [vmem:[%s2824_s1 + $0x88] sm:$0xf0] }
  0x3f   :  { %1018 = vmatpush.bf16.msrb.mxu3 %v1622_v9  ;;  %v1874_v9 = vld [vmem:[%s2824_s1 + $0x434] sm:$0xf0]  ;;  %v1755_v61 = vld [vmem:[%s2824_s1 + $0x84] sm:$0xf]  ;;  %v1833_v1 = vld [vmem:[%s2824_s1 + $0x2f4] sm:$0xf] }
  0x40   :  { %980 = vmatpush.bf16.msrb.mxu0 %v1422_v15  ;;  %v1330_v15 = vor.u32 %v1779_v3, %v1327_v4  ;;  %v1702_v18 = vor.u32 %v1874_v9, %v1701_v6  ;;  %v1295_v6 = vld [vmem:[%s2824_s1 + $0x108] sm:$0xf0]  ;;  %v1799_v9 = vld [vmem:[%s2824_s1 + $0x1e4] sm:$0xf]  ;;  %v1607_v16 = vld [vmem:[%s2824_s1 + $0x378] sm:$0xf0] }
  0x41   :  { %993 = vmatpush.bf16.msrb.mxu1 %v1486_v20  ;;  %v1319_v20 = vld [vmem:[%s2824_s1 + $0x138] sm:$0xf0]  ;;  %v1847_v29 = vld [vmem:[%s2824_s1 + $0x364] sm:$0xf]  ;;  %v1793_v52 = vld [vmem:[%s2824_s1 + $0x1b4] sm:$0xf] }
  0x42   :  { %1006 = vmatpush.bf16.msrb.mxu2 %v1550_v26  ;;  %v1183_v26 = vld [vmem:[%s2824_s1 + $0x28] sm:$0xf0]  ;;  %v1322_v27 = vor.u32 %v1777_v19, %v1319_v20  ;;  %v1815_v19 = vld [vmem:[%s2824_s1 + $0x264] sm:$0xf]  ;;  %v1399_v28 = vld [vmem:[%s2824_s1 + $0x1d8] sm:$0xf0] }
  0x43   :  { %1019 = vmatpush.bf16.msrb.mxu3 %v1614_v31  ;;  %981 = vmatmul.bf16.vlgmr.msrb.gmra.mxu0 %v2353_v38  ;;  %v1775_v31 = vld [vmem:[%s2824_s1 + $0x124] sm:$0xf]  ;;  %v1471_v20 = vld [vmem:[%s2824_s1 + $0x268] sm:$0xf0] }
  0x44   :  { %1025 = vmatpush.bf16.msra.mxu0 %v1734_v21  ;;  %994 = vmatmul.bf16.vlgmr.msrb.gmra.mxu1 %v2377_v50  ;;  %v1194_v21 = vor.u32 %v1745_v11, %v1191_v14  ;;  %v1314_v41 = vor.u32 %v1775_v31, %v1311_v32  ;;  %v1234_v11 = vor.u32 %v1755_v61, %v1231_v62  ;;  %v1407_v14 = vld [vmem:[%s2824_s1 + $0x1e8] sm:$0xf0]  ;;  %v1813_v32 = vld [vmem:[%s2824_s1 + $0x254] sm:$0xf] }
  0x45   :  { %1038 = vmatpush.bf16.msra.mxu1 %v1226_v25  ;;  %1007 = vmatmul.bf16.vlgmr.msrb.gmra.mxu2 %v2355_v40  ;;  %v1743_v25 = vld [vmem:[%s2824_s1 + $0x24] sm:$0xf] }
  0x46   :  { %1051 = vmatpush.bf16.msra.mxu2 %v1290_v30  ;;  %1020 = vmatmul.bf16.vlgmr.msrb.gmra.mxu3 %v2363_v44  ;;  %v1694_v30 = vor.u32 %v1872_v23, %v1693_v22  ;;  %v1186_v33 = vor.u32 %v1743_v25, %v1183_v26  ;;  %v1831_v22 = vld [vmem:[%s2824_s1 + $0x2e4] sm:$0xf]  ;;  %v1535_v23 = vld [vmem:[%s2824_s1 + $0x2e8] sm:$0xf0]  ;;  %v1797_v26 = vld [vmem:[%s2824_s1 + $0x1d4] sm:$0xf] }
  0x47   :  { %1064 = vmatpush.bf16.msra.mxu3 %v1354_v35  ;;  %v1870_v35 = vld [vmem:[%s2824_s1 + $0x414] sm:$0xf0]  ;;  %v1538_v31 = vor.u32 %v1831_v22, %v1535_v23  ;;  %v1805_v22 = vld [vmem:[%s2824_s1 + $0x214] sm:$0xf]  ;;  %v1431_v23 = vld [vmem:[%s2824_s1 + $0x218] sm:$0xf0] }
  0x48   :  { %1026 = vmatpush.bf16.msra.mxu0 %v1726_v39  ;;  %v1175_v39 = vld [vmem:[%s2824_s1 + $0x18] sm:$0xf0]  ;;  %v1686_v46 = vor.u32 %v1870_v35, %v1685_v34  ;;  %v1829_v34 = vld [vmem:[%s2824_s1 + $0x2d4] sm:$0xf] }
  0x49   :  { %1039 = vmatpush.bf16.msra.mxu1 %v1218_v43  ;;  %v1239_v43 = vld [vmem:[%s2824_s1 + $0x98] sm:$0xf0] }
  0x4a   :  { %1052 = vmatpush.bf16.msra.mxu2 %v1282_v47  ;;  %v1773_v47 = vld [vmem:[%s2824_s1 + $0x114] sm:$0xf]  ;;  %v1242_v55 = vor.u32 %v1757_v42, %v1239_v43  ;;  %v1527_v35 = vld [vmem:[%s2824_s1 + $0x2d8] sm:$0xf0]  ;;  %v1391_v42 = vld [vmem:[%s2824_s1 + $0x1c8] sm:$0xf0] }
  0x4b   :  { %1065 = vmatpush.bf16.msra.mxu3 %v1346_v51  ;;  %v1178_v51 = vor.u32 %v1741_v37, %v1175_v39  ;;  %v1306_v59 = vor.u32 %v1773_v47, %v1303_v48  ;;  %v1795_v39 = vld [vmem:[%s2824_s1 + $0x1c4] sm:$0xf]  ;;  %v1845_v43 = vld [vmem:[%s2824_s1 + $0x354] sm:$0xf]  ;;  %v1530_v45 = vor.u32 %v1829_v34, %v1527_v35  ;;  %v1455_v47 = vld [vmem:[%s2824_s1 + $0x248] sm:$0xf0] }
  0x4c   :  { %1027 = vmatpush.bf16.msra.mxu0 %v1718_v54  ;;  %v1167_v54 = vld [vmem:[%s2824_s1 + $0x8] sm:$0xf0]  ;;  %v1827_v48 = vld [vmem:[%s2824_s1 + $0x2c4] sm:$0xf]  ;;  %v1559_v34 = vld [vmem:[%s2824_s1 + $0x318] sm:$0xf0] }
  0x4d   :  { %1040 = vmatpush.bf16.msra.mxu1 %v1210_v57  ;;  %v1415_v57 = vld [vmem:[%s2824_s1 + $0x1f8] sm:$0xf0]  ;;  %v1170_v3 = vor.u32 %v1739_v53, %v1167_v54  ;;  %v1843_v54 = vld [vmem:[%s2824_s1 + $0x344] sm:$0xf] }
  0x4e   :  { %1053 = vmatpush.bf16.msra.mxu2 %v1274_v60  ;;  %v1479_v60 = vld [vmem:[%s2824_s1 + $0x278] sm:$0xf0]  ;;  %v1418_v4 = vor.u32 %v1801_v56, %v1415_v57  ;;  %v1809_v57 = vld [vmem:[%s2824_s1 + $0x234] sm:$0xf] }
  0x4f   :  { %1066 = vmatpush.bf16.msra.mxu3 %v1338_v63  ;;  %v182_v63 = vunpack.c.l.b16 %v18_v49  ;;  %v1394_v49 = vor.u32 %v1795_v39, %v1391_v42  ;;  %v1881_v39 = vld [vmem:[%s2824_s1 + $0x474] sm:$0xf]  ;;  %v1819_v42 = vld [vmem:[%s2824_s1 + $0x284] sm:$0xf] }
  0x50   :  { %1028 = vmatpush.bf16.msra.mxu0 %v1710_v2  ;;  %v1543_v2 = vld [vmem:[%s2824_s1 + $0x2f8] sm:$0xf0] }
  0x51   :  { %1041 = vmatpush.bf16.msra.mxu1 %v1202_v5  ;;  %v1771_v5 = vld [vmem:[%s2824_s1 + $0x104] sm:$0xf]  ;;  %v2548_v17 = vpack.c.b16 %v182_v63, %v182_v63 }
  0x52   :  { %1054 = vmatpush.bf16.msra.mxu2 %v1266_v10  ;;  %v1482_v10 = vor.u32 %v1817_v58, %v1479_v60  ;;  %v1447_v58 = vld [vmem:[%s2824_s1 + $0x238] sm:$0xf0]  ;;  %v1791_v63 = vld [vmem:[%s2824_s1 + $0x1a4] sm:$0xf] }
  0x53   :  { %1067 = vmatpush.bf16.msra.mxu3 %v1330_v15  ;;  %v1849_v15 = vld [vmem:[%s2824_s1 + $0x374] sm:$0xf]  ;;  %v1511_v60 = vld [vmem:[%s2824_s1 + $0x2b8] sm:$0xf0] }
  0x54   :  { %1029 = vmatpush.bf16.msra.mxu0 %v1702_v18  ;;  %v1546_v18 = vor.u32 %v1833_v1, %v1543_v2  ;;  %v1610_v25 = vor.u32 %v1849_v15, %v1607_v16  ;;  %v1375_v1 = vld [vmem:[%s2824_s1 + $0x1a8] sm:$0xf0]  ;;  %v1841_v2 = vld [vmem:[%s2824_s1 + $0x334] sm:$0xf] }
  0x55   :  { %1042 = vmatpush.bf16.msra.mxu1 %v1194_v21  ;;  %v1298_v21 = vor.u32 %v1771_v5, %v1295_v6  ;;  %v1807_v5 = vld [vmem:[%s2824_s1 + $0x224] sm:$0xf]  ;;  %v1439_v6 = vld [vmem:[%s2824_s1 + $0x228] sm:$0xf0]  ;;  %v1789_v15 = vld [vmem:[%s2824_s1 + $0x194] sm:$0xf] }
  0x56   :  { %1055 = vmatpush.bf16.msra.mxu2 %v1258_v24  ;;  %v1410_v24 = vor.u32 %v1799_v9, %v1407_v14  ;;  %v1823_v9 = vld [vmem:[%s2824_s1 + $0x2a4] sm:$0xf]  ;;  %v1442_v16 = vor.u32 %v1807_v5, %v1439_v6  ;;  %v1703_v5 = vld [vmem:[%s2824_s1 + $0x438] sm:$0xf0] }
  0x57   :  { %1068 = vmatpush.bf16.msra.mxu3 %v1322_v27  ;;  %v1474_v27 = vor.u32 %v1815_v19, %v1471_v20  ;;  %v1839_v19 = vld [vmem:[%s2824_s1 + $0x324] sm:$0xf]  ;;  %v1567_v20 = vld [vmem:[%s2824_s1 + $0x328] sm:$0xf0] }
  0x58   :  { %1030 = vmatpush.bf16.msra.mxu0 %v1694_v30  ;;  %v1599_v30 = vld [vmem:[%s2824_s1 + $0x368] sm:$0xf0] }
  0x59   :  { %1043 = vmatpush.bf16.msra.mxu1 %v1186_v33  ;;  %v1463_v33 = vld [vmem:[%s2824_s1 + $0x258] sm:$0xf0]  ;;  %v1602_v37 = vor.u32 %v1847_v29, %v1599_v30  ;;  %v1359_v29 = vld [vmem:[%s2824_s1 + $0x188] sm:$0xf0]  ;;  %v1803_v30 = vld [vmem:[%s2824_s1 + $0x204] sm:$0xf] }
  0x5a   :  { %1056 = vmatpush.bf16.msra.mxu2 %v1250_v36  ;;  %v1402_v36 = vor.u32 %v1797_v26, %v1399_v28  ;;  %v1787_v28 = vld [vmem:[%s2824_s1 + $0x184] sm:$0xf] }
  0x5b   :  { %1069 = vmatpush.bf16.msra.mxu3 %v1314_v41  ;;  %v1466_v41 = vor.u32 %v1813_v32, %v1463_v33  ;;  %v1423_v32 = vld [vmem:[%s2824_s1 + $0x208] sm:$0xf0]  ;;  %v1837_v33 = vld [vmem:[%s2824_s1 + $0x314] sm:$0xf] }
  0x5c   :  { %1031 = vmatpush.bf16.msra.mxu0 %v1686_v46  ;;  %v1811_v46 = vld [vmem:[%s2824_s1 + $0x244] sm:$0xf] }
  0x5d   :  { %1044 = vmatpush.bf16.msra.mxu1 %v1178_v51  ;;  %v1458_v53 = vor.u32 %v1811_v46, %v1455_v47  ;;  %v1426_v46 = vor.u32 %v1803_v30, %v1423_v32 }
  0x5e   :  { %1057 = vmatpush.bf16.msra.mxu2 %v1242_v55  ;;  %v1583_v55 = vld [vmem:[%s2824_s1 + $0x348] sm:$0xf0] }
  0x5f   :  { %1070 = vmatpush.bf16.msra.mxu3 %v1306_v59  ;;  %v1825_v59 = vld [vmem:[%s2824_s1 + $0x2b4] sm:$0xf]  ;;  %v1586_v62 = vor.u32 %v1843_v54, %v1583_v55  ;;  %v1727_v54 = vld [vmem:[%s2824_s1 + $0x468] sm:$0xf0] }
  0x60   :  { %1032 = vmatpush.bf16.msra.mxu0 %v1678_v0  ;;  %v1450_v0 = vor.u32 %v1809_v57, %v1447_v58  ;;  %v1861_v58 = vld [vmem:[%s2824_s1 + $0x3d4] sm:$0xf] }
  0x61   :  { %1045 = vmatpush.bf16.msra.mxu1 %v1170_v3  ;;  %v1575_v3 = vld [vmem:[%s2824_s1 + $0x338] sm:$0xf0] }
  0x62   :  { %1058 = vmatpush.bf16.msra.mxu2 %v1234_v11  ;;  %v1378_v11 = vor.u32 %v1791_v63, %v1375_v1  ;;  %v1578_v14 = vor.u32 %v1841_v2, %v1575_v3  ;;  %v1857_v3 = vld [vmem:[%s2824_s1 + $0x3b4] sm:$0xf] }
  0x63   :  { %1033 = vmatmul.bf16.vlgmr.msra.gmra.mxu0 %v2548_v17  ;;  %1071 = vmatpush.bf16.msra.mxu3 %v1298_v21 }
  0x64   :  { %1077 = vmatpush.bf16.msrb.mxu0 %v1418_v4  ;;  %1046 = vmatmul.bf16.vlgmr.msra.gmra.mxu1 %v2183_v12  ;;  %v1591_v12 = vld [vmem:[%s2824_s1 + $0x358] sm:$0xf0]  ;;  %v1514_v4 = vor.u32 %v1825_v59, %v1511_v60  ;;  %v1877_v60 = vld [vmem:[%s2824_s1 + $0x454] sm:$0xf] }
  0x65   :  { %1090 = vmatpush.bf16.msrb.mxu1 %v1482_v10  ;;  %1059 = vmatmul.bf16.vlgmr.msra.gmra.mxu2 %v2185_v13  ;;  %v1519_v13 = vld [vmem:[%s2824_s1 + $0x2c8] sm:$0xf0]  ;;  %v1594_v51 = vor.u32 %v1845_v43, %v1591_v12  ;;  %v1362_v12 = vor.u32 %v1787_v28, %v1359_v29  ;;  %v1655_v59 = vld [vmem:[%s2824_s1 + $0x3d8] sm:$0xf0] }
  0x66   :  { %1103 = vmatpush.bf16.msrb.mxu2 %v1546_v18  ;;  %1072 = vmatmul.bf16.vlgmr.msra.gmra.mxu3 %v2173_v7  ;;  %v1383_v7 = vld [vmem:[%s2824_s1 + $0x1b8] sm:$0xf0]  ;;  %v1522_v56 = vor.u32 %v1827_v48, %v1519_v13  ;;  %v1503_v10 = vld [vmem:[%s2824_s1 + $0x2a8] sm:$0xf0]  ;;  %v1835_v48 = vld [vmem:[%s2824_s1 + $0x304] sm:$0xf] }
  0x67   :  { %1116 = vmatpush.bf16.msrb.mxu3 %v1610_v25  ;;  %v1386_v61 = vor.u32 %v1793_v52, %v1383_v7  ;;  %v1367_v18 = vld [vmem:[%s2824_s1 + $0x198] sm:$0xf0]  ;;  %v1506_v21 = vor.u32 %v1823_v9, %v1503_v10  ;;  %v1487_v43 = vld [vmem:[%s2824_s1 + $0x288] sm:$0xf0]  ;;  %v1863_v52 = vld [vmem:[%s2824_s1 + $0x3e4] sm:$0xf] }
  0x68   :  { %1078 = vmatpush.bf16.msrb.mxu0 %v1410_v24  ;;  %v1821_v24 = vld [vmem:[%s2824_s1 + $0x294] sm:$0xf]  ;;  %v1495_v25 = vld [vmem:[%s2824_s1 + $0x298] sm:$0xf0]  ;;  %v1370_v26 = vor.u32 %v1789_v15, %v1367_v18  ;;  %v1551_v13 = vld [vmem:[%s2824_s1 + $0x308] sm:$0xf0] }
  0x69   :  { %1091 = vmatpush.bf16.msrb.mxu1 %v1474_v27  ;;  %v1570_v27 = vor.u32 %v1839_v19, %v1567_v20  ;;  %v1498_v35 = vor.u32 %v1821_v24, %v1495_v25  ;;  %v1879_v7 = vld [vmem:[%s2824_s1 + $0x464] sm:$0xf]  ;;  %v1554_v55 = vor.u32 %v1835_v48, %v1551_v13  ;;  %v1695_v15 = vld [vmem:[%s2824_s1 + $0x428] sm:$0xf0]  ;;  %v1853_v19 = vld [vmem:[%s2824_s1 + $0x394] sm:$0xf] }
  0x6a   :  { %1104 = vmatpush.bf16.msrb.mxu2 %v1538_v31  ;;  %v1434_v31 = vor.u32 %v1805_v22, %v1431_v23  ;;  %v1730_v57 = vor.u32 %v1879_v7, %v1727_v54  ;;  %v1855_v10 = vld [vmem:[%s2824_s1 + $0x3a4] sm:$0xf]  ;;  %v1623_v20 = vld [vmem:[%s2824_s1 + $0x398] sm:$0xf0]  ;;  %v1679_v28 = vld [vmem:[%s2824_s1 + $0x408] sm:$0xf0] }
  0x6b   :  { %1117 = vmatpush.bf16.msrb.mxu3 %v1602_v37  ;;  %v1671_v37 = vld [vmem:[%s2824_s1 + $0x3f8] sm:$0xf0]  ;;  %v1626_v23 = vor.u32 %v1853_v19, %v1623_v20  ;;  %v1851_v25 = vld [vmem:[%s2824_s1 + $0x384] sm:$0xf] }
  0x6c   :  { %1079 = vmatpush.bf16.msrb.mxu0 %v1402_v36  ;;  %v1865_v36 = vld [vmem:[%s2824_s1 + $0x3f4] sm:$0xf]  ;;  %v1687_v22 = vld [vmem:[%s2824_s1 + $0x418] sm:$0xf0] }
  0x6d   :  { %1092 = vmatpush.bf16.msrb.mxu1 %v1466_v41  ;;  %v1735_v41 = vld [vmem:[%s2824_s1 + $0x478] sm:$0xf0]  ;;  %v1674_v47 = vor.u32 %v1865_v36, %v1671_v37 }
  0x6e   :  { %1105 = vmatpush.bf16.msrb.mxu2 %v1530_v45  ;;  %v1562_v45 = vor.u32 %v1837_v33, %v1559_v34 }
  0x6f   :  { %1118 = vmatpush.bf16.msrb.mxu3 %v1594_v51  ;;  %v1490_v51 = vor.u32 %v1819_v42, %v1487_v43 }
  0x70   :  { %1080 = vmatpush.bf16.msrb.mxu0 %v1394_v49  ;;  %v1738_v49 = vor.u32 %v1881_v39, %v1735_v41 }
  0x71   :  { %1093 = vmatpush.bf16.msrb.mxu1 %v1458_v53  ;;  %v1663_v53 = vld [vmem:[%s2824_s1 + $0x3e8] sm:$0xf0] }
  0x72   :  { %1106 = vmatpush.bf16.msrb.mxu2 %v1522_v56  ;;  %v1666_v56 = vor.u32 %v1863_v52, %v1663_v53 }
  0x73   :  { %1119 = vmatpush.bf16.msrb.mxu3 %v1586_v62  ;;  %v1658_v62 = vor.u32 %v1861_v58, %v1655_v59 }
  0x74   :  { %1081 = vmatpush.bf16.msrb.mxu0 %v1386_v61  ;;  %v1719_v61 = vld [vmem:[%s2824_s1 + $0x458] sm:$0xf0] }
  0x75   :  { %1094 = vmatpush.bf16.msrb.mxu1 %v1450_v0  ;;  %v1722_v63 = vor.u32 %v1877_v60, %v1719_v61  ;;  %v1647_v0 = vld [vmem:[%s2824_s1 + $0x3c8] sm:$0xf0] }
  0x76   :  { %1107 = vmatpush.bf16.msrb.mxu2 %v1514_v4  ;;  %v1873_v4 = vld [vmem:[%s2824_s1 + $0x434] sm:$0xf] }
  0x77   :  { %1120 = vmatpush.bf16.msrb.mxu3 %v1578_v14  ;;  %v1706_v9 = vor.u32 %v1873_v4, %v1703_v5  ;;  %v1871_v14 = vld [vmem:[%s2824_s1 + $0x424] sm:$0xf] }
  0x78   :  { %1082 = vmatpush.bf16.msrb.mxu0 %v1378_v11  ;;  %v1631_v11 = vld [vmem:[%s2824_s1 + $0x3a8] sm:$0xf0]  ;;  %v1698_v18 = vor.u32 %v1871_v14, %v1695_v15 }
  0x79   :  { %1095 = vmatpush.bf16.msrb.mxu1 %v1442_v16  ;;  %v1634_v16 = vor.u32 %v1855_v10, %v1631_v11 }
  0x7a   :  { %1108 = vmatpush.bf16.msrb.mxu2 %v1506_v21  ;;  %v1869_v21 = vld [vmem:[%s2824_s1 + $0x414] sm:$0xf] }
  0x7b   :  { %1121 = vmatpush.bf16.msrb.mxu3 %v1570_v27  ;;  %v1690_v24 = vor.u32 %v1869_v21, %v1687_v22  ;;  %v1867_v27 = vld [vmem:[%s2824_s1 + $0x404] sm:$0xf] }
  0x7c   :  { %1083 = vmatpush.bf16.msrb.mxu0 %v1370_v26  ;;  %v1615_v26 = vld [vmem:[%s2824_s1 + $0x388] sm:$0xf0]  ;;  %v1682_v30 = vor.u32 %v1867_v27, %v1679_v28 }
  0x7d   :  { %1096 = vmatpush.bf16.msrb.mxu1 %v1434_v31  ;;  %v1618_v29 = vor.u32 %v1851_v25, %v1615_v26  ;;  %v163_v31 = vld [vmem:[%s2826_s2] sm:$0x3] }
  0x7e   :  { %1109 = vmatpush.bf16.msrb.mxu2 %v1498_v35  ;;  %v165_v32 = vperm.slane %v163_v31, 0 }
  0x7f   :  { %1122 = vmatpush.bf16.msrb.mxu3 %v1562_v45 }
  0x80   :  { %1084 = vmatpush.bf16.msrb.mxu0 %v1362_v12 }
  0x81   :  { %1097 = vmatpush.bf16.msrb.mxu1 %v1426_v46 }
  0x82   :  { %1110 = vmatpush.bf16.msrb.mxu2 %v1490_v51 }
  0x83   :  { %1085 = vmatmul.bf16.vlgmr.msrb.gmra.mxu0 %v2175_v8  ;;  %1123 = vmatpush.bf16.msrb.mxu3 %v1554_v55  ;;  %v1859_v8 = vld [vmem:[%s2824_s1 + $0x3c4] sm:$0xf] }
  0x84   :  { %1129 = vmatpush.bf16.msra.mxu0 %v1674_v47  ;;  %1098 = vmatmul.bf16.vlgmr.msrb.gmra.mxu1 %v2353_v38  ;;  %v1875_v38 = vld [vmem:[%s2824_s1 + $0x444] sm:$0xf]  ;;  %v1650_v1 = vor.u32 %v1859_v8, %v1647_v0  ;;  %v166_v8 = vperm.slane %v163_v31, 1 }
  0x85   :  { %1142 = vmatpush.bf16.msra.mxu1 %v1738_v49  ;;  %1111 = vmatmul.bf16.vlgmr.msrb.gmra.mxu2 %v2377_v50  ;;  %v1711_v50 = vld [vmem:[%s2824_s1 + $0x448] sm:$0xf0] }
  0x86   :  { %1124 = vmatmul.bf16.vlgmr.msrb.gmra.mxu3 %v2355_v40  ;;  %v1714_v2 = vor.u32 %v1875_v38, %v1711_v50  ;;  %v1639_v40 = vld [vmem:[%s2824_s1 + $0x3b8] sm:$0xf0] }
  0x87   :  { %v1642_v6 = vor.u32 %v1857_v3, %v1639_v40 }
  0x88   :  { %1130 = vmatpush.bf16.msra.mxu0 %v1666_v56 }
  0x89   :  { %1143 = vmatpush.bf16.msra.mxu1 %v1730_v57 }
  0x8c   :  { %1131 = vmatpush.bf16.msra.mxu0 %v1658_v62 }
  0x8d   :  { %1144 = vmatpush.bf16.msra.mxu1 %v1722_v63 }
  0x90   :  { %1132 = vmatpush.bf16.msra.mxu0 %v1650_v1 }
  0x91   :  { %1145 = vmatpush.bf16.msra.mxu1 %v1714_v2 }
  0x94   :  { %1133 = vmatpush.bf16.msra.mxu0 %v1642_v6 }
  0x95   :  { %1146 = vmatpush.bf16.msra.mxu1 %v1706_v9 }
  0x98   :  { %1134 = vmatpush.bf16.msra.mxu0 %v1634_v16 }
  0x99   :  { %1147 = vmatpush.bf16.msra.mxu1 %v1698_v18 }
  0x9c   :  { %1135 = vmatpush.bf16.msra.mxu0 %v1626_v23 }
  0x9d   :  { %1148 = vmatpush.bf16.msra.mxu1 %v1690_v24 }
  0xa0   :  { %1136 = vmatpush.bf16.msra.mxu0 %v1618_v29  ;;  %v930_v34 = vpop.f32.mrf.mxu0 }
  0xa1   :  { %1149 = vmatpush.bf16.msra.mxu1 %v1682_v30  ;;  %v943_v33 = vpop.f32.mrf.mxu1  ;;  %v931_v35 = vadd.f32 %v930_v34, %v165_v32 }
  0xa3   :  { %1137 = vmatmul.bf16.vlgmr.msra.gmra.mxu0 %v2363_v44  ;;  %v944_v36 = vadd.f32 %v943_v33, %v931_v35 }
  0xa4   :  { %1150 = vmatmul.bf16.vlgmr.msra.gmra.mxu1 %v2548_v17 }
  0xa8   :  { %v956_v39 = vpop.f32.mrf.mxu2  ;;  %v932_v12 = vpop.f32.mrf.mxu0 }
  0xa9   :  { %v969_v37 = vpop.f32.mrf.mxu3  ;;  %v957_v41 = vadd.f32 %v956_v39, %v944_v36  ;;  %v945_v43 = vpop.f32.mrf.mxu1 }
  0xab   :  { %v970_v42 = vadd.f32 %v969_v37, %v957_v41 }
  0xb0   :  { %v958_v46 = vpop.f32.mrf.mxu2 }
  0xb1   :  { %v971_v45 = vpop.f32.mrf.mxu3 }
  0xc0   :  { %v982_v44 = vpop.f32.mrf.mxu0 }
  0xc1   :  { %v983_v47 = vadd.f32 %v982_v44, %v970_v42  ;;  %v995_v17 = vpop.f32.mrf.mxu1 }
  0xc3   :  { %v996_v48 = vadd.f32 %v995_v17, %v983_v47 }
  0xc8   :  { %v1008_v13 = vpop.f32.mrf.mxu2  ;;  %v984_v52 = vpop.f32.mrf.mxu0 }
  0xc9   :  { %v1009_v49 = vadd.f32 %v1008_v13, %v996_v48  ;;  %v1021_v51 = vpop.f32.mrf.mxu3  ;;  %v997_v7 = vpop.f32.mrf.mxu1 }
  0xcb   :  { %v1022_v53 = vadd.f32 %v1021_v51, %v1009_v49 }
  0xd0   :  { %v1010_v54 = vpop.f32.mrf.mxu2 }
  0xd1   :  { %v1023_v55 = vpop.f32.mrf.mxu3 }
  0xe0   :  { %v1034_v56 = vpop.f32.mrf.mxu0 }
  0xe1   :  { %v1047_v57 = vpop.f32.mrf.mxu1  ;;  %v1035_v18 = vadd.f32 %v1034_v56, %v1022_v53 }
  0xe2   :  { %v1048_v50 = vadd.f32 %v1047_v57, %v166_v8 }
  0xe3   :  { %v1155_v22 = vmax.f32 %v1035_v18, 0.0 }
  0xe8   :  { %v1036_v58 = vpop.f32.mrf.mxu0  ;;  %v1060_v59 = vpop.f32.mrf.mxu2 }
  0xe9   :  { %v1049_v60 = vpop.f32.mrf.mxu1  ;;  %v1073_v61 = vpop.f32.mrf.mxu3  ;;  %v1061_v1 = vadd.f32 %v1060_v59, %v1048_v50 }
  0xeb   :  { %v1074_v5 = vadd.f32 %v1073_v61, %v1061_v1 }
  0xf0   :  { %v1062_v62 = vpop.f32.mrf.mxu2 }
  0xf1   :  { %v1075_v63 = vpop.f32.mrf.mxu3 }
 0x100   :  { %v1086_v0 = vpop.f32.mrf.mxu0 }
 0x101   :  { %v1099_v38 = vpop.f32.mrf.mxu1  ;;  %v1087_v6 = vadd.f32 %v1086_v0, %v1074_v5 }
 0x103   :  { %v1100_v11 = vadd.f32 %v1099_v38, %v1087_v6 }
 0x108   :  { %v1112_v2 = vpop.f32.mrf.mxu2  ;;  %v1088_v3 = vpop.f32.mrf.mxu0 }
 0x109   :  { %v1101_v40 = vpop.f32.mrf.mxu1  ;;  %v1125_v4 = vpop.f32.mrf.mxu3  ;;  %v1113_v14 = vadd.f32 %v1112_v2, %v1100_v11 }
 0x10b   :  { %v1126_v15 = vadd.f32 %v1125_v4, %v1113_v14 }
 0x110   :  { %v1114_v9 = vpop.f32.mrf.mxu2 }
 0x111   :  { %v1127_v10 = vpop.f32.mrf.mxu3 }
 0x120   :  { %v1138_v16 = vpop.f32.mrf.mxu0 }
 0x121   :  { %v1139_v19 = vadd.f32 %v1138_v16, %v1126_v15  ;;  %v1151_v20 = vpop.f32.mrf.mxu1 }
 0x123   :  { %v1152_v21 = vadd.f32 %v1151_v20, %v1139_v19 }
 0x125   :  { %v1156_v23 = vmax.f32 %v1152_v21, 0.0 }
 0x127   :  { %v1157_v24 = vpack.c.bf16 %v1156_v23, %v1155_v22 }
 0x128   :  { %v1140_v25 = vpop.f32.mrf.mxu0 }
 0x129   :  { %1158 = vst [vmem:[%s2827_s3] sm:$0xff] %v1157_v24  ;;  %v1153_v26 = vpop.f32.mrf.mxu1 }

// kernel: posenet_forward.11
= control target key start
LH: loop header
LB: loop body
LE: loop exit
PB: predicated region body
PF: predicated region fallthrough
CT: control target
= control target key end

     0   :  { %s3431_s1 = inlined_call_operand.vmem [shape: bf16[1024,256], index: 1, kind: input, shape index: {}]   ;;  %s3432_s0 = inlined_call_operand.vmem [shape: bf16[2,1024], index: 0, kind: input, shape index: {}]   ;;  %s3433_s3 = inlined_call_operand.vmem [shape: bf16[256,256], index: 3, kind: input, shape index: {}]   ;;  %s3434_s2 = inlined_call_operand.vmem [shape: f32[1,256], index: 2, kind: input, shape index: {}]   ;;  %s3435_s6 = inlined_call_operand.vmem [shape: f32[1,128], index: 6, kind: input, shape index: {}]   ;;  %s3436_s5 = inlined_call_operand.vmem [shape: bf16[256,128], index: 5, kind: input, shape index: {}]   ;;  %s3437_s4 = inlined_call_operand.vmem [shape: f32[1,256], index: 4, kind: input, shape index: {}]   ;;  %s3438_s7 = inlined_call_operand.vmem [shape: f32[2,128], index: 7, kind: output, shape index: {}]  }
   0x1   :  { %v1509_v0 = vld [vmem:[%s3431_s1 + $0x70] sm:$0xf]  ;;  %v2170_v1 = vld [vmem:[%s3431_s1 + $0x74] sm:$0xf0]  ;;  %v1501_v11 = vld [vmem:[%s3431_s1 + $0x60] sm:$0xf] }
   0x2   :  { %v1573_v2 = vld [vmem:[%s3431_s1 + $0xf0] sm:$0xf]  ;;  %v1510_v3 = vor.u32 %v2170_v1, %v1509_v0  ;;  %v2186_v4 = vld [vmem:[%s3431_s1 + $0xf4] sm:$0xf0]  ;;  %v2168_v13 = vld [vmem:[%s3431_s1 + $0x64] sm:$0xf0] }
   0x3   :  { %v1637_v5 = vld [vmem:[%s3431_s1 + $0x170] sm:$0xf]  ;;  %v2202_v6 = vld [vmem:[%s3431_s1 + $0x174] sm:$0xf0]  ;;  %v1574_v7 = vor.u32 %v2186_v4, %v1573_v2  ;;  %v1565_v14 = vld [vmem:[%s3431_s1 + $0xe0] sm:$0xf]  ;;  %v1502_v16 = vor.u32 %v2168_v13, %v1501_v11 }
   0x4   :  { %v1638_v8 = vor.u32 %v2202_v6, %v1637_v5  ;;  %v1701_v9 = vld [vmem:[%s3431_s1 + $0x1f0] sm:$0xf]  ;;  %v2218_v10 = vld [vmem:[%s3431_s1 + $0x1f4] sm:$0xf0]  ;;  %819 = vmatpush.bf16.msra.mxu0 %v1510_v3  ;;  %v2184_v15 = vld [vmem:[%s3431_s1 + $0xe4] sm:$0xf0] }
   0x5   :  { %v1702_v12 = vor.u32 %v2218_v10, %v1701_v9  ;;  %832 = vmatpush.bf16.msra.mxu1 %v1574_v7  ;;  %v1566_v17 = vor.u32 %v2184_v15, %v1565_v14  ;;  %v1629_v18 = vld [vmem:[%s3431_s1 + $0x160] sm:$0xf]  ;;  %v2200_v19 = vld [vmem:[%s3431_s1 + $0x164] sm:$0xf0]  ;;  %v1493_v23 = vld [vmem:[%s3431_s1 + $0x50] sm:$0xf] }
   0x6   :  { %845 = vmatpush.bf16.msra.mxu2 %v1638_v8  ;;  %v1693_v20 = vld [vmem:[%s3431_s1 + $0x1e0] sm:$0xf]  ;;  %v1630_v21 = vor.u32 %v2200_v19, %v1629_v18  ;;  %v2216_v22 = vld [vmem:[%s3431_s1 + $0x1e4] sm:$0xf0]  ;;  %v2166_v24 = vld [vmem:[%s3431_s1 + $0x54] sm:$0xf0] }
   0x7   :  { %858 = vmatpush.bf16.msra.mxu3 %v1702_v12  ;;  %v1694_v25 = vor.u32 %v2216_v22, %v1693_v20  ;;  %v1557_v26 = vld [vmem:[%s3431_s1 + $0xd0] sm:$0xf]  ;;  %v2182_v27 = vld [vmem:[%s3431_s1 + $0xd4] sm:$0xf0]  ;;  %v1494_v29 = vor.u32 %v2166_v24, %v1493_v23  ;;  %v1485_v35 = vld [vmem:[%s3431_s1 + $0x40] sm:$0xf] }
   0x8   :  { %v1621_v28 = vld [vmem:[%s3431_s1 + $0x150] sm:$0xf]  ;;  %820 = vmatpush.bf16.msra.mxu0 %v1502_v16  ;;  %v2198_v30 = vld [vmem:[%s3431_s1 + $0x154] sm:$0xf0]  ;;  %v1558_v33 = vor.u32 %v2182_v27, %v1557_v26  ;;  %v2164_v36 = vld [vmem:[%s3431_s1 + $0x44] sm:$0xf0] }
   0x9   :  { %v1685_v31 = vld [vmem:[%s3431_s1 + $0x1d0] sm:$0xf]  ;;  %v2214_v32 = vld [vmem:[%s3431_s1 + $0x1d4] sm:$0xf0]  ;;  %833 = vmatpush.bf16.msra.mxu1 %v1566_v17  ;;  %v1622_v34 = vor.u32 %v2198_v30, %v1621_v28  ;;  %v1549_v37 = vld [vmem:[%s3431_s1 + $0xc0] sm:$0xf]  ;;  %v1486_v44 = vor.u32 %v2164_v36, %v1485_v35 }
   0xa   :  { %846 = vmatpush.bf16.msra.mxu2 %v1630_v21  ;;  %v1686_v38 = vor.u32 %v2214_v32, %v1685_v31  ;;  %v2180_v39 = vld [vmem:[%s3431_s1 + $0xc4] sm:$0xf0]  ;;  %v1613_v40 = vld [vmem:[%s3431_s1 + $0x140] sm:$0xf]  ;;  %v1477_v47 = vld [vmem:[%s3431_s1 + $0x30] sm:$0xf] }
   0xb   :  { %859 = vmatpush.bf16.msra.mxu3 %v1694_v25  ;;  %v2196_v41 = vld [vmem:[%s3431_s1 + $0x144] sm:$0xf0]  ;;  %v1677_v42 = vld [vmem:[%s3431_s1 + $0x1c0] sm:$0xf]  ;;  %v1550_v45 = vor.u32 %v2180_v39, %v1549_v37  ;;  %v2162_v48 = vld [vmem:[%s3431_s1 + $0x34] sm:$0xf0] }
   0xc   :  { %v2212_v43 = vld [vmem:[%s3431_s1 + $0x1c4] sm:$0xf0]  ;;  %821 = vmatpush.bf16.msra.mxu0 %v1494_v29  ;;  %v1614_v46 = vor.u32 %v2196_v41, %v1613_v40  ;;  %v1541_v49 = vld [vmem:[%s3431_s1 + $0xb0] sm:$0xf]  ;;  %v2178_v51 = vld [vmem:[%s3431_s1 + $0xb4] sm:$0xf0]  ;;  %v1478_v56 = vor.u32 %v2162_v48, %v1477_v47 }
   0xd   :  { %834 = vmatpush.bf16.msra.mxu1 %v1558_v33  ;;  %v1678_v50 = vor.u32 %v2212_v43, %v1677_v42  ;;  %v1605_v52 = vld [vmem:[%s3431_s1 + $0x130] sm:$0xf]  ;;  %v2194_v53 = vld [vmem:[%s3431_s1 + $0x134] sm:$0xf0]  ;;  %v1542_v57 = vor.u32 %v2178_v51, %v1541_v49  ;;  %v1469_v59 = vld [vmem:[%s3431_s1 + $0x20] sm:$0xf] }
   0xe   :  { %847 = vmatpush.bf16.msra.mxu2 %v1622_v34  ;;  %v1669_v54 = vld [vmem:[%s3431_s1 + $0x1b0] sm:$0xf]  ;;  %v2210_v55 = vld [vmem:[%s3431_s1 + $0x1b4] sm:$0xf0]  ;;  %v1606_v58 = vor.u32 %v2194_v53, %v1605_v52  ;;  %v2160_v60 = vld [vmem:[%s3431_s1 + $0x24] sm:$0xf0] }
   0xf   :  { %860 = vmatpush.bf16.msra.mxu3 %v1686_v38  ;;  %v1533_v61 = vld [vmem:[%s3431_s1 + $0xa0] sm:$0xf]  ;;  %v1670_v62 = vor.u32 %v2210_v55, %v1669_v54  ;;  %v2176_v63 = vld [vmem:[%s3431_s1 + $0xa4] sm:$0xf0]  ;;  %v1470_v4 = vor.u32 %v2160_v60, %v1469_v59  ;;  %v1461_v7 = vld [vmem:[%s3431_s1 + $0x10] sm:$0xf] }
  0x10   :  { %822 = vmatpush.bf16.msra.mxu0 %v1486_v44  ;;  %v1597_v0 = vld [vmem:[%s3431_s1 + $0x120] sm:$0xf]  ;;  %v2192_v1 = vld [vmem:[%s3431_s1 + $0x124] sm:$0xf0]  ;;  %v1534_v5 = vor.u32 %v2176_v63, %v1533_v61  ;;  %v2158_v8 = vld [vmem:[%s3431_s1 + $0x14] sm:$0xf0] }
  0x11   :  { %835 = vmatpush.bf16.msra.mxu1 %v1550_v45  ;;  %v1661_v2 = vld [vmem:[%s3431_s1 + $0x1a0] sm:$0xf]  ;;  %v2208_v3 = vld [vmem:[%s3431_s1 + $0x1a4] sm:$0xf0]  ;;  %v1598_v6 = vor.u32 %v2192_v1, %v1597_v0  ;;  %v1525_v9 = vld [vmem:[%s3431_s1 + $0x90] sm:$0xf]  ;;  %v1462_v16 = vor.u32 %v2158_v8, %v1461_v7 }
  0x12   :  { %848 = vmatpush.bf16.msra.mxu2 %v1614_v46  ;;  %v1662_v10 = vor.u32 %v2208_v3, %v1661_v2  ;;  %v2174_v11 = vld [vmem:[%s3431_s1 + $0x94] sm:$0xf0]  ;;  %v1589_v12 = vld [vmem:[%s3431_s1 + $0x110] sm:$0xf]  ;;  %v1453_v17 = vld [vmem:[%s3431_s1] sm:$0xf] }
  0x13   :  { %861 = vmatpush.bf16.msra.mxu3 %v1678_v50  ;;  %v2190_v13 = vld [vmem:[%s3431_s1 + $0x114] sm:$0xf0]  ;;  %v1653_v14 = vld [vmem:[%s3431_s1 + $0x190] sm:$0xf]  ;;  %v2156_v18 = vld [vmem:[%s3431_s1 + $0x4] sm:$0xf0]  ;;  %v1526_v19 = vor.u32 %v2174_v11, %v1525_v9 }
  0x14   :  { %823 = vmatpush.bf16.msra.mxu0 %v1478_v56  ;;  %v2206_v15 = vld [vmem:[%s3431_s1 + $0x194] sm:$0xf0]  ;;  %v1590_v20 = vor.u32 %v2190_v13, %v1589_v12  ;;  %v1517_v21 = vld [vmem:[%s3431_s1 + $0x80] sm:$0xf]  ;;  %v2172_v22 = vld [vmem:[%s3431_s1 + $0x84] sm:$0xf0]  ;;  %v1454_v31 = vor.u32 %v2156_v18, %v1453_v17 }
  0x15   :  { %836 = vmatpush.bf16.msra.mxu1 %v1542_v57  ;;  %v1581_v23 = vld [vmem:[%s3431_s1 + $0x100] sm:$0xf]  ;;  %v1654_v24 = vor.u32 %v2206_v15, %v1653_v14  ;;  %v2188_v25 = vld [vmem:[%s3431_s1 + $0x104] sm:$0xf0]  ;;  %v1765_v28 = vld [vmem:[%s3431_s1 + $0x270] sm:$0xf]  ;;  %v1518_v35 = vor.u32 %v2172_v22, %v1517_v21 }
  0x16   :  { %849 = vmatpush.bf16.msra.mxu2 %v1606_v58  ;;  %v1645_v26 = vld [vmem:[%s3431_s1 + $0x180] sm:$0xf]  ;;  %v2204_v27 = vld [vmem:[%s3431_s1 + $0x184] sm:$0xf0]  ;;  %v2234_v29 = vld [vmem:[%s3431_s1 + $0x274] sm:$0xf0]  ;;  %v1582_v36 = vor.u32 %v2188_v25, %v1581_v23 }
  0x17   :  { %862 = vmatpush.bf16.msra.mxu3 %v1670_v62  ;;  %v1829_v30 = vld [vmem:[%s3431_s1 + $0x2f0] sm:$0xf]  ;;  %v2250_v32 = vld [vmem:[%s3431_s1 + $0x2f4] sm:$0xf0]  ;;  %v1646_v39 = vor.u32 %v2204_v27, %v1645_v26  ;;  %v1766_v40 = vor.u32 %v2234_v29, %v1765_v28  ;;  %v1757_v43 = vld [vmem:[%s3431_s1 + $0x260] sm:$0xf] }
  0x18   :  { %824 = vmatpush.bf16.msra.mxu0 %v1470_v4  ;;  %v1893_v33 = vld [vmem:[%s3431_s1 + $0x370] sm:$0xf]  ;;  %v2266_v34 = vld [vmem:[%s3431_s1 + $0x374] sm:$0xf0]  ;;  %v1830_v41 = vor.u32 %v2250_v32, %v1829_v30  ;;  %v2232_v44 = vld [vmem:[%s3431_s1 + $0x264] sm:$0xf0] }
  0x19   :  { %837 = vmatpush.bf16.msra.mxu1 %v1534_v5  ;;  %v1957_v37 = vld [vmem:[%s3431_s1 + $0x3f0] sm:$0xf]  ;;  %v2282_v38 = vld [vmem:[%s3431_s1 + $0x3f4] sm:$0xf0]  ;;  %v1894_v42 = vor.u32 %v2266_v34, %v1893_v33  ;;  %v1821_v45 = vld [vmem:[%s3431_s1 + $0x2e0] sm:$0xf]  ;;  %v1758_v53 = vor.u32 %v2232_v44, %v1757_v43 }
  0x1a   :  { %850 = vmatpush.bf16.msra.mxu2 %v1598_v6  ;;  %v1958_v46 = vor.u32 %v2282_v38, %v1957_v37  ;;  %v2248_v47 = vld [vmem:[%s3431_s1 + $0x2e4] sm:$0xf0]  ;;  %v1885_v48 = vld [vmem:[%s3431_s1 + $0x360] sm:$0xf]  ;;  %v1749_v56 = vld [vmem:[%s3431_s1 + $0x250] sm:$0xf] }
  0x1b   :  { %863 = vmatpush.bf16.msra.mxu3 %v1662_v10  ;;  %v2264_v49 = vld [vmem:[%s3431_s1 + $0x364] sm:$0xf0]  ;;  %v1949_v50 = vld [vmem:[%s3431_s1 + $0x3e0] sm:$0xf]  ;;  %v1822_v54 = vor.u32 %v2248_v47, %v1821_v45  ;;  %v2230_v57 = vld [vmem:[%s3431_s1 + $0x254] sm:$0xf0] }
  0x1c   :  { %825 = vmatpush.bf16.msra.mxu0 %v1462_v16  ;;  %v2280_v51 = vld [vmem:[%s3431_s1 + $0x3e4] sm:$0xf0]  ;;  %v26_v52 = vld [vmem:[%s3432_s0] sm:$0xff]  ;;  %v1886_v55 = vor.u32 %v2264_v49, %v1885_v48  ;;  %v1813_v58 = vld [vmem:[%s3431_s1 + $0x2d0] sm:$0xf]  ;;  %v1750_v1 = vor.u32 %v2230_v57, %v1749_v56 }
  0x1d   :  { %838 = vmatpush.bf16.msra.mxu1 %v1526_v19  ;;  %162 = vst [vmem:[#allocation1] ss:$9 sm:$0xff] %v26_v52  ;;  %v1950_v59 = vor.u32 %v2280_v51, %v1949_v50  ;;  %v2246_v60 = vld [vmem:[%s3431_s1 + $0x2d4] sm:$0xf0]  ;;  %v1877_v61 = vld [vmem:[%s3431_s1 + $0x350] sm:$0xf] }
  0x1e   :  { %851 = vmatpush.bf16.msra.mxu2 %v1590_v20  ;;  %v2262_v62 = vld [vmem:[%s3431_s1 + $0x354] sm:$0xf0]  ;;  %v1941_v63 = vld [vmem:[%s3431_s1 + $0x3d0] sm:$0xf]  ;;  %v1741_v2 = vld [vmem:[%s3431_s1 + $0x240] sm:$0xf]  ;;  %v1814_v3 = vor.u32 %v2246_v60, %v1813_v58 }
  0x1f   :  { %864 = vmatpush.bf16.msra.mxu3 %v1654_v24  ;;  %v2278_v0 = vld [vmem:[%s3431_s1 + $0x3d4] sm:$0xf0]  ;;  %v1878_v4 = vor.u32 %v2262_v62, %v1877_v61  ;;  %v2228_v5 = vld [vmem:[%s3431_s1 + $0x244] sm:$0xf0]  ;;  %v1805_v6 = vld [vmem:[%s3431_s1 + $0x2c0] sm:$0xf] }
  0x20   :  { %826 = vmatpush.bf16.msra.mxu0 %v1454_v31  ;;  %v2244_v7 = vld [vmem:[%s3431_s1 + $0x2c4] sm:$0xf0]  ;;  %v1942_v8 = vor.u32 %v2278_v0, %v1941_v63  ;;  %v1869_v9 = vld [vmem:[%s3431_s1 + $0x340] sm:$0xf]  ;;  %v1742_v15 = vor.u32 %v2228_v5, %v1741_v2  ;;  %v1733_v20 = vld [vmem:[%s3431_s1 + $0x230] sm:$0xf] }
  0x21   :  { %839 = vmatpush.bf16.msra.mxu1 %v1518_v35  ;;  %v2260_v10 = vld [vmem:[%s3431_s1 + $0x344] sm:$0xf0]  ;;  %v1933_v11 = vld [vmem:[%s3431_s1 + $0x3c0] sm:$0xf]  ;;  %v1806_v18 = vor.u32 %v2244_v7, %v1805_v6  ;;  %v2226_v21 = vld [vmem:[%s3431_s1 + $0x234] sm:$0xf0] }
  0x22   :  { %852 = vmatpush.bf16.msra.mxu2 %v1582_v36  ;;  %v2276_v12 = vld [vmem:[%s3431_s1 + $0x3c4] sm:$0xf0]  ;;  %v1870_v19 = vor.u32 %v2260_v10, %v1869_v9  ;;  %v1797_v22 = vld [vmem:[%s3431_s1 + $0x2b0] sm:$0xf]  ;;  %v2242_v24 = vld [vmem:[%s3431_s1 + $0x2b4] sm:$0xf0]  ;;  %v1734_v29 = vor.u32 %v2226_v21, %v1733_v20 }
  0x23   :  { %865 = vmatpush.bf16.msra.mxu3 %v1646_v39  ;;  %v1934_v23 = vor.u32 %v2276_v12, %v1933_v11  ;;  %v1861_v25 = vld [vmem:[%s3431_s1 + $0x330] sm:$0xf]  ;;  %v2258_v26 = vld [vmem:[%s3431_s1 + $0x334] sm:$0xf0]  ;;  %v1798_v30 = vor.u32 %v2242_v24, %v1797_v22  ;;  %v1725_v32 = vld [vmem:[%s3431_s1 + $0x220] sm:$0xf] }
  0x24   :  { %871 = vmatpush.bf16.msrb.mxu0 %v1766_v40  ;;  %v2663_v13 = vld [vmem:[#allocation1 + $0x12] sm:$0xff]  ;;  %v2665_v14 = vld [vmem:[#allocation1] sm:$0xff]  ;;  %v2670_v17 = vld [vmem:[#allocation1 + $0x9] sm:$0xff]  ;;  %v1862_v31 = vor.u32 %v2258_v26, %v1861_v25 }
  0x25   :  { %884 = vmatpush.bf16.msrb.mxu1 %v1830_v41  ;;  %853 = vmatmul.bf16.vlgmr.msra.gmra.mxu2 %v2663_v13  ;;  %v2668_v16 = vld [vmem:[#allocation1 + $0x1b] sm:$0xff]  ;;  %v1925_v27 = vld [vmem:[%s3431_s1 + $0x3b0] sm:$0xf]  ;;  %v2224_v33 = vld [vmem:[%s3431_s1 + $0x224] sm:$0xf0] }
  0x26   :  { %897 = vmatpush.bf16.msrb.mxu2 %v1894_v42  ;;  %827 = vmatmul.bf16.vlgmr.msra.gmra.mxu0 %v2665_v14  ;;  %v2274_v28 = vld [vmem:[%s3431_s1 + $0x3b4] sm:$0xf0]  ;;  %v1789_v34 = vld [vmem:[%s3431_s1 + $0x2a0] sm:$0xf]  ;;  %v2240_v36 = vld [vmem:[%s3431_s1 + $0x2a4] sm:$0xf0]  ;;  %v1726_v41 = vor.u32 %v2224_v33, %v1725_v32 }
  0x27   :  { %910 = vmatpush.bf16.msrb.mxu3 %v1958_v46  ;;  %840 = vmatmul.bf16.vlgmr.msra.gmra.mxu1 %v2670_v17  ;;  %v1926_v35 = vor.u32 %v2274_v28, %v1925_v27  ;;  %v1853_v37 = vld [vmem:[%s3431_s1 + $0x320] sm:$0xf]  ;;  %v2256_v38 = vld [vmem:[%s3431_s1 + $0x324] sm:$0xf0]  ;;  %v1790_v42 = vor.u32 %v2240_v36, %v1789_v34  ;;  %v1717_v44 = vld [vmem:[%s3431_s1 + $0x210] sm:$0xf] }
  0x28   :  { %872 = vmatpush.bf16.msrb.mxu0 %v1758_v53  ;;  %866 = vmatmul.bf16.vlgmr.msra.gmra.mxu3 %v2668_v16  ;;  %v1917_v39 = vld [vmem:[%s3431_s1 + $0x3a0] sm:$0xf]  ;;  %v2272_v40 = vld [vmem:[%s3431_s1 + $0x3a4] sm:$0xf0]  ;;  %v1854_v43 = vor.u32 %v2256_v38, %v1853_v37  ;;  %v2222_v45 = vld [vmem:[%s3431_s1 + $0x214] sm:$0xf0] }
  0x29   :  { %885 = vmatpush.bf16.msrb.mxu1 %v1822_v54  ;;  %v1781_v46 = vld [vmem:[%s3431_s1 + $0x290] sm:$0xf]  ;;  %v1918_v47 = vor.u32 %v2272_v40, %v1917_v39  ;;  %v2238_v48 = vld [vmem:[%s3431_s1 + $0x294] sm:$0xf0]  ;;  %v1718_v53 = vor.u32 %v2222_v45, %v1717_v44  ;;  %v1709_v54 = vld [vmem:[%s3431_s1 + $0x200] sm:$0xf] }
  0x2a   :  { %898 = vmatpush.bf16.msrb.mxu2 %v1886_v55  ;;  %v1845_v49 = vld [vmem:[%s3431_s1 + $0x310] sm:$0xf]  ;;  %v2254_v50 = vld [vmem:[%s3431_s1 + $0x314] sm:$0xf0]  ;;  %v2220_v55 = vld [vmem:[%s3431_s1 + $0x204] sm:$0xf0]  ;;  %v1782_v56 = vor.u32 %v2238_v48, %v1781_v46 }
  0x2b   :  { %911 = vmatpush.bf16.msrb.mxu3 %v1950_v59  ;;  %v1909_v51 = vld [vmem:[%s3431_s1 + $0x390] sm:$0xf]  ;;  %v2270_v52 = vld [vmem:[%s3431_s1 + $0x394] sm:$0xf0]  ;;  %v1846_v57 = vor.u32 %v2254_v50, %v1845_v49  ;;  %v1773_v58 = vld [vmem:[%s3431_s1 + $0x280] sm:$0xf] }
  0x2c   :  { %873 = vmatpush.bf16.msrb.mxu0 %v1750_v1  ;;  %v2236_v59 = vld [vmem:[%s3431_s1 + $0x284] sm:$0xf0]  ;;  %v1837_v60 = vld [vmem:[%s3431_s1 + $0x300] sm:$0xf]  ;;  %v1910_v61 = vor.u32 %v2270_v52, %v1909_v51  ;;  %v2169_v1 = vld [vmem:[%s3431_s1 + $0x74] sm:$0xf] }
  0x2d   :  { %886 = vmatpush.bf16.msrb.mxu1 %v1814_v3  ;;  %v2252_v62 = vld [vmem:[%s3431_s1 + $0x304] sm:$0xf0]  ;;  %v1901_v63 = vld [vmem:[%s3431_s1 + $0x380] sm:$0xf]  ;;  %v1511_v2 = vld [vmem:[%s3431_s1 + $0x78] sm:$0xf0] }
  0x2e   :  { %899 = vmatpush.bf16.msrb.mxu2 %v1878_v4  ;;  %v2268_v0 = vld [vmem:[%s3431_s1 + $0x384] sm:$0xf0]  ;;  %v2185_v3 = vld [vmem:[%s3431_s1 + $0xf4] sm:$0xf]  ;;  %v1710_v4 = vor.u32 %v2220_v55, %v1709_v54  ;;  %v1575_v5 = vld [vmem:[%s3431_s1 + $0xf8] sm:$0xf0]  ;;  %v1838_v9 = vor.u32 %v2252_v62, %v1837_v60 }
  0x2f   :  { %912 = vmatpush.bf16.msrb.mxu3 %v1942_v8  ;;  %v2201_v6 = vld [vmem:[%s3431_s1 + $0x174] sm:$0xf]  ;;  %v1639_v7 = vld [vmem:[%s3431_s1 + $0x178] sm:$0xf0]  ;;  %v1774_v8 = vor.u32 %v2236_v59, %v1773_v58  ;;  %v1902_v12 = vor.u32 %v2268_v0, %v1901_v63  ;;  %v2167_v20 = vld [vmem:[%s3431_s1 + $0x64] sm:$0xf] }
  0x30   :  { %874 = vmatpush.bf16.msrb.mxu0 %v1742_v15  ;;  %v2217_v10 = vld [vmem:[%s3431_s1 + $0x1f4] sm:$0xf]  ;;  %v1703_v11 = vld [vmem:[%s3431_s1 + $0x1f8] sm:$0xf0]  ;;  %v1514_v15 = vor.u32 %v2169_v1, %v1511_v2  ;;  %v1503_v21 = vld [vmem:[%s3431_s1 + $0x68] sm:$0xf0] }
  0x31   :  { %887 = vmatpush.bf16.msrb.mxu1 %v1806_v18  ;;  %v1578_v18 = vor.u32 %v2185_v3, %v1575_v5  ;;  %v2183_v22 = vld [vmem:[%s3431_s1 + $0xe4] sm:$0xf]  ;;  %v1567_v24 = vld [vmem:[%s3431_s1 + $0xe8] sm:$0xf0]  ;;  %v2813_v27 = vld [vmem:[#allocation1 + $0x36] sm:$0xff]  ;;  %v1506_v32 = vor.u32 %v2167_v20, %v1503_v21 }
  0x32   :  { %900 = vmatpush.bf16.msrb.mxu2 %v1870_v19  ;;  %v1642_v19 = vor.u32 %v2201_v6, %v1639_v7  ;;  %v2199_v25 = vld [vmem:[%s3431_s1 + $0x164] sm:$0xf]  ;;  %v1631_v26 = vld [vmem:[%s3431_s1 + $0x168] sm:$0xf0]  ;;  %v1570_v34 = vor.u32 %v2183_v22, %v1567_v24  ;;  %v2165_v36 = vld [vmem:[%s3431_s1 + $0x54] sm:$0xf] }
  0x33   :  { %913 = vmatpush.bf16.msrb.mxu3 %v1934_v23  ;;  %v1706_v23 = vor.u32 %v2217_v10, %v1703_v11  ;;  %v2215_v28 = vld [vmem:[%s3431_s1 + $0x1e4] sm:$0xf]  ;;  %v2825_v33 = vld [vmem:[#allocation1 + $0x2d] sm:$0xff]  ;;  %v1495_v37 = vld [vmem:[%s3431_s1 + $0x58] sm:$0xf0] }
  0x34   :  { %875 = vmatpush.bf16.msrb.mxu0 %v1734_v29  ;;  %v1695_v29 = vld [vmem:[%s3431_s1 + $0x1e8] sm:$0xf0]  ;;  %v2181_v38 = vld [vmem:[%s3431_s1 + $0xd4] sm:$0xf]  ;;  %v1559_v40 = vld [vmem:[%s3431_s1 + $0xd8] sm:$0xf0]  ;;  %v1498_v45 = vor.u32 %v2165_v36, %v1495_v37 }
  0x35   :  { %888 = vmatpush.bf16.msrb.mxu1 %v1798_v30  ;;  %v2821_v30 = vld [vmem:[#allocation1 + $0x24] sm:$0xff]  ;;  %v1698_v39 = vor.u32 %v2215_v28, %v1695_v29  ;;  %v1687_v44 = vld [vmem:[%s3431_s1 + $0x1d8] sm:$0xf0]  ;;  %v1562_v46 = vor.u32 %v2181_v38, %v1559_v40  ;;  %v1487_v49 = vld [vmem:[%s3431_s1 + $0x48] sm:$0xf0] }
  0x36   :  { %901 = vmatpush.bf16.msrb.mxu2 %v1862_v31  ;;  %v2823_v31 = vld [vmem:[#allocation1 + $0x3f] sm:$0xff]  ;;  %v1551_v52 = vld [vmem:[%s3431_s1 + $0xc8] sm:$0xf0]  ;;  %v2161_v60 = vld [vmem:[%s3431_s1 + $0x34] sm:$0xf] }
  0x37   :  { %914 = vmatpush.bf16.msrb.mxu3 %v1926_v35  ;;  %v1634_v35 = vor.u32 %v2199_v25, %v1631_v26  ;;  %v2163_v48 = vld [vmem:[%s3431_s1 + $0x44] sm:$0xf]  ;;  %v1615_v54 = vld [vmem:[%s3431_s1 + $0x148] sm:$0xf0]  ;;  %v2177_v62 = vld [vmem:[%s3431_s1 + $0xb4] sm:$0xf] }
  0x38   :  { %876 = vmatpush.bf16.msrb.mxu0 %v1726_v41  ;;  %v2197_v41 = vld [vmem:[%s3431_s1 + $0x154] sm:$0xf]  ;;  %v2179_v50 = vld [vmem:[%s3431_s1 + $0xc4] sm:$0xf]  ;;  %v1543_v0 = vld [vmem:[%s3431_s1 + $0xb8] sm:$0xf0] }
  0x39   :  { %889 = vmatpush.bf16.msrb.mxu1 %v1790_v42  ;;  %v1623_v42 = vld [vmem:[%s3431_s1 + $0x158] sm:$0xf0]  ;;  %v2211_v55 = vld [vmem:[%s3431_s1 + $0x1c4] sm:$0xf]  ;;  %v1554_v58 = vor.u32 %v2179_v50, %v1551_v52  ;;  %v2193_v1 = vld [vmem:[%s3431_s1 + $0x134] sm:$0xf]  ;;  %v1546_v6 = vor.u32 %v2177_v62, %v1543_v0 }
  0x3a   :  { %902 = vmatpush.bf16.msrb.mxu2 %v1854_v43  ;;  %v2213_v43 = vld [vmem:[%s3431_s1 + $0x1d4] sm:$0xf]  ;;  %v1607_v2 = vld [vmem:[%s3431_s1 + $0x138] sm:$0xf0]  ;;  %v2175_v10 = vld [vmem:[%s3431_s1 + $0xa4] sm:$0xf] }
  0x3b   :  { %915 = vmatpush.bf16.msrb.mxu3 %v1918_v47  ;;  %v1626_v47 = vor.u32 %v2197_v41, %v1623_v42  ;;  %v1690_v51 = vor.u32 %v2213_v43, %v1687_v44  ;;  %v2209_v3 = vld [vmem:[%s3431_s1 + $0x1b4] sm:$0xf]  ;;  %v1610_v7 = vor.u32 %v2193_v1, %v1607_v2  ;;  %v1663_v20 = vld [vmem:[%s3431_s1 + $0x1a8] sm:$0xf0]  ;;  %v1463_v25 = vld [vmem:[%s3431_s1 + $0x18] sm:$0xf0] }
  0x3c   :  { %877 = vmatpush.bf16.msrb.mxu0 %v1718_v53  ;;  %v2195_v53 = vld [vmem:[%s3431_s1 + $0x144] sm:$0xf]  ;;  %v2157_v24 = vld [vmem:[%s3431_s1 + $0x14] sm:$0xf]  ;;  %v1527_v29 = vld [vmem:[%s3431_s1 + $0x98] sm:$0xf0] }
  0x3d   :  { %890 = vmatpush.bf16.msrb.mxu1 %v1782_v56  ;;  %v1679_v56 = vld [vmem:[%s3431_s1 + $0x1c8] sm:$0xf0]  ;;  %v1618_v59 = vor.u32 %v2195_v53, %v1615_v54  ;;  %v2173_v26 = vld [vmem:[%s3431_s1 + $0x94] sm:$0xf]  ;;  %v1655_v36 = vld [vmem:[%s3431_s1 + $0x198] sm:$0xf0]  ;;  %v1466_v37 = vor.u32 %v2157_v24, %v1463_v25 }
  0x3e   :  { %903 = vmatpush.bf16.msrb.mxu2 %v1846_v57  ;;  %v1490_v57 = vor.u32 %v2163_v48, %v1487_v49  ;;  %v1682_v63 = vor.u32 %v2211_v55, %v1679_v56  ;;  %v2155_v38 = vld [vmem:[%s3431_s1 + $0x4] sm:$0xf]  ;;  %v1530_v40 = vor.u32 %v2173_v26, %v1527_v29  ;;  %v1519_v43 = vld [vmem:[%s3431_s1 + $0x88] sm:$0xf0]  ;;  %v2233_v49 = vld [vmem:[%s3431_s1 + $0x274] sm:$0xf] }
  0x3f   :  { %916 = vmatpush.bf16.msrb.mxu3 %v1910_v61  ;;  %v1479_v61 = vld [vmem:[%s3431_s1 + $0x38] sm:$0xf0]  ;;  %v2171_v42 = vld [vmem:[%s3431_s1 + $0x84] sm:$0xf]  ;;  %v1647_v48 = vld [vmem:[%s3431_s1 + $0x188] sm:$0xf0] }
  0x40   :  { %878 = vmatpush.bf16.msrb.mxu0 %v1710_v4  ;;  %v1671_v4 = vld [vmem:[%s3431_s1 + $0x1b8] sm:$0xf0]  ;;  %v1482_v5 = vor.u32 %v2161_v60, %v1479_v61  ;;  %v2187_v44 = vld [vmem:[%s3431_s1 + $0x104] sm:$0xf]  ;;  %v2265_v54 = vld [vmem:[%s3431_s1 + $0x374] sm:$0xf]  ;;  %v1522_v56 = vor.u32 %v2171_v42, %v1519_v43 }
  0x41   :  { %891 = vmatpush.bf16.msrb.mxu1 %v1774_v8  ;;  %v2159_v8 = vld [vmem:[%s3431_s1 + $0x24] sm:$0xf]  ;;  %v1674_v11 = vor.u32 %v2209_v3, %v1671_v4  ;;  %v1767_v50 = vld [vmem:[%s3431_s1 + $0x278] sm:$0xf0]  ;;  %v1759_v1 = vld [vmem:[%s3431_s1 + $0x268] sm:$0xf0] }
  0x42   :  { %904 = vmatpush.bf16.msrb.mxu2 %v1838_v9  ;;  %v1471_v9 = vld [vmem:[%s3431_s1 + $0x28] sm:$0xf0]  ;;  %v1831_v53 = vld [vmem:[%s3431_s1 + $0x2f8] sm:$0xf0]  ;;  %v1770_v61 = vor.u32 %v2233_v49, %v1767_v50  ;;  %v2231_v0 = vld [vmem:[%s3431_s1 + $0x264] sm:$0xf] }
  0x43   :  { %917 = vmatpush.bf16.msrb.mxu3 %v1902_v12  ;;  %879 = vmatmul.bf16.vlgmr.msrb.gmra.mxu0 %v2821_v30  ;;  %v1535_v12 = vld [vmem:[%s3431_s1 + $0xa8] sm:$0xf0]  ;;  %v1474_v21 = vor.u32 %v2159_v8, %v1471_v9  ;;  %v1895_v55 = vld [vmem:[%s3431_s1 + $0x378] sm:$0xf0]  ;;  %v2247_v2 = vld [vmem:[%s3431_s1 + $0x2e4] sm:$0xf]  ;;  %v1762_v9 = vor.u32 %v2231_v0, %v1759_v1 }
  0x44   :  { %923 = vmatpush.bf16.msra.mxu0 %v1514_v15  ;;  %892 = vmatmul.bf16.vlgmr.msrb.gmra.mxu1 %v2825_v33  ;;  %v2191_v15 = vld [vmem:[%s3431_s1 + $0x124] sm:$0xf]  ;;  %v1538_v22 = vor.u32 %v2175_v10, %v1535_v12  ;;  %v1823_v4 = vld [vmem:[%s3431_s1 + $0x2e8] sm:$0xf0]  ;;  %v2229_v12 = vld [vmem:[%s3431_s1 + $0x254] sm:$0xf] }
  0x45   :  { %936 = vmatpush.bf16.msra.mxu1 %v1578_v18  ;;  %905 = vmatmul.bf16.vlgmr.msrb.gmra.mxu2 %v2813_v27  ;;  %v1599_v18 = vld [vmem:[%s3431_s1 + $0x128] sm:$0xf0]  ;;  %v1826_v10 = vor.u32 %v2247_v2, %v1823_v4  ;;  %v2241_v42 = vld [vmem:[%s3431_s1 + $0x2b4] sm:$0xf]  ;;  %v1719_v1 = vld [vmem:[%s3431_s1 + $0x218] sm:$0xf0] }
  0x46   :  { %949 = vmatpush.bf16.msra.mxu2 %v1642_v19  ;;  %918 = vmatmul.bf16.vlgmr.msrb.gmra.mxu3 %v2823_v31  ;;  %v2207_v19 = vld [vmem:[%s3431_s1 + $0x1a4] sm:$0xf]  ;;  %v1951_v8 = vld [vmem:[%s3431_s1 + $0x3e8] sm:$0xf0]  ;;  %v2221_v0 = vld [vmem:[%s3431_s1 + $0x214] sm:$0xf] }
  0x47   :  { %962 = vmatpush.bf16.msra.mxu3 %v1706_v23  ;;  %v1602_v23 = vor.u32 %v2191_v15, %v1599_v18  ;;  %v1666_v28 = vor.u32 %v2207_v19, %v1663_v20  ;;  %v1751_v15 = vld [vmem:[%s3431_s1 + $0x258] sm:$0xf0]  ;;  %v2245_v18 = vld [vmem:[%s3431_s1 + $0x2d4] sm:$0xf]  ;;  %v1743_v29 = vld [vmem:[%s3431_s1 + $0x248] sm:$0xf0] }
  0x48   :  { %924 = vmatpush.bf16.msra.mxu0 %v1506_v32  ;;  %v2189_v32 = vld [vmem:[%s3431_s1 + $0x114] sm:$0xf]  ;;  %v1815_v20 = vld [vmem:[%s3431_s1 + $0x2d8] sm:$0xf0]  ;;  %v1754_v24 = vor.u32 %v2229_v12, %v1751_v15  ;;  %v1711_v15 = vld [vmem:[%s3431_s1 + $0x208] sm:$0xf0] }
  0x49   :  { %937 = vmatpush.bf16.msra.mxu1 %v1570_v34  ;;  %v1591_v34 = vld [vmem:[%s3431_s1 + $0x118] sm:$0xf0]  ;;  %v1818_v25 = vor.u32 %v2245_v18, %v1815_v20  ;;  %v2237_v2 = vld [vmem:[%s3431_s1 + $0x294] sm:$0xf]  ;;  %v2235_v18 = vld [vmem:[%s3431_s1 + $0x284] sm:$0xf] }
  0x4a   :  { %950 = vmatpush.bf16.msra.mxu2 %v1634_v35  ;;  %v2205_v35 = vld [vmem:[%s3431_s1 + $0x194] sm:$0xf]  ;;  %v1594_v41 = vor.u32 %v2189_v32, %v1591_v34  ;;  %v2259_v32 = vld [vmem:[%s3431_s1 + $0x344] sm:$0xf]  ;;  %v1871_v34 = vld [vmem:[%s3431_s1 + $0x348] sm:$0xf0] }
  0x4b   :  { %963 = vmatpush.bf16.msra.mxu3 %v1698_v39  ;;  %v1455_v39 = vld [vmem:[%s3431_s1 + $0x8] sm:$0xf0]  ;;  %v1783_v4 = vld [vmem:[%s3431_s1 + $0x298] sm:$0xf0] }
  0x4c   :  { %925 = vmatpush.bf16.msra.mxu0 %v1498_v45  ;;  %v1658_v45 = vor.u32 %v2205_v35, %v1655_v36  ;;  %v1458_v52 = vor.u32 %v2155_v38, %v1455_v39  ;;  %v2275_v35 = vld [vmem:[%s3431_s1 + $0x3c4] sm:$0xf]  ;;  %v1935_v36 = vld [vmem:[%s3431_s1 + $0x3c8] sm:$0xf0]  ;;  %v1874_v39 = vor.u32 %v2259_v32, %v1871_v34 }
  0x4d   :  { %938 = vmatpush.bf16.msra.mxu1 %v1562_v46  ;;  %v1583_v46 = vld [vmem:[%s3431_s1 + $0x108] sm:$0xf0]  ;;  %v1938_v43 = vor.u32 %v2275_v35, %v1935_v36  ;;  %v2013_v35 = vld [vmem:[%s3433_s3 + $0x60] sm:$0xf]  ;;  %v2296_v36 = vld [vmem:[%s3433_s3 + $0x64] sm:$0xf0] }
  0x4e   :  { %951 = vmatpush.bf16.msra.mxu2 %v1626_v47  ;;  %v2203_v47 = vld [vmem:[%s3431_s1 + $0x184] sm:$0xf] }
  0x4f   :  { %964 = vmatpush.bf16.msra.mxu3 %v1690_v51  ;;  %v2249_v51 = vld [vmem:[%s3431_s1 + $0x2f4] sm:$0xf]  ;;  %v1650_v60 = vor.u32 %v2203_v47, %v1647_v48  ;;  %v1927_v48 = vld [vmem:[%s3431_s1 + $0x3b8] sm:$0xf0] }
  0x50   :  { %926 = vmatpush.bf16.msra.mxu0 %v1490_v57  ;;  %v1586_v57 = vor.u32 %v2187_v44, %v1583_v46  ;;  %v1834_v62 = vor.u32 %v2249_v51, %v1831_v53  ;;  %v1799_v44 = vld [vmem:[%s3431_s1 + $0x2b8] sm:$0xf0]  ;;  %v2273_v47 = vld [vmem:[%s3431_s1 + $0x3b4] sm:$0xf]  ;;  %v1727_v53 = vld [vmem:[%s3431_s1 + $0x228] sm:$0xf0] }
  0x51   :  { %939 = vmatpush.bf16.msra.mxu1 %v1554_v58  ;;  %v2281_v58 = vld [vmem:[%s3431_s1 + $0x3f4] sm:$0xf]  ;;  %v1863_v46 = vld [vmem:[%s3431_s1 + $0x338] sm:$0xf0]  ;;  %v1802_v50 = vor.u32 %v2241_v42, %v1799_v44  ;;  %v1997_v42 = vld [vmem:[%s3433_s3 + $0x40] sm:$0xf] }
  0x52   :  { %952 = vmatpush.bf16.msra.mxu2 %v1618_v59  ;;  %v1959_v59 = vld [vmem:[%s3431_s1 + $0x3f8] sm:$0xf0] }
  0x53   :  { %965 = vmatpush.bf16.msra.mxu3 %v1682_v63  ;;  %v1898_v63 = vor.u32 %v2265_v54, %v1895_v55  ;;  %v1962_v3 = vor.u32 %v2281_v58, %v1959_v59  ;;  %v2239_v54 = vld [vmem:[%s3431_s1 + $0x2a4] sm:$0xf]  ;;  %v1930_v55 = vor.u32 %v2273_v47, %v1927_v48  ;;  %v1855_v58 = vld [vmem:[%s3431_s1 + $0x328] sm:$0xf0] }
  0x54   :  { %927 = vmatpush.bf16.msra.mxu0 %v1482_v5  ;;  %v2263_v5 = vld [vmem:[%s3431_s1 + $0x364] sm:$0xf] }
  0x55   :  { %940 = vmatpush.bf16.msra.mxu1 %v1546_v6  ;;  %v1887_v6 = vld [vmem:[%s3431_s1 + $0x368] sm:$0xf0]  ;;  %v2271_v59 = vld [vmem:[%s3431_s1 + $0x3a4] sm:$0xf] }
  0x56   :  { %953 = vmatpush.bf16.msra.mxu2 %v1610_v7  ;;  %v2279_v7 = vld [vmem:[%s3431_s1 + $0x3e4] sm:$0xf] }
  0x57   :  { %966 = vmatpush.bf16.msra.mxu3 %v1674_v11  ;;  %v1890_v11 = vor.u32 %v2263_v5, %v1887_v6  ;;  %v1954_v19 = vor.u32 %v2279_v7, %v1951_v8  ;;  %v2253_v5 = vld [vmem:[%s3431_s1 + $0x314] sm:$0xf]  ;;  %v1847_v6 = vld [vmem:[%s3431_s1 + $0x318] sm:$0xf0] }
  0x58   :  { %928 = vmatpush.bf16.msra.mxu0 %v1474_v21  ;;  %v2261_v21 = vld [vmem:[%s3431_s1 + $0x354] sm:$0xf]  ;;  %v1911_v8 = vld [vmem:[%s3431_s1 + $0x398] sm:$0xf0]  ;;  %v1850_v12 = vor.u32 %v2253_v5, %v1847_v6  ;;  %v1965_v6 = vld [vmem:[%s3433_s3] sm:$0xf] }
  0x59   :  { %941 = vmatpush.bf16.msra.mxu1 %v1538_v22  ;;  %v1879_v22 = vld [vmem:[%s3431_s1 + $0x358] sm:$0xf0]  ;;  %v2269_v7 = vld [vmem:[%s3431_s1 + $0x394] sm:$0xf] }
  0x5a   :  { %954 = vmatpush.bf16.msra.mxu2 %v1602_v23  ;;  %v2277_v23 = vld [vmem:[%s3431_s1 + $0x3d4] sm:$0xf]  ;;  %v1882_v26 = vor.u32 %v2261_v21, %v1879_v22  ;;  %v1914_v20 = vor.u32 %v2269_v7, %v1911_v8  ;;  %v2251_v21 = vld [vmem:[%s3431_s1 + $0x304] sm:$0xf]  ;;  %v1839_v22 = vld [vmem:[%s3431_s1 + $0x308] sm:$0xf0] }
  0x5b   :  { %967 = vmatpush.bf16.msra.mxu3 %v1666_v28  ;;  %v2227_v28 = vld [vmem:[%s3431_s1 + $0x244] sm:$0xf]  ;;  %v2284_v7 = vld [vmem:[%s3433_s3 + $0x4] sm:$0xf0] }
  0x5c   :  { %929 = vmatpush.bf16.msra.mxu0 %v1466_v37  ;;  %v1746_v37 = vor.u32 %v2227_v28, %v1743_v29  ;;  %v2297_v28 = vld [vmem:[%s3433_s3 + $0x74] sm:$0xf]  ;;  %v2023_v29 = vld [vmem:[%s3433_s3 + $0x78] sm:$0xf0]  ;;  %v2283_v8 = vld [vmem:[%s3433_s3 + $0x4] sm:$0xf] }
  0x5d   :  { %942 = vmatpush.bf16.msra.mxu1 %v1530_v40  ;;  %v2225_v40 = vld [vmem:[%s3431_s1 + $0x234] sm:$0xf]  ;;  %v2026_v34 = vor.u32 %v2297_v28, %v2023_v29 }
  0x5e   :  { %955 = vmatpush.bf16.msra.mxu2 %v1594_v41  ;;  %v1735_v41 = vld [vmem:[%s3431_s1 + $0x238] sm:$0xf0] }
  0x5f   :  { %968 = vmatpush.bf16.msra.mxu3 %v1658_v45  ;;  %v2257_v45 = vld [vmem:[%s3431_s1 + $0x334] sm:$0xf]  ;;  %v1738_v49 = vor.u32 %v2225_v40, %v1735_v41  ;;  %v2007_v41 = vld [vmem:[%s3433_s3 + $0x58] sm:$0xf0] }
  0x60   :  { %930 = vmatpush.bf16.msra.mxu0 %v1458_v52  ;;  %v1866_v51 = vor.u32 %v2257_v45, %v1863_v46  ;;  %v2223_v52 = vld [vmem:[%s3431_s1 + $0x224] sm:$0xf]  ;;  %v1999_v46 = vld [vmem:[%s3433_s3 + $0x48] sm:$0xf0] }
  0x61   :  { %943 = vmatpush.bf16.msra.mxu1 %v1522_v56  ;;  %v1791_v56 = vld [vmem:[%s3431_s1 + $0x2a8] sm:$0xf0]  ;;  %v2291_v45 = vld [vmem:[%s3433_s3 + $0x44] sm:$0xf] }
  0x62   :  { %956 = vmatpush.bf16.msra.mxu2 %v1586_v57  ;;  %v2255_v57 = vld [vmem:[%s3431_s1 + $0x324] sm:$0xf]  ;;  %v2002_v48 = vor.u32 %v2291_v45, %v1999_v46 }
  0x63   :  { %969 = vmatpush.bf16.msra.mxu3 %v1650_v60  ;;  %931 = vmatmul.bf16.vlgmr.msra.gmra.mxu0 %v2665_v14  ;;  %v2243_v14 = vld [vmem:[%s3431_s1 + $0x2c4] sm:$0xf]  ;;  %v1919_v60 = vld [vmem:[%s3431_s1 + $0x3a8] sm:$0xf0] }
  0x64   :  { %975 = vmatpush.bf16.msrb.mxu0 %v1770_v61  ;;  %944 = vmatmul.bf16.vlgmr.msra.gmra.mxu1 %v2670_v17  ;;  %v1807_v17 = vld [vmem:[%s3431_s1 + $0x2c8] sm:$0xf0]  ;;  %v1730_v61 = vor.u32 %v2223_v52, %v1727_v53  ;;  %v1991_v53 = vld [vmem:[%s3433_s3 + $0x38] sm:$0xf0] }
  0x65   :  { %988 = vmatpush.bf16.msrb.mxu1 %v1834_v62  ;;  %957 = vmatmul.bf16.vlgmr.msra.gmra.mxu2 %v2663_v13  ;;  %v1943_v13 = vld [vmem:[%s3431_s1 + $0x3d8] sm:$0xf0]  ;;  %v1810_v38 = vor.u32 %v2243_v14, %v1807_v17  ;;  %v1794_v62 = vor.u32 %v2239_v54, %v1791_v56  ;;  %v2288_v56 = vld [vmem:[%s3433_s3 + $0x24] sm:$0xf0] }
  0x66   :  { %1001 = vmatpush.bf16.msrb.mxu2 %v1898_v63  ;;  %970 = vmatmul.bf16.vlgmr.msra.gmra.mxu3 %v2668_v16  ;;  %v1946_v16 = vor.u32 %v2277_v23, %v1943_v13  ;;  %v1858_v63 = vor.u32 %v2255_v57, %v1855_v58  ;;  %v2267_v23 = vld [vmem:[%s3431_s1 + $0x384] sm:$0xf]  ;;  %v1903_v13 = vld [vmem:[%s3431_s1 + $0x388] sm:$0xf0] }
  0x67   :  { %1014 = vmatpush.bf16.msrb.mxu3 %v1962_v3  ;;  %v1922_v3 = vor.u32 %v2271_v59, %v1919_v60  ;;  %v1906_v17 = vor.u32 %v2267_v23, %v1903_v13  ;;  %v2287_v57 = vld [vmem:[%s3433_s3 + $0x24] sm:$0xf]  ;;  %v1983_v59 = vld [vmem:[%s3433_s3 + $0x28] sm:$0xf0] }
  0x68   :  { %976 = vmatpush.bf16.msrb.mxu0 %v1762_v9  ;;  %v1722_v9 = vor.u32 %v2221_v0, %v1719_v1  ;;  %v1986_v60 = vor.u32 %v2287_v57, %v1983_v59  ;;  %v1975_v1 = vld [vmem:[%s3433_s3 + $0x18] sm:$0xf0]  ;;  %v2307_v57 = vld [vmem:[%s3433_s3 + $0xc4] sm:$0xf] }
  0x69   :  { %989 = vmatpush.bf16.msrb.mxu1 %v1826_v10  ;;  %v2219_v10 = vld [vmem:[%s3431_s1 + $0x204] sm:$0xf] }
  0x6a   :  { %1002 = vmatpush.bf16.msrb.mxu2 %v1890_v11  ;;  %v1786_v11 = vor.u32 %v2237_v2, %v1783_v4  ;;  %v3262_v4 = vld [vmem:[%s3434_s2] sm:$0x3] }
  0x6b   :  { %1015 = vmatpush.bf16.msrb.mxu3 %v1954_v19  ;;  %v1775_v19 = vld [vmem:[%s3431_s1 + $0x288] sm:$0xf0] }
  0x6c   :  { %977 = vmatpush.bf16.msrb.mxu0 %v1754_v24  ;;  %v2021_v24 = vld [vmem:[%s3433_s3 + $0x70] sm:$0xf]  ;;  %v1778_v14 = vor.u32 %v2235_v18, %v1775_v19 }
  0x6d   :  { %990 = vmatpush.bf16.msrb.mxu1 %v1818_v25  ;;  %v2298_v25 = vld [vmem:[%s3433_s3 + $0x74] sm:$0xf0] }
  0x6e   :  { %1003 = vmatpush.bf16.msrb.mxu2 %v1882_v26  ;;  %v1714_v26 = vor.u32 %v2219_v10, %v1711_v15  ;;  %v2022_v32 = vor.u32 %v2298_v25, %v2021_v24  ;;  %v1967_v10 = vld [vmem:[%s3433_s3 + $0x8] sm:$0xf0] }
  0x6f   :  { %1016 = vmatpush.bf16.msrb.mxu3 %v1946_v16  ;;  %v1842_v16 = vor.u32 %v2251_v21, %v1839_v22  ;;  %v1970_v15 = vor.u32 %v2283_v8, %v1967_v10 }
  0x70   :  { %978 = vmatpush.bf16.msrb.mxu0 %v1746_v37  ;;  %v2295_v37 = vld [vmem:[%s3433_s3 + $0x64] sm:$0xf] }
  0x71   :  { %991 = vmatpush.bf16.msrb.mxu1 %v1810_v38  ;;  %v2294_v38 = vld [vmem:[%s3433_s3 + $0x54] sm:$0xf0] }
  0x72   :  { %1004 = vmatpush.bf16.msrb.mxu2 %v1874_v39  ;;  %v2293_v39 = vld [vmem:[%s3433_s3 + $0x54] sm:$0xf] }
  0x73   :  { %1017 = vmatpush.bf16.msrb.mxu3 %v1938_v43  ;;  %v2292_v43 = vld [vmem:[%s3433_s3 + $0x44] sm:$0xf0]  ;;  %v2010_v44 = vor.u32 %v2293_v39, %v2007_v41  ;;  %v2079_v41 = vld [vmem:[%s3433_s3 + $0xe8] sm:$0xf0] }
  0x74   :  { %979 = vmatpush.bf16.msrb.mxu0 %v1738_v49  ;;  %v1998_v47 = vor.u32 %v2292_v43, %v1997_v42  ;;  %v1989_v49 = vld [vmem:[%s3433_s3 + $0x30] sm:$0xf] }
  0x75   :  { %992 = vmatpush.bf16.msrb.mxu1 %v1802_v50  ;;  %v2290_v50 = vld [vmem:[%s3433_s3 + $0x34] sm:$0xf0] }
  0x76   :  { %1005 = vmatpush.bf16.msrb.mxu2 %v1866_v51  ;;  %v2289_v51 = vld [vmem:[%s3433_s3 + $0x34] sm:$0xf]  ;;  %v1990_v52 = vor.u32 %v2290_v50, %v1989_v49 }
  0x77   :  { %1018 = vmatpush.bf16.msrb.mxu3 %v1930_v55  ;;  %v1994_v54 = vor.u32 %v2289_v51, %v1991_v53  ;;  %v1981_v55 = vld [vmem:[%s3433_s3 + $0x20] sm:$0xf]  ;;  %v2309_v49 = vld [vmem:[%s3433_s3 + $0xd4] sm:$0xf] }
  0x78   :  { %980 = vmatpush.bf16.msrb.mxu0 %v1730_v61  ;;  %v1982_v58 = vor.u32 %v2288_v56, %v1981_v55  ;;  %v1973_v61 = vld [vmem:[%s3433_s3 + $0x10] sm:$0xf]  ;;  %v2308_v55 = vld [vmem:[%s3433_s3 + $0xc4] sm:$0xf0] }
  0x79   :  { %993 = vmatpush.bf16.msrb.mxu1 %v1794_v62  ;;  %v2286_v62 = vld [vmem:[%s3433_s3 + $0x14] sm:$0xf0] }
  0x7a   :  { %1006 = vmatpush.bf16.msrb.mxu2 %v1858_v63  ;;  %v2285_v63 = vld [vmem:[%s3433_s3 + $0x14] sm:$0xf]  ;;  %v1974_v0 = vor.u32 %v2286_v62, %v1973_v61  ;;  %v2053_v61 = vld [vmem:[%s3433_s3 + $0xb0] sm:$0xf]  ;;  %v2306_v62 = vld [vmem:[%s3433_s3 + $0xb4] sm:$0xf0] }
  0x7b   :  { %1019 = vmatpush.bf16.msrb.mxu3 %v1922_v3  ;;  %v1978_v3 = vor.u32 %v2285_v63, %v1975_v1  ;;  %v2305_v63 = vld [vmem:[%s3433_s3 + $0xb4] sm:$0xf]  ;;  %v2055_v1 = vld [vmem:[%s3433_s3 + $0xb8] sm:$0xf0] }
  0x7c   :  { %981 = vmatpush.bf16.msrb.mxu0 %v1722_v9  ;;  %v1966_v9 = vor.u32 %v2284_v7, %v1965_v6  ;;  %v2303_v6 = vld [vmem:[%s3433_s3 + $0xa4] sm:$0xf] }
  0x7d   :  { %994 = vmatpush.bf16.msrb.mxu1 %v1786_v11  ;;  %v157_v11 = vperm.slane %v3262_v4, 0 }
  0x7e   :  { %1007 = vmatpush.bf16.msrb.mxu2 %v1850_v12 }
  0x7f   :  { %1020 = vmatpush.bf16.msrb.mxu3 %v1914_v20 }
  0x80   :  { %982 = vmatpush.bf16.msrb.mxu0 %v1714_v26 }
  0x81   :  { %995 = vmatpush.bf16.msrb.mxu1 %v1778_v14 }
  0x82   :  { %1008 = vmatpush.bf16.msrb.mxu2 %v1842_v16 }
  0x83   :  { %1021 = vmatpush.bf16.msrb.mxu3 %v1906_v17  ;;  %983 = vmatmul.bf16.vlgmr.msrb.gmra.mxu0 %v2821_v30  ;;  %v2014_v30 = vor.u32 %v2296_v36, %v2013_v35  ;;  %v2314_v35 = vld [vmem:[%s3433_s3 + $0xf4] sm:$0xf0]  ;;  %v2313_v36 = vld [vmem:[%s3433_s3 + $0xf4] sm:$0xf] }
  0x84   :  { %1229 = vmatpush.bf16.msra.mxu0 %v2022_v32  ;;  %996 = vmatmul.bf16.vlgmr.msrb.gmra.mxu1 %v2825_v33  ;;  %v2015_v33 = vld [vmem:[%s3433_s3 + $0x68] sm:$0xf0] }
  0x85   :  { %1009 = vmatmul.bf16.vlgmr.msrb.gmra.mxu2 %v2813_v27  ;;  %v2018_v27 = vor.u32 %v2295_v37, %v2015_v33  ;;  %v2077_v33 = vld [vmem:[%s3433_s3 + $0xe0] sm:$0xf] }
  0x86   :  { %1255 = vmatpush.bf16.msra.mxu2 %v2026_v34  ;;  %1022 = vmatmul.bf16.vlgmr.msrb.gmra.mxu3 %v2823_v31  ;;  %v2005_v31 = vld [vmem:[%s3433_s3 + $0x50] sm:$0xf] }
  0x87   :  { %v2006_v40 = vor.u32 %v2294_v38, %v2005_v31  ;;  %v2085_v34 = vld [vmem:[%s3433_s3 + $0xf0] sm:$0xf] }
  0x88   :  { %1230 = vmatpush.bf16.msra.mxu0 %v2014_v30  ;;  %v2086_v37 = vor.u32 %v2314_v35, %v2085_v34  ;;  %v2087_v30 = vld [vmem:[%s3433_s3 + $0xf8] sm:$0xf0] }
  0x89   :  { %v2090_v39 = vor.u32 %v2313_v36, %v2087_v30 }
  0x8a   :  { %1256 = vmatpush.bf16.msra.mxu2 %v2018_v27  ;;  %v2312_v27 = vld [vmem:[%s3433_s3 + $0xe4] sm:$0xf0]  ;;  %1242 = vmatpush.bf16.msra.mxu1 %v2086_v37 }
  0x8b   :  { %v2078_v43 = vor.u32 %v2312_v27, %v2077_v33  ;;  %1268 = vmatpush.bf16.msra.mxu3 %v2090_v39 }
  0x8c   :  { %1231 = vmatpush.bf16.msra.mxu0 %v2006_v40  ;;  %v2311_v40 = vld [vmem:[%s3433_s3 + $0xe4] sm:$0xf] }
  0x8d   :  { %v2082_v45 = vor.u32 %v2311_v40, %v2079_v41 }
  0x8e   :  { %1257 = vmatpush.bf16.msra.mxu2 %v2010_v44  ;;  %1243 = vmatpush.bf16.msra.mxu1 %v2078_v43 }
  0x8f   :  { %1269 = vmatpush.bf16.msra.mxu3 %v2082_v45 }
  0x90   :  { %1232 = vmatpush.bf16.msra.mxu0 %v1998_v47  ;;  %v2069_v47 = vld [vmem:[%s3433_s3 + $0xd0] sm:$0xf] }
  0x92   :  { %1258 = vmatpush.bf16.msra.mxu2 %v2002_v48  ;;  %v2310_v48 = vld [vmem:[%s3433_s3 + $0xd4] sm:$0xf0] }
  0x93   :  { %v2070_v51 = vor.u32 %v2310_v48, %v2069_v47  ;;  %v2322_v48 = vld [vmem:[%s3436_s5 + $0x38] sm:$0xff] }
  0x94   :  { %1233 = vmatpush.bf16.msra.mxu0 %v1990_v52  ;;  %v2071_v52 = vld [vmem:[%s3433_s3 + $0xd8] sm:$0xf0] }
  0x95   :  { %v2074_v56 = vor.u32 %v2309_v49, %v2071_v52  ;;  %1244 = vmatpush.bf16.msra.mxu1 %v2070_v51  ;;  %v2330_v49 = vld [vmem:[%s3436_s5 + $0x78] sm:$0xff]  ;;  %v2329_v51 = vld [vmem:[%s3436_s5 + $0x70] sm:$0xff]  ;;  %v2320_v52 = vld [vmem:[%s3436_s5 + $0x28] sm:$0xff] }
  0x96   :  { %1259 = vmatpush.bf16.msra.mxu2 %v1994_v54  ;;  %v2061_v54 = vld [vmem:[%s3433_s3 + $0xc0] sm:$0xf] }
  0x97   :  { %v2062_v59 = vor.u32 %v2308_v55, %v2061_v54  ;;  %1270 = vmatpush.bf16.msra.mxu3 %v2074_v56  ;;  %v2319_v54 = vld [vmem:[%s3436_s5 + $0x20] sm:$0xff]  ;;  %v2318_v56 = vld [vmem:[%s3436_s5 + $0x18] sm:$0xff] }
  0x98   :  { %1234 = vmatpush.bf16.msra.mxu0 %v1982_v58  ;;  %v2063_v58 = vld [vmem:[%s3433_s3 + $0xc8] sm:$0xf0]  ;;  %v2327_v55 = vld [vmem:[%s3436_s5 + $0x60] sm:$0xff] }
  0x99   :  { %1245 = vmatpush.bf16.msra.mxu1 %v2062_v59  ;;  %v2317_v59 = vld [vmem:[%s3436_s5 + $0x10] sm:$0xff] }
  0x9a   :  { %1260 = vmatpush.bf16.msra.mxu2 %v1986_v60  ;;  %v2066_v60 = vor.u32 %v2307_v57, %v2063_v58  ;;  %v2326_v57 = vld [vmem:[%s3436_s5 + $0x58] sm:$0xff] }
  0x9c   :  { %1235 = vmatpush.bf16.msra.mxu0 %v1974_v0  ;;  %1271 = vmatpush.bf16.msra.mxu3 %v2066_v60  ;;  %v2054_v0 = vor.u32 %v2306_v62, %v2053_v61 }
  0x9e   :  { %1261 = vmatpush.bf16.msra.mxu2 %v1978_v3  ;;  %1246 = vmatpush.bf16.msra.mxu1 %v2054_v0  ;;  %v2045_v3 = vld [vmem:[%s3433_s3 + $0xa0] sm:$0xf]  ;;  %v2325_v0 = vld [vmem:[%s3436_s5 + $0x50] sm:$0xff] }
  0xa0   :  { %1236 = vmatpush.bf16.msra.mxu0 %v1966_v9  ;;  %v2047_v9 = vld [vmem:[%s3433_s3 + $0xa8] sm:$0xf0] }
  0xa2   :  { %1262 = vmatpush.bf16.msra.mxu2 %v1970_v15  ;;  %v2302_v15 = vld [vmem:[%s3433_s3 + $0x94] sm:$0xf0] }
  0xa3   :  { %v828_v2 = vpop.f32.mrf.mxu0 }
  0xa4   :  { %v841_v5 = vpop.f32.mrf.mxu1  ;;  %v829_v19 = vadd.f32 %v828_v2, %v157_v11  ;;  %v2058_v2 = vor.u32 %v2305_v63, %v2055_v1  ;;  %v2050_v11 = vor.u32 %v2303_v6, %v2047_v9  ;;  %1417 = vmatpush.bf16.msrb.mxu0 %v2322_v48  ;;  %v2316_v63 = vld [vmem:[%s3436_s5 + $0x8] sm:$0xff]  ;;  %v2315_v1 = vld [vmem:[%s3436_s5] sm:$0xff] }
  0xa6   :  { %v842_v22 = vadd.f32 %v841_v5, %v829_v19  ;;  %1272 = vmatpush.bf16.msra.mxu3 %v2058_v2  ;;  %v2304_v5 = vld [vmem:[%s3433_s3 + $0xa4] sm:$0xf0] }
  0xa7   :  { %v2046_v8 = vor.u32 %v2304_v5, %v2045_v3  ;;  %v2324_v2 = vld [vmem:[%s3436_s5 + $0x48] sm:$0xff]  ;;  %v2323_v3 = vld [vmem:[%s3436_s5 + $0x40] sm:$0xff] }
  0xa8   :  { %v854_v12 = vpop.f32.mrf.mxu2  ;;  %v1063_v5 = vld [vmem:[%s3437_s4] sm:$0x3] }
  0xa9   :  { %v855_v24 = vadd.f32 %v854_v12, %v842_v22  ;;  %1247 = vmatpush.bf16.msra.mxu1 %v2046_v8  ;;  %v2037_v12 = vld [vmem:[%s3433_s3 + $0x90] sm:$0xf]  ;;  %v1065_v6 = vperm.slane %v1063_v5, 0  ;;  %v1066_v9 = vperm.slane %v1063_v5, 1 }
  0xaa   :  { %1273 = vmatpush.bf16.msra.mxu3 %v2050_v11  ;;  %v2038_v19 = vor.u32 %v2302_v15, %v2037_v12 }
  0xab   :  { %v867_v18 = vpop.f32.mrf.mxu3  ;;  %v830_v20 = vpop.f32.mrf.mxu0 }
  0xac   :  { %v843_v21 = vpop.f32.mrf.mxu1  ;;  %v868_v25 = vadd.f32 %v867_v18, %v855_v24  ;;  %v2301_v18 = vld [vmem:[%s3433_s3 + $0x94] sm:$0xf]  ;;  %v2039_v20 = vld [vmem:[%s3433_s3 + $0x98] sm:$0xf0]  ;;  %v2300_v24 = vld [vmem:[%s3433_s3 + $0x84] sm:$0xf0] }
  0xad   :  { %v2042_v22 = vor.u32 %v2301_v18, %v2039_v20  ;;  %1248 = vmatpush.bf16.msra.mxu1 %v2038_v19 }
  0xaf   :  { %1274 = vmatpush.bf16.msra.mxu3 %v2042_v22 }
  0xb0   :  { %v856_v23 = vpop.f32.mrf.mxu2 }
  0xb3   :  { %v869_v13 = vpop.f32.mrf.mxu3 }
  0xb4   :  { %v2029_v13 = vld [vmem:[%s3433_s3 + $0x80] sm:$0xf] }
  0xc0   :  { %v880_v26 = vpop.f32.mrf.mxu0 }
  0xc1   :  { %v881_v28 = vadd.f32 %v880_v26, %v868_v25  ;;  %v893_v29 = vpop.f32.mrf.mxu1  ;;  %v2299_v25 = vld [vmem:[%s3433_s3 + $0x84] sm:$0xf] }
  0xc3   :  { %v894_v14 = vadd.f32 %v893_v29, %v881_v28  ;;  %v2030_v28 = vor.u32 %v2300_v24, %v2029_v13  ;;  %v2031_v29 = vld [vmem:[%s3433_s3 + $0x88] sm:$0xf0]  ;;  %v2331_v24 = vld [vmem:[%s3435_s6] ss:$0 sm:$0xff] }
  0xc5   :  { %1249 = vmatpush.bf16.msra.mxu1 %v2030_v28 }
  0xc8   :  { %v906_v16 = vpop.f32.mrf.mxu2  ;;  %v882_v38 = vpop.f32.mrf.mxu0 }
  0xc9   :  { %v907_v17 = vadd.f32 %v906_v16, %v894_v14  ;;  %v919_v32 = vpop.f32.mrf.mxu3  ;;  %v895_v42 = vpop.f32.mrf.mxu1  ;;  %v2034_v16 = vor.u32 %v2299_v25, %v2031_v29  ;;  %1430 = vmatpush.bf16.msrb.mxu1 %v2330_v49 }
  0xcb   :  { %v920_v31 = vadd.f32 %v919_v32, %v907_v17  ;;  %1275 = vmatpush.bf16.msra.mxu3 %v2034_v16  ;;  %v158_v17 = vperm.slane %v3262_v4, 1 }
  0xcd   :  { %v1027_v44 = vmax.f32 %v920_v31, 0.0  ;;  %1431 = vmatpush.bf16.msrb.mxu1 %v2329_v51 }
  0xcf   :  { %v1029_v46 = vpack.c.bf16 %v1027_v44, %v1027_v44 }
  0xd0   :  { %v908_v50 = vpop.f32.mrf.mxu2 }
  0xd1   :  { %1237 = vmatmul.bf16.vlgmr.msra.gmra.mxu0 %v1029_v46  ;;  %1263 = vmatmul.bf16.vlgmr.msra.gmra.mxu2 %v1029_v46  ;;  %v921_v53 = vpop.f32.mrf.mxu3  ;;  %v2321_v50 = vld [vmem:[%s3436_s5 + $0x30] sm:$0xff] }
  0xd2   :  { %1418 = vmatpush.bf16.msrb.mxu0 %v2321_v50  ;;  %v2328_v53 = vld [vmem:[%s3436_s5 + $0x68] sm:$0xff] }
  0xd3   :  { %1432 = vmatpush.bf16.msrb.mxu1 %v2328_v53 }
  0xd6   :  { %1419 = vmatpush.bf16.msrb.mxu0 %v2320_v52 }
  0xd7   :  { %1433 = vmatpush.bf16.msrb.mxu1 %v2327_v55 }
  0xda   :  { %1420 = vmatpush.bf16.msrb.mxu0 %v2319_v54 }
  0xdb   :  { %1434 = vmatpush.bf16.msrb.mxu1 %v2326_v57 }
  0xde   :  { %1421 = vmatpush.bf16.msrb.mxu0 %v2318_v56 }
  0xdf   :  { %1435 = vmatpush.bf16.msrb.mxu1 %v2325_v0 }
  0xe0   :  { %v932_v7 = vpop.f32.mrf.mxu0 }
  0xe1   :  { %v945_v10 = vpop.f32.mrf.mxu1  ;;  %v933_v35 = vadd.f32 %v932_v7, %v158_v17 }
  0xe2   :  { %1422 = vmatpush.bf16.msrb.mxu0 %v2317_v59 }
  0xe3   :  { %v946_v36 = vadd.f32 %v945_v10, %v933_v35  ;;  %1436 = vmatpush.bf16.msrb.mxu1 %v2324_v2 }
  0xe6   :  { %1423 = vmatpush.bf16.msrb.mxu0 %v2316_v63 }
  0xe7   :  { %1437 = vmatpush.bf16.msrb.mxu1 %v2323_v3 }
  0xe8   :  { %v958_v21 = vpop.f32.mrf.mxu2  ;;  %v934_v26 = vpop.f32.mrf.mxu0 }
  0xe9   :  { %v971_v23 = vpop.f32.mrf.mxu3  ;;  %v947_v14 = vpop.f32.mrf.mxu1  ;;  %v959_v37 = vadd.f32 %v958_v21, %v946_v36 }
  0xea   :  { %1424 = vmatpush.bf16.msrb.mxu0 %v2315_v1 }
  0xeb   :  { %v972_v30 = vadd.f32 %v971_v23, %v959_v37 }
  0xf0   :  { %v960_v32 = vpop.f32.mrf.mxu2 }
  0xf1   :  { %v973_v34 = vpop.f32.mrf.mxu3 }
 0x100   :  { %v984_v33 = vpop.f32.mrf.mxu0 }
 0x101   :  { %v997_v27 = vpop.f32.mrf.mxu1  ;;  %v985_v31 = vadd.f32 %v984_v33, %v972_v30 }
 0x103   :  { %v998_v38 = vadd.f32 %v997_v27, %v985_v31 }
 0x108   :  { %v1010_v39 = vpop.f32.mrf.mxu2  ;;  %v986_v42 = vpop.f32.mrf.mxu0 }
 0x109   :  { %v1011_v40 = vadd.f32 %v1010_v39, %v998_v38  ;;  %v1023_v41 = vpop.f32.mrf.mxu3  ;;  %v999_v43 = vpop.f32.mrf.mxu1 }
 0x10b   :  { %v1024_v44 = vadd.f32 %v1023_v41, %v1011_v40 }
 0x10d   :  { %v1028_v45 = vmax.f32 %v1024_v44, 0.0 }
 0x10f   :  { %v1030_v46 = vpack.c.bf16 %v1028_v45, %v1028_v45 }
 0x110   :  { %v1012_v47 = vpop.f32.mrf.mxu2 }
 0x111   :  { %v1025_v4 = vpop.f32.mrf.mxu3  ;;  %1250 = vmatmul.bf16.vlgmr.msra.gmra.mxu1 %v1030_v46  ;;  %1276 = vmatmul.bf16.vlgmr.msra.gmra.mxu3 %v1030_v46 }
 0x14e   :  { %v1238_v58 = vpop.f32.mrf.mxu0 }
 0x14f   :  { %v1239_v7 = vadd.f32 %v1238_v58, %v1065_v6 }
 0x154   :  { %v1264_v60 = vpop.f32.mrf.mxu2 }
 0x155   :  { %v1265_v12 = vadd.f32 %v1264_v60, %v1066_v9 }
 0x156   :  { %v1240_v61 = vpop.f32.mrf.mxu0 }
 0x15c   :  { %v1266_v62 = vpop.f32.mrf.mxu2 }
 0x18e   :  { %v1251_v8 = vpop.f32.mrf.mxu1 }
 0x18f   :  { %v1252_v10 = vadd.f32 %v1251_v8, %v1239_v7 }
 0x191   :  { %v1281_v11 = vmax.f32 %v1252_v10, 0.0 }
 0x193   :  { %v1283_v15 = vpack.c.bf16 %v1281_v11, %v1281_v11 }
 0x194   :  { %v1277_v18 = vpop.f32.mrf.mxu3 }
 0x195   :  { %v1278_v19 = vadd.f32 %v1277_v18, %v1265_v12  ;;  %1425 = vmatmul.bf16.vlgmr.msrb.gmra.mxu0 %v1283_v15 }
 0x196   :  { %v1253_v20 = vpop.f32.mrf.mxu1 }
 0x197   :  { %v1282_v21 = vmax.f32 %v1278_v19, 0.0 }
 0x199   :  { %v1284_v22 = vpack.c.bf16 %v1282_v21, %v1282_v21 }
 0x19b   :  { %1438 = vmatmul.bf16.vlgmr.msrb.gmra.mxu1 %v1284_v22 }
 0x19c   :  { %v1279_v23 = vpop.f32.mrf.mxu3 }
 0x212   :  { %v1426_v13 = vpop.f32.mrf.mxu0 }
 0x213   :  { %v1427_v25 = vadd.f32 %v2331_v24, %v1426_v13 }
 0x218   :  { %v1439_v26 = vpop.f32.mrf.mxu1 }
 0x219   :  { %v1440_v28 = vadd.f32 %v1439_v26, %v1427_v25 }
 0x21a   :  { %v1428_v29 = vpop.f32.mrf.mxu0 }
 0x21b   :  { %v1443_v14 = vpack.c.bf16 %v1440_v28, %v1440_v28 }
 0x21d   :  { %v1444_v16 = vunpack.c.l.bf16 %v1443_v14 }
 0x21f   :  { %v1445_v17 = vmul.f32 0.01, %v1444_v16 }
 0x220   :  { %v1441_v32 = vpop.f32.mrf.mxu1 }
 0x221   :  { %1446 = vst [vmem:[%s3438_s7] sm:$0x3] %v1445_v17 }

</bundles_post_ra>
